<compile_context>
chip_gen: v7x
topology: tpu7x:2x2x1
jax: 0.10.0
libtpu: 0.0.40
codegen_flags: <defaults>
</compile_context>

<pallas_src>
import inspect

import jax
import jax.numpy as jnp
from jax import lax
from jax.experimental import pallas as pl
from jax.experimental.pallas import tpu as pltpu


def _round_up(x, m):
    return (x + m - 1) // m * m


def _bf16_snap(a):
    # Snap to bf16-representable f32 so the bf16-MXU kernel and the f32 reference share
    # identical parameters; the remaining difference is the stage-1 -> stage-2 requant.
    return a.astype(jnp.bfloat16).astype(jnp.float32)


# Tap order shared by the kernel and the host weight builder.
_TAPS_3X3 = tuple((dy, dx) for dy in (-1, 0, 1) for dx in (-1, 0, 1) if (dy, dx) != (0, 0))
_TAPS_4X1 = (-1, 1, 2)            # (4,1) 'same' conv -> H taps {-1,0,1,2}; dy=0 rides on block 0
_N_BLOCKS = 1 + len(_TAPS_3X3) + len(_TAPS_4X1) + 1   # x | 3x3 taps | (4,1) taps | maxpool3x3(x)

try:
    _HAS_BUFFERED = hasattr(pl, "Buffered") and (
        "pipeline_mode" in inspect.signature(pl.BlockSpec).parameters)
except (ValueError, TypeError):          # pragma: no cover - very old/odd JAX
    _HAS_BUFFERED = False


def _invariant_spec(shape):
    """BlockSpec for a grid-invariant operand: constant index_map (no re-DMA across steps);
    single-buffered when supported (halves its VMEM footprint; wt2/sel dominate at prod o_ch)."""
    index_map = lambda b: (0,) * len(shape)
    if _HAS_BUFFERED:
        return pl.BlockSpec(shape, index_map, pipeline_mode=pl.Buffered(1))
    return pl.BlockSpec(shape, index_map)


def _pick_block_n(n, hw, target_lanes=2048):
    """Largest divisor of n with block_n*hw <= target_lanes, keeping >= 2 grid steps when
    possible so dimension_semantics=("parallel",) actually feeds both v7x TensorCores."""
    divs = [d for d in range(1, n + 1) if n % d == 0]
    fit = [d for d in divs if d * hw <= max(target_lanes, hw)] or [1]
    multi = [d for d in fit if n // d >= 2]
    return max(multi) if multi else max(fit)


def _build_stage_weights(sp, *, in_ch, in_ch_pad, o_ch, bn_scale, bn_shift, compute_dtype):
    """Fused per-tap weights (13, o_ch, in_ch_pad) and additive shift (o_ch, 1).

    Block order matches the kernel's taps.  Conv biases + eval-mode BatchNorm are folded in.
    Weights are emitted pre-laid-out as the MXU LHS (o_ch rows, contraction on lanes) in
    `compute_dtype`; the shift stays f32 (added after f32 accumulation).
    """
    o8, o4, o2 = o_ch // 8, o_ch // 4, o_ch // 2
    c1, c2, c3 = o8, o8 + o2, o8 + o2 + o4
    w = jnp.zeros((_N_BLOCKS, o_ch, in_ch_pad), jnp.float32)

    def put(wc, blk, row0, sub):                     # sub: (n_out, in_ch)
        return wc.at[blk, row0:row0 + sub.shape[0], :in_ch].set(sub)

    w1a = sp["w1a"][:, :, 0, 0]                      # (o8, ic)
    w1b = sp["w1b"][:, :, 0, 0]
    w3, w41 = sp["w3"], sp["w41"]                    # (o2, ic, 3, 3) / (o4, ic, 4, 1)

    # block 0: unshifted x carries the 1x1 branch, the 3x3 centre tap and the (4,1) dy=0 tap
    w = put(w, 0, 0, w1a)
    w = put(w, 0, c1, w3[:, :, 1, 1])
    w = put(w, 0, c2, w41[:, :, 1, 0])
    blk = 1
    for dy, dx in _TAPS_3X3:
        w = put(w, blk, c1, w3[:, :, dy + 1, dx + 1])
        blk += 1
    for dy in _TAPS_4X1:
        w = put(w, blk, c2, w41[:, :, dy + 1, 0])
        blk += 1
    w = put(w, blk, c3, w1b)                         # maxpool3x3 -> second 1x1 branch

    bias = jnp.concatenate([sp["b1a"], sp["b3"], sp["b41"], sp["b1b"]])
    w = w * bn_scale[None, :, None]                                  # fold BN scale
    sh = (bias * bn_scale + bn_shift)[:, None].astype(jnp.float32)   # (o_ch, 1)
    return w.astype(compute_dtype), sh


def doub_inc_forward(x_nchw, p1, p2, bn_scale, bn_shift, *, o_ch, act_type, is_act,
                     block_n=None, compute_dtype=jnp.bfloat16):
    """Pallas forward for Doub_Inc (inference mode). Returns NCHW output."""
    N, i_ch, H, W = x_nchw.shape
    assert o_ch % 8 == 0
    o2 = o_ch // 2
    c_act = o2 if act_type == "glu" else o_ch
    if is_act == 1:
        assert H % 2 == 0 and W % 2 == 0

    if block_n is None:
        block_n = _pick_block_n(N, H * W)
    assert N % block_n == 0
    grid_len = N // block_n
    Mb = block_n * H * W                       # flat (image, h, w) lanes per grid step
    assert Mb % 128 == 0, "block_n*H*W must be a multiple of 128 (lane-dense blocks)"

    # bf16 packs 16 rows per vreg -> round the stage-1 channel block up to 16 sublanes
    ch_align = 16 if compute_dtype == jnp.bfloat16 else 8
    ch1p = _round_up(i_ch, ch_align)

    wt1, sh1 = _build_stage_weights(p1, in_ch=i_ch, in_ch_pad=ch1p, o_ch=o_ch,
                                    bn_scale=bn_scale, bn_shift=bn_shift,
                                    compute_dtype=compute_dtype)
    wt2, sh2 = _build_stage_weights(p2, in_ch=o_ch, in_ch_pad=o_ch, o_ch=o_ch,
                                    bn_scale=bn_scale, bn_shift=bn_shift,
                                    compute_dtype=compute_dtype)

    # channels-on-sublanes / flat (n, h, w)-on-lanes layout
    x_flat = jnp.transpose(x_nchw, (1, 0, 2, 3)).reshape(i_ch, N * H * W)
    x_flat = jnp.pad(x_flat, ((0, ch1p - i_ch), (0, 0)))

    # per-lane (h, w) coordinates; periodic over images, so one (1, Mb) block serves all steps
    pos = jnp.arange(Mb, dtype=jnp.int32)[None, :]
    hh_arr = (pos // W) % H
    ww_arr = pos % W

    if is_act == 1:
        Ho, Wo = H // 2, W // 2
        Mo = block_n * Ho * Wo
        # 0/1 selection matrix: compacts the even-(h, w) lanes (each 2x2 window's max) into
        # a lane-dense (c_act, Mo) output on the MXU -> 4x smaller writeback, no host gather.
        q = jnp.arange(Mo)
        n_loc, rem = q // (Ho * Wo), q % (Ho * Wo)
        src = n_loc * H * W + (rem // Wo) * 2 * W + (rem % Wo) * 2
        sel = jnp.zeros((Mb, Mo), jnp.float32).at[src, q].set(1.0)
    else:
        Mo = Mb
        sel = None

    neg_inf = float("-inf")

    def kernel(*refs):
        if is_act == 1:
            x_ref, hh_ref, ww_ref, wt1_ref, sh1_ref, wt2_ref, sh2_ref, sel_ref, o_ref = refs
        else:
            x_ref, hh_ref, ww_ref, wt1_ref, sh1_ref, wt2_ref, sh2_ref, o_ref = refs
            sel_ref = None

        hh = hh_ref[...]
        ww = ww_ref[...]

        # (dy, dx) boundary masks: computed once, reused by both stages and the 2x2 pool.
        def make_mask(dy, dx):
            conds = []
            if dy > 0:
                conds.append(hh <= H - 1 - dy)
            if dy < 0:
                conds.append(hh >= -dy)
            if dx > 0:
                conds.append(ww <= W - 1 - dx)
            if dx < 0:
                conds.append(ww >= -dx)
            m = conds[0]
            for c in conds[1:]:
                m = jnp.logical_and(m, c)
            return m

        offs = sorted(set(_TAPS_3X3) | {(dy, 0) for dy in _TAPS_4X1} | {(0, 1), (1, 0), (1, 1)})
        masks = {od: make_mask(*od) for od in offs}

        def shift(v, dy, dx, fill):
            # tap[c, i] == v[c, i + dy*W + dx] when (h+dy, w+dx) stays inside its image,
            # else `fill`.  pltpu.roll keeps the shift on the XLU; circular wrap-around only
            # lands on lanes the (dy, dx) mask already invalidates.
            d = dy * W + dx
            t = v if d == 0 else pltpu.roll(v, shift=(-d) % Mb, axis=1)
            if dy == 0 and dx == 0:
                return t
            return jnp.where(masks[(dy, dx)], t, fill)

        def stage(xf, wt_ref, sh_ref):
            # separable 3x3 / stride-1 / pad-1 (-inf) maxpool: 4 rolls + 4 maxes, all f32 VPU
            rmax = jnp.maximum(xf, jnp.maximum(shift(xf, 0, -1, neg_inf),
                                               shift(xf, 0, 1, neg_inf)))
            mp = jnp.maximum(rmax, jnp.maximum(shift(rmax, -1, 0, neg_inf),
                                               shift(rmax, 1, 0, neg_inf)))
            # 13 per-tap MXU matmuls accumulated in f32 (no concat slab); taps are cast to
            # bf16 only at the dot.  (For tiny stage-1 in_ch a VMEM scratch slab + single
            # matmul would give longer MXU cadence; per-tap keeps peak live VMEM minimal.)
            acc = jnp.dot(wt_ref[0], xf.astype(compute_dtype),
                          preferred_element_type=jnp.float32)
            blk = 1
            for dy, dx in _TAPS_3X3:
                acc = acc + jnp.dot(wt_ref[blk], shift(xf, dy, dx, 0.0).astype(compute_dtype),
                                    preferred_element_type=jnp.float32)
                blk += 1
            for dy in _TAPS_4X1:
                acc = acc + jnp.dot(wt_ref[blk], shift(xf, dy, 0, 0.0).astype(compute_dtype),
                                    preferred_element_type=jnp.float32)
                blk += 1
            acc = acc + jnp.dot(wt_ref[blk], mp.astype(compute_dtype),
                                preferred_element_type=jnp.float32)
            return acc + sh_ref[...]          # conv bias + eval-mode BN folded into the shift

        y = stage(x_ref[...], wt1_ref, sh1_ref)      # (o_ch, Mb) f32
        y = stage(y, wt2_ref, sh2_ref)               # (o_ch, Mb) f32

        if act_type == "glu":
            y = y[0:o2, :] * jax.nn.sigmoid(y[o2:o_ch, :])
        elif act_type == "leak_relu":
            y = jnp.where(y > 0, y, 0.1 * y)
        else:
            y = jnp.maximum(y, 0.0)

        if is_act == 1:
            # 2x2/stride-2 maxpool: even-(h, w) lanes end up holding their window max;
            # the f32 selection matmul compacts exactly those lanes into a lane-dense block.
            # TODO(synk): dropout after the pool is eval-mode identity (no train-mode RNG).
            y = jnp.maximum(jnp.maximum(y, shift(y, 0, 1, neg_inf)),
                            jnp.maximum(shift(y, 1, 0, neg_inf), shift(y, 1, 1, neg_inf)))
            y = jnp.dot(y, sel_ref[...], preferred_element_type=jnp.float32)

        o_ref[...] = y.astype(o_ref.dtype)

    in_specs = [
        pl.BlockSpec((ch1p, Mb), lambda b: (0, b)),   # x: only operand pipelined over the grid
        _invariant_spec(hh_arr.shape),
        _invariant_spec(ww_arr.shape),
        _invariant_spec(wt1.shape),
        _invariant_spec(sh1.shape),
        _invariant_spec(wt2.shape),
        _invariant_spec(sh2.shape),
    ]
    args = [x_flat, hh_arr, ww_arr, wt1, sh1, wt2, sh2]
    if is_act == 1:
        in_specs.append(_invariant_spec(sel.shape))
        args.append(sel)

    # Rough per-step working set -> explicit VMEM limit (>= 32 MiB; capped at v7x's 64 MiB
    # physical.  v6e has 128 MiB physical and can be raised to ~96 MiB for larger block_n).
    mib = 1 << 20
    wsize = jnp.dtype(compute_dtype).itemsize
    work = (2 * ch1p * Mb * 4 + 2 * c_act * Mo * 4
            + wt1.size * wsize + wt2.size * wsize
            + (sel.size * 4 if is_act == 1 else 0)
            + 6 * max(ch1p, o_ch) * Mb * 4)
    vmem_limit = int(min(64 * mib, max(32 * mib, 2 * work)))

    out_flat = pl.pallas_call(
        kernel,
        out_shape=jax.ShapeDtypeStruct((c_act, grid_len * Mo), jnp.float32),
        grid=(grid_len,),
        in_specs=in_specs,
        out_specs=pl.BlockSpec((c_act, Mo), lambda b: (0, b)),
        compiler_params=pltpu.CompilerParams(
            dimension_semantics=("parallel",),        # batch axis -> both v7x TensorCores
            vmem_limit_bytes=vmem_limit,
        ),
    )(*args)

    if is_act == 1:
        out = out_flat.reshape(c_act, N, H // 2, W // 2)
    else:
        out = out_flat.reshape(c_act, N, H, W)
    return jnp.transpose(out, (1, 0, 2, 3))           # back to NCHW


# ------------------------- parameter construction -------------------------

def init_params(key, i_ch, o_ch):
    o8, o4, o2 = o_ch // 8, o_ch // 4, o_ch // 2
    ks = jax.random.split(key, 16)

    def nrm(k, shape):
        return 0.1 * jax.random.normal(k, shape, dtype=jnp.float32)

    def stage_params(kk, ic):
        return dict(
            w1a=nrm(kk[0], (o8, ic, 1, 1)), b1a=nrm(kk[1], (o8,)),
            w3=nrm(kk[2], (o2, ic, 3, 3)),  b3=nrm(kk[3], (o2,)),
            w41=nrm(kk[4], (o4, ic, 4, 1)), b41=nrm(kk[5], (o4,)),
            w1b=nrm(kk[6], (o8, ic, 1, 1)), b1b=nrm(kk[7], (o8,)),
        )

    p1 = stage_params(ks[:8], i_ch)
    p2 = stage_params(ks[8:], o_ch)
    eps = 1e-5
    # BatchNorm2d defaults (weight=1, bias=0, running_mean=0, running_var=1), eval mode
    bn_scale = jnp.ones((o_ch,), jnp.float32) / jnp.sqrt(1.0 + eps)
    bn_shift = jnp.zeros((o_ch,), jnp.float32)
    return p1, p2, bn_scale, bn_shift


# ------------------------- plain-JAX reference (NCHW) -------------------------

def ref_forward(x, p1, p2, bn_scale, bn_shift, *, act_type, is_act):
    def conv(x, w, b, pad):
        y = lax.conv_general_dilated(x, w, (1, 1), pad,
                                     dimension_numbers=("NCHW", "OIHW", "NCHW"),
                                     precision=lax.Precision.HIGHEST)
        return y + b[None, :, None, None]

    def maxpool(x, win, strides, pad):
        return lax.reduce_window(x, -jnp.inf, lax.max,
                                 (1, 1) + win, (1, 1) + strides,
                                 ((0, 0), (0, 0)) + pad)

    def stage(x, sp):
        y1 = conv(x, sp["w1a"], sp["b1a"], ((0, 0), (0, 0)))
        y2 = conv(x, sp["w3"], sp["b3"], ((1, 1), (1, 1)))
        y3 = conv(x, sp["w41"], sp["b41"], ((1, 2), (0, 0)))        # torch 'same' for k=4
        y4 = conv(maxpool(x, (3, 3), (1, 1), ((1, 1), (1, 1))),
                  sp["w1b"], sp["b1b"], ((0, 0), (0, 0)))
        y = jnp.concatenate([y1, y2, y3, y4], axis=1)
        return y * bn_scale[None, :, None, None] + bn_shift[None, :, None, None]

    y = stage(stage(x, p1), p2)
    if act_type == "glu":
        a, b = jnp.split(y, 2, axis=1)
        y = a * jax.nn.sigmoid(b)
    elif act_type == "leak_relu":
        y = jnp.where(y > 0, y, 0.1 * y)
    else:
        y = jnp.maximum(y, 0.0)
    if is_act == 1:
        y = maxpool(y, (2, 2), (2, 2), ((0, 0), (0, 0)))
    return y


if __name__ == "__main__":
    N, i_ch, H, W = 8, 4, 16, 16
    o_ch = 16
    act_type, is_act, drop_rate = "glu", 1, 1   # drop_rate: eval-mode dropout == identity

    key = jax.random.PRNGKey(0)
    kx, kp = jax.random.split(key)
    x_nchw = jax.random.normal(kx, (N, i_ch, H, W), jnp.float32)
    p1, p2, bn_s, bn_h = init_params(kp, i_ch, o_ch)

    # Snap input + conv weights to bf16-representable values so the bf16-MXU kernel and the
    # HIGHEST-precision f32 reference share identical parameters (biases stay f32 in both).
    x_nchw = _bf16_snap(x_nchw)
    p1 = {k: (_bf16_snap(v) if k.startswith("w") else v) for k, v in p1.items()}
    p2 = {k: (_bf16_snap(v) if k.startswith("w") else v) for k, v in p2.items()}

    out = doub_inc_forward(x_nchw, p1, p2, bn_s, bn_h,
                           o_ch=o_ch, act_type=act_type, is_act=is_act)
    out = jax.block_until_ready(out)

    ref = ref_forward(x_nchw, p1, p2, bn_s, bn_h, act_type=act_type, is_act=is_act)
    assert out.shape == ref.shape, (out.shape, ref.shape)
    max_err = float(jnp.max(jnp.abs(out - ref)))
    # bf16 MXU inputs + f32 accumulation in-kernel vs HIGHEST-precision f32 reference
    if max_err < 3e-2:
        print("KERNEL_OK")
    else:
        print(f"MISMATCH max_err={max_err}")
</pallas_src>

<mosaic_0001>
module attributes {stable_mosaic.version = 11 : i64} {
  func.func @kernel(%arg0: i32, %arg1: memref<16x1024xf32, #tpu.memory_space<vmem>>, %arg2: memref<1x1024xi32, #tpu.memory_space<vmem>>, %arg3: memref<1x1024xi32, #tpu.memory_space<vmem>>, %arg4: memref<13x16x16xbf16, #tpu.memory_space<vmem>>, %arg5: memref<16x1xf32, #tpu.memory_space<vmem>>, %arg6: memref<13x16x16xbf16, #tpu.memory_space<vmem>>, %arg7: memref<16x1xf32, #tpu.memory_space<vmem>>, %arg8: memref<1024x256xf32, #tpu.memory_space<vmem>>, %arg9: memref<8x256xf32, #tpu.memory_space<vmem>>) attributes {dimension_semantics = [#tpu.dimension_semantics<parallel>], iteration_bounds = array<i64: 2>, scalar_prefetch = 0 : i64, scratch_operands = 0 : i64, tpu.core_type = #tpu.core_type<tc>, window_params = [{transform_indices = @transform_0, window_bounds = array<i64: 16, 1024>}, {pipeline_mode = #tpu.pipeline_mode<synchronous>, transform_indices = @transform_1, window_bounds = array<i64: 1, 1024>}, {pipeline_mode = #tpu.pipeline_mode<synchronous>, transform_indices = @transform_2, window_bounds = array<i64: 1, 1024>}, {pipeline_mode = #tpu.pipeline_mode<synchronous>, transform_indices = @transform_3, window_bounds = array<i64: 13, 16, 16>}, {pipeline_mode = #tpu.pipeline_mode<synchronous>, transform_indices = @transform_4, window_bounds = array<i64: 16, 1>}, {pipeline_mode = #tpu.pipeline_mode<synchronous>, transform_indices = @transform_5, window_bounds = array<i64: 13, 16, 16>}, {pipeline_mode = #tpu.pipeline_mode<synchronous>, transform_indices = @transform_6, window_bounds = array<i64: 16, 1>}, {pipeline_mode = #tpu.pipeline_mode<synchronous>, transform_indices = @transform_7, window_bounds = array<i64: 1024, 256>}, {transform_indices = @transform_8, window_bounds = array<i64: 8, 256>}]} {
    %c0 = arith.constant 0 : index
    %c0_0 = arith.constant 0 : index
    %0 = vector.load %arg2[%c0, %c0_0] : memref<1x1024xi32, #tpu.memory_space<vmem>>, vector<1x1024xi32>
    %c0_1 = arith.constant 0 : index
    %c0_2 = arith.constant 0 : index
    %1 = vector.load %arg3[%c0_1, %c0_2] : memref<1x1024xi32, #tpu.memory_space<vmem>>, vector<1x1024xi32>
    %c1_i32 = arith.constant 1 : i32
    %2 = vector.broadcast %c1_i32 : i32 to vector<1x1024xi32>
    %3 = arith.cmpi sge, %0, %2 : vector<1x1024xi32>
    %c1_i32_3 = arith.constant 1 : i32
    %4 = vector.broadcast %c1_i32_3 : i32 to vector<1x1024xi32>
    %5 = arith.cmpi sge, %1, %4 : vector<1x1024xi32>
    %6 = arith.andi %3, %5 : vector<1x1024xi1>
    %c1_i32_4 = arith.constant 1 : i32
    %7 = vector.broadcast %c1_i32_4 : i32 to vector<1x1024xi32>
    %8 = arith.cmpi sge, %0, %7 : vector<1x1024xi32>
    %c1_i32_5 = arith.constant 1 : i32
    %9 = vector.broadcast %c1_i32_5 : i32 to vector<1x1024xi32>
    %10 = arith.cmpi sge, %0, %9 : vector<1x1024xi32>
    %c14_i32 = arith.constant 14 : i32
    %11 = vector.broadcast %c14_i32 : i32 to vector<1x1024xi32>
    %12 = arith.cmpi sle, %1, %11 : vector<1x1024xi32>
    %13 = arith.andi %10, %12 : vector<1x1024xi1>
    %c1_i32_6 = arith.constant 1 : i32
    %14 = vector.broadcast %c1_i32_6 : i32 to vector<1x1024xi32>
    %15 = arith.cmpi sge, %1, %14 : vector<1x1024xi32>
    %c14_i32_7 = arith.constant 14 : i32
    %16 = vector.broadcast %c14_i32_7 : i32 to vector<1x1024xi32>
    %17 = arith.cmpi sle, %1, %16 : vector<1x1024xi32>
    %c14_i32_8 = arith.constant 14 : i32
    %18 = vector.broadcast %c14_i32_8 : i32 to vector<1x1024xi32>
    %19 = arith.cmpi sle, %0, %18 : vector<1x1024xi32>
    %c1_i32_9 = arith.constant 1 : i32
    %20 = vector.broadcast %c1_i32_9 : i32 to vector<1x1024xi32>
    %21 = arith.cmpi sge, %1, %20 : vector<1x1024xi32>
    %22 = arith.andi %19, %21 : vector<1x1024xi1>
    %c14_i32_10 = arith.constant 14 : i32
    %23 = vector.broadcast %c14_i32_10 : i32 to vector<1x1024xi32>
    %24 = arith.cmpi sle, %0, %23 : vector<1x1024xi32>
    %c14_i32_11 = arith.constant 14 : i32
    %25 = vector.broadcast %c14_i32_11 : i32 to vector<1x1024xi32>
    %26 = arith.cmpi sle, %0, %25 : vector<1x1024xi32>
    %c14_i32_12 = arith.constant 14 : i32
    %27 = vector.broadcast %c14_i32_12 : i32 to vector<1x1024xi32>
    %28 = arith.cmpi sle, %1, %27 : vector<1x1024xi32>
    %29 = arith.andi %26, %28 : vector<1x1024xi1>
    %c13_i32 = arith.constant 13 : i32
    %30 = vector.broadcast %c13_i32 : i32 to vector<1x1024xi32>
    %31 = arith.cmpi sle, %0, %30 : vector<1x1024xi32>
    %c0_13 = arith.constant 0 : index
    %c0_14 = arith.constant 0 : index
    %32 = vector.load %arg1[%c0_13, %c0_14] : memref<16x1024xf32, #tpu.memory_space<vmem>>, vector<16x1024xf32>
    %c1_i32_15 = arith.constant 1 : i32
    %33 = tpu.dynamic_rotate %32 by %c1_i32_15 dim 1 : vector<16x1024xf32>, i32 -> vector<16x1024xf32>
    %cst = arith.constant 0xFF800000 : f32
    %34 = vector.shape_cast %15 : vector<1x1024xi1> to vector<1x1024xi1>
    %35 = vector.broadcast %34 : vector<1x1024xi1> to vector<16x1024xi1>
    %36 = vector.broadcast %cst : f32 to vector<16x1024xf32>
    %37 = arith.select %35, %33, %36 : vector<16x1024xi1>, vector<16x1024xf32>
    %c1023_i32 = arith.constant 1023 : i32
    %38 = tpu.dynamic_rotate %32 by %c1023_i32 dim 1 : vector<16x1024xf32>, i32 -> vector<16x1024xf32>
    %cst_16 = arith.constant 0xFF800000 : f32
    %39 = vector.shape_cast %17 : vector<1x1024xi1> to vector<1x1024xi1>
    %40 = vector.broadcast %39 : vector<1x1024xi1> to vector<16x1024xi1>
    %41 = vector.broadcast %cst_16 : f32 to vector<16x1024xf32>
    %42 = arith.select %40, %38, %41 : vector<16x1024xi1>, vector<16x1024xf32>
    %43 = arith.maximumf %37, %42 : vector<16x1024xf32>
    %44 = arith.maximumf %32, %43 : vector<16x1024xf32>
    %c16_i32 = arith.constant 16 : i32
    %45 = tpu.dynamic_rotate %44 by %c16_i32 dim 1 : vector<16x1024xf32>, i32 -> vector<16x1024xf32>
    %cst_17 = arith.constant 0xFF800000 : f32
    %46 = vector.shape_cast %8 : vector<1x1024xi1> to vector<1x1024xi1>
    %47 = vector.broadcast %46 : vector<1x1024xi1> to vector<16x1024xi1>
    %48 = vector.broadcast %cst_17 : f32 to vector<16x1024xf32>
    %49 = arith.select %47, %45, %48 : vector<16x1024xi1>, vector<16x1024xf32>
    %c1008_i32 = arith.constant 1008 : i32
    %50 = tpu.dynamic_rotate %44 by %c1008_i32 dim 1 : vector<16x1024xf32>, i32 -> vector<16x1024xf32>
    %cst_18 = arith.constant 0xFF800000 : f32
    %51 = vector.shape_cast %24 : vector<1x1024xi1> to vector<1x1024xi1>
    %52 = vector.broadcast %51 : vector<1x1024xi1> to vector<16x1024xi1>
    %53 = vector.broadcast %cst_18 : f32 to vector<16x1024xf32>
    %54 = arith.select %52, %50, %53 : vector<16x1024xi1>, vector<16x1024xf32>
    %55 = arith.maximumf %49, %54 : vector<16x1024xf32>
    %56 = arith.maximumf %44, %55 : vector<16x1024xf32>
    %c0_19 = arith.constant 0 : index
    %c0_20 = arith.constant 0 : index
    %c0_21 = arith.constant 0 : index
    %57 = vector.load %arg4[%c0_19, %c0_20, %c0_21] : memref<13x16x16xbf16, #tpu.memory_space<vmem>>, vector<1x16x16xbf16>
    %58 = vector.shape_cast %57 : vector<1x16x16xbf16> to vector<16x16xbf16>
    %59 = arith.truncf %32 : vector<16x1024xf32> to vector<16x1024xbf16>
    %cst_22 = arith.constant dense<0.000000e+00> : vector<16x1024xf32>
    %60 = tpu.matmul %58, %59, %cst_22 {dimension_numbers = #tpu.dot_dimension_numbers<[1], [0], [0], [1], [0, 0, 1, 1], [], []>} : vector<16x16xbf16>, vector<16x1024xbf16>, vector<16x1024xf32> -> vector<16x1024xf32>
    %c1 = arith.constant 1 : index
    %c0_23 = arith.constant 0 : index
    %c0_24 = arith.constant 0 : index
    %61 = vector.load %arg4[%c1, %c0_23, %c0_24] : memref<13x16x16xbf16, #tpu.memory_space<vmem>>, vector<1x16x16xbf16>
    %62 = vector.shape_cast %61 : vector<1x16x16xbf16> to vector<16x16xbf16>
    %c17_i32 = arith.constant 17 : i32
    %63 = tpu.dynamic_rotate %32 by %c17_i32 dim 1 : vector<16x1024xf32>, i32 -> vector<16x1024xf32>
    %cst_25 = arith.constant 0.000000e+00 : f32
    %64 = vector.shape_cast %6 : vector<1x1024xi1> to vector<1x1024xi1>
    %65 = vector.broadcast %64 : vector<1x1024xi1> to vector<16x1024xi1>
    %66 = vector.broadcast %cst_25 : f32 to vector<16x1024xf32>
    %67 = arith.select %65, %63, %66 : vector<16x1024xi1>, vector<16x1024xf32>
    %68 = arith.truncf %67 : vector<16x1024xf32> to vector<16x1024xbf16>
    %cst_26 = arith.constant dense<0.000000e+00> : vector<16x1024xf32>
    %69 = tpu.matmul %62, %68, %cst_26 {dimension_numbers = #tpu.dot_dimension_numbers<[1], [0], [0], [1], [0, 0, 1, 1], [], []>} : vector<16x16xbf16>, vector<16x1024xbf16>, vector<16x1024xf32> -> vector<16x1024xf32>
    %70 = arith.addf %60, %69 : vector<16x1024xf32>
    %c2 = arith.constant 2 : index
    %c0_27 = arith.constant 0 : index
    %c0_28 = arith.constant 0 : index
    %71 = vector.load %arg4[%c2, %c0_27, %c0_28] : memref<13x16x16xbf16, #tpu.memory_space<vmem>>, vector<1x16x16xbf16>
    %72 = vector.shape_cast %71 : vector<1x16x16xbf16> to vector<16x16xbf16>
    %c16_i32_29 = arith.constant 16 : i32
    %73 = tpu.dynamic_rotate %32 by %c16_i32_29 dim 1 : vector<16x1024xf32>, i32 -> vector<16x1024xf32>
    %cst_30 = arith.constant 0.000000e+00 : f32
    %74 = vector.shape_cast %8 : vector<1x1024xi1> to vector<1x1024xi1>
    %75 = vector.broadcast %74 : vector<1x1024xi1> to vector<16x1024xi1>
    %76 = vector.broadcast %cst_30 : f32 to vector<16x1024xf32>
    %77 = arith.select %75, %73, %76 : vector<16x1024xi1>, vector<16x1024xf32>
    %78 = arith.truncf %77 : vector<16x1024xf32> to vector<16x1024xbf16>
    %cst_31 = arith.constant dense<0.000000e+00> : vector<16x1024xf32>
    %79 = tpu.matmul %72, %78, %cst_31 {dimension_numbers = #tpu.dot_dimension_numbers<[1], [0], [0], [1], [0, 0, 1, 1], [], []>} : vector<16x16xbf16>, vector<16x1024xbf16>, vector<16x1024xf32> -> vector<16x1024xf32>
    %80 = arith.addf %70, %79 : vector<16x1024xf32>
    %c3 = arith.constant 3 : index
    %c0_32 = arith.constant 0 : index
    %c0_33 = arith.constant 0 : index
    %81 = vector.load %arg4[%c3, %c0_32, %c0_33] : memref<13x16x16xbf16, #tpu.memory_space<vmem>>, vector<1x16x16xbf16>
    %82 = vector.shape_cast %81 : vector<1x16x16xbf16> to vector<16x16xbf16>
    %c15_i32 = arith.constant 15 : i32
    %83 = tpu.dynamic_rotate %32 by %c15_i32 dim 1 : vector<16x1024xf32>, i32 -> vector<16x1024xf32>
    %cst_34 = arith.constant 0.000000e+00 : f32
    %84 = vector.shape_cast %13 : vector<1x1024xi1> to vector<1x1024xi1>
    %85 = vector.broadcast %84 : vector<1x1024xi1> to vector<16x1024xi1>
    %86 = vector.broadcast %cst_34 : f32 to vector<16x1024xf32>
    %87 = arith.select %85, %83, %86 : vector<16x1024xi1>, vector<16x1024xf32>
    %88 = arith.truncf %87 : vector<16x1024xf32> to vector<16x1024xbf16>
    %cst_35 = arith.constant dense<0.000000e+00> : vector<16x1024xf32>
    %89 = tpu.matmul %82, %88, %cst_35 {dimension_numbers = #tpu.dot_dimension_numbers<[1], [0], [0], [1], [0, 0, 1, 1], [], []>} : vector<16x16xbf16>, vector<16x1024xbf16>, vector<16x1024xf32> -> vector<16x1024xf32>
    %90 = arith.addf %80, %89 : vector<16x1024xf32>
    %c4 = arith.constant 4 : index
    %c0_36 = arith.constant 0 : index
    %c0_37 = arith.constant 0 : index
    %91 = vector.load %arg4[%c4, %c0_36, %c0_37] : memref<13x16x16xbf16, #tpu.memory_space<vmem>>, vector<1x16x16xbf16>
    %92 = vector.shape_cast %91 : vector<1x16x16xbf16> to vector<16x16xbf16>
    %c1_i32_38 = arith.constant 1 : i32
    %93 = tpu.dynamic_rotate %32 by %c1_i32_38 dim 1 : vector<16x1024xf32>, i32 -> vector<16x1024xf32>
    %cst_39 = arith.constant 0.000000e+00 : f32
    %94 = vector.shape_cast %15 : vector<1x1024xi1> to vector<1x1024xi1>
    %95 = vector.broadcast %94 : vector<1x1024xi1> to vector<16x1024xi1>
    %96 = vector.broadcast %cst_39 : f32 to vector<16x1024xf32>
    %97 = arith.select %95, %93, %96 : vector<16x1024xi1>, vector<16x1024xf32>
    %98 = arith.truncf %97 : vector<16x1024xf32> to vector<16x1024xbf16>
    %cst_40 = arith.constant dense<0.000000e+00> : vector<16x1024xf32>
    %99 = tpu.matmul %92, %98, %cst_40 {dimension_numbers = #tpu.dot_dimension_numbers<[1], [0], [0], [1], [0, 0, 1, 1], [], []>} : vector<16x16xbf16>, vector<16x1024xbf16>, vector<16x1024xf32> -> vector<16x1024xf32>
    %100 = arith.addf %90, %99 : vector<16x1024xf32>
    %c5 = arith.constant 5 : index
    %c0_41 = arith.constant 0 : index
    %c0_42 = arith.constant 0 : index
    %101 = vector.load %arg4[%c5, %c0_41, %c0_42] : memref<13x16x16xbf16, #tpu.memory_space<vmem>>, vector<1x16x16xbf16>
    %102 = vector.shape_cast %101 : vector<1x16x16xbf16> to vector<16x16xbf16>
    %c1023_i32_43 = arith.constant 1023 : i32
    %103 = tpu.dynamic_rotate %32 by %c1023_i32_43 dim 1 : vector<16x1024xf32>, i32 -> vector<16x1024xf32>
    %cst_44 = arith.constant 0.000000e+00 : f32
    %104 = vector.shape_cast %17 : vector<1x1024xi1> to vector<1x1024xi1>
    %105 = vector.broadcast %104 : vector<1x1024xi1> to vector<16x1024xi1>
    %106 = vector.broadcast %cst_44 : f32 to vector<16x1024xf32>
    %107 = arith.select %105, %103, %106 : vector<16x1024xi1>, vector<16x1024xf32>
    %108 = arith.truncf %107 : vector<16x1024xf32> to vector<16x1024xbf16>
    %cst_45 = arith.constant dense<0.000000e+00> : vector<16x1024xf32>
    %109 = tpu.matmul %102, %108, %cst_45 {dimension_numbers = #tpu.dot_dimension_numbers<[1], [0], [0], [1], [0, 0, 1, 1], [], []>} : vector<16x16xbf16>, vector<16x1024xbf16>, vector<16x1024xf32> -> vector<16x1024xf32>
    %110 = arith.addf %100, %109 : vector<16x1024xf32>
    %c6 = arith.constant 6 : index
    %c0_46 = arith.constant 0 : index
    %c0_47 = arith.constant 0 : index
    %111 = vector.load %arg4[%c6, %c0_46, %c0_47] : memref<13x16x16xbf16, #tpu.memory_space<vmem>>, vector<1x16x16xbf16>
    %112 = vector.shape_cast %111 : vector<1x16x16xbf16> to vector<16x16xbf16>
    %c1009_i32 = arith.constant 1009 : i32
    %113 = tpu.dynamic_rotate %32 by %c1009_i32 dim 1 : vector<16x1024xf32>, i32 -> vector<16x1024xf32>
    %cst_48 = arith.constant 0.000000e+00 : f32
    %114 = vector.shape_cast %22 : vector<1x1024xi1> to vector<1x1024xi1>
    %115 = vector.broadcast %114 : vector<1x1024xi1> to vector<16x1024xi1>
    %116 = vector.broadcast %cst_48 : f32 to vector<16x1024xf32>
    %117 = arith.select %115, %113, %116 : vector<16x1024xi1>, vector<16x1024xf32>
    %118 = arith.truncf %117 : vector<16x1024xf32> to vector<16x1024xbf16>
    %cst_49 = arith.constant dense<0.000000e+00> : vector<16x1024xf32>
    %119 = tpu.matmul %112, %118, %cst_49 {dimension_numbers = #tpu.dot_dimension_numbers<[1], [0], [0], [1], [0, 0, 1, 1], [], []>} : vector<16x16xbf16>, vector<16x1024xbf16>, vector<16x1024xf32> -> vector<16x1024xf32>
    %120 = arith.addf %110, %119 : vector<16x1024xf32>
    %c7 = arith.constant 7 : index
    %c0_50 = arith.constant 0 : index
    %c0_51 = arith.constant 0 : index
    %121 = vector.load %arg4[%c7, %c0_50, %c0_51] : memref<13x16x16xbf16, #tpu.memory_space<vmem>>, vector<1x16x16xbf16>
    %122 = vector.shape_cast %121 : vector<1x16x16xbf16> to vector<16x16xbf16>
    %c1008_i32_52 = arith.constant 1008 : i32
    %123 = tpu.dynamic_rotate %32 by %c1008_i32_52 dim 1 : vector<16x1024xf32>, i32 -> vector<16x1024xf32>
    %cst_53 = arith.constant 0.000000e+00 : f32
    %124 = vector.shape_cast %24 : vector<1x1024xi1> to vector<1x1024xi1>
    %125 = vector.broadcast %124 : vector<1x1024xi1> to vector<16x1024xi1>
    %126 = vector.broadcast %cst_53 : f32 to vector<16x1024xf32>
    %127 = arith.select %125, %123, %126 : vector<16x1024xi1>, vector<16x1024xf32>
    %128 = arith.truncf %127 : vector<16x1024xf32> to vector<16x1024xbf16>
    %cst_54 = arith.constant dense<0.000000e+00> : vector<16x1024xf32>
    %129 = tpu.matmul %122, %128, %cst_54 {dimension_numbers = #tpu.dot_dimension_numbers<[1], [0], [0], [1], [0, 0, 1, 1], [], []>} : vector<16x16xbf16>, vector<16x1024xbf16>, vector<16x1024xf32> -> vector<16x1024xf32>
    %130 = arith.addf %120, %129 : vector<16x1024xf32>
    %c8 = arith.constant 8 : index
    %c0_55 = arith.constant 0 : index
    %c0_56 = arith.constant 0 : index
    %131 = vector.load %arg4[%c8, %c0_55, %c0_56] : memref<13x16x16xbf16, #tpu.memory_space<vmem>>, vector<1x16x16xbf16>
    %132 = vector.shape_cast %131 : vector<1x16x16xbf16> to vector<16x16xbf16>
    %c1007_i32 = arith.constant 1007 : i32
    %133 = tpu.dynamic_rotate %32 by %c1007_i32 dim 1 : vector<16x1024xf32>, i32 -> vector<16x1024xf32>
    %cst_57 = arith.constant 0.000000e+00 : f32
    %134 = vector.shape_cast %29 : vector<1x1024xi1> to vector<1x1024xi1>
    %135 = vector.broadcast %134 : vector<1x1024xi1> to vector<16x1024xi1>
    %136 = vector.broadcast %cst_57 : f32 to vector<16x1024xf32>
    %137 = arith.select %135, %133, %136 : vector<16x1024xi1>, vector<16x1024xf32>
    %138 = arith.truncf %137 : vector<16x1024xf32> to vector<16x1024xbf16>
    %cst_58 = arith.constant dense<0.000000e+00> : vector<16x1024xf32>
    %139 = tpu.matmul %132, %138, %cst_58 {dimension_numbers = #tpu.dot_dimension_numbers<[1], [0], [0], [1], [0, 0, 1, 1], [], []>} : vector<16x16xbf16>, vector<16x1024xbf16>, vector<16x1024xf32> -> vector<16x1024xf32>
    %140 = arith.addf %130, %139 : vector<16x1024xf32>
    %c9 = arith.constant 9 : index
    %c0_59 = arith.constant 0 : index
    %c0_60 = arith.constant 0 : index
    %141 = vector.load %arg4[%c9, %c0_59, %c0_60] : memref<13x16x16xbf16, #tpu.memory_space<vmem>>, vector<1x16x16xbf16>
    %142 = vector.shape_cast %141 : vector<1x16x16xbf16> to vector<16x16xbf16>
    %c16_i32_61 = arith.constant 16 : i32
    %143 = tpu.dynamic_rotate %32 by %c16_i32_61 dim 1 : vector<16x1024xf32>, i32 -> vector<16x1024xf32>
    %cst_62 = arith.constant 0.000000e+00 : f32
    %144 = vector.shape_cast %8 : vector<1x1024xi1> to vector<1x1024xi1>
    %145 = vector.broadcast %144 : vector<1x1024xi1> to vector<16x1024xi1>
    %146 = vector.broadcast %cst_62 : f32 to vector<16x1024xf32>
    %147 = arith.select %145, %143, %146 : vector<16x1024xi1>, vector<16x1024xf32>
    %148 = arith.truncf %147 : vector<16x1024xf32> to vector<16x1024xbf16>
    %cst_63 = arith.constant dense<0.000000e+00> : vector<16x1024xf32>
    %149 = tpu.matmul %142, %148, %cst_63 {dimension_numbers = #tpu.dot_dimension_numbers<[1], [0], [0], [1], [0, 0, 1, 1], [], []>} : vector<16x16xbf16>, vector<16x1024xbf16>, vector<16x1024xf32> -> vector<16x1024xf32>
    %150 = arith.addf %140, %149 : vector<16x1024xf32>
    %c10 = arith.constant 10 : index
    %c0_64 = arith.constant 0 : index
    %c0_65 = arith.constant 0 : index
    %151 = vector.load %arg4[%c10, %c0_64, %c0_65] : memref<13x16x16xbf16, #tpu.memory_space<vmem>>, vector<1x16x16xbf16>
    %152 = vector.shape_cast %151 : vector<1x16x16xbf16> to vector<16x16xbf16>
    %c1008_i32_66 = arith.constant 1008 : i32
    %153 = tpu.dynamic_rotate %32 by %c1008_i32_66 dim 1 : vector<16x1024xf32>, i32 -> vector<16x1024xf32>
    %cst_67 = arith.constant 0.000000e+00 : f32
    %154 = vector.shape_cast %24 : vector<1x1024xi1> to vector<1x1024xi1>
    %155 = vector.broadcast %154 : vector<1x1024xi1> to vector<16x1024xi1>
    %156 = vector.broadcast %cst_67 : f32 to vector<16x1024xf32>
    %157 = arith.select %155, %153, %156 : vector<16x1024xi1>, vector<16x1024xf32>
    %158 = arith.truncf %157 : vector<16x1024xf32> to vector<16x1024xbf16>
    %cst_68 = arith.constant dense<0.000000e+00> : vector<16x1024xf32>
    %159 = tpu.matmul %152, %158, %cst_68 {dimension_numbers = #tpu.dot_dimension_numbers<[1], [0], [0], [1], [0, 0, 1, 1], [], []>} : vector<16x16xbf16>, vector<16x1024xbf16>, vector<16x1024xf32> -> vector<16x1024xf32>
    %160 = arith.addf %150, %159 : vector<16x1024xf32>
    %c11 = arith.constant 11 : index
    %c0_69 = arith.constant 0 : index
    %c0_70 = arith.constant 0 : index
    %161 = vector.load %arg4[%c11, %c0_69, %c0_70] : memref<13x16x16xbf16, #tpu.memory_space<vmem>>, vector<1x16x16xbf16>
    %162 = vector.shape_cast %161 : vector<1x16x16xbf16> to vector<16x16xbf16>
    %c992_i32 = arith.constant 992 : i32
    %163 = tpu.dynamic_rotate %32 by %c992_i32 dim 1 : vector<16x1024xf32>, i32 -> vector<16x1024xf32>
    %cst_71 = arith.constant 0.000000e+00 : f32
    %164 = vector.shape_cast %31 : vector<1x1024xi1> to vector<1x1024xi1>
    %165 = vector.broadcast %164 : vector<1x1024xi1> to vector<16x1024xi1>
    %166 = vector.broadcast %cst_71 : f32 to vector<16x1024xf32>
    %167 = arith.select %165, %163, %166 : vector<16x1024xi1>, vector<16x1024xf32>
    %168 = arith.truncf %167 : vector<16x1024xf32> to vector<16x1024xbf16>
    %cst_72 = arith.constant dense<0.000000e+00> : vector<16x1024xf32>
    %169 = tpu.matmul %162, %168, %cst_72 {dimension_numbers = #tpu.dot_dimension_numbers<[1], [0], [0], [1], [0, 0, 1, 1], [], []>} : vector<16x16xbf16>, vector<16x1024xbf16>, vector<16x1024xf32> -> vector<16x1024xf32>
    %170 = arith.addf %160, %169 : vector<16x1024xf32>
    %c12 = arith.constant 12 : index
    %c0_73 = arith.constant 0 : index
    %c0_74 = arith.constant 0 : index
    %171 = vector.load %arg4[%c12, %c0_73, %c0_74] : memref<13x16x16xbf16, #tpu.memory_space<vmem>>, vector<1x16x16xbf16>
    %172 = vector.shape_cast %171 : vector<1x16x16xbf16> to vector<16x16xbf16>
    %173 = arith.truncf %56 : vector<16x1024xf32> to vector<16x1024xbf16>
    %cst_75 = arith.constant dense<0.000000e+00> : vector<16x1024xf32>
    %174 = tpu.matmul %172, %173, %cst_75 {dimension_numbers = #tpu.dot_dimension_numbers<[1], [0], [0], [1], [0, 0, 1, 1], [], []>} : vector<16x16xbf16>, vector<16x1024xbf16>, vector<16x1024xf32> -> vector<16x1024xf32>
    %175 = arith.addf %170, %174 : vector<16x1024xf32>
    %c0_76 = arith.constant 0 : index
    %c0_77 = arith.constant 0 : index
    %176 = vector.load %arg5[%c0_76, %c0_77] : memref<16x1xf32, #tpu.memory_space<vmem>>, vector<16x1xf32>
    %177 = vector.broadcast %176 : vector<16x1xf32> to vector<16x1024xf32>
    %178 = arith.addf %175, %177 : vector<16x1024xf32>
    %c1_i32_78 = arith.constant 1 : i32
    %179 = tpu.dynamic_rotate %178 by %c1_i32_78 dim 1 : vector<16x1024xf32>, i32 -> vector<16x1024xf32>
    %cst_79 = arith.constant 0xFF800000 : f32
    %180 = vector.shape_cast %15 : vector<1x1024xi1> to vector<1x1024xi1>
    %181 = vector.broadcast %180 : vector<1x1024xi1> to vector<16x1024xi1>
    %182 = vector.broadcast %cst_79 : f32 to vector<16x1024xf32>
    %183 = arith.select %181, %179, %182 : vector<16x1024xi1>, vector<16x1024xf32>
    %c1023_i32_80 = arith.constant 1023 : i32
    %184 = tpu.dynamic_rotate %178 by %c1023_i32_80 dim 1 : vector<16x1024xf32>, i32 -> vector<16x1024xf32>
    %cst_81 = arith.constant 0xFF800000 : f32
    %185 = vector.shape_cast %17 : vector<1x1024xi1> to vector<1x1024xi1>
    %186 = vector.broadcast %185 : vector<1x1024xi1> to vector<16x1024xi1>
    %187 = vector.broadcast %cst_81 : f32 to vector<16x1024xf32>
    %188 = arith.select %186, %184, %187 : vector<16x1024xi1>, vector<16x1024xf32>
    %189 = arith.maximumf %183, %188 : vector<16x1024xf32>
    %190 = arith.maximumf %178, %189 : vector<16x1024xf32>
    %c16_i32_82 = arith.constant 16 : i32
    %191 = tpu.dynamic_rotate %190 by %c16_i32_82 dim 1 : vector<16x1024xf32>, i32 -> vector<16x1024xf32>
    %cst_83 = arith.constant 0xFF800000 : f32
    %192 = vector.shape_cast %8 : vector<1x1024xi1> to vector<1x1024xi1>
    %193 = vector.broadcast %192 : vector<1x1024xi1> to vector<16x1024xi1>
    %194 = vector.broadcast %cst_83 : f32 to vector<16x1024xf32>
    %195 = arith.select %193, %191, %194 : vector<16x1024xi1>, vector<16x1024xf32>
    %c1008_i32_84 = arith.constant 1008 : i32
    %196 = tpu.dynamic_rotate %190 by %c1008_i32_84 dim 1 : vector<16x1024xf32>, i32 -> vector<16x1024xf32>
    %cst_85 = arith.constant 0xFF800000 : f32
    %197 = vector.shape_cast %24 : vector<1x1024xi1> to vector<1x1024xi1>
    %198 = vector.broadcast %197 : vector<1x1024xi1> to vector<16x1024xi1>
    %199 = vector.broadcast %cst_85 : f32 to vector<16x1024xf32>
    %200 = arith.select %198, %196, %199 : vector<16x1024xi1>, vector<16x1024xf32>
    %201 = arith.maximumf %195, %200 : vector<16x1024xf32>
    %202 = arith.maximumf %190, %201 : vector<16x1024xf32>
    %c0_86 = arith.constant 0 : index
    %c0_87 = arith.constant 0 : index
    %c0_88 = arith.constant 0 : index
    %203 = vector.load %arg6[%c0_86, %c0_87, %c0_88] : memref<13x16x16xbf16, #tpu.memory_space<vmem>>, vector<1x16x16xbf16>
    %204 = vector.shape_cast %203 : vector<1x16x16xbf16> to vector<16x16xbf16>
    %205 = arith.truncf %178 : vector<16x1024xf32> to vector<16x1024xbf16>
    %cst_89 = arith.constant dense<0.000000e+00> : vector<16x1024xf32>
    %206 = tpu.matmul %204, %205, %cst_89 {dimension_numbers = #tpu.dot_dimension_numbers<[1], [0], [0], [1], [0, 0, 1, 1], [], []>} : vector<16x16xbf16>, vector<16x1024xbf16>, vector<16x1024xf32> -> vector<16x1024xf32>
    %c1_90 = arith.constant 1 : index
    %c0_91 = arith.constant 0 : index
    %c0_92 = arith.constant 0 : index
    %207 = vector.load %arg6[%c1_90, %c0_91, %c0_92] : memref<13x16x16xbf16, #tpu.memory_space<vmem>>, vector<1x16x16xbf16>
    %208 = vector.shape_cast %207 : vector<1x16x16xbf16> to vector<16x16xbf16>
    %c17_i32_93 = arith.constant 17 : i32
    %209 = tpu.dynamic_rotate %178 by %c17_i32_93 dim 1 : vector<16x1024xf32>, i32 -> vector<16x1024xf32>
    %cst_94 = arith.constant 0.000000e+00 : f32
    %210 = vector.shape_cast %6 : vector<1x1024xi1> to vector<1x1024xi1>
    %211 = vector.broadcast %210 : vector<1x1024xi1> to vector<16x1024xi1>
    %212 = vector.broadcast %cst_94 : f32 to vector<16x1024xf32>
    %213 = arith.select %211, %209, %212 : vector<16x1024xi1>, vector<16x1024xf32>
    %214 = arith.truncf %213 : vector<16x1024xf32> to vector<16x1024xbf16>
    %cst_95 = arith.constant dense<0.000000e+00> : vector<16x1024xf32>
    %215 = tpu.matmul %208, %214, %cst_95 {dimension_numbers = #tpu.dot_dimension_numbers<[1], [0], [0], [1], [0, 0, 1, 1], [], []>} : vector<16x16xbf16>, vector<16x1024xbf16>, vector<16x1024xf32> -> vector<16x1024xf32>
    %216 = arith.addf %206, %215 : vector<16x1024xf32>
    %c2_96 = arith.constant 2 : index
    %c0_97 = arith.constant 0 : index
    %c0_98 = arith.constant 0 : index
    %217 = vector.load %arg6[%c2_96, %c0_97, %c0_98] : memref<13x16x16xbf16, #tpu.memory_space<vmem>>, vector<1x16x16xbf16>
    %218 = vector.shape_cast %217 : vector<1x16x16xbf16> to vector<16x16xbf16>
    %c16_i32_99 = arith.constant 16 : i32
    %219 = tpu.dynamic_rotate %178 by %c16_i32_99 dim 1 : vector<16x1024xf32>, i32 -> vector<16x1024xf32>
    %cst_100 = arith.constant 0.000000e+00 : f32
    %220 = vector.shape_cast %8 : vector<1x1024xi1> to vector<1x1024xi1>
    %221 = vector.broadcast %220 : vector<1x1024xi1> to vector<16x1024xi1>
    %222 = vector.broadcast %cst_100 : f32 to vector<16x1024xf32>
    %223 = arith.select %221, %219, %222 : vector<16x1024xi1>, vector<16x1024xf32>
    %224 = arith.truncf %223 : vector<16x1024xf32> to vector<16x1024xbf16>
    %cst_101 = arith.constant dense<0.000000e+00> : vector<16x1024xf32>
    %225 = tpu.matmul %218, %224, %cst_101 {dimension_numbers = #tpu.dot_dimension_numbers<[1], [0], [0], [1], [0, 0, 1, 1], [], []>} : vector<16x16xbf16>, vector<16x1024xbf16>, vector<16x1024xf32> -> vector<16x1024xf32>
    %226 = arith.addf %216, %225 : vector<16x1024xf32>
    %c3_102 = arith.constant 3 : index
    %c0_103 = arith.constant 0 : index
    %c0_104 = arith.constant 0 : index
    %227 = vector.load %arg6[%c3_102, %c0_103, %c0_104] : memref<13x16x16xbf16, #tpu.memory_space<vmem>>, vector<1x16x16xbf16>
    %228 = vector.shape_cast %227 : vector<1x16x16xbf16> to vector<16x16xbf16>
    %c15_i32_105 = arith.constant 15 : i32
    %229 = tpu.dynamic_rotate %178 by %c15_i32_105 dim 1 : vector<16x1024xf32>, i32 -> vector<16x1024xf32>
    %cst_106 = arith.constant 0.000000e+00 : f32
    %230 = vector.shape_cast %13 : vector<1x1024xi1> to vector<1x1024xi1>
    %231 = vector.broadcast %230 : vector<1x1024xi1> to vector<16x1024xi1>
    %232 = vector.broadcast %cst_106 : f32 to vector<16x1024xf32>
    %233 = arith.select %231, %229, %232 : vector<16x1024xi1>, vector<16x1024xf32>
    %234 = arith.truncf %233 : vector<16x1024xf32> to vector<16x1024xbf16>
    %cst_107 = arith.constant dense<0.000000e+00> : vector<16x1024xf32>
    %235 = tpu.matmul %228, %234, %cst_107 {dimension_numbers = #tpu.dot_dimension_numbers<[1], [0], [0], [1], [0, 0, 1, 1], [], []>} : vector<16x16xbf16>, vector<16x1024xbf16>, vector<16x1024xf32> -> vector<16x1024xf32>
    %236 = arith.addf %226, %235 : vector<16x1024xf32>
    %c4_108 = arith.constant 4 : index
    %c0_109 = arith.constant 0 : index
    %c0_110 = arith.constant 0 : index
    %237 = vector.load %arg6[%c4_108, %c0_109, %c0_110] : memref<13x16x16xbf16, #tpu.memory_space<vmem>>, vector<1x16x16xbf16>
    %238 = vector.shape_cast %237 : vector<1x16x16xbf16> to vector<16x16xbf16>
    %c1_i32_111 = arith.constant 1 : i32
    %239 = tpu.dynamic_rotate %178 by %c1_i32_111 dim 1 : vector<16x1024xf32>, i32 -> vector<16x1024xf32>
    %cst_112 = arith.constant 0.000000e+00 : f32
    %240 = vector.shape_cast %15 : vector<1x1024xi1> to vector<1x1024xi1>
    %241 = vector.broadcast %240 : vector<1x1024xi1> to vector<16x1024xi1>
    %242 = vector.broadcast %cst_112 : f32 to vector<16x1024xf32>
    %243 = arith.select %241, %239, %242 : vector<16x1024xi1>, vector<16x1024xf32>
    %244 = arith.truncf %243 : vector<16x1024xf32> to vector<16x1024xbf16>
    %cst_113 = arith.constant dense<0.000000e+00> : vector<16x1024xf32>
    %245 = tpu.matmul %238, %244, %cst_113 {dimension_numbers = #tpu.dot_dimension_numbers<[1], [0], [0], [1], [0, 0, 1, 1], [], []>} : vector<16x16xbf16>, vector<16x1024xbf16>, vector<16x1024xf32> -> vector<16x1024xf32>
    %246 = arith.addf %236, %245 : vector<16x1024xf32>
    %c5_114 = arith.constant 5 : index
    %c0_115 = arith.constant 0 : index
    %c0_116 = arith.constant 0 : index
    %247 = vector.load %arg6[%c5_114, %c0_115, %c0_116] : memref<13x16x16xbf16, #tpu.memory_space<vmem>>, vector<1x16x16xbf16>
    %248 = vector.shape_cast %247 : vector<1x16x16xbf16> to vector<16x16xbf16>
    %c1023_i32_117 = arith.constant 1023 : i32
    %249 = tpu.dynamic_rotate %178 by %c1023_i32_117 dim 1 : vector<16x1024xf32>, i32 -> vector<16x1024xf32>
    %cst_118 = arith.constant 0.000000e+00 : f32
    %250 = vector.shape_cast %17 : vector<1x1024xi1> to vector<1x1024xi1>
    %251 = vector.broadcast %250 : vector<1x1024xi1> to vector<16x1024xi1>
    %252 = vector.broadcast %cst_118 : f32 to vector<16x1024xf32>
    %253 = arith.select %251, %249, %252 : vector<16x1024xi1>, vector<16x1024xf32>
    %254 = arith.truncf %253 : vector<16x1024xf32> to vector<16x1024xbf16>
    %cst_119 = arith.constant dense<0.000000e+00> : vector<16x1024xf32>
    %255 = tpu.matmul %248, %254, %cst_119 {dimension_numbers = #tpu.dot_dimension_numbers<[1], [0], [0], [1], [0, 0, 1, 1], [], []>} : vector<16x16xbf16>, vector<16x1024xbf16>, vector<16x1024xf32> -> vector<16x1024xf32>
    %256 = arith.addf %246, %255 : vector<16x1024xf32>
    %c6_120 = arith.constant 6 : index
    %c0_121 = arith.constant 0 : index
    %c0_122 = arith.constant 0 : index
    %257 = vector.load %arg6[%c6_120, %c0_121, %c0_122] : memref<13x16x16xbf16, #tpu.memory_space<vmem>>, vector<1x16x16xbf16>
    %258 = vector.shape_cast %257 : vector<1x16x16xbf16> to vector<16x16xbf16>
    %c1009_i32_123 = arith.constant 1009 : i32
    %259 = tpu.dynamic_rotate %178 by %c1009_i32_123 dim 1 : vector<16x1024xf32>, i32 -> vector<16x1024xf32>
    %cst_124 = arith.constant 0.000000e+00 : f32
    %260 = vector.shape_cast %22 : vector<1x1024xi1> to vector<1x1024xi1>
    %261 = vector.broadcast %260 : vector<1x1024xi1> to vector<16x1024xi1>
    %262 = vector.broadcast %cst_124 : f32 to vector<16x1024xf32>
    %263 = arith.select %261, %259, %262 : vector<16x1024xi1>, vector<16x1024xf32>
    %264 = arith.truncf %263 : vector<16x1024xf32> to vector<16x1024xbf16>
    %cst_125 = arith.constant dense<0.000000e+00> : vector<16x1024xf32>
    %265 = tpu.matmul %258, %264, %cst_125 {dimension_numbers = #tpu.dot_dimension_numbers<[1], [0], [0], [1], [0, 0, 1, 1], [], []>} : vector<16x16xbf16>, vector<16x1024xbf16>, vector<16x1024xf32> -> vector<16x1024xf32>
    %266 = arith.addf %256, %265 : vector<16x1024xf32>
    %c7_126 = arith.constant 7 : index
    %c0_127 = arith.constant 0 : index
    %c0_128 = arith.constant 0 : index
    %267 = vector.load %arg6[%c7_126, %c0_127, %c0_128] : memref<13x16x16xbf16, #tpu.memory_space<vmem>>, vector<1x16x16xbf16>
    %268 = vector.shape_cast %267 : vector<1x16x16xbf16> to vector<16x16xbf16>
    %c1008_i32_129 = arith.constant 1008 : i32
    %269 = tpu.dynamic_rotate %178 by %c1008_i32_129 dim 1 : vector<16x1024xf32>, i32 -> vector<16x1024xf32>
    %cst_130 = arith.constant 0.000000e+00 : f32
    %270 = vector.shape_cast %24 : vector<1x1024xi1> to vector<1x1024xi1>
    %271 = vector.broadcast %270 : vector<1x1024xi1> to vector<16x1024xi1>
    %272 = vector.broadcast %cst_130 : f32 to vector<16x1024xf32>
    %273 = arith.select %271, %269, %272 : vector<16x1024xi1>, vector<16x1024xf32>
    %274 = arith.truncf %273 : vector<16x1024xf32> to vector<16x1024xbf16>
    %cst_131 = arith.constant dense<0.000000e+00> : vector<16x1024xf32>
    %275 = tpu.matmul %268, %274, %cst_131 {dimension_numbers = #tpu.dot_dimension_numbers<[1], [0], [0], [1], [0, 0, 1, 1], [], []>} : vector<16x16xbf16>, vector<16x1024xbf16>, vector<16x1024xf32> -> vector<16x1024xf32>
    %276 = arith.addf %266, %275 : vector<16x1024xf32>
    %c8_132 = arith.constant 8 : index
    %c0_133 = arith.constant 0 : index
    %c0_134 = arith.constant 0 : index
    %277 = vector.load %arg6[%c8_132, %c0_133, %c0_134] : memref<13x16x16xbf16, #tpu.memory_space<vmem>>, vector<1x16x16xbf16>
    %278 = vector.shape_cast %277 : vector<1x16x16xbf16> to vector<16x16xbf16>
    %c1007_i32_135 = arith.constant 1007 : i32
    %279 = tpu.dynamic_rotate %178 by %c1007_i32_135 dim 1 : vector<16x1024xf32>, i32 -> vector<16x1024xf32>
    %cst_136 = arith.constant 0.000000e+00 : f32
    %280 = vector.shape_cast %29 : vector<1x1024xi1> to vector<1x1024xi1>
    %281 = vector.broadcast %280 : vector<1x1024xi1> to vector<16x1024xi1>
    %282 = vector.broadcast %cst_136 : f32 to vector<16x1024xf32>
    %283 = arith.select %281, %279, %282 : vector<16x1024xi1>, vector<16x1024xf32>
    %284 = arith.truncf %283 : vector<16x1024xf32> to vector<16x1024xbf16>
    %cst_137 = arith.constant dense<0.000000e+00> : vector<16x1024xf32>
    %285 = tpu.matmul %278, %284, %cst_137 {dimension_numbers = #tpu.dot_dimension_numbers<[1], [0], [0], [1], [0, 0, 1, 1], [], []>} : vector<16x16xbf16>, vector<16x1024xbf16>, vector<16x1024xf32> -> vector<16x1024xf32>
    %286 = arith.addf %276, %285 : vector<16x1024xf32>
    %c9_138 = arith.constant 9 : index
    %c0_139 = arith.constant 0 : index
    %c0_140 = arith.constant 0 : index
    %287 = vector.load %arg6[%c9_138, %c0_139, %c0_140] : memref<13x16x16xbf16, #tpu.memory_space<vmem>>, vector<1x16x16xbf16>
    %288 = vector.shape_cast %287 : vector<1x16x16xbf16> to vector<16x16xbf16>
    %c16_i32_141 = arith.constant 16 : i32
    %289 = tpu.dynamic_rotate %178 by %c16_i32_141 dim 1 : vector<16x1024xf32>, i32 -> vector<16x1024xf32>
    %cst_142 = arith.constant 0.000000e+00 : f32
    %290 = vector.shape_cast %8 : vector<1x1024xi1> to vector<1x1024xi1>
    %291 = vector.broadcast %290 : vector<1x1024xi1> to vector<16x1024xi1>
    %292 = vector.broadcast %cst_142 : f32 to vector<16x1024xf32>
    %293 = arith.select %291, %289, %292 : vector<16x1024xi1>, vector<16x1024xf32>
    %294 = arith.truncf %293 : vector<16x1024xf32> to vector<16x1024xbf16>
    %cst_143 = arith.constant dense<0.000000e+00> : vector<16x1024xf32>
    %295 = tpu.matmul %288, %294, %cst_143 {dimension_numbers = #tpu.dot_dimension_numbers<[1], [0], [0], [1], [0, 0, 1, 1], [], []>} : vector<16x16xbf16>, vector<16x1024xbf16>, vector<16x1024xf32> -> vector<16x1024xf32>
    %296 = arith.addf %286, %295 : vector<16x1024xf32>
    %c10_144 = arith.constant 10 : index
    %c0_145 = arith.constant 0 : index
    %c0_146 = arith.constant 0 : index
    %297 = vector.load %arg6[%c10_144, %c0_145, %c0_146] : memref<13x16x16xbf16, #tpu.memory_space<vmem>>, vector<1x16x16xbf16>
    %298 = vector.shape_cast %297 : vector<1x16x16xbf16> to vector<16x16xbf16>
    %c1008_i32_147 = arith.constant 1008 : i32
    %299 = tpu.dynamic_rotate %178 by %c1008_i32_147 dim 1 : vector<16x1024xf32>, i32 -> vector<16x1024xf32>
    %cst_148 = arith.constant 0.000000e+00 : f32
    %300 = vector.shape_cast %24 : vector<1x1024xi1> to vector<1x1024xi1>
    %301 = vector.broadcast %300 : vector<1x1024xi1> to vector<16x1024xi1>
    %302 = vector.broadcast %cst_148 : f32 to vector<16x1024xf32>
    %303 = arith.select %301, %299, %302 : vector<16x1024xi1>, vector<16x1024xf32>
    %304 = arith.truncf %303 : vector<16x1024xf32> to vector<16x1024xbf16>
    %cst_149 = arith.constant dense<0.000000e+00> : vector<16x1024xf32>
    %305 = tpu.matmul %298, %304, %cst_149 {dimension_numbers = #tpu.dot_dimension_numbers<[1], [0], [0], [1], [0, 0, 1, 1], [], []>} : vector<16x16xbf16>, vector<16x1024xbf16>, vector<16x1024xf32> -> vector<16x1024xf32>
    %306 = arith.addf %296, %305 : vector<16x1024xf32>
    %c11_150 = arith.constant 11 : index
    %c0_151 = arith.constant 0 : index
    %c0_152 = arith.constant 0 : index
    %307 = vector.load %arg6[%c11_150, %c0_151, %c0_152] : memref<13x16x16xbf16, #tpu.memory_space<vmem>>, vector<1x16x16xbf16>
    %308 = vector.shape_cast %307 : vector<1x16x16xbf16> to vector<16x16xbf16>
    %c992_i32_153 = arith.constant 992 : i32
    %309 = tpu.dynamic_rotate %178 by %c992_i32_153 dim 1 : vector<16x1024xf32>, i32 -> vector<16x1024xf32>
    %cst_154 = arith.constant 0.000000e+00 : f32
    %310 = vector.shape_cast %31 : vector<1x1024xi1> to vector<1x1024xi1>
    %311 = vector.broadcast %310 : vector<1x1024xi1> to vector<16x1024xi1>
    %312 = vector.broadcast %cst_154 : f32 to vector<16x1024xf32>
    %313 = arith.select %311, %309, %312 : vector<16x1024xi1>, vector<16x1024xf32>
    %314 = arith.truncf %313 : vector<16x1024xf32> to vector<16x1024xbf16>
    %cst_155 = arith.constant dense<0.000000e+00> : vector<16x1024xf32>
    %315 = tpu.matmul %308, %314, %cst_155 {dimension_numbers = #tpu.dot_dimension_numbers<[1], [0], [0], [1], [0, 0, 1, 1], [], []>} : vector<16x16xbf16>, vector<16x1024xbf16>, vector<16x1024xf32> -> vector<16x1024xf32>
    %316 = arith.addf %306, %315 : vector<16x1024xf32>
    %c12_156 = arith.constant 12 : index
    %c0_157 = arith.constant 0 : index
    %c0_158 = arith.constant 0 : index
    %317 = vector.load %arg6[%c12_156, %c0_157, %c0_158] : memref<13x16x16xbf16, #tpu.memory_space<vmem>>, vector<1x16x16xbf16>
    %318 = vector.shape_cast %317 : vector<1x16x16xbf16> to vector<16x16xbf16>
    %319 = arith.truncf %202 : vector<16x1024xf32> to vector<16x1024xbf16>
    %cst_159 = arith.constant dense<0.000000e+00> : vector<16x1024xf32>
    %320 = tpu.matmul %318, %319, %cst_159 {dimension_numbers = #tpu.dot_dimension_numbers<[1], [0], [0], [1], [0, 0, 1, 1], [], []>} : vector<16x16xbf16>, vector<16x1024xbf16>, vector<16x1024xf32> -> vector<16x1024xf32>
    %321 = arith.addf %316, %320 : vector<16x1024xf32>
    %c0_160 = arith.constant 0 : index
    %c0_161 = arith.constant 0 : index
    %322 = vector.load %arg7[%c0_160, %c0_161] : memref<16x1xf32, #tpu.memory_space<vmem>>, vector<16x1xf32>
    %323 = vector.broadcast %322 : vector<16x1xf32> to vector<16x1024xf32>
    %324 = arith.addf %321, %323 : vector<16x1024xf32>
    %325 = vector.extract_strided_slice %324 {offsets = [0, 0], sizes = [8, 1024], strides = [1, 1]} : vector<16x1024xf32> to vector<8x1024xf32>
    %326 = vector.extract_strided_slice %324 {offsets = [8, 0], sizes = [8, 1024], strides = [1, 1]} : vector<16x1024xf32> to vector<8x1024xf32>
    %327 = arith.negf %326 : vector<8x1024xf32>
    %328 = math.exp %327 : vector<8x1024xf32>
    %cst_162 = arith.constant 1.000000e+00 : f32
    %329 = vector.broadcast %cst_162 : f32 to vector<8x1024xf32>
    %330 = arith.addf %329, %328 : vector<8x1024xf32>
    %331 = arith.divf %329, %330 : vector<8x1024xf32>
    %332 = arith.mulf %325, %331 : vector<8x1024xf32>
    %c1023_i32_163 = arith.constant 1023 : i32
    %333 = tpu.dynamic_rotate %332 by %c1023_i32_163 dim 1 : vector<8x1024xf32>, i32 -> vector<8x1024xf32>
    %cst_164 = arith.constant 0xFF800000 : f32
    %334 = vector.shape_cast %17 : vector<1x1024xi1> to vector<1x1024xi1>
    %335 = vector.broadcast %334 : vector<1x1024xi1> to vector<8x1024xi1>
    %336 = vector.broadcast %cst_164 : f32 to vector<8x1024xf32>
    %337 = arith.select %335, %333, %336 : vector<8x1024xi1>, vector<8x1024xf32>
    %338 = arith.maximumf %332, %337 : vector<8x1024xf32>
    %c1008_i32_165 = arith.constant 1008 : i32
    %339 = tpu.dynamic_rotate %332 by %c1008_i32_165 dim 1 : vector<8x1024xf32>, i32 -> vector<8x1024xf32>
    %cst_166 = arith.constant 0xFF800000 : f32
    %340 = vector.shape_cast %24 : vector<1x1024xi1> to vector<1x1024xi1>
    %341 = vector.broadcast %340 : vector<1x1024xi1> to vector<8x1024xi1>
    %342 = vector.broadcast %cst_166 : f32 to vector<8x1024xf32>
    %343 = arith.select %341, %339, %342 : vector<8x1024xi1>, vector<8x1024xf32>
    %c1007_i32_167 = arith.constant 1007 : i32
    %344 = tpu.dynamic_rotate %332 by %c1007_i32_167 dim 1 : vector<8x1024xf32>, i32 -> vector<8x1024xf32>
    %cst_168 = arith.constant 0xFF800000 : f32
    %345 = vector.shape_cast %29 : vector<1x1024xi1> to vector<1x1024xi1>
    %346 = vector.broadcast %345 : vector<1x1024xi1> to vector<8x1024xi1>
    %347 = vector.broadcast %cst_168 : f32 to vector<8x1024xf32>
    %348 = arith.select %346, %344, %347 : vector<8x1024xi1>, vector<8x1024xf32>
    %349 = arith.maximumf %343, %348 : vector<8x1024xf32>
    %350 = arith.maximumf %338, %349 : vector<8x1024xf32>
    %c0_169 = arith.constant 0 : index
    %c0_170 = arith.constant 0 : index
    %351 = vector.load %arg8[%c0_169, %c0_170] : memref<1024x256xf32, #tpu.memory_space<vmem>>, vector<1024x256xf32>
    %cst_171 = arith.constant dense<0.000000e+00> : vector<8x256xf32>
    %352 = tpu.matmul %350, %351, %cst_171 {dimension_numbers = #tpu.dot_dimension_numbers<[1], [0], [0], [1], [0, 0, 1, 1], [], []>} : vector<8x1024xf32>, vector<1024x256xf32>, vector<8x256xf32> -> vector<8x256xf32>
    %c0_172 = arith.constant 0 : index
    %c0_173 = arith.constant 0 : index
    %353 = vector.load %arg9[%c0_172, %c0_173] : memref<8x256xf32, #tpu.memory_space<vmem>>, vector<8x256xf32>
    tpu.vector_store %arg9[%c0_172, %c0_173], %352 {strides = array<i32>} : memref<8x256xf32, #tpu.memory_space<vmem>>, vector<8x256xf32>,
    return
  }
  func.func @transform_0(%arg0: i32) -> (i32, i32) {
    %c0_i32 = arith.constant 0 : i32
    %c0_i32_0 = arith.constant 0 : i32
    return %c0_i32, %arg0 : i32, i32
  }
  func.func @transform_1(%arg0: i32) -> (i32, i32) {
    %c0_i32 = arith.constant 0 : i32
    %c0_i32_0 = arith.constant 0 : i32
    %c0_i32_1 = arith.constant 0 : i32
    return %c0_i32, %c0_i32_0 : i32, i32
  }
  func.func @transform_2(%arg0: i32) -> (i32, i32) {
    %c0_i32 = arith.constant 0 : i32
    %c0_i32_0 = arith.constant 0 : i32
    %c0_i32_1 = arith.constant 0 : i32
    return %c0_i32, %c0_i32_0 : i32, i32
  }
  func.func @transform_3(%arg0: i32) -> (i32, i32, i32) {
    %c0_i32 = arith.constant 0 : i32
    %c0_i32_0 = arith.constant 0 : i32
    %c0_i32_1 = arith.constant 0 : i32
    %c0_i32_2 = arith.constant 0 : i32
    return %c0_i32, %c0_i32_0, %c0_i32_1 : i32, i32, i32
  }
  func.func @transform_4(%arg0: i32) -> (i32, i32) {
    %c0_i32 = arith.constant 0 : i32
    %c0_i32_0 = arith.constant 0 : i32
    %c0_i32_1 = arith.constant 0 : i32
    return %c0_i32, %c0_i32_0 : i32, i32
  }
  func.func @transform_5(%arg0: i32) -> (i32, i32, i32) {
    %c0_i32 = arith.constant 0 : i32
    %c0_i32_0 = arith.constant 0 : i32
    %c0_i32_1 = arith.constant 0 : i32
    %c0_i32_2 = arith.constant 0 : i32
    return %c0_i32, %c0_i32_0, %c0_i32_1 : i32, i32, i32
  }
  func.func @transform_6(%arg0: i32) -> (i32, i32) {
    %c0_i32 = arith.constant 0 : i32
    %c0_i32_0 = arith.constant 0 : i32
    %c0_i32_1 = arith.constant 0 : i32
    return %c0_i32, %c0_i32_0 : i32, i32
  }
  func.func @transform_7(%arg0: i32) -> (i32, i32) {
    %c0_i32 = arith.constant 0 : i32
    %c0_i32_0 = arith.constant 0 : i32
    %c0_i32_1 = arith.constant 0 : i32
    return %c0_i32, %c0_i32_0 : i32, i32
  }
  func.func @transform_8(%arg0: i32) -> (i32, i32) {
    %c0_i32 = arith.constant 0 : i32
    %c0_i32_0 = arith.constant 0 : i32
    return %c0_i32, %arg0 : i32, i32
  }
}

</mosaic_0001>

<bundles_post_ra>
// kernel: tpu_custom_call.1
= control target key start
LH: loop header
LB: loop body
LE: loop exit
PB: predicated region body
PF: predicated region fallthrough
CT: control target
= control target key end

     0   :  { %s16586_s0 = inlined_call_operand.hbm [shape: f32[16,2048], index: 0, kind: input, shape index: {}]   ;;  %s16587_s1 = inlined_call_operand.vmem [shape: s32[1,1024], index: 1, kind: input, shape index: {}]   ;;  %s16588_s2 = inlined_call_operand.vmem [shape: s32[1,1024], index: 2, kind: input, shape index: {}]   ;;  %s16589_s3 = inlined_call_operand.hbm [shape: bf16[13,16,16], index: 3, kind: input, shape index: {}]   ;;  %s16590_s4 = inlined_call_operand.vmem [shape: f32[16,1], index: 4, kind: input, shape index: {}]   ;;  %s16591_s5 = inlined_call_operand.hbm [shape: bf16[13,16,16], index: 5, kind: input, shape index: {}]   ;;  %s16592_s6 = inlined_call_operand.vmem [shape: f32[16,1], index: 6, kind: input, shape index: {}]   ;;  %s16593_s7 = inlined_call_operand.hbm [shape: f32[1024,256], index: 7, kind: input, shape index: {}]   ;;  %s16594_s8 = inlined_call_operand.hbm [shape: f32[8,512], index: 8, kind: output, shape index: {}]  }
   0x1   :  { %17139 = sst [smem:[#allocation117_spill]] %s16589_s3 }
   0x2   :  { %17140 = sst [smem:[#allocation118_spill]] %s16594_s8 }
   0x3   :  { %13 = vsyncpa [#allocation3], 0 }
   0x4   :  { %15 = vsyncpa [#allocation3 + $0x1], 0 }
   0x5   :  { %16 = vsyncpa [#allocation6], 0 }
   0x6   :  { %17 = vsyncpa [#allocation9], 0 }
   0x7   :  { %18 = vsyncpa [#allocation4], 0 }
   0x8   :  { %20 = vsyncpa [#allocation4 + $0x1], 0  ;;  %s11251_s27 = smov 0   ;;  %s11253_s28 = smov 0  }
   0x9   :  { %s11255_s29 = smov 0   ;;  %s11257_s30 = smov 0  }
   0xa LB: > { %17141 = sst [smem:[#allocation15_spill]] %s11171_s27  ;;  %s11272_s9 = sadd.s32 4294967295, %s11183_s30   ;;  %s11183_s30 = sphi %s11257_s30, %s18412_s30   ;;  %s11179_s29 = sphi %s11255_s29, %s18416_s29   ;;  %s11175_s28 = sphi %s11253_s28, %s18415_s28   ;;  %s11171_s27 = sphi %s11251_s27, %s18414_s27  }
   0xb   : > { %s8551_s10 = sadd.s32 4294967294, %s11183_s30   ;;  %s11276_s11 = sadd.s32 1, %s11183_s30  }
   0xc   : > { %17142 = sst [smem:[#allocation16_spill]] %s11276_s11  ;;  %s33_s12 = sadd.s32 1, %s11179_s29 }
   0xd   : > { %s30_s13 = ssub.s32 %s11183_s30, %s11276_s11  ;;  %p40_p0 = scmp.ne.s32.totalorder %s11179_s29, %s11175_s28 }
   0xe   : > { %p31_p1 = scmp.eq.s32.totalorder %s30_s13, 0  ;;  %p41_p2 = scmp.eq.s32.totalorder %s11183_s30, 0 }
   0xf   : > { %p46_p3 = scmp.ne.s32.totalorder %s11175_s28, %s11171_s27  ;;  %p16597_p4 = scmp.eq.s32.totalorder %s11272_s9, 0 }
  0x10   : > { %s11288_s14 = scalar_select %p31_p1, %s11179_s29, %s33_s12  }
  0x11   : > { %p11290_p5 = por %p41_p2, %p40_p0  ;;  %p11296_p6 = por %p16597_p4, %p46_p3 }
  0x12   : > { %17143 = sst [smem:[#allocation17_spill]] %s11288_s14  ;;  %p217_p7 = scmp.eq.s32.totalorder %s11272_s9, 1 }
  0x13   : > { %s17144_s15 = scalar_select %p11290_p5, 1, 0 }
  0x14   : > { %s17145_s16 = scalar_select %p11296_p6, 1, 0 }
  0x15   : > { %p223_p8 = scmp.eq.s32.totalorder %s8551_s10, 1  ;;  %p8552_p9 = scmp.ge.s32.totalorder %s11183_s30, 1 }
  0x16   : > { %p230_p10 = scmp.lt.s32.totalorder %s11183_s30, 3  ;;  %p11303_p11 = por %p217_p7, %p40_p0 }
  0x17   : > { %p11307_p12 = por %p223_p8, %p46_p3  ;;  %s11185_s20 = smov [#allocation5]  }
  0x18   : > { %s17146_s17 = scalar_select %p11303_p11, 1, 0 }
  0x19   : > { %s17147_s18 = scalar_select %p11307_p12, 1, 0 }
  0x1a   : > { %p11311_p13 = pnand %p8552_p9, %p230_p10  ;;  %s248_s21 = sshll.u32 %s11185_s20, 4  ;;  %s249_s21 = int_to_ptr.vmem [resolvable:$true] %s248_s21 }
  0x1b   : > { %17148 = sst [smem:[#allocation18_spill]] %s17147_s18  ;;  %s11186_s23 = smov [#allocation7]  }
  0x1c   : > { %s17149_s19 = scalar_select %p11311_p13, 1, 0 }
  0x1d   : > { %p9901_p1 = pneg %p11311_p13  ;;  %s264_s24 = sshll.u32 %s11186_s23, 4  ;;  %s265_s24 = int_to_ptr.vmem [resolvable:$true] %s264_s24 }
  0x1e   : > { %s17151_s3 = sld [smem:[#allocation117_spill]] }
  0x1f   : > { %p11319_p2 = pnand %p9901_p1, %p16597_p4 }
  0x21   : > { %p11333_p8 = pneg %p11319_p2 }
  0x24   : > { %s10995_s10 = scalar_lea.hbm %s17151_s3, 1664 }
  0x25   : > { %p10996_p7 = scmp.ne.s32.totalorder %s17151_s3, %s10995_s10  ;;  %p11002_p1 = scmp.lt.u32.totalorder %s10995_s10, %s17151_s3 }
  0x27   : > { %p10998_p9 = pnand %p11333_p8, %p10996_p7 }
  0x29   : > { %p10999_p10 = pneg %p10998_p9 }
  0x2b   : > { %p11004_p0 = pnand %p11002_p1, %p10999_p10 }
  0x2d   : > { %11007 = shalt.err (!%p11004_p0)
}
  0x2e   : > { %s11008_s23 = scalar_lea.vmem %s249_s21, 1664  ;;  %p11016_p11 = scmp.lt.s32.totalorder %s249_s21, %s249_s21 }
  0x2f   : > { %p11009_p4 = scmp.ne.s32.totalorder %s249_s21, %s11008_s23  ;;  %p11017_p6 = scmp.lt.s32.totalorder %s11008_s23, %s11008_s23 }
  0x31   : > { %p11011_p3 = pnand %p11009_p4, %p11333_p8  ;;  %p11018_p13 = por %p11017_p6, %p11016_p11 }
  0x33   : > { %p11012_p12 = pneg %p11011_p3 }
  0x35   : > { %p11019_p5 = pnand %p11018_p13, %p11012_p12 }
  0x37   : > { %11022 = shalt.err (!%p11019_p5)
}
  0x38   : > { %s11187_s25 = smov 64   ;;  %s11188_s11 = smov 4  }
  0x39   : > { %9904 = dma.hbm_to_vmem [thread:$0]  (!%p11319_p2), %s17151_s3, 1664, %s249_s21, [#allocation6], %s11187_s25, %s11187_s25, %s11188_s11  }
  0x3a   : > { %p17153_p4 = scmp.ne.s32.totalorder %s17144_s15, 0  ;;  %p17154_p0 = scmp.lt.s32.totalorder %s11183_s30, 2 }
  0x3b   : > { %s11023_s23 = scalar_lea.hbm %s16591_s5, 1664 }
  0x3c   : > { %p11355_p3 = pnand %p17154_p0, %p17153_p4  ;;  %p11024_p5 = scmp.ne.s32.totalorder %s16591_s5, %s11023_s23 }
  0x3d   : > { %p11030_p12 = scmp.lt.u32.totalorder %s11023_s23, %s16591_s5 }
  0x3e   : > { %s17155_s10 = scalar_select %p11355_p3, 1, 0 }
  0x3f   : > { %p11026_p6 = pnand %p11024_p5, %p11333_p8 }
  0x41   : > { %p11027_p11 = pneg %p11026_p6 }
  0x43   : > { %p11032_p13 = pnand %p11030_p12, %p11027_p11 }
  0x45   : > { %11035 = shalt.err (!%p11032_p13)
}
  0x46   : > { %s11036_s15 = scalar_lea.vmem %s265_s24, 1664  ;;  %p11044_p1 = scmp.lt.s32.totalorder %s265_s24, %s265_s24 }
  0x47   : > { %p11037_p7 = scmp.ne.s32.totalorder %s265_s24, %s11036_s15  ;;  %p11045_p4 = scmp.lt.s32.totalorder %s11036_s15, %s11036_s15 }
  0x49   : > { %p11039_p9 = pnand %p11037_p7, %p11333_p8  ;;  %p11046_p0 = por %p11045_p4, %p11044_p1 }
  0x4b   : > { %p11040_p10 = pneg %p11039_p9 }
  0x4d   : > { %p11047_p3 = pnand %p11046_p0, %p11040_p10 }
  0x4f   : > { %11050 = shalt.err (!%p11047_p3)
}
  0x50   : > { %9907 = dma.hbm_to_vmem [thread:$0]  (!%p11319_p2), %s16591_s5, 1664, %s265_s24, [#allocation6], %s11187_s25, %s11187_s25, %s11188_s11  }
  0x51   : > { %s11189_s26 = smov [#allocation8]   ;;  %s11051_s14 = scalar_lea.hbm %s16593_s7, 32768 }
  0x52   : > { %s280_s12 = sshll.u32 %s11189_s26, 4  ;;  %p11052_p3 = scmp.ne.s32.totalorder %s16593_s7, %s11051_s14  ;;  %s281_s12 = int_to_ptr.vmem [resolvable:$true] %s280_s12 }
  0x53   : > { %p11058_p11 = scmp.lt.u32.totalorder %s11051_s14, %s16593_s7 }
  0x54   : > { %p11054_p5 = pnand %p11052_p3, %p11333_p8 }
  0x56   : > { %p11055_p6 = pneg %p11054_p5 }
  0x58   : > { %p11060_p12 = pnand %p11058_p11, %p11055_p6 }
  0x5a   : > { %11063 = shalt.err (!%p11060_p12)
}
  0x5b   : > { %s11064_s24 = scalar_lea.vmem %s281_s12, 32768  ;;  %p11072_p10 = scmp.lt.s32.totalorder %s281_s12, %s281_s12 }
  0x5c   : > { %p11065_p13 = scmp.ne.s32.totalorder %s281_s12, %s11064_s24  ;;  %p11073_p1 = scmp.lt.s32.totalorder %s11064_s24, %s11064_s24 }
  0x5e   : > { %p11067_p7 = pnand %p11065_p13, %p11333_p8  ;;  %p11074_p4 = por %p11073_p1, %p11072_p10 }
  0x60   : > { %p11068_p9 = pneg %p11067_p7 }
  0x62   : > { %p11075_p0 = pnand %p11074_p4, %p11068_p9 }
  0x64   : > { %11078 = shalt.err (!%p11075_p0)
}
  0x65   : > { %s11190_s11 = smov 256   ;;  %s11191_s3 = smov 16  }
  0x66   : > { %9910 = dma.hbm_to_vmem [thread:$0]  (!%p11319_p2), %s16593_s7, 32768, %s281_s12, [#allocation9], %s11190_s11, %s11190_s11, %s11191_s3  }
  0x67   : > { %s294_s20 = sand.u32 1, %s11179_s29   ;;  %s9237_s18 = sshll.u32 %s11183_s30, 10 }
  0x68   : > { %s8557_s26 = sshll.u32 %s294_s20, 7  ;;  %s11402_s14 = scalar_lea.hbm %s16586_s0, %s9237_s18 }
  0x69   : > { %s298_s21 = scalar_lea.vmem [#allocation2], %s8557_s26  ;;  %s11406_s22 = scalar_lea.sflag [#allocation3], %s294_s20 }
  0x6a   : > { %s305_s15 = sshll.u32 %s298_s21, 4  ;;  %s11079_s24 = scalar_lea.hbm %s11402_s14, 2048  ;;  %s11404_s15 = int_to_ptr.vmem [resolvable:$true] %s305_s15 }
  0x6b   : > { %p11080_p2 = scmp.ne.s32.totalorder %s11402_s14, %s11079_s24  ;;  %p17156_p8 = scmp.ne.s32.totalorder %s17155_s10, 0 }
  0x6c   : > { %s11084_s3 = scalar_lea.hbm %s16586_s0, 4096  ;;  %p11085_p11 = scmp.lt.u32.totalorder %s11402_s14, %s16586_s0 }
  0x6d   : > { %p11081_p3 = pneg %p17156_p8  ;;  %p11086_p12 = scmp.lt.u32.totalorder %s11084_s3, %s11079_s24 }
  0x6e   : > { %p11088_p7 = scmp.lt.u32.totalorder %s11079_s24, %s11402_s14 }
  0x6f   : > { %p11082_p5 = pnand %p11081_p3, %p11080_p2  ;;  %p11087_p13 = por %p11086_p12, %p11085_p11 }
  0x71   : > { %p11083_p6 = pneg %p11082_p5  ;;  %p11089_p9 = por %p11088_p7, %p11087_p13 }
  0x73   : > { %p11090_p10 = pnand %p11089_p9, %p11083_p6 }
  0x75   : > { %11093 = shalt.err (!%p11090_p10)
}
  0x76   : > { %s11094_s20 = scalar_lea.vmem %s11404_s15, 2048  ;;  %s11192_s18 = smov [#allocation2]  }
  0x77   : > { %p11095_p1 = scmp.ne.s32.totalorder %s11404_s15, %s11094_s20  ;;  %s11099_s26 = sshll.u32 %s11192_s18, 4  ;;  %s11100_s26 = int_to_ptr.vmem [resolvable:$false] %s11099_s26 }
  0x78   : > { %s11101_s13 = scalar_lea.vmem %s11100_s26, 4096  ;;  %p11102_p2 = scmp.lt.s32.totalorder %s11404_s15, %s11100_s26 }
  0x79   : > { %p11097_p4 = pnand %p11095_p1, %p11081_p3  ;;  %p11103_p5 = scmp.lt.s32.totalorder %s11101_s13, %s11094_s20 }
  0x7b   : > { %p11098_p0 = pneg %p11097_p4  ;;  %p11104_p11 = por %p11103_p5, %p11102_p2 }
  0x7d   : > { %p11105_p12 = pnand %p11104_p11, %p11098_p0 }
  0x7f   : > { %11108 = shalt.err (!%p11105_p12)
}
  0x80   : > { %s11193_s23 = smov 2048   ;;  %s11194_s21 = smov 1024  }
  0x81   : > { %9914 = dma.hbm_to_vmem [thread:$0]  (!%p17156_p8), %s11402_s14, 2048, %s11404_s15, %s11406_s22, %s11193_s23, %s11194_s21, %s11187_s25  }
  0x82   : > { %p17157_p3 = scmp.ne.s32.totalorder %s17149_s19, 0 }
  0x84   : > { %317 = sbr.rel (%p17157_p3) target bundleno = 1849 (0x739), region = 52 }
  0x8b   : > { %s11438_s24 = sand.u32 1, %s11175_s28   ;;  %p17158_p6 = scmp.ne.s32.totalorder %s17145_s16, 0 }
  0x8c   : > { %s8561_s12 = sshll.u32 %s11438_s24, 7  ;;  %s320_s11 = scalar_lea.sflag [#allocation3], %s11438_s24 }
  0x8d   : > { %s11442_s3 = scalar_lea.vmem [#allocation2], %s8561_s12 }
  0x8e   : > { %11154 = dma.done.wait (%p17158_p6), %s320_s11, 2048  }
  0x8f   : > { %11156 = vsyncadd (%p17158_p6), %s320_s11, 4294965248  ;;  %p17159_p8 = scmp.eq.s32.totalorder %s11272_s9, 0 }
  0x91   : > { %11158 = dma.done.wait (%p17159_p8), [#allocation6], 3328   ;;  %p17160_p13 = pmov %p17159_p8 }
  0x92   : > { %p17161_p7 = pmov %p17159_p8 }
  0x93   : > { %11160 = vsyncadd (%p17160_p13), [#allocation6], 4294963968 }
  0x94   : > { %11162 = dma.done.wait (%p17161_p7), [#allocation9], 32768   ;;  %p17162_p9 = pmov %p17161_p7 }
  0x95   : > { %v16628_v0 = vmov 0   ;;  %v11461_v1 = vld [vmem:[%s11442_s3 + $0x10] sm:$0xff]  ;;  %v11467_v3 = vld [vmem:[%s11442_s3 + $0x8] sm:$0xff]  ;;  %v11477_v6 = vld [vmem:[%s11442_s3 + $0x18] sm:$0xff]  ;;  %s11196_s16 = smov 17   ;;  %s11197_s19 = smov 16   ;;  %v430_v27 = vlaneseq }
  0x96   : > { %11164 = vsyncadd (%p17162_p9), [#allocation9], 4294934528  ;;  %1099 = vmatprep.mubr.bf16.mxu1 %v16628_v0  ;;  %1056 = vmatprep.mubr.bf16.mxu0 %v16628_v0  ;;  %v11464_v2 = vld [vmem:[%s11442_s3 + $0x50] sm:$0xff]  ;;  %v11474_v5 = vld [vmem:[%s11442_s3 + $0x48] sm:$0xff]  ;;  %s11198_s25 = smov 15   ;;  %s11199_s10 = smov 1  }
  0x97   : > { %10418 = vset.pattern.permute.xlu0 %v16628_v0  ;;  %10419 = vset.pattern.permute.xlu1 %v16628_v0  ;;  %v11471_v4 = vpack.i.bf16 %v11464_v2, %v11461_v1  ;;  %v11480_v7 = vld [vmem:[%s11442_s3 + $0x58] sm:$0xff]  ;;  %v11484_v8 = vpack.i.bf16 %v11474_v5, %v11467_v3  ;;  %v11487_v9 = vld [vmem:[%s11442_s3] sm:$0xff]  ;;  %v11505_v13 = vld [vmem:[%s11442_s3 + $0x30] sm:$0xff]  ;;  %s11200_s14 = smov 127   ;;  %s11201_s15 = smov 113   ;;  %v451_v28 = vshrl.u32 %v430_v27, 7 }
  0x98   : > { %v11490_v10 = vld [vmem:[%s11442_s3 + $0x40] sm:$0xff]  ;;  %v11496_v11 = vpack.i.bf16 %v11480_v7, %v11477_v6  ;;  %v11508_v14 = vld [vmem:[%s11442_s3 + $0x70] sm:$0xff]  ;;  %v11511_v15 = vld [vmem:[%s11442_s3 + $0x38] sm:$0xff]  ;;  %s11202_s22 = smov 112   ;;  %v11681_v35 = vand.u32 127, %v430_v27  ;;  %s11203_s26 = smov 111  }
  0x99   : > { %9979 = vrot.lane.b32.xlu0 %v11471_v4, %s11196_s16  ;;  %9989 = vrot.lane.b32.xlu1 %v11484_v8, %s11196_s16  ;;  %v11502_v12 = vpack.i.bf16 %v11490_v10, %v11487_v9  ;;  %v11514_v16 = vld [vmem:[%s11442_s3 + $0x78] sm:$0xff]  ;;  %v11517_v17 = vld [vmem:[%s11442_s3 + $0x28] sm:$0xff]  ;;  %v11526_v19 = vpack.i.bf16 %v11508_v14, %v11505_v13  ;;  %v11668_v29 = vsub.s32 1, %v451_v28  ;;  %v11670_v30 = vsub.s32 3, %v451_v28  ;;  %s11204_s13 = smov 96   ;;  %p18407_p1 = scmp.ne.s32.totalorder %s17146_s17, 0 }
  0x9a   : > { %v11520_v18 = vld [vmem:[%s11442_s3 + $0x68] sm:$0xff]  ;;  %v11529_v20 = vld [vmem:[%s11442_s3 + $0x20] sm:$0xff]  ;;  %v11538_v22 = vpack.i.bf16 %v11514_v16, %v11511_v15  ;;  %v11675_v32 = vsub.s32 2, %v451_v28  ;;  %v11677_v33 = vsub.s32 0, %v451_v28  ;;  %v11679_v34 = vsub.s32 7, %v451_v28  ;;  %s11205_s21 = smov [#allocation10]  }
  0x9b   : > { %v11532_v21 = vld [vmem:[%s11442_s3 + $0x60] sm:$0xff]  ;;  %v11544_v23 = vpack.i.bf16 %v11520_v18, %v11517_v17  ;;  %vm16615_vm3 = vcmp.lt.s32.totalorder %v11681_v35, 17  ;;  %v17168_v47 = vmov 0  ;;  %v11706_v48 = vsub.s32 5, %v451_v28  ;;  %s11113_s12 = sshll.u32 %s11205_s21, 4  ;;  %s11114_s12 = int_to_ptr.vmem [resolvable:$false] %s11113_s12 }
  0x9c   : > { %v11550_v24 = vpack.i.bf16 %v11532_v21, %v11529_v20  ;;  %v11647_v25 = vld [vmem:[%s16587_s1] sm:$0xff]  ;;  %17166 = vst [vmem:[#allocation22_spill] sm:$0xff] %v11677_v33  ;;  %17167 = vst [vmem:[#allocation23_spill] sm:$0xff] %v11679_v34  ;;  %v11708_v49 = vsub.s32 6, %v451_v28  ;;  %v17173_v51 = vmov 0  ;;  %v17176_v52 = vmov 0 }
  0x9d   : > { %9984 = vrot.lane.b32.xlu0 %v11496_v11, %s11196_s16  ;;  %9994 = vrot.lane.b32.xlu1 %v11502_v12, %s11196_s16  ;;  %17163 = vst [vmem:[#allocation19_spill] sm:$0xff] %v11544_v23  ;;  %17164 = vst [vmem:[#allocation20_spill] sm:$0xff] %v11647_v25  ;;  %v11652_v26 = vld [vmem:[%s16588_s2] sm:$0xff]  ;;  %vm373_vm0 = vcmp.ge.s32.totalorder %v11647_v25, 1  ;;  %v17179_v53 = vmov 0  ;;  %v17182_v54 = vmov 0 }
  0x9e   : > { %17165 = vst [vmem:[#allocation21_spill] sm:$0xff] %v11652_v26  ;;  %vm16617_vm1 = vcmp.ge.s32.totalorder %v11652_v26, 1  ;;  %17171 = vst [vmem:[#allocation25_spill] sm:$0xff] %v11706_v48  ;;  %v11730_v58 = vsub.s32 4, %v451_v28  ;;  %vm16630_vm13 = vcmask 130048   ;;  %s11115_s11 = scalar_lea.vmem %s11114_s12, 512 }
  0x9f   : > { %vm375_vm2 = vmand %vm373_vm0, %vm16617_vm1  ;;  %17172 = vst [vmem:[#allocation26_spill] sm:$0xff] %v11708_v49 }
  0xa0   : > { %v11673_v31 = vsel %vm375_vm2, 1, %v16628_v0  ;;  %17185 = vst [vmem:[#allocation31_spill] sm:$0xff] %v11730_v58 }
  0xa1   : > { %9999 = vrot.lane.b32.xlu0 %v11526_v19, %s11196_s16  ;;  %10004 = vrot.lane.b32.xlu1 %v11538_v22, %s11196_s16  ;;  %v958_v36 = vrot.slane %v11673_v31, %v11668_v29  ;;  %v966_v38 = vrot.slane %v11673_v31, %v11670_v30  ;;  %v962_v39 = vrot.slane %v11673_v31, %v11675_v32 }
  0xa2   : > { %v954_v40 = vrot.slane %v11673_v31, %v11677_v33  ;;  %v982_v41 = vrot.slane %v11673_v31, %v11679_v34  ;;  %v974_v28 = vrot.slane %v11673_v31, %v11706_v48 }
  0xa3   : > { %vm11700_vm4 = vcmp.eq.s32.totalorder %v958_v36, 1  ;;  %vm11712_vm5 = vcmp.eq.s32.totalorder %v966_v38, 1  ;;  %vm11716_vm6 = vcmp.eq.s32.totalorder %v962_v39, 1  ;;  %v978_v36 = vrot.slane %v11673_v31, %v11708_v49 }
  0xa4   : > { %v17169_v47 = vsel %vm11700_vm4, 4294967295, %v17168_v47  ;;  %v17174_v51 = vsel %vm11712_vm5, 4294967295, %v17173_v51  ;;  %v17177_v52 = vsel %vm11716_vm6, 4294967295, %v17176_v52  ;;  %vm11720_vm7 = vcmp.eq.s32.totalorder %v954_v40, 1  ;;  %vm16611_vm9 = vmpackc.low %vm11700_vm4, %vm11700_vm4 }
  0xa5   : > { %10009 = vrot.lane.b32.xlu0 %v11544_v23, %s11196_s16  ;;  %10014 = vrot.lane.b32.xlu1 %v11550_v24, %s11196_s16  ;;  %17170 = vst [vmem:[#allocation24_spill] sm:$0xff] %v17169_v47  ;;  %17175 = vst [vmem:[#allocation27_spill] sm:$0xff] %v17174_v51  ;;  %v17180_v53 = vsel %vm11720_vm7, 4294967295, %v17179_v53  ;;  %vm11724_vm8 = vcmp.eq.s32.totalorder %v982_v41, 1  ;;  %vm11789_vm14 = vcmp.eq.s32.totalorder %v974_v28, 1  ;;  %vm11793_vm15 = vcmp.eq.s32.totalorder %v978_v36, 1 }
  0xa6   : > { %17178 = vst [vmem:[#allocation28_spill] sm:$0xff] %v17177_v52  ;;  %17181 = vst [vmem:[#allocation29_spill] sm:$0xff] %v17180_v53  ;;  %v17183_v54 = vsel %vm11724_vm8, 4294967295, %v17182_v54  ;;  %v17282_v52 = vmov 0 }
  0xa7   : > { %17184 = vst [vmem:[#allocation30_spill] sm:$0xff] %v17183_v54  ;;  %vm16608_vm10 = vmpackc.low %vm11712_vm5, %vm11712_vm5 }
  0xa8   : > { %vm16607_vm11 = vmpackc.low %vm11716_vm6, %vm11716_vm6 }
  0xa9   : > { %10019 = vrot.lane.b32.xlu0 %v11471_v4, %s11197_s19  ;;  %10024 = vrot.lane.b32.xlu1 %v11496_v11, %s11197_s19  ;;  %vm16610_vm12 = vmpackc.low %vm11720_vm7, %vm11720_vm7  ;;  %vm17231_vm7 = vcmask 130048  }
  0xaa   : > { %vm16609_vm2 = vmpackc.low %vm11724_vm8, %vm11724_vm8 }
  0xad   : > { %10029 = vrot.lane.b32.xlu0 %v11484_v8, %s11197_s19  ;;  %10034 = vrot.lane.b32.xlu1 %v11502_v12, %s11197_s19 }
  0xb1   : > { %10039 = vrot.lane.b32.xlu0 %v11526_v19, %s11197_s19  ;;  %10044 = vrot.lane.b32.xlu1 %v11538_v22, %s11197_s19 }
  0xb5   : > { %10049 = vrot.lane.b32.xlu0 %v11544_v23, %s11197_s19  ;;  %10054 = vrot.lane.b32.xlu1 %v11550_v24, %s11197_s19 }
  0xb9   : > { %10059 = vrot.lane.b32.xlu0 %v11471_v4, %s11198_s25  ;;  %10064 = vrot.lane.b32.xlu1 %v11496_v11, %s11198_s25 }
  0xbd   : > { %10069 = vrot.lane.b32.xlu0 %v11484_v8, %s11198_s25  ;;  %10074 = vrot.lane.b32.xlu1 %v11502_v12, %s11198_s25 }
  0xc1   : > { %10079 = vrot.lane.b32.xlu0 %v11526_v19, %s11198_s25  ;;  %10084 = vrot.lane.b32.xlu1 %v11538_v22, %s11198_s25 }
  0xc5   : > { %10089 = vrot.lane.b32.xlu0 %v11544_v23, %s11198_s25  ;;  %10094 = vrot.lane.b32.xlu1 %v11550_v24, %s11198_s25 }
  0xc9   : > { %10099 = vrot.lane.b32.xlu0 %v11471_v4, %s11199_s10  ;;  %10104 = vrot.lane.b32.xlu1 %v11496_v11, %s11199_s10 }
  0xcd   : > { %10109 = vrot.lane.b32.xlu0 %v11484_v8, %s11199_s10  ;;  %10114 = vrot.lane.b32.xlu1 %v11502_v12, %s11199_s10 }
  0xd1   : > { %10119 = vrot.lane.b32.xlu0 %v11526_v19, %s11199_s10  ;;  %10124 = vrot.lane.b32.xlu1 %v11538_v22, %s11199_s10 }
  0xd5   : > { %10129 = vrot.lane.b32.xlu0 %v11544_v23, %s11199_s10  ;;  %10134 = vrot.lane.b32.xlu1 %v11550_v24, %s11199_s10 }
  0xd9   : > { %10139 = vrot.lane.b32.xlu0 %v11496_v11, %s11200_s14  ;;  %10144 = vrot.lane.b32.xlu1 %v11550_v24, %s11200_s14 }
  0xdd   : > { %10149 = vrot.lane.b32.xlu0 %v11471_v4, %s11200_s14  ;;  %10154 = vrot.lane.b32.xlu1 %v11484_v8, %s11200_s14 }
  0xe1   : > { %10159 = vrot.lane.b32.xlu0 %v11502_v12, %s11200_s14  ;;  %10164 = vrot.lane.b32.xlu1 %v11538_v22, %s11200_s14 }
  0xe5   : > { %10169 = vrot.lane.b32.xlu0 %v11526_v19, %s11200_s14  ;;  %10174 = vrot.lane.b32.xlu1 %v11544_v23, %s11200_s14 }
  0xe9   : > { %10179 = vrot.lane.b32.xlu0 %v11496_v11, %s11201_s15  ;;  %10184 = vrot.lane.b32.xlu1 %v11550_v24, %s11201_s15 }
  0xed   : > { %10189 = vrot.lane.b32.xlu0 %v11471_v4, %s11201_s15  ;;  %10194 = vrot.lane.b32.xlu1 %v11484_v8, %s11201_s15 }
  0xf1   : > { %10199 = vrot.lane.b32.xlu0 %v11502_v12, %s11201_s15  ;;  %10204 = vrot.lane.b32.xlu1 %v11538_v22, %s11201_s15 }
  0xf5   : > { %10209 = vrot.lane.b32.xlu0 %v11526_v19, %s11201_s15  ;;  %10214 = vrot.lane.b32.xlu1 %v11544_v23, %s11201_s15 }
  0xf9   : > { %10219 = vrot.lane.b32.xlu0 %v11496_v11, %s11202_s22  ;;  %10224 = vrot.lane.b32.xlu1 %v11550_v24, %s11202_s22 }
  0xfd   : > { %10229 = vrot.lane.b32.xlu0 %v11471_v4, %s11202_s22  ;;  %10234 = vrot.lane.b32.xlu1 %v11484_v8, %s11202_s22 }
 0x101   : > { %10239 = vrot.lane.b32.xlu0 %v11502_v12, %s11202_s22  ;;  %10244 = vrot.lane.b32.xlu1 %v11538_v22, %s11202_s22 }
 0x105   : > { %10249 = vrot.lane.b32.xlu0 %v11526_v19, %s11202_s22  ;;  %10254 = vrot.lane.b32.xlu1 %v11544_v23, %s11202_s22 }
 0x109   : > { %10259 = vrot.lane.b32.xlu0 %v11496_v11, %s11203_s26  ;;  %10264 = vrot.lane.b32.xlu1 %v11550_v24, %s11203_s26 }
 0x10b   : > { %v9980_v37 = vpop.permute.xlu0 %9979  ;;  %v9990_v42 = vpop.permute.xlu1 %9989 }
 0x10c   : > { %v9982_v43 = vunpack.i.h.bf16 %v9980_v37  ;;  %v9981_v44 = vunpack.i.l.bf16 %v9980_v37  ;;  %v9992_v45 = vunpack.i.h.bf16 %v9990_v42  ;;  %v9991_v46 = vunpack.i.l.bf16 %v9990_v42 }
 0x10d   : > { %10269 = vrot.lane.b32.xlu0 %v11471_v4, %s11203_s26  ;;  %10274 = vrot.lane.b32.xlu1 %v11484_v8, %s11203_s26 }
 0x10e   : > { %v944_v61 = vsel %vm16615_vm3, %v9991_v46, %v9981_v44  ;;  %v945_v62 = vsel %vm16615_vm3, %v9992_v45, %v9982_v43 }
 0x10f   : > { %v11710_v50 = vpop.permute.xlu0 %9984  ;;  %v9995_v57 = vpop.permute.xlu1 %9994 }
 0x110   : > { %v16606_v55 = vunpack.i.h.bf16 %v11710_v50  ;;  %v16605_v56 = vunpack.i.l.bf16 %v11710_v50  ;;  %v9997_v59 = vunpack.i.h.bf16 %v9995_v57  ;;  %v9996_v60 = vunpack.i.l.bf16 %v9995_v57 }
 0x111   : > { %10279 = vrot.lane.b32.xlu0 %v11502_v12, %s11203_s26  ;;  %10284 = vrot.lane.b32.xlu1 %v11538_v22, %s11203_s26  ;;  %v8578_v57 = vpack.c.bf16 %v945_v62, %v944_v61  ;;  %v17189_v61 = vmov 0 }
 0x112   : > { %v942_v63 = vsel %vm16615_vm3, %v9981_v44, %v16605_v56  ;;  %v943_v27 = vsel %vm16615_vm3, %v9982_v43, %v16606_v55  ;;  %v946_v38 = vsel %vm16615_vm3, %v9996_v60, %v9991_v46  ;;  %v947_v39 = vsel %vm16615_vm3, %v9997_v59, %v9992_v45  ;;  %v11770_v46 = vld [vmem:[#allocation5 + $0x8] sm:$0xff]  }
 0x113   : > { %v10000_v37 = vpop.permute.xlu0 %9999  ;;  %v8575_v40 = vpack.c.bf16 %v943_v27, %v942_v63  ;;  %v10005_v43 = vpop.permute.xlu1 %10004  ;;  %v8568_v44 = vpack.c.bf16 %v947_v39, %v946_v38  ;;  %v970_v45 = vrot.slane %v11673_v31, %v11730_v58  ;;  %v17186_v31 = vmov 0 }
 0x114   : > { %v10002_v41 = vunpack.i.h.bf16 %v10000_v37  ;;  %v10001_v42 = vunpack.i.l.bf16 %v10000_v37  ;;  %v10007_v56 = vunpack.i.h.bf16 %v10005_v43  ;;  %v10006_v55 = vunpack.i.l.bf16 %v10005_v43 }
 0x115   : > { %8576 = vmatprep.subr.msk.bf16.mxu1 %vm16608_vm10, %v8575_v40  ;;  %10289 = vrot.lane.b32.xlu0 %v11526_v19, %s11203_s26  ;;  %v17187_v31 = vsel %vm11789_vm14, 4294967295, %v17186_v31  ;;  %v17190_v61 = vsel %vm11793_vm15, 4294967295, %v17189_v61  ;;  %vm16612_vm10 = vmpackc.low %vm11793_vm15, %vm11793_vm15  ;;  %vm17218_vm15 = vcmp.lt.s32.totalorder %v11681_v35, 16 }
 0x116   : > { %8569 = vmatprep.subr.msk.bf16.mxu0 %vm16611_vm9, %v8568_v44  ;;  %8579 = vmatpush1.bf16.msk.msra.mxu1 %vm16607_vm11, %v8578_v57  ;;  %17188 = vst [vmem:[#allocation32_spill] sm:$0xff] %v17187_v31  ;;  %17191 = vst [vmem:[#allocation33_spill] sm:$0xff] %v17190_v61  ;;  %v935_v62 = vsel %vm16615_vm3, %v10002_v41, %v10007_v56  ;;  %v934_v63 = vsel %vm16615_vm3, %v10001_v42, %v10006_v55  ;;  %vm11812_vm11 = vcmp.eq.s32.totalorder %v970_v45, 1 }
 0x117   : > { %v10010_v27 = vpop.permute.xlu0 %10009  ;;  %v948_v37 = vsel %vm16615_vm3, %v10006_v55, %v9996_v60  ;;  %v949_v28 = vsel %vm16615_vm3, %v10007_v56, %v9997_v59  ;;  %10294 = vrot.lane.b32.xlu1 %v11544_v23, %s11203_s26  ;;  %v10015_v39 = vpop.permute.xlu1 %10014  ;;  %v8589_v43 = vpack.c.bf16 %v935_v62, %v934_v63  ;;  %v17192_v55 = vmov 0  ;;  %vm17219_vm8 = vmmov %vm17218_vm15 }
 0x118   : > { %v10012_v36 = vunpack.i.h.bf16 %v10010_v27  ;;  %v10011_v38 = vunpack.i.l.bf16 %v10010_v27  ;;  %v8571_v40 = vpack.c.bf16 %v949_v28, %v948_v37  ;;  %v10017_v44 = vunpack.i.h.bf16 %v10015_v39  ;;  %vm17253_vm4 = vmmov %vm17219_vm8 }
 0x119   : > { %v10016_v57 = vunpack.i.l.bf16 %v10015_v39  ;;  %8580 = vmatmul.mubr.msk.bf16.vlgmr.msra.gmra.mrb[0].mxu1 %vm16630_vm13, %v11770_v46  ;;  %v17193_v55 = vsel %vm11812_vm11, 4294967295, %v17192_v55  ;;  %10299 = vrot.lane.b32.xlu0 %v11496_v11, %s11204_s13  ;;  %v11821_v56 = vsel %vm373_vm0, 1, %v16628_v0  ;;  %v893_v11 = vpack.c.bf16 %v11480_v7, %v11477_v6 }
 0x11a   : > { %17194 = vst [vmem:[#allocation34_spill] sm:$0xff] %v17193_v55  ;;  %v936_v59 = vsel %vm16615_vm3, %v10011_v38, %v10001_v42  ;;  %v937_v60 = vsel %vm16615_vm3, %v10012_v36, %v10002_v41  ;;  %8572 = vmatpush1.bf16.msk.msra.mxu0 %vm16610_vm12, %v8571_v40  ;;  %8590 = vmatprep.subr.msk.bf16.mxu1 %vm16609_vm2, %v8589_v43  ;;  %v17195_v45 = vunpack.i.h.bf16 %v11710_v50  ;;  %vm16614_vm2 = vmpackc.low %vm11789_vm14, %vm11789_vm14  ;;  %v17196_v6 = vunpack.i.l.bf16 %v11710_v50 }
 0x11b   : > { %v8592_v41 = vpack.c.bf16 %v937_v60, %v936_v59  ;;  %v939_v42 = vsel %vm16615_vm3, %v10017_v44, %v10012_v36  ;;  %v938_v63 = vsel %vm16615_vm3, %v10016_v57, %v10011_v38  ;;  %v11850_v27 = vpop.permute.xlu0 %10019  ;;  %1185 = vmatprep.mubr.bf16.mxu1 %v16628_v0  ;;  %v11860_v37 = vpop.permute.xlu1 %10024  ;;  %vm16613_vm12 = vmpackc.low %vm11812_vm11, %vm11812_vm11  ;;  %v891_v36 = vpack.c.bf16 %v11474_v5, %v11467_v3 }
 0x11c   : > { %v941_v62 = vsel %vm16615_vm3, %v17195_v45, %v10017_v44  ;;  %v940_v7 = vsel %vm16615_vm3, %v17196_v6, %v10016_v57  ;;  %v8582_v28 = vpack.c.bf16 %v939_v42, %v938_v63  ;;  %10304 = vrot.lane.b32.xlu1 %v11550_v24, %s11204_s13  ;;  %v892_v3 = vpack.c.bf16 %v11464_v2, %v11461_v1  ;;  %vm17230_vm14 = vmmov %vm17219_vm8 }
 0x11d   : > { %v8585_v38 = vpack.c.bf16 %v941_v62, %v940_v7  ;;  %8573 = vmatmul.mubr.msk.bf16.vlgmr.msra.gmra.mrb[0].mxu0 %vm16630_vm13, %v11770_v46  ;;  %8593 = vmatpush1.bf16.msk.msra.mxu1 %vm16612_vm10, %v8592_v41  ;;  %vm16616_vm9 = vcmp.le.s32.totalorder %v11652_v26, 14  ;;  %v897_v24 = vpack.c.bf16 %v11514_v16, %v11511_v15  ;;  %v709_v50 = vrot.slane %v11821_v56, %v11670_v30  ;;  %v11974_v62 = vld [vmem:[#allocation5] sm:$0xff]  }
 0x11e   : > { %8583 = vmatprep.subr.msk.bf16.mxu0 %vm16614_vm2, %v8582_v28  ;;  %1142 = vmatprep.mubr.bf16.mxu0 %v16628_v0  ;;  %v701_v1 = vrot.slane %v11821_v56, %v11668_v29  ;;  %v11901_v2 = vsel %vm16617_vm1, 1, %v16628_v0  ;;  %v705_v40 = vrot.slane %v11821_v56, %v11675_v32  ;;  %v10022_v15 = vunpack.i.h.bf16 %v11850_v27 }
 0x11f   : > { %8586 = vmatpush1.bf16.msk.msra.mxu0 %vm16613_vm12, %v8585_v38  ;;  %v11890_v5 = vpop.permute.xlu0 %10029  ;;  %1247 = vmatprep.subr.bf16.mxu1 %v893_v11  ;;  %v11903_v39 = vpop.permute.xlu1 %10034  ;;  %v10021_v16 = vunpack.i.l.bf16 %v11850_v27  ;;  %v16625_v43 = vunpack.i.h.bf16 %v11860_v37  ;;  %v16626_v44 = vunpack.i.l.bf16 %v11860_v37  ;;  %v11920_v57 = vsel %vm16616_vm9, 1, %v16628_v0  ;;  %vm11932_vm12 = vmand %vm373_vm0, %vm16616_vm9 }
 0x120   : > { %1204 = vmatprep.subr.bf16.mxu0 %v891_v36  ;;  %10309 = vrot.lane.b32.xlu0 %v11471_v4, %s11204_s13  ;;  %vm16618_vm10 = vcmp.lt.s32.totalorder %v11681_v35, 16  ;;  %v890_v4 = vpack.c.bf16 %v11490_v10, %v11487_v9  ;;  %v896_v59 = vpack.c.bf16 %v11508_v14, %v11505_v13  ;;  %v895_v11 = vpack.c.bf16 %v11520_v18, %v11517_v17 }
 0x121   : > { %8594 = vmatmul.mubr.msk.bf16.vlgmr.msra.gmra.mrb[4].mxu1 %vm16630_vm13, %v11770_v46  ;;  %10314 = vrot.lane.b32.xlu1 %v11484_v8, %s11204_s13  ;;  %v894_v9 = vpack.c.bf16 %v11532_v21, %v11529_v20  ;;  %v725_v10 = vrot.slane %v11821_v56, %v11679_v34  ;;  %v697_v13 = vrot.slane %v11821_v56, %v11677_v33  ;;  %vm11948_vm0 = vcmp.eq.s32.totalorder %v709_v50, 1 }
 0x122   : > { %1248 = vmatpush1.bf16.msra.mxu1 %v892_v3  ;;  %1279 = vmatprep.mubr.bf16.mxu1 %v16628_v0  ;;  %v17199_v41 = vmov 0  ;;  %vm11952_vm2 = vcmp.eq.s32.totalorder %v701_v1, 1  ;;  %v17202_v42 = vmov 0  ;;  %v717_v17 = vrot.slane %v11821_v56, %v11706_v48  ;;  %vm12011_vm1 = vmpackc.low %vm11948_vm0, %vm11948_vm0 }
 0x123   : > { %v11936_v60 = vpop.permute.xlu0 %10039  ;;  %1333 = vmatprep.subr.bf16.mxu1 %v897_v24  ;;  %v11946_v14 = vpop.permute.xlu1 %10044  ;;  %v17200_v41 = vsel %vm11948_vm0, 4294967295, %v17199_v41  ;;  %v17203_v42 = vsel %vm11952_vm2, 4294967295, %v17202_v42  ;;  %v1420_v18 = vsel %vm16618_vm10, %v10022_v15, %v16625_v43  ;;  %v1419_v45 = vsel %vm16618_vm10, %v10021_v16, %v16626_v44 }
 0x124   : > { %17201 = vst [vmem:[#allocation35_spill] sm:$0xff] %v17200_v41  ;;  %17204 = vst [vmem:[#allocation36_spill] sm:$0xff] %v17203_v42  ;;  %10319 = vrot.lane.b32.xlu0 %v11502_v12, %s11204_s13  ;;  %vm11976_vm3 = vcmp.eq.s32.totalorder %v705_v40, 1  ;;  %v17205_v12 = vmov 0  ;;  %v11983_v63 = vsel %vm11932_vm12, 1, %v16628_v0  ;;  %v10032_v6 = vunpack.i.h.bf16 %v11890_v5 }
 0x125   : > { %8587 = vmatmul.mubr.msk.bf16.vlgmr.msra.gmra.mrb[4].mxu0 %vm16630_vm13, %v11770_v46  ;;  %v17206_v12 = vsel %vm11976_vm3, 4294967295, %v17205_v12  ;;  %10324 = vrot.lane.b32.xlu1 %v11538_v22, %s11204_s13  ;;  %v10031_v7 = vunpack.i.l.bf16 %v11890_v5  ;;  %v16627_v46 = vunpack.i.h.bf16 %v11903_v39  ;;  %v10036_v28 = vunpack.i.l.bf16 %v11903_v39 }
 0x126   : > { %17207 = vst [vmem:[#allocation37_spill] sm:$0xff] %v17206_v12  ;;  %1205 = vmatpush1.bf16.msra.mxu0 %v890_v4  ;;  %1236 = vmatprep.mubr.bf16.mxu0 %v16628_v0  ;;  %vm11994_vm9 = vcmp.eq.s32.totalorder %v725_v10, 1  ;;  %v17208_v38 = vmov 0  ;;  %vm11998_vm12 = vcmp.eq.s32.totalorder %v697_v13, 1  ;;  %v17211_v22 = vmov 0 }
 0x127   : > { %v11992_v36 = vpop.permute.xlu0 %10049  ;;  %1290 = vmatprep.subr.bf16.mxu0 %v895_v11  ;;  %v17209_v38 = vsel %vm11994_vm9, 4294967295, %v17208_v38  ;;  %v17212_v22 = vsel %vm11998_vm12, 4294967295, %v17211_v22  ;;  %v721_v3 = vrot.slane %v11821_v56, %v11708_v49  ;;  %v713_v5 = vrot.slane %v11821_v56, %v11730_v58  ;;  %v12006_v24 = vpop.permute.xlu1 %10054  ;;  %vm12141_vm5 = vmpackc.low %vm11994_vm9, %vm11994_vm9 }
 0x128   : > { %17210 = vst [vmem:[#allocation38_spill] sm:$0xff] %v17209_v38  ;;  %17213 = vst [vmem:[#allocation39_spill] sm:$0xff] %v17212_v22  ;;  %v17214_v50 = vmov 0  ;;  %v12015_v1 = vpack.c.bf16 %v1420_v18, %v1419_v45  ;;  %v1715_v40 = vrot.slane %v11983_v63, %v11670_v30  ;;  %v1707_v56 = vrot.slane %v11983_v63, %v11668_v29  ;;  %10329 = vrot.lane.b32.xlu0 %v11526_v19, %s11204_s13 }
 0x129   : > { %v17215_v50 = vsel %vm12011_vm1, 4294967295, %v17214_v50  ;;  %v16637_v8 = vunpack.i.h.bf16 %v11936_v60  ;;  %v16638_v11 = vunpack.i.l.bf16 %v11936_v60  ;;  %v10047_v10 = vunpack.i.h.bf16 %v11946_v14  ;;  %8597 = vmatmul.mubr.msk.bf16.vlgmr.msra.gmra.mrb[0].mxu1 %vm16630_vm13, %v11974_v62  ;;  %vm17229_vm13 = vmmov %vm17219_vm8 }
 0x12a   : > { %17216 = vst [vmem:[#allocation40_spill] sm:$0xff] %v17215_v50  ;;  %17217 = vst [vmem:[#allocation41_spill] sm:$0xff] %v12015_v1  ;;  %v10046_v13 = vunpack.i.l.bf16 %v11946_v14  ;;  %v1424_v18 = vsel %vm17218_vm15, %v16627_v46, %v10032_v6  ;;  %v1423_v19 = vsel %vm17219_vm8, %v10036_v28, %v10031_v7  ;;  %1334 = vmatpush1.bf16.msra.mxu1 %v896_v59  ;;  %1365 = vmatprep.mubr.bf16.mxu1 %v16628_v0  ;;  %v17220_v45 = vmov 0 }
 0x12b   : > { %vm12039_vm11 = vcmp.eq.s32.totalorder %v717_v17, 1  ;;  %v1711_v14 = vrot.slane %v11983_v63, %v11675_v32  ;;  %8610 = vmatprep.subr.msk.bf16.mxu1 %vm12011_vm1, %v12015_v1  ;;  %v12048_v4 = vpop.permute.xlu0 %10059  ;;  %v1422_v46 = vsel %vm17219_vm8, %v10032_v6, %v10022_v15  ;;  %v12062_v0 = vpop.permute.xlu1 %10064  ;;  %vm12067_vm15 = vmpackc.low %vm11952_vm2, %vm11952_vm2  ;;  %v17223_v43 = vmov 0 }
 0x12c   : > { %v17221_v45 = vsel %vm12039_vm11, 4294967295, %v17220_v45  ;;  %v17224_v43 = vsel %vm12067_vm15, 4294967295, %v17223_v43  ;;  %vm12071_vm10 = vcmp.eq.s32.totalorder %v721_v3, 1  ;;  %v17226_v59 = vmov 0  ;;  %vm12171_vm9 = vmpackc.low %vm11998_vm12, %vm11998_vm12 }
 0x12d   : > { %17222 = vst [vmem:[#allocation42_spill] sm:$0xff] %v17221_v45  ;;  %17225 = vst [vmem:[#allocation43_spill] sm:$0xff] %v17224_v43  ;;  %v17227_v59 = vsel %vm12071_vm10, 4294967295, %v17226_v59  ;;  %v1421_v6 = vsel %vm17219_vm8, %v10031_v7, %v10021_v16  ;;  %v1412_v3 = vsel %vm17229_vm13, %v16637_v8, %v10047_v10  ;;  %v1411_v44 = vsel %vm17230_vm14, %v16638_v11, %v10046_v13 }
 0x12e   : > { %17228 = vst [vmem:[#allocation44_spill] sm:$0xff] %v17227_v59  ;;  %8596 = vmatmul.mubr.msk.bf16.vlgmr.msra.gmra.mrb[0].mxu0 %vm17231_vm7, %v11974_v62  ;;  %v12095_v17 = vpack.c.bf16 %v1424_v18, %v1423_v19  ;;  %vm12097_vm6 = vcmp.eq.s32.totalorder %v1715_v40, 1  ;;  %v17233_v27 = vmov 0  ;;  %v10052_v16 = vunpack.i.h.bf16 %v11992_v36  ;;  %vm12117_vm7 = vmpackc.low %vm11976_vm3, %vm11976_vm3 }
 0x12f   : > { %v17234_v27 = vsel %vm12097_vm6, 4294967295, %v17233_v27  ;;  %v10051_v7 = vunpack.i.l.bf16 %v11992_v36  ;;  %1291 = vmatpush1.bf16.msra.mxu0 %v894_v9  ;;  %v17236_v11 = vmov 0   ;;  %v12112_v40 = vpop.permute.xlu0 %10069  ;;  %v17237_v36 = vmov 0  ;;  %vm17241_vm14 = vmmov %vm17219_vm8  ;;  %v12136_v61 = vpop.permute.xlu1 %10074 }
 0x130   : > { %17232 = vst [vmem:[#allocation45_spill] sm:$0xff] %v12095_v17  ;;  %17235 = vst [vmem:[#allocation46_spill] sm:$0xff] %v17234_v27  ;;  %1322 = vmatprep.mubr.bf16.mxu0 %v17236_v11  ;;  %8603 = vmatprep.subr.msk.bf16.mxu0 %vm12067_vm15, %v12095_v17  ;;  %v17238_v36 = vsel %vm12117_vm7, 4294967295, %v17237_v36  ;;  %v12128_v9 = vpack.c.bf16 %v1422_v46, %v1421_v6  ;;  %v1425_v19 = vsel %vm17241_vm14, %v10046_v13, %v10036_v28  ;;  %v17243_v20 = vmov 0 }
 0x131   : > { %17239 = vst [vmem:[#allocation47_spill] sm:$0xff] %v17238_v36  ;;  %v17242_v8 = vunpack.i.h.bf16 %v11903_v39  ;;  %v17244_v20 = vsel %vm12141_vm5, 4294967295, %v17243_v20  ;;  %v12145_v18 = vpack.c.bf16 %v1412_v3, %v1411_v44  ;;  %vm12147_vm13 = vcmp.eq.s32.totalorder %v713_v5, 1 }
 0x132   : > { %17240 = vst [vmem:[#allocation48_spill] sm:$0xff] %v12128_v9  ;;  %17245 = vst [vmem:[#allocation49_spill] sm:$0xff] %v17244_v20  ;;  %v17247_v46 = vmov 0  ;;  %vm17250_vm14 = vcmask 130048   ;;  %v17251_v13 = vunpack.i.h.bf16 %v12006_v24  ;;  %v17252_v5 = vunpack.i.l.bf16 %v12006_v24 }
 0x133   : > { %v1426_v15 = vsel %vm17219_vm8, %v10047_v10, %v17242_v8  ;;  %17246 = vst [vmem:[#allocation50_spill] sm:$0xff] %v12145_v18  ;;  %v17248_v46 = vsel %vm12147_vm13, 4294967295, %v17247_v46  ;;  %8599 = vmatmul.mubr.msk.bf16.vlgmr.msra.gmra.mrb[4].mxu1 %vm17250_vm14, %v11974_v62  ;;  %v17254_v3 = vmov 0  ;;  %vm12176_vm14 = vcmp.eq.s32.totalorder %v1707_v56, 1  ;;  %v12185_v21 = vpop.permute.xlu0 %10079  ;;  %v12208_v31 = vpop.permute.xlu1 %10084 }
 0x134   : > { %17249 = vst [vmem:[#allocation51_spill] sm:$0xff] %v17248_v46  ;;  %v1416_v44 = vsel %vm17219_vm8, %v17251_v13, %v10052_v16  ;;  %v1415_v6 = vsel %vm17253_vm4, %v17252_v5, %v10051_v7  ;;  %8613 = vmatpush1.bf16.msk.msra.mxu1 %vm12117_vm7, %v12128_v9  ;;  %v17255_v3 = vsel %vm12171_vm9, 4294967295, %v17254_v3  ;;  %1534 = vmatprep.mubr.bf16.mxu1 %v17236_v11  ;;  %v17257_v13 = vmov 0  ;;  %vm12190_vm4 = vmpackc.low %vm12039_vm11, %vm12039_vm11 }
 0x135   : > { %17256 = vst [vmem:[#allocation52_spill] sm:$0xff] %v17255_v3  ;;  %v17258_v13 = vsel %vm12176_vm14, 4294967295, %v17257_v13  ;;  %8624 = vmatprep.subr.msk.bf16.mxu1 %vm12141_vm5, %v12145_v18  ;;  %v17260_v28 = vmov 0  ;;  %v12202_v8 = vpack.c.bf16 %v1426_v15, %v1425_v19  ;;  %v17264_v54 = vunpack.i.l.bf16 %v11936_v60 }
 0x136   : > { %17259 = vst [vmem:[#allocation53_spill] sm:$0xff] %v17258_v13  ;;  %v17261_v28 = vsel %vm12190_vm4, 4294967295, %v17260_v28  ;;  %vm12210_vm11 = vcmp.eq.s32.totalorder %v1711_v14, 1  ;;  %v17265_v56 = vmov 0  ;;  %vm17268_vm12 = vcmp.ge.s32.totalorder %v11652_v26, 1 }
 0x137   : > { %17262 = vst [vmem:[#allocation54_spill] sm:$0xff] %v17261_v28  ;;  %17263 = vst [vmem:[#allocation55_spill] sm:$0xff] %v12202_v8  ;;  %v1413_v55 = vsel %vm17219_vm8, %v10051_v7, %v17264_v54  ;;  %v17266_v56 = vsel %vm12210_vm11, 4294967295, %v17265_v56  ;;  %vm17269_vm2 = vcmp.le.s32.totalorder %v11647_v25, 14  ;;  %v17272_v54 = vunpack.i.h.bf16 %v11936_v60  ;;  %v12300_v59 = vpop.permute.xlu1 %10094 }
 0x138   : > { %17267 = vst [vmem:[#allocation56_spill] sm:$0xff] %v17266_v56  ;;  %vm12222_vm3 = vmand %vm17269_vm2, %vm17268_vm12  ;;  %v17273_v7 = vunpack.i.h.bf16 %v12062_v0  ;;  %v17274_v19 = vunpack.i.h.bf16 %v12048_v4  ;;  %vm17275_vm0 = vcmp.lt.s32.totalorder %v11681_v35, 15  ;;  %v17276_v10 = vunpack.i.l.bf16 %v12062_v0 }
 0x139   : > { %v1414_v14 = vsel %vm17219_vm8, %v10052_v16, %v17272_v54  ;;  %v17277_v39 = vunpack.i.l.bf16 %v12048_v4  ;;  %vm17278_vm2 = vmmov %vm17275_vm0  ;;  %vm17279_vm12 = vcmask 130048   ;;  %v12244_v60 = vpack.c.bf16 %v1416_v44, %v1415_v6  ;;  %v12246_v16 = vld [vmem:[#allocation5 + $0x10] sm:$0xff]  }
 0x13a   : > { %v1692_v5 = vsel %vm17275_vm0, %v17274_v19, %v17273_v7  ;;  %8598 = vmatmul.mubr.msk.bf16.vlgmr.msra.gmra.mrb[4].mxu0 %vm17279_vm12, %v11974_v62  ;;  %v17281_v54 = vrot.slane %v11983_v63, %v11679_v34  ;;  %v10072_v7 = vunpack.i.h.bf16 %v12112_v40  ;;  %v10071_v19 = vunpack.i.l.bf16 %v12112_v40  ;;  %v12266_v62 = vpop.permute.xlu0 %10089  ;;  %vm12271_vm0 = vmpackc.low %vm12071_vm10, %vm12071_vm10 }
 0x13b   : > { %v1691_v53 = vsel %vm17278_vm2, %v17277_v39, %v17276_v10  ;;  %17280 = vst [vmem:[#allocation57_spill] sm:$0xff] %v12244_v60  ;;  %8606 = vmatpush1.bf16.msk.msra.mxu0 %vm12171_vm9, %v12202_v8  ;;  %1491 = vmatprep.mubr.bf16.mxu0 %v17236_v11  ;;  %v17285_v40 = vmov 0  ;;  %v12284_v10 = vsel %vm12222_vm3, 1, %v17236_v11  ;;  %v12286_v39 = vpack.c.bf16 %v1414_v14, %v1413_v55  ;;  %v12369_v22 = vpop.permute.xlu1 %10104  ;;  %vm17349_vm5 = vmpackc.low %vm12210_vm11, %vm12210_vm11 }
 0x13c   : > { %vm12251_vm8 = vcmp.eq.s32.totalorder %v17281_v54, 1  ;;  %8617 = vmatprep.subr.msk.bf16.mxu0 %vm12190_vm4, %v12244_v60  ;;  %v17286_v40 = vsel %vm12271_vm0, 4294967295, %v17285_v40  ;;  %v17289_v51 = vunpack.i.l.bf16 %v12006_v24  ;;  %v17290_v47 = vunpack.i.l.bf16 %v11860_v37 }
 0x13d   : > { %v17283_v52 = vsel %vm12251_vm8, 4294967295, %v17282_v52  ;;  %17287 = vst [vmem:[#allocation59_spill] sm:$0xff] %v17286_v40  ;;  %17288 = vst [vmem:[#allocation60_spill] sm:$0xff] %v12286_v39  ;;  %vm17291_vm2 = vcmp.lt.s32.totalorder %v11681_v35, 16  ;;  %v17292_v45 = vunpack.i.h.bf16 %v12006_v24  ;;  %v17293_v6 = vunpack.i.h.bf16 %v11860_v37 }
 0x13e   : > { %17284 = vst [vmem:[#allocation58_spill] sm:$0xff] %v17283_v52  ;;  %v1417_v44 = vsel %vm17291_vm2, %v17290_v47, %v17289_v51  ;;  %vm17294_vm12 = vmmov %vm17291_vm2  ;;  %v8638_v55 = vpack.c.bf16 %v1692_v5, %v1691_v53  ;;  %v17295_v15 = vrot.slane %v11983_v63, %v11677_v33  ;;  %v17296_v14 = vmov 0 }
 0x13f   : > { %v1418_v54 = vsel %vm17294_vm12, %v17293_v6, %v17292_v45  ;;  %v10087_v37 = vunpack.i.h.bf16 %v12208_v31  ;;  %v10086_v24 = vunpack.i.l.bf16 %v12208_v31  ;;  %vm17299_vm2 = vcmask 130048   ;;  %v12447_v40 = vpop.permute.xlu1 %10114 }
 0x140   : > { %vm12308_vm10 = vcmp.eq.s32.totalorder %v17295_v15, 1  ;;  %8614 = vmatmul.mubr.msk.bf16.vlgmr.msra.gmra.mrb[0].mxu1 %vm17299_vm2, %v12246_v16  ;;  %v17300_v53 = vunpack.i.h.bf16 %v12136_v61  ;;  %vm17301_vm3 = vcmp.lt.s32.totalorder %v11681_v35, 15  ;;  %v17302_v5 = vunpack.i.l.bf16 %v12136_v61 }
 0x141   : > { %v17297_v14 = vsel %vm12308_vm10, 4294967295, %v17296_v14  ;;  %vm17303_vm4 = vmmov %vm17301_vm3  ;;  %8627 = vmatpush1.bf16.msk.msra.mxu1 %vm12271_vm0, %v12286_v39  ;;  %1620 = vmatprep.mubr.bf16.mxu1 %v17236_v11  ;;  %v17304_v31 = vrot.slane %v11983_v63, %v11706_v48  ;;  %v17305_v15 = vmov 0  ;;  %vm17312_vm12 = vcmp.le.s32.totalorder %v11647_v25, 14 }
 0x142   : > { %17298 = vst [vmem:[#allocation61_spill] sm:$0xff] %v17297_v14  ;;  %v1696_v45 = vsel %vm17301_vm3, %v17300_v53, %v10072_v7  ;;  %v1695_v6 = vsel %vm17303_vm4, %v17302_v5, %v10071_v19  ;;  %vm17308_vm3 = vmpackc.low %vm12097_vm6, %vm12097_vm6  ;;  %v12343_v53 = vpop.permute.xlu0 %10099  ;;  %v17309_v5 = vmov 0  ;;  %v12363_v27 = vpack.c.bf16 %v1418_v54, %v1417_v44 }
 0x143   : > { %vm12334_vm2 = vcmp.eq.s32.totalorder %v17304_v31, 1  ;;  %8639 = vmatprep.subr.msk.bf16.mxu1 %vm17308_vm3, %v8638_v55  ;;  %vm12348_vm4 = vmpackc.low %vm12147_vm13, %vm12147_vm13  ;;  %v12355_v31 = vsel %vm17312_vm12, 1, %v17236_v11  ;;  %v17315_v46 = vunpack.i.l.bf16 %v12048_v4  ;;  %vm17316_vm3 = vcmp.lt.s32.totalorder %v11681_v35, 15  ;;  %v10125_v39 = vpop.permute.xlu1 %10124 }
 0x144   : > { %v17306_v15 = vsel %vm12334_vm2, 4294967295, %v17305_v15  ;;  %v17310_v5 = vsel %vm12348_vm4, 4294967295, %v17309_v5  ;;  %17313 = vst [vmem:[#allocation64_spill] sm:$0xff] %v12355_v31  ;;  %17314 = vst [vmem:[#allocation65_spill] sm:$0xff] %v12363_v27  ;;  %v17317_v51 = vrot.slane %v11983_v63, %v11708_v49  ;;  %v17318_v55 = vmov 0 }
 0x145   : > { %17307 = vst [vmem:[#allocation62_spill] sm:$0xff] %v17306_v15  ;;  %17311 = vst [vmem:[#allocation63_spill] sm:$0xff] %v17310_v5  ;;  %v1693_v38 = vsel %vm17316_vm3, %v10071_v19, %v17315_v46  ;;  %v17321_v46 = vunpack.i.h.bf16 %v12048_v4  ;;  %v17322_v47 = vunpack.i.h.bf16 %v12185_v21  ;;  %v17326_v44 = vrot.slane %v11901_v2, %v11670_v30 }
 0x146   : > { %vm12377_vm6 = vcmp.eq.s32.totalorder %v17317_v51, 1  ;;  %vm17323_vm12 = vmmov %vm17316_vm3  ;;  %v17324_v51 = vunpack.i.l.bf16 %v12185_v21  ;;  %v17327_v54 = vmov 0  ;;  %vm17330_vm9 = vcmask 130048  }
 0x147   : > { %v17319_v55 = vsel %vm12377_vm6, 4294967295, %v17318_v55  ;;  %v1694_v19 = vsel %vm17316_vm3, %v10072_v7, %v17321_v46  ;;  %v1684_v42 = vsel %vm17323_vm12, %v17322_v47, %v10087_v37  ;;  %vm17325_vm13 = vmmov %vm17316_vm3  ;;  %vm12400_vm0 = vcmp.eq.s32.totalorder %v17326_v44, 1  ;;  %8607 = vmatmul.mubr.msk.bf16.vlgmr.msra.gmra.mrb[0].mxu0 %vm17330_vm9, %v12246_v16 }
 0x148   : > { %17320 = vst [vmem:[#allocation66_spill] sm:$0xff] %v17319_v55  ;;  %v1683_v12 = vsel %vm17325_vm13, %v17324_v51, %v10086_v24  ;;  %v17328_v54 = vsel %vm12400_vm0, 4294967295, %v17327_v54  ;;  %v8631_v4 = vpack.c.bf16 %v1696_v45, %v1695_v6  ;;  %v10092_v7 = vunpack.i.h.bf16 %v12266_v62  ;;  %8620 = vmatpush1.bf16.msk.msra.mxu0 %vm12348_vm4, %v12363_v27  ;;  %1577 = vmatprep.mubr.bf16.mxu0 %v17236_v11  ;;  %vm17335_vm9 = vmpackc.low %vm12176_vm14, %vm12176_vm14 }
 0x149   : > { %17329 = vst [vmem:[#allocation67_spill] sm:$0xff] %v17328_v54  ;;  %v10091_v47 = vunpack.i.l.bf16 %v12266_v62  ;;  %v10097_v46 = vunpack.i.h.bf16 %v12300_v59  ;;  %v10096_v41 = vunpack.i.l.bf16 %v12300_v59  ;;  %v17331_v44 = vrot.slane %v11901_v2, %v11675_v32  ;;  %v12426_v59 = vpop.permute.xlu0 %10109  ;;  %vm17348_vm4 = vmmov %vm17323_vm12 }
 0x14a   : > { %v17332_v51 = vmov 0  ;;  %8632 = vmatprep.subr.msk.bf16.mxu0 %vm17335_vm9, %v8631_v4  ;;  %v8641_v13 = vpack.c.bf16 %v1694_v19, %v1693_v38  ;;  %v17336_v4 = vunpack.i.l.bf16 %v12136_v61  ;;  %v17337_v27 = vunpack.i.h.bf16 %v12136_v61  ;;  %vm17338_vm9 = vmmov %vm17316_vm3 }
 0x14b   : > { %vm12416_vm13 = vcmp.eq.s32.totalorder %v17331_v44, 1  ;;  %v8652_v6 = vpack.c.bf16 %v1684_v42, %v1683_v12  ;;  %v17339_v38 = vrot.slane %v11983_v63, %v11730_v58  ;;  %v17340_v19 = vmov 0 }
 0x14c   : > { %v17333_v51 = vsel %vm12416_vm13, 4294967295, %v17332_v51  ;;  %v1697_v5 = vsel %vm17316_vm3, %v10086_v24, %v17336_v4  ;;  %v1698_v62 = vsel %vm17338_vm9, %v10087_v37, %v17337_v27  ;;  %v10102_v24 = vunpack.i.h.bf16 %v12343_v53 }
 0x14d   : > { %17334 = vst [vmem:[#allocation68_spill] sm:$0xff] %v17333_v51  ;;  %vm12455_vm14 = vcmp.eq.s32.totalorder %v17339_v38, 1  ;;  %v10101_v61 = vunpack.i.l.bf16 %v12343_v53  ;;  %v17343_v4 = vrot.slane %v11901_v2, %v11668_v29  ;;  %v17344_v42 = vmov 0  ;;  %v10980_v51 = vld [vmem:[%s11442_s3 + $0x10] sm:$0xff] }
 0x14e   : > { %v17341_v19 = vsel %vm12455_vm14, 4294967295, %v17340_v19  ;;  %vm17347_vm9 = vcmask 130048   ;;  %v1688_v12 = vsel %vm17323_vm12, %v10097_v46, %v10092_v7  ;;  %v1687_v63 = vsel %vm17348_vm4, %v10096_v41, %v10091_v47 }
 0x14f   : > { %17342 = vst [vmem:[#allocation69_spill] sm:$0xff] %v17341_v19  ;;  %vm12466_vm3 = vcmp.eq.s32.totalorder %v17343_v4, 1  ;;  %8628 = vmatmul.mubr.msk.bf16.vlgmr.msra.gmra.mrb[4].mxu1 %vm17347_vm9, %v12246_v16  ;;  %v10111_v53 = vunpack.i.l.bf16 %v12426_v59  ;;  %v17350_v38 = vrot.slane %v11901_v2, %v11677_v33  ;;  %v17351_v4 = vmov 0  ;;  %vm17360_vm9 = vmmov %vm17348_vm4 }
 0x150   : > { %v17345_v42 = vsel %vm12466_vm3, 4294967295, %v17344_v42  ;;  %8642 = vmatpush1.bf16.msk.msra.mxu1 %vm17349_vm5, %v8641_v13  ;;  %v17354_v44 = vrot.slane %v11901_v2, %v11679_v34  ;;  %v17355_v45 = vmov 0  ;;  %1847 = vmatprep.mubr.bf16.mxu1 %v17236_v11  ;;  %v8634_v13 = vpack.c.bf16 %v1698_v62, %v1697_v5  ;;  %vm17358_vm5 = vmpackc.low %vm12251_vm8, %vm12251_vm8 }
 0x151   : > { %17346 = vst [vmem:[#allocation70_spill] sm:$0xff] %v17345_v42  ;;  %vm12485_vm7 = vcmp.eq.s32.totalorder %v17350_v38, 1  ;;  %v10112_v27 = vunpack.i.h.bf16 %v12426_v59  ;;  %8653 = vmatprep.subr.msk.bf16.mxu1 %vm17358_vm5, %v8652_v6  ;;  %v12505_v38 = vpop.permute.xlu0 %10119  ;;  %v17359_v59 = vunpack.i.l.bf16 %v12185_v21  ;;  %v17361_v37 = vunpack.i.h.bf16 %v12185_v21  ;;  %vm17362_vm5 = vmmov %vm17348_vm4 }
 0x152   : > { %v17352_v4 = vsel %vm12485_vm7, 4294967295, %v17351_v4  ;;  %vm12492_vm12 = vcmp.eq.s32.totalorder %v17354_v44, 1  ;;  %v17363_v52 = vunpack.i.l.bf16 %v12062_v0  ;;  %v17364_v44 = vunpack.i.h.bf16 %v12062_v0  ;;  %vm17365_vm8 = vmmov %vm17348_vm4 }
 0x153   : > { %17353 = vst [vmem:[#allocation71_spill] sm:$0xff] %v17352_v4  ;;  %v17356_v45 = vsel %vm12492_vm12, 4294967295, %v17355_v45  ;;  %v1685_v62 = vsel %vm17360_vm9, %v10091_v47, %v17359_v59  ;;  %v1686_v6 = vsel %vm17362_vm5, %v10092_v7, %v17361_v37  ;;  %v17366_v21 = vunpack.i.h.bf16 %v12369_v22 }
 0x154   : > { %17357 = vst [vmem:[#allocation72_spill] sm:$0xff] %v17356_v45  ;;  %v12526_v56 = vsel %vm17348_vm4, %v17363_v52, %v10096_v41  ;;  %v12532_v5 = vsel %vm17365_vm8, %v17364_v44, %v10097_v46  ;;  %vm17367_vm5 = vcmp.lt.s32.totalorder %v11681_v35, 1  ;;  %v17368_v52 = vunpack.i.l.bf16 %v12369_v22  ;;  %v12552_v46 = vld [vmem:[#allocation5 + $0x18] sm:$0xff]  }
 0x155   : > { %v12541_v7 = vsel %vm17367_vm5, %v10102_v24, %v17366_v21  ;;  %vm17369_vm4 = vmmov %vm17367_vm5  ;;  %v10117_v41 = vunpack.i.h.bf16 %v12447_v40  ;;  %vm17370_vm8 = vcmask 130048   ;;  %v8645_v47 = vpack.c.bf16 %v1688_v12, %v1687_v63 }
 0x156   : > { %v12547_v0 = vsel %vm17369_vm4, %v10101_v61, %v17368_v52  ;;  %8621 = vmatmul.mubr.msk.bf16.vlgmr.msra.gmra.mrb[4].mxu0 %vm17370_vm8, %v12246_v16  ;;  %vm17371_vm11 = vmmov %vm17369_vm4  ;;  %v10116_v44 = vunpack.i.l.bf16 %v12447_v40  ;;  %v10121_v59 = vunpack.i.l.bf16 %v12505_v38  ;;  %v10126_v21 = vunpack.i.l.bf16 %v10125_v39  ;;  %v10130_v40 = vpop.permute.xlu0 %10129 }
 0x157   : > { %v12557_v37 = vsel %vm17371_vm11, %v10111_v53, %v10101_v61  ;;  %vm17372_vm5 = vmpackc.low %vm12308_vm10, %vm12308_vm10  ;;  %1804 = vmatprep.mubr.bf16.mxu0 %v17236_v11  ;;  %v12569_v16 = vsel %vm17369_vm4, %v10112_v27, %v10102_v24  ;;  %v10122_v61 = vunpack.i.h.bf16 %v12505_v38  ;;  %v10127_v12 = vunpack.i.h.bf16 %v10125_v39  ;;  %8643 = vmatmul.mubr.msk.bf16.vlgmr.msra.gmra.mrb[0].mxu1 %vm17370_vm8, %v12552_v46 }
 0x158   : > { %8635 = vmatpush1.bf16.msk.msra.mxu0 %vm17372_vm5, %v8634_v13  ;;  %vm17373_vm11 = vmpackc.low %vm12334_vm2, %vm12334_vm2  ;;  %v17374_v63 = vrot.slane %v11920_v57, %v11670_v30  ;;  %v17375_v24 = vmov 0  ;;  %v8655_v13 = vpack.c.bf16 %v1686_v6, %v1685_v62  ;;  %v8648_v38 = vpack.c.bf16 %v12532_v5, %v12526_v56  ;;  %1933 = vmatprep.mubr.bf16.mxu1 %v17236_v11 }
 0x159   : > { %8646 = vmatprep.subr.msk.bf16.mxu0 %vm17373_vm11, %v8645_v47  ;;  %v17378_v47 = vrot.slane %v11901_v2, %v11708_v49  ;;  %v17379_v15 = vmov 0  ;;  %vm17382_vm9 = vcmp.lt.s32.totalorder %v11681_v35, 1  ;;  %v17383_v56 = vrot.slane %v11920_v57, %v11675_v32  ;;  %vm17389_vm10 = vmpackc.low %vm12377_vm6, %vm12377_vm6 }
 0x15a   : > { %vm12583_vm5 = vcmp.eq.s32.totalorder %v17374_v63, 1  ;;  %v12601_v63 = vpop.permute.xlu1 %10134  ;;  %v12616_v6 = vsel %vm17382_vm9, %v10117_v41, %v10112_v27  ;;  %v17384_v39 = vmov 0  ;;  %v12634_v27 = vsel %vm17382_vm9, %v10116_v44, %v10111_v53  ;;  %vm17387_vm8 = vmmov %vm17382_vm9  ;;  %8656 = vmatpush1.bf16.msk.msra.mxu1 %vm17389_vm10, %v8655_v13  ;;  %v10140_v13 = vpop.permute.xlu0 %10139 }
 0x15b   : > { %v17376_v24 = vsel %vm12583_vm5, 4294967295, %v17375_v24  ;;  %vm12597_vm4 = vcmp.eq.s32.totalorder %v17378_v47, 1  ;;  %v8667_v47 = vpack.c.bf16 %v12541_v7, %v12547_v0  ;;  %vm12625_vm11 = vcmp.eq.s32.totalorder %v17383_v56, 1  ;;  %vm17388_vm2 = vmmov %vm17387_vm8 }
 0x15c   : > { %17377 = vst [vmem:[#allocation73_spill] sm:$0xff] %v17376_v24  ;;  %v17380_v15 = vsel %vm12597_vm4, 4294967295, %v17379_v15  ;;  %v17385_v39 = vsel %vm12625_vm11, 4294967295, %v17384_v39  ;;  %v12638_v5 = vsel %vm17387_vm8, %v10121_v59, %v10126_v21  ;;  %v12642_v52 = vsel %vm17388_vm2, %v10126_v21, %v10116_v44  ;;  %vm17390_vm15 = vmmov %vm17388_vm2 }
 0x15d   : > { %17381 = vst [vmem:[#allocation74_spill] sm:$0xff] %v17380_v15  ;;  %17386 = vst [vmem:[#allocation75_spill] sm:$0xff] %v17385_v39  ;;  %v12652_v53 = vsel %vm17390_vm15, %v10122_v61, %v10127_v12  ;;  %v10132_v62 = vunpack.i.h.bf16 %v10130_v40  ;;  %v10131_v14 = vunpack.i.l.bf16 %v10130_v40  ;;  %v17392_v44 = vrot.slane %v11901_v2, %v11706_v48 }
 0x15e   : > { %vm17391_vm9 = vmmov %vm17388_vm2  ;;  %v17393_v21 = vmov 0  ;;  %v10137_v40 = vunpack.i.h.bf16 %v12601_v63  ;;  %v17397_v55 = vrot.slane %v11901_v2, %v11730_v58  ;;  %v12687_v28 = vpop.permute.xlu1 %10144  ;;  %v17402_v60 = vrot.slane %v11920_v57, %v11668_v29 }
 0x15f   : > { %v12656_v56 = vsel %vm17391_vm9, %v10127_v12, %v10117_v41  ;;  %vm12661_vm2 = vcmp.eq.s32.totalorder %v17392_v44, 1  ;;  %vm17396_vm10 = vmpackc.low %vm12400_vm0, %vm12400_vm0  ;;  %v8670_v41 = vpack.c.bf16 %v12569_v16, %v12557_v37  ;;  %v17403_v3 = vmov 0 }
 0x160   : > { %v17394_v21 = vsel %vm12661_vm2, 4294967295, %v17393_v21  ;;  %8668 = vmatprep.subr.msk.bf16.mxu1 %vm17396_vm10, %v8667_v47  ;;  %vm16747_vm15 = vmpackc.low %vm12455_vm14, %vm12455_vm14  ;;  %vm12683_vm8 = vcmp.eq.s32.totalorder %v17397_v55, 1  ;;  %v17398_v47 = vmov 0  ;;  %vm17401_vm10 = vcmask 130048  }
 0x161   : > { %17395 = vst [vmem:[#allocation76_spill] sm:$0xff] %v17394_v21  ;;  %v17399_v47 = vsel %vm12683_vm8, 4294967295, %v17398_v47  ;;  %8636 = vmatmul.mubr.msk.bf16.vlgmr.msra.gmra.mrb[0].mxu0 %vm17401_vm10, %v12552_v46  ;;  %v8660_v55 = vpack.c.bf16 %v12616_v6, %v12634_v27  ;;  %vm12708_vm9 = vcmp.eq.s32.totalorder %v17402_v60, 1  ;;  %v10142_v12 = vunpack.i.h.bf16 %v10140_v13 }
 0x162   : > { %17400 = vst [vmem:[#allocation77_spill] sm:$0xff] %v17399_v47  ;;  %v17404_v3 = vsel %vm12708_vm9, 4294967295, %v17403_v3  ;;  %v10141_v8 = vunpack.i.l.bf16 %v10140_v13  ;;  %8649 = vmatpush1.bf16.msk.msra.mxu0 %vm16747_vm15, %v8648_v38  ;;  %v8681_v2 = vpack.c.bf16 %v12652_v53, %v12638_v5  ;;  %1890 = vmatprep.mubr.bf16.mxu0 %v17236_v11  ;;  %vm17406_vm10 = vcmp.lt.s32.totalorder %v11681_v35, 1  ;;  %vm17408_vm15 = vmpackc.low %vm12466_vm3, %vm12466_vm3  ;;  %v10150_v38 = vpop.permute.xlu0 %10149  ;;  %v10155_v18 = vpop.permute.xlu1 %10154 }
 0x163   : > { %17405 = vst [vmem:[#allocation78_spill] sm:$0xff] %v17404_v3  ;;  %v12725_v60 = vsel %vm17406_vm10, %v10131_v14, %v10121_v59  ;;  %vm17407_vm6 = vmmov %vm17406_vm10  ;;  %8661 = vmatprep.subr.msk.bf16.mxu0 %vm17408_vm15, %v8660_v55  ;;  %v10152_v13 = vunpack.i.h.bf16 %v10150_v38  ;;  %v10151_v19 = vunpack.i.l.bf16 %v10150_v38  ;;  %v17413_v55 = vunpack.i.h.bf16 %v12687_v28 }
 0x164   : > { %v12729_v44 = vsel %vm17407_vm6, %v10132_v62, %v10122_v61  ;;  %vm17409_vm14 = vmmov %vm17407_vm6  ;;  %v17411_v61 = vunpack.i.l.bf16 %v12601_v63  ;;  %vm17414_vm10 = vcmp.lt.s32.totalorder %v11681_v35, 127  ;;  %v17418_v38 = vrot.slane %v11920_v57, %v11677_v33 }
 0x165   : > { %v12743_v59 = vsel %vm17409_vm14, %v10137_v40, %v10132_v62  ;;  %v12758_v36 = vsel %vm17414_vm10, %v10142_v12, %v17413_v55  ;;  %v17415_v62 = vunpack.i.l.bf16 %v12687_v28  ;;  %vm17416_vm14 = vmmov %vm17414_vm10  ;;  %v17419_v43 = vmov 0 }
 0x166   : > { %17410 = vst [vmem:[#allocation79_spill] sm:$0xff] %v12743_v59  ;;  %v12749_v20 = vsel %vm17407_vm6, %v17411_v61, %v10131_v14  ;;  %v10157_v14 = vunpack.i.h.bf16 %v10155_v18  ;;  %v10156_v61 = vunpack.i.l.bf16 %v10155_v18  ;;  %vm17417_vm6 = vcmask 130048   ;;  %v12827_v25 = vpop.permute.xlu1 %10164 }
 0x167   : > { %17412 = vst [vmem:[#allocation80_spill] sm:$0xff] %v12749_v20  ;;  %v12764_v9 = vsel %vm17416_vm14, %v10141_v8, %v17415_v62  ;;  %8657 = vmatmul.mubr.msk.bf16.vlgmr.msra.gmra.mrb[4].mxu1 %vm17417_vm6, %v12552_v46  ;;  %vm12771_vm15 = vcmp.eq.s32.totalorder %v17418_v38, 1  ;;  %v8663_v62 = vpack.c.bf16 %v12656_v56, %v12642_v52  ;;  %v12785_v17 = vsel %vm17414_vm10, %v10151_v19, %v10141_v8  ;;  %vm17422_vm14 = vmpackc.low %vm12416_vm13, %vm12416_vm13 }
 0x168   : > { %v17420_v43 = vsel %vm12771_vm15, 4294967295, %v17419_v43  ;;  %v599_v18 = vsel %vm12583_vm5, %v12764_v9, -inf  ;;  %8671 = vmatpush1.bf16.msk.msra.mxu1 %vm17422_vm14, %v8670_v41  ;;  %2070 = vmatprep.mubr.bf16.mxu1 %v17236_v11  ;;  %v17423_v55 = vunpack.i.h.bf16 %v12369_v22  ;;  %vm17424_vm6 = vcmp.lt.s32.totalorder %v11681_v35, 1  ;;  %vm17425_vm14 = vmpackc.low %vm12492_vm12, %vm12492_vm12  ;;  %v10160_v41 = vpop.permute.xlu0 %10159 }
 0x169   : > { %17421 = vst [vmem:[#allocation81_spill] sm:$0xff] %v17420_v43  ;;  %v607_v8 = vsel %vm12583_vm5, %v12758_v36, -inf  ;;  %v12807_v1 = vsel %vm17414_vm10, %v10152_v13, %v10142_v12  ;;  %8682 = vmatprep.subr.msk.bf16.mxu1 %vm17425_vm14, %v8681_v2  ;;  %v17426_v12 = vsel %vm12400_vm0, %v12547_v0, -inf  ;;  %v598_v38 = vsel %vm12625_vm11, %v12785_v17, -inf }
 0x16a   : > { %v12800_v50 = vsel %vm17424_vm6, %v17423_v55, %v10137_v40  ;;  %v615_v55 = vmax.f32 %v17426_v12, %v599_v18  ;;  %v8674_v2 = vpack.c.bf16 %v12743_v59, %v12749_v20  ;;  %v17427_v40 = vrot.slane %v11920_v57, %v11730_v58  ;;  %vm17431_vm6 = vmmov %vm17414_vm10 }
 0x16b   : > { %v17428_v26 = vmov 0  ;;  %v12843_v0 = vsel %vm17431_vm6, %v10157_v14, %v10152_v13  ;;  %vm17432_vm1 = vmmov %vm17431_vm6  ;;  %v10162_v12 = vunpack.i.h.bf16 %v10160_v41  ;;  %v10161_v31 = vunpack.i.l.bf16 %v10160_v41 }
 0x16c   : > { %vm12837_vm14 = vcmp.eq.s32.totalorder %v17427_v40, 1  ;;  %v12847_v18 = vsel %vm17432_vm1, %v10156_v61, %v10151_v19  ;;  %v17433_v23 = vrot.slane %v11920_v57, %v11679_v34  ;;  %v17434_v33 = vmov 0  ;;  %v12858_v40 = vld [vmem:[#allocation5 + $0x20] sm:$0xff]  }
 0x16d   : > { %v17429_v26 = vsel %vm12837_vm14, 4294967295, %v17428_v26  ;;  %vm17437_vm12 = vcmask 130048   ;;  %v8684_v13 = vpack.c.bf16 %v12729_v44, %v12725_v60  ;;  %v17438_v19 = vunpack.i.l.bf16 %v12601_v63 }
 0x16e   : > { %17430 = vst [vmem:[#allocation82_spill] sm:$0xff] %v17429_v26  ;;  %vm12852_vm10 = vcmp.eq.s32.totalorder %v17433_v23, 1  ;;  %8650 = vmatmul.mubr.msk.bf16.vlgmr.msra.gmra.mrb[4].mxu0 %vm17437_vm12, %v12552_v46  ;;  %v17439_v58 = vunpack.i.l.bf16 %v12369_v22  ;;  %vm17440_vm1 = vcmp.lt.s32.totalorder %v11681_v35, 1  ;;  %v17441_v23 = vsel %vm12400_vm0, %v12541_v7, -inf  ;;  %vm17442_vm12 = vmpackc.low %vm12485_vm7, %vm12485_vm7  ;;  %v17544_v26 = vld [vmem:[#allocation79_spill] sm:$0xff] }
 0x16f   : > { %v17435_v33 = vsel %vm12852_vm10, 4294967295, %v17434_v33  ;;  %v623_v34 = vmax.f32 %v17441_v23, %v607_v8  ;;  %v606_v46 = vsel %vm12625_vm11, %v12807_v1, -inf  ;;  %8664 = vmatpush1.bf16.msk.msra.mxu0 %vm17442_vm12, %v8663_v62  ;;  %v17444_v22 = vmov 0  ;;  %2027 = vmatprep.mubr.bf16.mxu0 %v17236_v11  ;;  %v12908_v23 = vpop.permute.xlu0 %10169 }
 0x170   : > { %17436 = vst [vmem:[#allocation83_spill] sm:$0xff] %v17435_v33  ;;  %v12868_v41 = vsel %vm17440_vm1, %v17439_v58, %v17438_v19  ;;  %v17443_v58 = vrot.slane %v11920_v57, %v11708_v49  ;;  %v17447_v8 = vsel %vm12416_vm13, %v12557_v37, -inf  ;;  %vm17448_vm1 = vmpackc.low %vm12661_vm2, %vm12661_vm2  ;;  %v605_v37 = vsel %vm12708_vm9, %v12843_v0, -inf }
 0x171   : > { %v614_v19 = vmax.f32 %v17447_v8, %v598_v38  ;;  %8675 = vmatprep.subr.msk.bf16.mxu0 %vm17448_vm1, %v8674_v2  ;;  %v10167_v38 = vunpack.i.h.bf16 %v12827_v25  ;;  %v10978_v8 = vld [vmem:[%s11442_s3 + $0x18] sm:$0xff]  ;;  %v12923_v2 = vpop.permute.xlu1 %10174  ;;  %v17449_v7 = vsel %vm12416_vm13, %v12569_v16, -inf  ;;  %vm17450_vm1 = vcmp.lt.s32.totalorder %v11681_v35, 127 }
 0x172   : > { %vm12885_vm6 = vcmp.eq.s32.totalorder %v17443_v58, 1  ;;  %v597_v58 = vsel %vm12708_vm9, %v12847_v18, -inf  ;;  %v12921_v62 = vmax.f32 %v10978_v8, %v615_v55  ;;  %v622_v63 = vmax.f32 %v17449_v7, %v606_v46  ;;  %vm17451_vm12 = vmmov %vm17450_vm1  ;;  %v10979_v46 = vld [vmem:[%s11442_s3 + $0x58] sm:$0xff] }
 0x173   : > { %v17445_v22 = vsel %vm12885_vm6, 4294967295, %v17444_v22  ;;  %v12931_v54 = vsel %vm17450_vm1, %v10161_v31, %v10156_v61  ;;  %v12935_v59 = vsel %vm17451_vm12, %v10162_v12, %v10157_v14  ;;  %v10166_v49 = vunpack.i.l.bf16 %v12827_v25 }
 0x174   : > { %17446 = vst [vmem:[#allocation84_spill] sm:$0xff] %v17445_v22  ;;  %vm17452_vm0 = vcmask 130048   ;;  %v8677_v55 = vpack.c.bf16 %v12800_v50, %v12868_v41  ;;  %v12945_v7 = vmax.f32 %v10979_v46, %v623_v34  ;;  %v10172_v61 = vunpack.i.h.bf16 %v12908_v23 }
 0x175   : > { %8672 = vmatmul.mubr.msk.bf16.vlgmr.msra.gmra.mrb[0].mxu1 %vm17452_vm0, %v12858_v40  ;;  %v17454_v14 = vrot.slane %v11920_v57, %v11706_v48  ;;  %v17455_v8 = vmov 0  ;;  %vm17458_vm0 = vmpackc.low %vm12597_vm4, %vm12597_vm4  ;;  %v17459_v25 = vsel %vm12466_vm3, %v12634_v27, -inf  ;;  %v17460_v57 = vsel %vm12466_vm3, %v12616_v6, -inf  ;;  %v10981_v48 = vld [vmem:[%s11442_s3 + $0x50] sm:$0xff] }
 0x176   : > { %17453 = vst [vmem:[#allocation85_spill] sm:$0xff] %v12945_v7  ;;  %8685 = vmatpush1.bf16.msk.msra.mxu1 %vm17458_vm0, %v8684_v13  ;;  %2156 = vmatprep.mubr.bf16.mxu1 %v17236_v11  ;;  %v12965_v34 = vmax.f32 %v17459_v25, %v597_v58  ;;  %v12971_v46 = vmax.f32 %v17460_v57, %v605_v37  ;;  %v10176_v16 = vunpack.i.l.bf16 %v12923_v2  ;;  %v12978_v13 = vpop.permute.xlu0 %10179  ;;  %v596_v27 = vsel %vm12771_vm15, %v12931_v54, -inf  ;;  %vm17461_vm0 = vmmov %vm17450_vm1 }
 0x177   : > { %vm12951_vm12 = vcmp.eq.s32.totalorder %v17454_v14, 1  ;;  %v10177_v14 = vunpack.i.h.bf16 %v12923_v2  ;;  %v604_v6 = vsel %vm12771_vm15, %v12935_v59, -inf  ;;  %v12988_v58 = vsel %vm17461_vm0, %v10167_v38, %v10162_v12  ;;  %v12994_v2 = vpop.permute.xlu1 %10184  ;;  %vm17462_vm1 = vmmov %vm17461_vm0 }
 0x178   : > { %v17456_v8 = vsel %vm12951_vm12, 4294967295, %v17455_v8  ;;  %v12992_v37 = vpack.i.bf16 %v12945_v7, %v12921_v62  ;;  %v12998_v25 = vsel %vm17462_vm1, %v10166_v49, %v10161_v31  ;;  %v10171_v57 = vunpack.i.l.bf16 %v12908_v23  ;;  %vm17465_vm13 = vmmov %vm17462_vm1 }
 0x179   : > { %17457 = vst [vmem:[#allocation86_spill] sm:$0xff] %v17456_v8  ;;  %v13002_v42 = vmax.f32 %v10980_v51, %v614_v19  ;;  %v13005_v20 = vmax.f32 %v10981_v48, %v622_v63  ;;  %vm17463_vm0 = vcmask 130048   ;;  %v494_v12 = vsel %vm12683_vm8, %v12868_v41, -inf }
 0x17a   : > { %8665 = vmatmul.mubr.msk.bf16.vlgmr.msra.gmra.mrb[0].mxu0 %vm17463_vm0, %v12858_v40  ;;  %v8692_v7 = vpack.c.bf16 %v12935_v59, %v12931_v54  ;;  %10339 = vrot.lane.b32.xlu0 %v12992_v37, %s11197_s19  ;;  %v13018_v31 = vsel %vm17462_vm1, %v10172_v61, %v10167_v38  ;;  %v17464_v48 = vunpack.i.l.bf16 %v12687_v28  ;;  %vm17466_vm0 = vmpackc.low %vm12683_vm8, %vm12683_vm8  ;;  %v17467_v54 = vsel %vm12485_vm7, %v12642_v52, -inf  ;;  %v13057_v52 = vpop.permute.xlu0 %10189 }
 0x17b   : > { %8678 = vmatpush1.bf16.msk.msra.mxu0 %vm17466_vm0, %v8677_v55  ;;  %v13036_v59 = vmax.f32 %v17467_v54, %v596_v27  ;;  %v17468_v41 = vsel %vm12485_vm7, %v12656_v56, -inf  ;;  %v17469_v19 = vunpack.i.h.bf16 %v12687_v28  ;;  %2113 = vmatprep.mubr.bf16.mxu0 %v17236_v11  ;;  %v603_v28 = vsel %vm12852_vm10, %v12998_v25, -inf  ;;  %vm17474_vm0 = vmmov %vm17462_vm1 }
 0x17c   : > { %v13024_v51 = vsel %vm17465_vm13, %v17464_v48, %v10176_v16  ;;  %v13042_v63 = vmax.f32 %v17468_v41, %v604_v6  ;;  %vm17470_vm13 = vmmov %vm17462_vm1  ;;  %v611_v56 = vsel %vm12852_vm10, %v12988_v58, -inf  ;;  %v13071_v6 = vpop.permute.xlu1 %10194  ;;  %v610_v54 = vsel %vm12885_vm6, %v13018_v31, -inf }
 0x17d   : > { %v13048_v23 = vsel %vm17470_vm13, %v17469_v19, %v10177_v14  ;;  %v600_v38 = vsel %vm12837_vm14, %v13024_v51, -inf  ;;  %vm17471_vm13 = vmmov %vm17462_vm1  ;;  %v17472_v41 = vsel %vm12683_vm8, %v12800_v50, -inf  ;;  %v13086_v19 = vpack.i.bf16 %v13005_v20, %v13002_v42 }
 0x17e   : > { %v608_v55 = vsel %vm12837_vm14, %v13048_v23, -inf  ;;  %v616_v27 = vmax.f32 %v494_v12, %v600_v38  ;;  %v13075_v48 = vsel %vm17471_vm13, %v10171_v57, %v10166_v49  ;;  %vm17473_vm3 = vcmask 130048  }
 0x17f   : > { %v624_v12 = vmax.f32 %v17472_v41, %v608_v55  ;;  %8686 = vmatmul.mubr.msk.bf16.vlgmr.msra.gmra.mrb[4].mxu1 %vm17473_vm3, %v12858_v40  ;;  %v541_v49 = vsel %vm17474_vm0, %v10176_v16, %v10171_v57  ;;  %v8696_v38 = vpack.c.bf16 %v12758_v36, %v12764_v9  ;;  %v8689_v50 = vpack.c.bf16 %v12843_v0, %v12847_v18  ;;  %v10982_v55 = vld [vmem:[%s11442_s3 + $0x20] sm:$0xff]  ;;  %vm17486_vm3 = vmpackc.low %vm12708_vm9, %vm12708_vm9 }
 0x180   : > { %v13100_v41 = vmax.f32 %v10982_v55, %v616_v27  ;;  %2293 = vmatprep.mubr.bf16.mxu1 %v17236_v11  ;;  %vm17476_vm13 = vnez %v17356_v45  ;;  %v13120_v0 = vsel %vm17474_vm0, %v10177_v14, %v10172_v61  ;;  %10334 = vrot.lane.b32.xlu1 %v13086_v19, %s11197_s19  ;;  %v10983_v18 = vld [vmem:[%s11442_s3 + $0x60] sm:$0xff]  ;;  %v602_v61 = vsel %vm12885_vm6, %v13075_v48, -inf  ;;  %vm17485_vm0 = vmpackc.low %vm12583_vm5, %vm12583_vm5  ;;  %v13160_v27 = vpop.permute.xlu1 %10204  ;;  %v10985_v55 = vld [vmem:[%s11442_s3 + $0x48] sm:$0xff] }
 0x181   : > { %v17477_v47 = vsel %vm17476_vm13, %v12638_v5, -inf  ;;  %v17478_v36 = vsel %vm17476_vm13, %v12652_v53, -inf  ;;  %v13125_v57 = vmax.f32 %v10983_v18, %v624_v12  ;;  %v13130_v5 = vpop.permute.xlu0 %10199  ;;  %v17480_v53 = vrot.slane %v12284_v10, %v11670_v30  ;;  %8697 = vmatprep.subr.msk.bf16.mxu1 %vm17485_vm0, %v8696_v38  ;;  %8690 = vmatprep.subr.msk.bf16.mxu0 %vm17486_vm3, %v8689_v50  ;;  %vm17492_vm3 = vmpackc.low %vm12625_vm11, %vm12625_vm11 }
 0x182   : > { %17475 = vst [vmem:[#allocation87_spill] sm:$0xff] %v13100_v41  ;;  %v13110_v16 = vmax.f32 %v17477_v47, %v603_v28  ;;  %v13116_v9 = vmax.f32 %v17478_v36, %v611_v56  ;;  %v17481_v47 = vmov 0  ;;  %v17484_v14 = vsel %vm12597_vm4, %v12729_v44, -inf  ;;  %vm16803_vm5 = vmpackc.low %vm12951_vm12, %vm12951_vm12 }
 0x183   : > { %17479 = vst [vmem:[#allocation88_spill] sm:$0xff] %v13125_v57  ;;  %vm13135_vm1 = vcmp.eq.s32.totalorder %v17480_v53, 1  ;;  %v13146_v28 = vmax.f32 %v17484_v14, %v610_v54  ;;  %v8710_v56 = vpack.c.bf16 %v12988_v58, %v12998_v25  ;;  %v17487_v44 = vrot.slane %v12284_v10, %v11675_v32  ;;  %v10984_v25 = vld [vmem:[%s11442_s3 + $0x8] sm:$0xff]  ;;  %vm17495_vm11 = vmpackc.low %vm12771_vm15, %vm12771_vm15 }
 0x184   : > { %v17482_v47 = vsel %vm13135_vm1, 4294967295, %v17481_v47  ;;  %v17488_v54 = vmov 0  ;;  %v601_v12 = vsel %vm12951_vm12, %v541_v49, -inf  ;;  %v17491_v38 = vpack.c.bf16 %v12807_v1, %v12785_v17  ;;  %v13196_v1 = vld [vmem:[#allocation5 + $0x28] sm:$0xff]   ;;  %10344 = vrot.lane.b32.xlu1 %v12992_v37, %s11202_s22  ;;  %vm17534_vm15 = vmpackc.low %vm12837_vm14, %vm12837_vm14 }
 0x185   : > { %17483 = vst [vmem:[#allocation89_spill] sm:$0xff] %v17482_v47  ;;  %vm13165_vm13 = vcmp.eq.s32.totalorder %v17487_v44, 1  ;;  %v13181_v58 = vpack.i.bf16 %v13125_v57, %v13100_v41  ;;  %v13185_v50 = vmax.f32 %v10984_v25, %v12965_v34  ;;  %v13189_v36 = vmax.f32 %v10985_v55, %v12971_v46 }
 0x186   : > { %v17489_v54 = vsel %vm13165_vm13, 4294967295, %v17488_v54  ;;  %8700 = vmatpush1.bf16.msk.msra.mxu1 %vm17492_vm3, %v17491_v38  ;;  %vm17493_vm0 = vcmask 130048   ;;  %vm17494_vm3 = vmpackc.low %vm12852_vm10, %vm12852_vm10  ;;  %v8703_v17 = vpack.c.bf16 %v13120_v0, %v541_v49  ;;  %v10181_v34 = vunpack.i.l.bf16 %v12978_v13  ;;  %v10987_v38 = vld [vmem:[%s11442_s3 + $0x40] sm:$0xff] }
 0x187   : > { %17490 = vst [vmem:[#allocation90_spill] sm:$0xff] %v17489_v54  ;;  %8679 = vmatmul.mubr.msk.bf16.vlgmr.msra.gmra.mrb[4].mxu0 %vm17493_vm0, %v12858_v40  ;;  %8711 = vmatprep.subr.msk.bf16.mxu1 %vm17494_vm3, %v8710_v56  ;;  %v10182_v40 = vunpack.i.h.bf16 %v12978_v13  ;;  %v10192_v46 = vunpack.i.h.bf16 %v13057_v52  ;;  %v17496_v18 = vrot.slane %v12284_v10, %v11668_v29  ;;  %v17497_v53 = vmov 0  ;;  %v13231_v56 = vpop.permute.xlu0 %10209 }
 0x188   : > { %8693 = vmatpush1.bf16.msk.msra.mxu0 %vm17495_vm11, %v8692_v7  ;;  %v8713_v7 = vpack.c.bf16 %v13018_v31, %v13075_v48  ;;  %10349 = vrot.lane.b32.xlu0 %v13181_v58, %s11202_s22  ;;  %v16815_v13 = vunpack.i.h.bf16 %v12994_v2  ;;  %vm16810_vm11 = vmpackc.low %vm12885_vm6, %vm12885_vm6  ;;  %v10191_v14 = vunpack.i.l.bf16 %v13057_v52  ;;  %v17500_v31 = vsel %vm12597_vm4, %v12725_v60, -inf  ;;  %v10986_v48 = vld [vmem:[%s11442_s3] sm:$0xff]  ;;  %v13252_v60 = vpop.permute.xlu1 %10214 }
 0x189   : > { %vm13215_vm0 = vcmp.eq.s32.totalorder %v17496_v18, 1  ;;  %v618_v37 = vmax.f32 %v17500_v31, %v602_v61  ;;  %8704 = vmatprep.subr.msk.bf16.mxu0 %vm16803_vm5, %v8703_v17  ;;  %v13244_v44 = vmax.f32 %v10986_v48, %v13036_v59  ;;  %v13248_v52 = vmax.f32 %v10987_v38, %v13042_v63  ;;  %2250 = vmatprep.mubr.bf16.mxu0 %v17236_v11  ;;  %v17502_v61 = vld [vmem:[#allocation22_spill] sm:$0xff]  ;;  %v17507_v63 = vld [vmem:[#allocation80_spill] sm:$0xff] }
 0x18a   : > { %v17498_v53 = vsel %vm13215_vm0, 4294967295, %v17497_v53  ;;  %v10197_v25 = vunpack.i.h.bf16 %v13071_v6  ;;  %v17503_v55 = vrot.slane %v12284_v10, %v17502_v61  ;;  %v17504_v18 = vmov 0 }
 0x18b   : > { %17499 = vst [vmem:[#allocation91_spill] sm:$0xff] %v17498_v53  ;;  %17501 = vst [vmem:[#allocation92_spill] sm:$0xff] %v13248_v52  ;;  %v609_v59 = vsel %vm12951_vm12, %v13120_v0, -inf  ;;  %v17508_v17 = vsel %vm12661_vm2, %v17507_v63, -inf  ;;  %v13272_v48 = vpack.i.bf16 %v13189_v36, %v13185_v50  ;;  %vm17509_vm5 = vcmask 130048   ;;  %v17512_v63 = vld [vmem:[#allocation23_spill] sm:$0xff] }
 0x18c   : > { %vm13257_vm3 = vcmp.eq.s32.totalorder %v17503_v55, 1  ;;  %v13268_v31 = vmax.f32 %v17508_v17, %v601_v12  ;;  %8701 = vmatmul.mubr.msk.bf16.vlgmr.msra.gmra.mrb[0].mxu1 %vm17509_vm5, %v13196_v1  ;;  %vm17510_vm10 = vcmp.lt.s32.totalorder %v11681_v35, 113  ;;  %v10196_v38 = vunpack.i.l.bf16 %v13071_v6  ;;  %10359 = vrot.lane.b32.xlu0 %v13086_v19, %s11202_s22  ;;  %v17519_v19 = vld [vmem:[#allocation25_spill] sm:$0xff]  ;;  %v13336_v39 = vpop.permute.xlu1 %10224 }
 0x18d   : > { %v17505_v18 = vsel %vm13257_vm3, 4294967295, %v17504_v18  ;;  %8714 = vmatpush1.bf16.msk.msra.mxu1 %vm16810_vm11, %v8713_v7  ;;  %v2450_v0 = vsel %vm17510_vm10, %v10191_v14, %v10181_v34  ;;  %vm17511_vm12 = vmmov %vm17510_vm10  ;;  %v10202_v55 = vunpack.i.h.bf16 %v13130_v5  ;;  %2379 = vmatprep.mubr.bf16.mxu1 %v17236_v11  ;;  %v17513_v17 = vrot.slane %v12284_v10, %v17512_v63 }
 0x18e   : > { %17506 = vst [vmem:[#allocation22_spill] sm:$0xff] %v17505_v18  ;;  %v2451_v12 = vsel %vm17511_vm12, %v10192_v46, %v10182_v40  ;;  %v17514_v49 = vmov 0  ;;  %v8706_v7 = vpack.c.bf16 %v13048_v23, %v13024_v51  ;;  %10354 = vrot.lane.b32.xlu1 %v13272_v48, %s11197_s19  ;;  %v2449_v6 = vsel %vm17510_vm10, %v10182_v40, %v16815_v13  ;;  %vm17518_vm12 = vmmov %vm17510_vm10  ;;  %v13313_v23 = vpop.permute.xlu0 %10219  ;;  %v17584_v18 = vld [vmem:[#allocation21_spill] sm:$0xff] }
 0x18f   : > { %vm13291_vm5 = vcmp.eq.s32.totalorder %v17513_v17, 1  ;;  %v17517_v22 = vunpack.i.l.bf16 %v12994_v2  ;;  %v10201_v51 = vunpack.i.l.bf16 %v13130_v5  ;;  %v17520_v33 = vrot.slane %v12284_v10, %v17519_v19  ;;  %v10989_v5 = vld [vmem:[%s11442_s3 + $0x78] sm:$0xff]  ;;  %vm16842_vm11 = vmpackc.low %vm13135_vm1, %vm13135_vm1 }
 0x190   : > { %v17515_v49 = vsel %vm13291_vm5, 4294967295, %v17514_v49  ;;  %v17521_v40 = vmov 0  ;;  %v13324_v13 = vpack.i.bf16 %v13248_v52, %v13244_v44  ;;  %v13334_v24 = vmax.f32 %v10989_v5, %v13116_v9  ;;  %v13400_v4 = vpop.permute.xlu1 %10234 }
 0x191   : > { %17516 = vst [vmem:[#allocation80_spill] sm:$0xff] %v17515_v49  ;;  %v2448_v17 = vsel %vm17518_vm12, %v10181_v34, %v17517_v22  ;;  %vm13318_vm6 = vcmp.eq.s32.totalorder %v17520_v33, 1  ;;  %v2453_v22 = vsel %vm17510_vm10, %v10197_v25, %v10192_v46  ;;  %v10988_v34 = vld [vmem:[%s11442_s3 + $0x38] sm:$0xff]  ;;  %v17526_v33 = vld [vmem:[#allocation26_spill] sm:$0xff]  ;;  %v17528_v15 = vmov 0  ;;  %v10990_v46 = vld [vmem:[%s11442_s3 + $0x30] sm:$0xff] }
 0x192   : > { %v17522_v40 = vsel %vm13318_vm6, 4294967295, %v17521_v40  ;;  %v13330_v8 = vmax.f32 %v10988_v34, %v13110_v16  ;;  %17525 = vst [vmem:[#allocation93_spill] sm:$0xff] %v13334_v24  ;;  %v17527_v43 = vrot.slane %v12284_v10, %v17526_v33  ;;  %v8728_v45 = vpack.c.bf16 %v2451_v12, %v2450_v0  ;;  %v10991_v34 = vld [vmem:[%s11442_s3 + $0x70] sm:$0xff]  ;;  %10369 = vrot.lane.b32.xlu0 %v13324_v13, %s11197_s19  ;;  %v17586_v49 = vld [vmem:[#allocation20_spill] sm:$0xff] }
 0x193   : > { %17523 = vst [vmem:[#allocation23_spill] sm:$0xff] %v17522_v40  ;;  %vm17531_vm10 = vcmask 130048   ;;  %v13348_v16 = vmax.f32 %v10990_v46, %v618_v37  ;;  %v13352_v9 = vmax.f32 %v10991_v34, %v13146_v28  ;;  %v10207_v5 = vunpack.i.h.bf16 %v13160_v27  ;;  %v17538_v12 = vld [vmem:[#allocation19_spill] sm:$0xff] }
 0x194   : > { %17524 = vst [vmem:[#allocation25_spill] sm:$0xff] %v13330_v8  ;;  %vm13341_vm12 = vcmp.eq.s32.totalorder %v17527_v43, 1  ;;  %8694 = vmatmul.mubr.msk.bf16.vlgmr.msra.gmra.mrb[0].mxu0 %vm17531_vm10, %v13196_v1  ;;  %vm17535_vm4 = vcmp.lt.s32.totalorder %v11681_v35, 113  ;;  %v10206_v0 = vunpack.i.l.bf16 %v13160_v27  ;;  %10364 = vrot.lane.b32.xlu1 %v17538_v12, %s11204_s13  ;;  %v13382_v27 = vpop.permute.xlu0 %10229  ;;  %v17539_v46 = vld [vmem:[#allocation31_spill] sm:$0xff]  ;;  %v17541_v12 = vmov 0 }
 0x195   : > { %v17529_v15 = vsel %vm13341_vm12, 4294967295, %v17528_v15  ;;  %17532 = vst [vmem:[#allocation94_spill] sm:$0xff] %v13348_v16  ;;  %17533 = vst [vmem:[#allocation95_spill] sm:$0xff] %v13352_v9  ;;  %8707 = vmatpush1.bf16.msk.msra.mxu0 %vm17534_vm15, %v8706_v7  ;;  %v2452_v43 = vsel %vm17535_vm4, %v10196_v38, %v10191_v14  ;;  %2336 = vmatprep.mubr.bf16.mxu0 %v17236_v11  ;;  %v10212_v14 = vunpack.i.h.bf16 %v13231_v56  ;;  %v17556_v47 = vmov 0 }
 0x196   : > { %17530 = vst [vmem:[#allocation26_spill] sm:$0xff] %v17529_v15  ;;  %vm17536_vm10 = vmmov %vm17535_vm4  ;;  %v8725_v7 = vpack.c.bf16 %v2449_v6, %v2448_v17  ;;  %v17540_v34 = vrot.slane %v12284_v10, %v17539_v46  ;;  %v13397_v6 = vpack.i.bf16 %v13334_v24, %v13330_v8  ;;  %v10216_v17 = vunpack.i.l.bf16 %v13252_v60 }
 0x197   : > { %v2454_v37 = vsel %vm17536_vm10, %v10201_v51, %v10196_v38  ;;  %vm17537_vm9 = vmmov %vm17535_vm4  ;;  %v10211_v38 = vunpack.i.l.bf16 %v13231_v56  ;;  %v17545_v56 = vsel %vm12661_vm2, %v17544_v26, -inf  ;;  %v13404_v10 = vpack.i.bf16 %v13352_v9, %v13348_v16  ;;  %v17548_v26 = vld [vmem:[#allocation64_spill] sm:$0xff] }
 0x198   : > { %v2455_v28 = vsel %vm17537_vm9, %v10202_v55, %v10197_v25  ;;  %v10217_v25 = vunpack.i.h.bf16 %v13252_v60  ;;  %vm13387_vm9 = vcmp.eq.s32.totalorder %v17540_v34, 1  ;;  %v625_v3 = vmax.f32 %v17545_v56, %v609_v59  ;;  %vm17546_vm15 = vmmov %vm17535_vm4  ;;  %8726 = vmatprep.subr.msk.bf16.mxu1 %vm16842_vm11, %v8725_v7  ;;  %10374 = vrot.lane.b32.xlu1 %v13272_v48, %s11202_s22  ;;  %v13454_v48 = vpop.permute.xlu0 %10239 }
 0x199   : > { %v17542_v12 = vsel %vm13387_vm9, 4294967295, %v17541_v12  ;;  %v2457_v34 = vsel %vm17546_vm15, %v10207_v5, %v10202_v55  ;;  %vm17547_vm10 = vcmask 130048   ;;  %v17549_v60 = vrot.slane %v17548_v26, %v11670_v30  ;;  %vm17553_vm15 = vmmov %vm17535_vm4  ;;  %10379 = vrot.lane.b32.xlu0 %v13404_v10, %s11197_s19 }
 0x19a   : > { %17543 = vst [vmem:[#allocation19_spill] sm:$0xff] %v17542_v12  ;;  %8715 = vmatmul.mubr.msk.bf16.vlgmr.msra.gmra.mrb[4].mxu1 %vm17547_vm10, %v13196_v1  ;;  %v17550_v59 = vmov 0  ;;  %v8721_v55 = vpack.c.bf16 %v2455_v28, %v2454_v37  ;;  %v2456_v56 = vsel %vm17553_vm15, %v10206_v0, %v10201_v51  ;;  %vm17554_vm10 = vmpackc.low %vm13165_vm13, %vm13165_vm13  ;;  %v8718_v7 = vpack.c.bf16 %v2453_v22, %v2452_v43 }
 0x19b   : > { %vm13421_vm14 = vcmp.eq.s32.totalorder %v17549_v60, 1  ;;  %8729 = vmatpush1.bf16.msk.msra.mxu1 %vm17554_vm10, %v8728_v45  ;;  %2606 = vmatprep.mubr.bf16.mxu1 %v17236_v11  ;;  %v17555_v60 = vrot.slane %v17548_v26, %v11668_v29  ;;  %vm17559_vm15 = vmmov %vm17535_vm4  ;;  %v2445_v22 = vsel %vm17535_vm4, %v10217_v25, %v10212_v14  ;;  %v10222_v43 = vunpack.i.h.bf16 %v13313_v23 }
 0x19c   : > { %v17551_v59 = vsel %vm13421_vm14, 4294967295, %v17550_v59  ;;  %v2442_v45 = vsel %vm17559_vm15, %v10211_v38, %v10206_v0  ;;  %vm17560_vm10 = vmmov %vm17535_vm4  ;;  %v17562_v28 = vunpack.i.l.bf16 %v12994_v2  ;;  %10384 = vrot.lane.b32.xlu1 %v13397_v6, %s11197_s19  ;;  %vm17634_vm8 = vcmask 130048  }
 0x19d   : > { %17552 = vst [vmem:[#allocation31_spill] sm:$0xff] %v17551_v59  ;;  %vm13436_vm11 = vcmp.eq.s32.totalorder %v17555_v60, 1  ;;  %v2443_v51 = vsel %vm17560_vm10, %v10212_v14, %v10207_v5  ;;  %vm16851_vm13 = vmpackc.low %vm13257_vm3, %vm13257_vm3  ;;  %v17564_v5 = vunpack.i.h.bf16 %v12994_v2  ;;  %v10992_v60 = vld [vmem:[%s11442_s3 + $0x28] sm:$0xff]  ;;  %v17569_v2 = vmov 0  ;;  %10389 = vrot.lane.b32.xlu0 %v13324_v13, %s11202_s22 }
 0x19e   : > { %v17557_v47 = vsel %vm13436_vm11, 4294967295, %v17556_v47  ;;  %vm17561_vm1 = vmmov %vm17535_vm4  ;;  %v13472_v54 = vmax.f32 %v10992_v60, %v13268_v31  ;;  %v10993_v31 = vld [vmem:[%s11442_s3 + $0x68] sm:$0xff]  ;;  %v13496_v60 = vld [vmem:[#allocation5 + $0x30] sm:$0xff]   ;;  %v10241_v13 = vunpack.i.l.bf16 %v13454_v48 }
 0x19f   : > { %17558 = vst [vmem:[#allocation79_spill] sm:$0xff] %v17557_v47  ;;  %v2444_v37 = vsel %vm17561_vm1, %v10216_v17, %v10211_v38  ;;  %vm17563_vm15 = vmmov %vm17561_vm1  ;;  %v13479_v38 = vpop.permute.xlu1 %10244 }
 0x1a0   : > { %v13462_v0 = vsel %vm17563_vm15, %v17562_v28, %v10216_v17  ;;  %vm17565_vm4 = vmmov %vm17561_vm1  ;;  %17566 = vst [vmem:[#allocation64_spill] sm:$0xff] %v13472_v54  ;;  %v17568_v17 = vrot.slane %v17548_v26, %v11675_v32  ;;  %vm17572_vm15 = vcmask 130048   ;;  %v10221_v28 = vunpack.i.l.bf16 %v13313_v23  ;;  %10394 = vrot.lane.b32.xlu1 %v13397_v6, %s11202_s22 }
 0x1a1   : > { %v13468_v14 = vsel %vm17565_vm4, %v17564_v5, %v10217_v25  ;;  %vm17567_vm1 = vmpackc.low %vm13215_vm0, %vm13215_vm0  ;;  %8708 = vmatmul.mubr.msk.bf16.vlgmr.msra.gmra.mrb[4].mxu0 %vm17572_vm15, %v13196_v1  ;;  %v13491_v25 = vmax.f32 %v10993_v31, %v625_v3  ;;  %v16855_v5 = vunpack.i.h.bf16 %v13336_v39  ;;  %v10237_v3 = vunpack.i.h.bf16 %v13400_v4 }
 0x1a2   : > { %8719 = vmatprep.subr.msk.bf16.mxu0 %vm17567_vm1, %v8718_v7  ;;  %vm13484_vm10 = vcmp.eq.s32.totalorder %v17568_v17, 1  ;;  %v16856_v7 = vunpack.i.l.bf16 %v13336_v39  ;;  %vm16852_vm4 = vmpackc.low %vm13291_vm5, %vm13291_vm5  ;;  %v8742_v17 = vpack.c.bf16 %v2443_v51, %v2442_v45  ;;  %2563 = vmatprep.mubr.bf16.mxu0 %v17236_v11  ;;  %v10236_v1 = vunpack.i.l.bf16 %v13400_v4 }
 0x1a3   : > { %v17570_v2 = vsel %vm13484_vm10, 4294967295, %v17569_v2  ;;  %17573 = vst [vmem:[#allocation97_spill] sm:$0xff] %v13491_v25  ;;  %8722 = vmatpush1.bf16.msk.msra.mxu0 %vm16851_vm13, %v8721_v55  ;;  %v8739_v23 = vpack.c.bf16 %v2457_v34, %v2456_v56  ;;  %vm16857_vm1 = vmpackc.low %vm13318_vm6, %vm13318_vm6  ;;  %v10232_v45 = vunpack.i.h.bf16 %v13382_v27  ;;  %v10231_v55 = vunpack.i.l.bf16 %v13382_v27  ;;  %v13521_v34 = vpop.permute.xlu0 %10249  ;;  %v13534_v31 = vpop.permute.xlu1 %10254 }
 0x1a4   : > { %17571 = vst [vmem:[#allocation96_spill] sm:$0xff] %v17570_v2  ;;  %v8732_v4 = vpack.c.bf16 %v2445_v22, %v2444_v37  ;;  %v823_v56 = vrot.slane %v17548_v26, %v17519_v19  ;;  %v8735_v51 = vpack.c.bf16 %v13468_v14, %v13462_v0  ;;  %v10246_v27 = vunpack.i.l.bf16 %v13479_v38  ;;  %vm13603_vm6 = vmpackc.low %vm13421_vm14, %vm13421_vm14  ;;  %10404 = vrot.lane.b32.xlu1 %v13404_v10, %s11202_s22 }
 0x1a5   : > { %8740 = vmatprep.subr.msk.bf16.mxu1 %vm16852_vm4, %v8739_v23  ;;  %v10398_v22 = vpack.i.bf16 %v13491_v25, %v13472_v54  ;;  %vm17574_vm13 = vcmp.lt.s32.totalorder %v11681_v35, 112  ;;  %vm17576_vm4 = vcmask 130048   ;;  %v17577_v14 = vrot.slane %v17548_v26, %v17512_v63 }
 0x1a6   : > { %v2761_v37 = vsel %vm17574_vm13, %v10222_v43, %v16855_v5  ;;  %vm17575_vm15 = vmmov %vm17574_vm13  ;;  %8730 = vmatmul.mubr.msk.bf16.vlgmr.msra.gmra.mrb[0].mxu1 %vm17576_vm4, %v13496_v60  ;;  %8733 = vmatprep.subr.msk.bf16.mxu0 %vm16857_vm1, %v8732_v4  ;;  %v17578_v23 = vmov 0  ;;  %v2765_v5 = vsel %vm17574_vm13, %v10237_v3, %v10232_v45  ;;  %v10242_v4 = vunpack.i.h.bf16 %v13454_v48 }
 0x1a7   : > { %v2760_v0 = vsel %vm17575_vm15, %v10221_v28, %v16856_v7  ;;  %vm13556_vm3 = vcmp.eq.s32.totalorder %v17577_v14, 1  ;;  %vm17581_vm15 = vmmov %vm17574_vm13  ;;  %2692 = vmatprep.mubr.bf16.mxu1 %v17236_v11  ;;  %10399 = vrot.lane.b32.xlu0 %v10398_v22, %s11197_s19  ;;  %v2762_v14 = vsel %vm17574_vm13, %v10231_v55, %v10221_v28  ;;  %v13584_v40 = vpop.permute.xlu0 %10259  ;;  %vm17587_vm1 = vcmp.le.s32.totalorder %v17586_v49, 14 }
 0x1a8   : > { %v17579_v23 = vsel %vm13556_vm3, 4294967295, %v17578_v23  ;;  %v2764_v7 = vsel %vm17581_vm15, %v10236_v1, %v10231_v55  ;;  %vm17582_vm4 = vmpackc.low %vm13341_vm12, %vm13341_vm12  ;;  %v17590_v53 = vunpack.i.h.bf16 %v13479_v38  ;;  %v13607_v49 = vpack.c.bf16 %v2761_v37, %v2760_v0  ;;  %10414 = vrot.lane.b32.xlu1 %v10398_v22, %s11202_s22 }
 0x1a9   : > { %17580 = vst [vmem:[#allocation98_spill] sm:$0xff] %v17579_v23  ;;  %8743 = vmatpush1.bf16.msk.msra.mxu1 %vm17582_vm4, %v8742_v17  ;;  %vm17583_vm15 = vmmov %vm17574_vm13  ;;  %vm17585_vm4 = vcmp.le.s32.totalorder %v17584_v18, 14  ;;  %v13609_v18 = vpop.permute.xlu1 %10264  ;;  %v10252_v55 = vunpack.i.h.bf16 %v13521_v34  ;;  %v17596_v48 = vmov 0  ;;  %v13622_v15 = vpack.c.bf16 %v2765_v5, %v2764_v7 }
 0x1aa   : > { %v2763_v17 = vsel %vm17583_vm15, %v10232_v45, %v10222_v43  ;;  %vm13590_vm12 = vmand %vm17587_vm1, %vm17585_vm4  ;;  %v2769_v28 = vsel %vm17574_vm13, %v17590_v53, %v10242_v4  ;;  %v17592_v45 = vmov 0  ;;  %vm17595_vm1 = vcmask 130048   ;;  %8755 = vmatprep.subr.msk.bf16.mxu1 %vm13603_vm6, %v13607_v49 }
 0x1ab   : > { %vm17591_vm15 = vmmov %vm17574_vm13  ;;  %v17593_v45 = vsel %vm13603_vm6, 4294967295, %v17592_v45  ;;  %8723 = vmatmul.mubr.msk.bf16.vlgmr.msra.gmra.mrb[0].mxu0 %vm17595_vm1, %v13496_v60  ;;  %v10251_v53 = vunpack.i.l.bf16 %v13521_v34  ;;  %v13624_v37 = vpack.c.bf16 %v2763_v17, %v2762_v14  ;;  %v2766_v0 = vsel %vm17574_vm13, %v10241_v13, %v10236_v1  ;;  %10409 = vrot.lane.b32.xlu0 %v13181_v58, %s11197_s19 }
 0x1ac   : > { %v2768_v43 = vsel %vm17591_vm15, %v10246_v27, %v10241_v13  ;;  %17594 = vst [vmem:[#allocation21_spill] sm:$0xff] %v17593_v45  ;;  %vm13618_vm4 = vmpackc.low %vm13436_vm11, %vm13436_vm11  ;;  %2649 = vmatprep.mubr.bf16.mxu0 %v17236_v11  ;;  %v13639_v5 = vsel %vm13590_vm12, 1, %v17236_v11  ;;  %v17601_v7 = vunpack.i.h.bf16 %v13534_v31  ;;  %v17602_v1 = vunpack.i.l.bf16 %v13534_v31  ;;  %v13667_v13 = vpop.permute.xlu0 %10269 }
 0x1ad   : > { %v17597_v48 = vsel %vm13618_vm4, 4294967295, %v17596_v48  ;;  %vm17599_vm15 = vmmov %vm17574_vm13  ;;  %v17607_v58 = vrot.slane %v17548_v26, %v17502_v61  ;;  %v17608_v10 = vmov 0  ;;  %v16887_v6 = vunpack.i.h.bf16 %v13609_v18 }
 0x1ae   : > { %17598 = vst [vmem:[#allocation20_spill] sm:$0xff] %v17597_v48  ;;  %v2767_v21 = vsel %vm17599_vm15, %v10242_v4, %v10237_v3  ;;  %vm17600_vm1 = vmpackc.low %vm13387_vm9, %vm13387_vm9  ;;  %v2757_v3 = vsel %vm17574_vm13, %v17601_v7, %v10252_v55  ;;  %v13669_v4 = vpack.c.bf16 %v2769_v28, %v2768_v43  ;;  %v17611_v28 = vmov 0 }
 0x1af   : > { %8736 = vmatpush1.bf16.msk.msra.mxu0 %vm17600_vm1, %v8735_v51  ;;  %vm17603_vm15 = vmmov %vm17574_vm13  ;;  %v17604_v51 = vmov 0  ;;  %vm13663_vm1 = vcmp.eq.s32.totalorder %v17607_v58, 1  ;;  %vm17614_vm9 = vcmask 130048   ;;  %vm13693_vm5 = vcmp.eq.s32.totalorder %v823_v56, 1 }
 0x1b0   : > { %v2756_v34 = vsel %vm17603_vm15, %v17602_v1, %v10251_v53  ;;  %vm13656_vm12 = vmpackc.low %vm13484_vm10, %vm13484_vm10  ;;  %v17609_v10 = vsel %vm13663_vm1, 4294967295, %v17608_v10  ;;  %8748 = vmatprep.subr.msk.bf16.mxu0 %vm13618_vm4, %v13622_v15  ;;  %v13681_v1 = vpop.permute.xlu1 %10274  ;;  %vm16886_vm15 = vcmp.lt.s32.totalorder %v11681_v35, 111  ;;  %8744 = vmatmul.mubr.msk.bf16.vlgmr.msra.gmra.mrb[4].mxu1 %vm17614_vm9, %v13496_v60  ;;  %v17615_v43 = vmov 0 }
 0x1b1   : > { %v17605_v51 = vsel %vm13656_vm12, 4294967295, %v17604_v51  ;;  %17610 = vst [vmem:[#allocation100_spill] sm:$0xff] %v17609_v10  ;;  %vm13686_vm13 = vmpackc.low %vm13556_vm3, %vm13556_vm3  ;;  %v17616_v43 = vsel %vm13693_vm5, 4294967295, %v17615_v43  ;;  %v3058_v58 = vrot.slane %v13639_v5, %v11670_v30  ;;  %v13699_v17 = vpack.c.bf16 %v2767_v21, %v2766_v0  ;;  %8758 = vmatpush1.bf16.msk.msra.mxu1 %vm13656_vm12, %v13624_v37  ;;  %2877 = vmatprep.mubr.bf16.mxu1 %v17236_v11 }
 0x1b2   : > { %17606 = vst [vmem:[#allocation99_spill] sm:$0xff] %v17605_v51  ;;  %v17612_v28 = vsel %vm13686_vm13, 4294967295, %v17611_v28  ;;  %17617 = vst [vmem:[#allocation102_spill] sm:$0xff] %v17616_v43  ;;  %vm17618_vm0 = vcmp.lt.s32.totalorder %v11681_v35, 112  ;;  %v819_v56 = vrot.slane %v17548_v26, %v17539_v46  ;;  %v17619_v14 = vunpack.i.h.bf16 %v13479_v38  ;;  %8769 = vmatprep.subr.msk.bf16.mxu1 %vm13686_vm13, %v13669_v4 }
 0x1b3   : > { %17613 = vst [vmem:[#allocation101_spill] sm:$0xff] %v17612_v28  ;;  %v2754_v7 = vsel %vm17618_vm0, %v10251_v53, %v10246_v27  ;;  %vm17620_vm9 = vmmov %vm17618_vm0  ;;  %v17621_v27 = vmov 0  ;;  %v13726_v22 = vpack.c.bf16 %v2757_v3, %v2756_v34  ;;  %v17624_v38 = vunpack.i.h.bf16 %v13584_v40  ;;  %8737 = vmatmul.mubr.msk.bf16.vlgmr.msra.gmra.mrb[4].mxu0 %vm17634_vm8, %v13496_v60 }
 0x1b4   : > { %v2755_v21 = vsel %vm17620_vm9, %v10252_v55, %v17619_v14  ;;  %vm13717_vm0 = vmpackc.low %vm13663_vm1, %vm13663_vm1  ;;  %v17625_v14 = vunpack.i.l.bf16 %v13609_v18  ;;  %v17626_v12 = vunpack.i.l.bf16 %v13584_v40  ;;  %v17627_v53 = vrot.slane %v17548_v26, %v17526_v33  ;;  %2834 = vmatprep.mubr.bf16.mxu0 %v17236_v11 }
 0x1b5   : > { %v17622_v27 = vsel %vm13717_vm0, 4294967295, %v17621_v27  ;;  %v3033_v55 = vsel %vm16886_vm15, %v17624_v38, %v16887_v6  ;;  %v17628_v3 = vmov 0  ;;  %vm13750_vm2 = vmpackc.low %vm13693_vm5, %vm13693_vm5  ;;  %v17631_v34 = vmov 0  ;;  %v13754_v38 = vpop.permute.xlu1 %10284  ;;  %8751 = vmatpush1.bf16.msk.msra.mxu0 %vm13717_vm0, %v13699_v17 }
 0x1b6   : > { %17623 = vst [vmem:[#allocation103_spill] sm:$0xff] %v17622_v27  ;;  %v3032_v0 = vsel %vm16886_vm15, %v17626_v12, %v17625_v14  ;;  %vm13743_vm9 = vcmp.eq.s32.totalorder %v17627_v53, 1  ;;  %v17632_v34 = vsel %vm13750_vm2, 4294967295, %v17631_v34  ;;  %v13758_v12 = vld [vmem:[#allocation5 + $0x38] sm:$0xff]   ;;  %v10272_v26 = vunpack.i.h.bf16 %v13667_v13  ;;  %v10280_v14 = vpop.permute.xlu0 %10279  ;;  %8762 = vmatprep.subr.msk.bf16.mxu0 %vm13750_vm2, %v13726_v22 }
 0x1b7   : > { %v17629_v3 = vsel %vm13743_vm9, 4294967295, %v17628_v3  ;;  %17633 = vst [vmem:[#allocation105_spill] sm:$0xff] %v17632_v34  ;;  %v10271_v53 = vunpack.i.l.bf16 %v13667_v13  ;;  %vm13762_vm15 = vcmp.eq.s32.totalorder %v3058_v58, 1  ;;  %v17635_v6 = vmov 0  ;;  %vm13803_vm1 = vmpackc.low %vm13743_vm9, %vm13743_vm9 }
 0x1b8   : > { %17630 = vst [vmem:[#allocation104_spill] sm:$0xff] %v17629_v3  ;;  %v17636_v6 = vsel %vm13762_vm15, 4294967295, %v17635_v6  ;;  %v3050_v25 = vrot.slane %v13639_v5, %v11668_v29  ;;  %v13768_v54 = vpack.c.bf16 %v2755_v21, %v2754_v7  ;;  %v17638_v57 = vunpack.i.l.bf16 %v13534_v31  ;;  %vm17668_vm10 = vmpackc.low %vm13762_vm15, %vm13762_vm15 }
 0x1b9   : > { %17637 = vst [vmem:[#allocation106_spill] sm:$0xff] %v17636_v6  ;;  %v17639_v60 = vunpack.i.l.bf16 %v13336_v39  ;;  %vm17640_vm8 = vcmp.lt.s32.totalorder %v11681_v35, 112  ;;  %vm13780_vm7 = vcmp.eq.s32.totalorder %v819_v56, 1  ;;  %v17641_v13 = vmov 0 }
 0x1ba   : > { %v17642_v13 = vsel %vm13780_vm7, 4294967295, %v17641_v13  ;;  %v3054_v7 = vrot.slane %v13639_v5, %v11675_v32  ;;  %v17644_v58 = vunpack.i.h.bf16 %v13534_v31  ;;  %v17645_v21 = vunpack.i.h.bf16 %v13336_v39  ;;  %vm17646_vm5 = vmmov %vm17640_vm8 }
 0x1bb   : > { %v2758_v41 = vsel %vm17640_vm8, %v17639_v60, %v17638_v57  ;;  %17643 = vst [vmem:[#allocation107_spill] sm:$0xff] %v17642_v13  ;;  %v17647_v60 = vunpack.i.h.bf16 %v13681_v1  ;;  %vm17648_vm8 = vcmp.lt.s32.totalorder %v11681_v35, 111  ;;  %v17649_v56 = vunpack.i.l.bf16 %v13681_v1  ;;  %vm13850_vm11 = vmpackc.low %vm13780_vm7, %vm13780_vm7 }
 0x1bc   : > { %v2759_v57 = vsel %vm17646_vm5, %v17645_v21, %v17644_v58  ;;  %vm17650_vm3 = vmmov %vm17648_vm8  ;;  %v17651_v31 = vmov 0  ;;  %v8783_v39 = vpack.c.bf16 %v3033_v55, %v3032_v0  ;;  %v4221_v58 = vld [vmem:[%s16590_s4] sm:$0xff]  ;;  %v4222_v21 = vld [vmem:[%s16590_s4 + $0x8] sm:$0xff]  ;;  %v10287_v8 = vunpack.i.h.bf16 %v13754_v38  ;;  %v10295_v0 = vpop.permute.xlu1 %10294 }
 0x1bd   : > { %v3037_v43 = vsel %vm17648_vm8, %v17647_v60, %v10272_v26  ;;  %v3036_v24 = vsel %vm17650_vm3, %v17649_v56, %v10271_v53  ;;  %v17652_v31 = vsel %vm13803_vm1, 4294967295, %v17651_v31  ;;  %v10282_v60 = vunpack.i.h.bf16 %v10280_v14  ;;  %4225 = vperm.xlu0 %10418, %v4221_v58   ;;  %4230 = vperm.xlu1 %10419, %v4222_v21  }
 0x1be   : > { %17653 = vst [vmem:[#allocation108_spill] sm:$0xff] %v17652_v31  ;;  %v10281_v56 = vunpack.i.l.bf16 %v10280_v14  ;;  %v10286_v9 = vunpack.i.l.bf16 %v13754_v38  ;;  %vm17654_vm5 = vcmask 130048   ;;  %vm13823_vm8 = vcmp.eq.s32.totalorder %v3050_v25, 1 }
 0x1bf   : > { %8759 = vmatmul.mubr.msk.bf16.vlgmr.msra.gmra.mrb[0].mxu1 %vm17654_vm5, %v13758_v12  ;;  %v17655_v55 = vmov 0  ;;  %v3074_v14 = vrot.slane %v13639_v5, %v17512_v63  ;;  %v13829_v16 = vpack.c.bf16 %v2759_v57, %v2758_v41  ;;  %vm13835_vm3 = vcmp.eq.s32.totalorder %v3054_v7, 1  ;;  %v10290_v7 = vpop.permute.xlu0 %10289  ;;  %vm16929_vm7 = vmpackc.low %vm13823_vm8, %vm13823_vm8 }
 0x1c0   : > { %v17656_v55 = vsel %vm13823_vm8, 4294967295, %v17655_v55  ;;  %8772 = vmatpush1.bf16.msk.msra.mxu1 %vm13803_vm1, %v13768_v54  ;;  %2963 = vmatprep.mubr.bf16.mxu1 %v17236_v11  ;;  %v17658_v38 = vmov 0  ;;  %v17661_v25 = vunpack.i.l.bf16 %v13584_v40  ;;  %vm17662_vm5 = vcmp.lt.s32.totalorder %v11681_v35, 111 }
 0x1c1   : > { %17657 = vst [vmem:[#allocation109_spill] sm:$0xff] %v17656_v55  ;;  %v17659_v38 = vsel %vm13835_vm3, 4294967295, %v17658_v38  ;;  %v17663_v21 = vunpack.i.h.bf16 %v13584_v40  ;;  %vm17664_vm9 = vmmov %vm17662_vm5  ;;  %v17665_v57 = vmov 0  ;;  %8784 = vmatprep.subr.msk.bf16.mxu1 %vm17668_vm10, %v8783_v39  ;;  %v3046_v40 = vrot.slane %v13639_v5, %v17502_v61  ;;  %v18005_v55 = vld [vmem:[#allocation78_spill] sm:$0xff] }
 0x1c2   : > { %17660 = vst [vmem:[#allocation110_spill] sm:$0xff] %v17659_v38  ;;  %v3034_v58 = vsel %vm17662_vm5, %v10271_v53, %v17661_v25  ;;  %v17666_v57 = vsel %vm13850_vm11, 4294967295, %v17665_v57  ;;  %v8776_v53 = vpack.c.bf16 %v3037_v43, %v3036_v24  ;;  %v3040_v25 = vsel %vm17662_vm5, %v10286_v9, %v10281_v56  ;;  %vm17678_vm15 = vmmov %vm17662_vm5  ;;  %v18007_v38 = vld [vmem:[#allocation76_spill] sm:$0xff] }
 0x1c3   : > { %v3035_v41 = vsel %vm17664_vm9, %v10272_v26, %v17663_v21  ;;  %17667 = vst [vmem:[#allocation111_spill] sm:$0xff] %v17666_v57  ;;  %vm17669_vm9 = vmmov %vm17662_vm5  ;;  %v10297_v21 = vunpack.i.h.bf16 %v10295_v0  ;;  %v10296_v13 = vunpack.i.l.bf16 %v10295_v0  ;;  %vm17670_vm14 = vcmask 130048  }
 0x1c4   : > { %v3041_v26 = vsel %vm17669_vm9, %v10287_v8, %v10282_v60  ;;  %8752 = vmatmul.mubr.msk.bf16.vlgmr.msra.gmra.mrb[0].mxu0 %vm17670_vm14, %v13758_v12  ;;  %vm13870_vm10 = vcmp.eq.s32.totalorder %v3074_v14, 1  ;;  %v17671_v24 = vmov 0  ;;  %v3066_v43 = vrot.slane %v13639_v5, %v17519_v19  ;;  %vm17675_vm14 = vmmov %vm17662_vm5 }
 0x1c5   : > { %v17672_v24 = vsel %vm13870_vm10, 4294967295, %v17671_v24  ;;  %v8786_v39 = vpack.c.bf16 %v3035_v41, %v3034_v58  ;;  %8765 = vmatpush1.bf16.msk.msra.mxu0 %vm13850_vm11, %v13829_v16  ;;  %v10292_v0 = vunpack.i.h.bf16 %v10290_v7  ;;  %v10291_v6 = vunpack.i.l.bf16 %v10290_v7  ;;  %2920 = vmatprep.mubr.bf16.mxu0 %v17236_v11  ;;  %vm17677_vm9 = vmmov %vm17662_vm5 }
 0x1c6   : > { %17673 = vst [vmem:[#allocation112_spill] sm:$0xff] %v17672_v24  ;;  %v17674_v23 = vunpack.i.l.bf16 %v13681_v1  ;;  %v17676_v3 = vunpack.i.h.bf16 %v13681_v1  ;;  %8777 = vmatprep.subr.msk.bf16.mxu0 %vm16929_vm7, %v8776_v53  ;;  %v8797_v58 = vpack.c.bf16 %v3041_v26, %v3040_v25  ;;  %vm13900_vm11 = vcmp.eq.s32.totalorder %v3046_v40, 1  ;;  %vm17689_vm8 = vmpackc.low %vm13870_vm10, %vm13870_vm10 }
 0x1c7   : > { %v3029_v41 = vsel %vm17678_vm15, %v10297_v21, %v10292_v0  ;;  %v17680_v1 = vmov 0  ;;  %vm17683_vm7 = vcmask 130048   ;;  %vm17687_vm15 = vmpackc.low %vm13835_vm3, %vm13835_vm3  ;;  %v3027_v53 = vsel %vm17677_vm9, %v10292_v0, %v10287_v8  ;;  %v17708_v0 = vld [vmem:[#allocation43_spill] sm:$0xff] }
 0x1c8   : > { %v3038_v14 = vsel %vm17675_vm14, %v10281_v56, %v17674_v23  ;;  %v3039_v52 = vsel %vm17677_vm9, %v10282_v60, %v17676_v3  ;;  %vm17679_vm14 = vmmov %vm17662_vm5  ;;  %v17681_v1 = vsel %vm13900_vm11, 4294967295, %v17680_v1  ;;  %v3070_v3 = vrot.slane %v13639_v5, %v17526_v33  ;;  %8773 = vmatmul.mubr.msk.bf16.vlgmr.msra.gmra.mrb[4].mxu1 %vm17683_vm7, %v13758_v12 }
 0x1c9   : > { %v3028_v23 = vsel %vm17679_vm14, %v10296_v13, %v10291_v6  ;;  %17682 = vst [vmem:[#allocation113_spill] sm:$0xff] %v17681_v1  ;;  %vm13911_vm5 = vcmp.eq.s32.totalorder %v3066_v43, 1  ;;  %v17684_v60 = vmov 0  ;;  %v8779_v56 = vpack.c.bf16 %v3039_v52, %v3038_v14  ;;  %8787 = vmatpush1.bf16.msk.msra.mxu1 %vm17687_vm15, %v8786_v39  ;;  %3190 = vmatprep.mubr.bf16.mxu1 %v17236_v11  ;;  %vm17688_vm14 = vmmov %vm17677_vm9  ;;  %v17707_v39 = vld [vmem:[#allocation45_spill] sm:$0xff]  ;;  %v17711_v14 = vld [vmem:[#allocation48_spill] sm:$0xff] }
 0x1ca   : > { %v17685_v60 = vsel %vm13911_vm5, 4294967295, %v17684_v60  ;;  %v3026_v7 = vsel %vm17688_vm14, %v10291_v6, %v10286_v9  ;;  %vm16932_vm7 = vmpackc.low %vm13900_vm11, %vm13900_vm11  ;;  %8798 = vmatprep.subr.msk.bf16.mxu1 %vm17689_vm8, %v8797_v58  ;;  %v8790_v52 = vpack.c.bf16 %v3029_v41, %v3028_v23  ;;  %vm13933_vm15 = vcmp.eq.s32.totalorder %v3070_v3, 1  ;;  %v10928_v9 = vld [vmem:[#allocation5 + $0x40] sm:$0xff]   ;;  %v17712_v58 = vld [vmem:[#allocation47_spill] sm:$0xff] }
 0x1cb   : > { %17686 = vst [vmem:[#allocation114_spill] sm:$0xff] %v17685_v60  ;;  %v17690_v40 = vmov 0  ;;  %v3062_v8 = vrot.slane %v13639_v5, %v17539_v46  ;;  %vm17693_vm9 = vcmask 130048   ;;  %v8800_v6 = vpack.c.bf16 %v3027_v53, %v3026_v7  ;;  %vm17695_vm8 = vmmov %vm17688_vm14  ;;  %v17714_v41 = vld [vmem:[#allocation50_spill] sm:$0xff]  ;;  %v17715_v23 = vld [vmem:[#allocation49_spill] sm:$0xff] }
 0x1cc   : > { %v17691_v40 = vsel %vm13933_vm15, 4294967295, %v17690_v40  ;;  %8766 = vmatmul.mubr.msk.bf16.vlgmr.msra.gmra.mrb[4].mxu0 %vm17693_vm9, %v13758_v12  ;;  %v17694_v26 = vunpack.i.l.bf16 %v13609_v18  ;;  %v17696_v5 = vunpack.i.h.bf16 %v13609_v18  ;;  %vm17697_vm14 = vmmov %vm17695_vm8  ;;  %v17699_v43 = vmov 0  ;;  %v10929_v3 = vld [vmem:[#allocation5 + $0x48] sm:$0xff]   ;;  %v17719_v7 = vld [vmem:[#allocation52_spill] sm:$0xff] }
 0x1cd   : > { %17692 = vst [vmem:[#allocation115_spill] sm:$0xff] %v17691_v40  ;;  %8780 = vmatpush1.bf16.msk.msra.mxu0 %vm16932_vm7, %v8779_v56  ;;  %3147 = vmatprep.mubr.bf16.mxu0 %v17236_v11  ;;  %vm16937_vm9 = vmpackc.low %vm13933_vm15, %vm13933_vm15  ;;  %vm13966_vm11 = vcmp.eq.s32.totalorder %v3062_v8, 1  ;;  %vm17713_vm15 = vnez %v17712_v58  ;;  %v17718_v56 = vld [vmem:[#allocation55_spill] sm:$0xff]  ;;  %v17721_v53 = vld [vmem:[#allocation57_spill] sm:$0xff]  ;;  %v14010_v8 = vpop.permute.xlu1 %10304  ;;  %v17740_v40 = vmov 0 }
 0x1ce   : > { %v3030_v25 = vsel %vm17695_vm8, %v17694_v26, %v10296_v13  ;;  %v3031_v12 = vsel %vm17697_vm14, %v17696_v5, %v10297_v21  ;;  %vm17698_vm7 = vmpackc.low %vm13911_vm5, %vm13911_vm5  ;;  %v17700_v43 = vsel %vm13966_vm11, 4294967295, %v17699_v43  ;;  %vm17702_vm8 = vcmask 130048   ;;  %v17703_v13 = vld [vmem:[#allocation41_spill] sm:$0xff]  ;;  %v17704_v21 = vld [vmem:[#allocation40_spill] sm:$0xff] }
 0x1cf   : > { %8791 = vmatprep.subr.msk.bf16.mxu0 %vm17698_vm7, %v8790_v52  ;;  %17701 = vst [vmem:[#allocation116_spill] sm:$0xff] %v17700_v43  ;;  %v8793_v18 = vpack.c.bf16 %v3031_v12, %v3030_v25  ;;  %vm17705_vm14 = vnez %v17704_v21  ;;  %vm16942_vm7 = vmpackc.low %vm13966_vm11, %vm13966_vm11  ;;  %v17722_v52 = vld [vmem:[#allocation54_spill] sm:$0xff]  ;;  %v17726_v26 = vld [vmem:[#allocation59_spill] sm:$0xff]  ;;  %v10300_v25 = vpop.permute.xlu0 %10299 }
 0x1d0   : > { %8788 = vmatmul.mubr.msk.bf16.vlgmr.msra.gmra.mrb[0].mxu1 %vm17702_vm8, %v10928_v9  ;;  %vm17706_vm5 = vmmov %vm17702_vm8  ;;  %vm17709_vm8 = vnez %v17708_v0  ;;  %vm17727_vm3 = vnez %v17726_v26  ;;  %v17729_v5 = vld [vmem:[#allocation65_spill] sm:$0xff]  ;;  %v17730_v12 = vld [vmem:[#allocation63_spill] sm:$0xff] }
 0x1d1   : > { %8801 = vmatpush1.bf16.msk.msra.mxu1 %vm16937_vm9, %v8800_v6  ;;  %3276 = vmatprep.mubr.bf16.mxu1 %v17236_v11  ;;  %vm17710_vm9 = vmmov %vm17706_vm5  ;;  %v17725_v6 = vld [vmem:[#allocation60_spill] sm:$0xff]  ;;  %v17992_v21 = vld [vmem:[#allocation69_spill] sm:$0xff] }
 0x1d2   : > { %8813 = vmatprep.subr.msk.bf16.mxu1 %vm17705_vm14, %v17703_v13  ;;  %vm17717_vm11 = vmmov %vm17710_vm9  ;;  %v10302_v13 = vunpack.i.h.bf16 %v10300_v25 }
 0x1d3   : > { %vm17724_vm10 = vmmov %vm17717_vm11 }
 0x1d4   : > { %8781 = vmatmul.mubr.msk.bf16.vlgmr.msra.gmra.mrb[0].mxu0 %vm17706_vm5, %v10928_v9  ;;  %vm17716_vm5 = vnez %v17715_v23 }
 0x1d5   : > { %8794 = vmatpush1.bf16.msk.msra.mxu0 %vm16942_vm7, %v8793_v18  ;;  %3233 = vmatprep.mubr.bf16.mxu0 %v17236_v11  ;;  %vm17720_vm7 = vnez %v17719_v7 }
 0x1d6   : > { %8806 = vmatprep.subr.msk.bf16.mxu0 %vm17709_vm8, %v17707_v39  ;;  %v10301_v39 = vunpack.i.l.bf16 %v10300_v25  ;;  %v17733_v25 = vmov 0 }
 0x1d8   : > { %8802 = vmatmul.mubr.msk.bf16.vlgmr.msra.gmra.mrb[4].mxu1 %vm17710_vm9, %v10928_v9  ;;  %vm17723_vm9 = vnez %v17722_v52 }
 0x1d9   : > { %8816 = vmatpush1.bf16.msk.msra.mxu1 %vm17713_vm15, %v17711_v14  ;;  %3389 = vmatprep.mubr.bf16.mxu1 %v17236_v11  ;;  %v16950_v14 = vunpack.i.h.bf16 %v14010_v8 }
 0x1da   : > { %8827 = vmatprep.subr.msk.bf16.mxu1 %vm17716_vm5, %v17714_v41  ;;  %v16949_v41 = vunpack.i.l.bf16 %v14010_v8 }
 0x1dc   : > { %8795 = vmatmul.mubr.msk.bf16.vlgmr.msra.gmra.mrb[4].mxu0 %vm17717_vm11, %v10928_v9  ;;  %v10994_v9 = vld [vmem:[%s16587_s1] sm:$0xff] }
 0x1dd   : > { %8809 = vmatpush1.bf16.msk.msra.mxu0 %vm17720_vm7, %v17718_v56  ;;  %3346 = vmatprep.mubr.bf16.mxu0 %v17236_v11  ;;  %vm381_vm11 = vcmp.le.s32.totalorder %v10994_v9, 13 }
 0x1de   : > { %8820 = vmatprep.subr.msk.bf16.mxu0 %vm17723_vm9, %v17721_v53  ;;  %vm17728_vm9 = vmmov %vm17724_vm10  ;;  %v14028_v18 = vsel %vm381_vm11, 1, %v17236_v11 }
 0x1df   : > { %v3769_v56 = vrot.slane %v14028_v18, %v11670_v30 }
 0x1e0   : > { %8817 = vmatmul.mubr.msk.bf16.vlgmr.msra.gmra.mrb[0].mxu1 %vm17724_vm10, %v10929_v3  ;;  %vm17731_vm10 = vnez %v17730_v12 }
 0x1e1   : > { %8830 = vmatpush1.bf16.msk.msra.mxu1 %vm17727_vm3, %v17725_v6  ;;  %3475 = vmatprep.mubr.bf16.mxu1 %v17236_v11  ;;  %vm14055_vm11 = vcmp.eq.s32.totalorder %v3769_v56, 1 }
 0x1e2   : > { %8842 = vmatprep.subr.msk.bf16.mxu1 %vm13603_vm6, %v13607_v49  ;;  %v10315_v49 = vpop.permute.xlu1 %10314  ;;  %vm17732_vm6 = vcmask 130048   ;;  %v17734_v25 = vsel %vm14055_vm11, 4294967295, %v17733_v25 }
 0x1e3   : > { %v10317_v6 = vunpack.i.h.bf16 %v10315_v49  ;;  %v10316_v9 = vunpack.i.l.bf16 %v10315_v49  ;;  %17735 = vst [vmem:[#allocation41_spill] sm:$0xff] %v17734_v25  ;;  %v3765_v49 = vrot.slane %v14028_v18, %v11675_v32  ;;  %v3785_v32 = vrot.slane %v14028_v18, %v17512_v63 }
 0x1e4   : > { %8810 = vmatmul.mubr.msk.bf16.vlgmr.msra.gmra.mrb[0].mxu0 %vm17728_vm9, %v10929_v3  ;;  %vm16966_vm9 = vcmp.lt.s32.totalorder %v11681_v35, 96 }
 0x1e5   : > { %8823 = vmatpush1.bf16.msk.msra.mxu0 %vm17731_vm10, %v17729_v5  ;;  %3432 = vmatprep.mubr.bf16.mxu0 %v17236_v11  ;;  %v3744_v53 = vsel %vm16966_vm9, %v10302_v13, %v16950_v14  ;;  %v3743_v30 = vsel %vm16966_vm9, %v10301_v39, %v16949_v41  ;;  %v3761_v5 = vrot.slane %v14028_v18, %v11668_v29 }
 0x1e6   : > { %8835 = vmatprep.subr.msk.bf16.mxu0 %vm13618_vm4, %v13622_v15  ;;  %v10310_v15 = vpop.permute.xlu0 %10309 }
 0x1e7   : > { %v10312_v41 = vunpack.i.h.bf16 %v10310_v15  ;;  %v10311_v14 = vunpack.i.l.bf16 %v10310_v15 }
 0x1e8   : > { %8831 = vmatmul.mubr.msk.bf16.vlgmr.msra.gmra.mrb[4].mxu1 %vm17732_vm6, %v10929_v3 }
 0x1e9   : > { %8845 = vmatpush1.bf16.msk.msra.mxu1 %vm13656_vm12, %v13624_v37  ;;  %3588 = vmatprep.mubr.bf16.mxu1 %v17236_v11  ;;  %v10930_v37 = vld [vmem:[#allocation5 + $0x50] sm:$0xff]   ;;  %v3748_v29 = vsel %vm16966_vm9, %v10317_v6, %v10312_v41  ;;  %v3747_v43 = vsel %vm16966_vm9, %v10316_v9, %v10311_v14  ;;  %vm17751_vm12 = vcmask 130048  }
 0x1ea   : > { %8856 = vmatprep.subr.msk.bf16.mxu1 %vm13686_vm13, %v13669_v4  ;;  %v10325_v4 = vpop.permute.xlu1 %10324  ;;  %v10320_v56 = vpop.permute.xlu0 %10319  ;;  %v8863_v63 = vpack.c.bf16 %v3748_v29, %v3747_v43  ;;  %v17744_v43 = vmov 0  ;;  %vm17747_vm13 = vnez %v17666_v57 }
 0x1eb   : > { %v10326_v15 = vunpack.i.l.bf16 %v10325_v4 }
 0x1ec   : > { %8824 = vmatmul.mubr.msk.bf16.vlgmr.msra.gmra.mrb[4].mxu0 %vm17732_vm6, %v10929_v3  ;;  %v8870_v3 = vpack.c.bf16 %v3744_v53, %v3743_v30  ;;  %vm16963_vm6 = vmpackc.low %vm14055_vm11, %vm14055_vm11  ;;  %v10322_v53 = vunpack.i.h.bf16 %v10320_v56  ;;  %v10321_v30 = vunpack.i.l.bf16 %v10320_v56  ;;  %vm17743_vm11 = vcmask 130048  }
 0x1ed   : > { %8838 = vmatpush1.bf16.msk.msra.mxu0 %vm13717_vm0, %v13699_v17  ;;  %3545 = vmatprep.mubr.bf16.mxu0 %v17236_v11  ;;  %v10327_v17 = vunpack.i.h.bf16 %v10325_v4  ;;  %vm17736_vm0 = vcmask 130048   ;;  %v3745_v4 = vsel %vm16966_vm9, %v10311_v14, %v10301_v39 }
 0x1ee   : > { %8849 = vmatprep.subr.msk.bf16.mxu0 %vm13750_vm2, %v13726_v22  ;;  %vm14078_vm2 = vcmp.eq.s32.totalorder %v3761_v5, 1  ;;  %v17737_v22 = vmov 0  ;;  %v3746_v5 = vsel %vm16966_vm9, %v10312_v41, %v10302_v13  ;;  %v3751_v39 = vsel %vm16966_vm9, %v10326_v15, %v10321_v30 }
 0x1ef   : > { %v17738_v22 = vsel %vm14078_vm2, 4294967295, %v17737_v22  ;;  %v3757_v13 = vrot.slane %v14028_v18, %v17502_v61  ;;  %v8873_v14 = vpack.c.bf16 %v3746_v5, %v3745_v4  ;;  %v3750_v41 = vsel %vm16966_vm9, %v10322_v53, %v10317_v6 }
 0x1f0   : > { %8846 = vmatmul.mubr.msk.bf16.vlgmr.msra.gmra.mrb[0].mxu1 %vm17736_vm0, %v10930_v37  ;;  %17739 = vst [vmem:[#allocation45_spill] sm:$0xff] %v17738_v22  ;;  %vm14097_vm0 = vcmp.eq.s32.totalorder %v3765_v49, 1  ;;  %v3749_v61 = vsel %vm16966_vm9, %v10321_v30, %v10316_v9  ;;  %v17748_v6 = vmov 0  ;;  %v3781_v9 = vrot.slane %v14028_v18, %v17526_v33 }
 0x1f1   : > { %8859 = vmatpush1.bf16.msk.msra.mxu1 %vm13803_vm1, %v13768_v54  ;;  %3674 = vmatprep.mubr.bf16.mxu1 %v17236_v11  ;;  %v17741_v40 = vsel %vm14097_vm0, 4294967295, %v17740_v40  ;;  %v3752_v54 = vsel %vm16966_vm9, %v10327_v17, %v10322_v53  ;;  %vm16969_vm1 = vmpackc.low %vm14078_vm2, %vm14078_vm2  ;;  %v8866_v29 = vpack.c.bf16 %v3750_v41, %v3749_v61  ;;  %v17755_v53 = vmov 0 }
 0x1f2   : > { %8871 = vmatprep.subr.msk.bf16.mxu1 %vm16963_vm6, %v8870_v3  ;;  %17742 = vst [vmem:[#allocation48_spill] sm:$0xff] %v17741_v40  ;;  %vm14111_vm6 = vcmp.eq.s32.totalorder %v3785_v32, 1  ;;  %v14120_v3 = vpop.permute.xlu0 %10329  ;;  %vm17780_vm2 = vnez %v17570_v2  ;;  %v17784_v2 = vunpack.i.h.bf16 %v14010_v8 }
 0x1f3   : > { %v17745_v43 = vsel %vm14111_vm6, 4294967295, %v17744_v43  ;;  %v16979_v49 = vunpack.i.h.bf16 %v14120_v3  ;;  %v16976_v56 = vunpack.i.l.bf16 %v14120_v3 }
 0x1f4   : > { %8839 = vmatmul.mubr.msk.bf16.vlgmr.msra.gmra.mrb[0].mxu0 %vm17743_vm11, %v10930_v37  ;;  %17746 = vst [vmem:[#allocation50_spill] sm:$0xff] %v17745_v43  ;;  %vm16970_vm11 = vmpackc.low %vm14097_vm0, %vm14097_vm0  ;;  %vm14167_vm0 = vcmp.eq.s32.totalorder %v3781_v9, 1  ;;  %v17771_v43 = vmov 0 }
 0x1f5   : > { %8852 = vmatpush1.bf16.msk.msra.mxu0 %vm17747_vm13, %v13829_v16  ;;  %3631 = vmatprep.mubr.bf16.mxu0 %v17236_v11  ;;  %v8884_v16 = vpack.c.bf16 %v3752_v54, %v3751_v39  ;;  %vm14135_vm13 = vcmp.eq.s32.totalorder %v3757_v13, 1  ;;  %v17756_v53 = vsel %vm14167_vm0, 4294967295, %v17755_v53 }
 0x1f6   : > { %8864 = vmatprep.subr.msk.bf16.mxu0 %vm16969_vm1, %v8863_v63  ;;  %v17749_v6 = vsel %vm14135_vm13, 4294967295, %v17748_v6  ;;  %vm17752_vm1 = vcmp.lt.s32.totalorder %v11681_v35, 96  ;;  %17757 = vst [vmem:[#allocation57_spill] sm:$0xff] %v17756_v53 }
 0x1f7   : > { %17750 = vst [vmem:[#allocation55_spill] sm:$0xff] %v17749_v6  ;;  %v3738_v32 = vsel %vm17752_vm1, %v16979_v49, %v10327_v17  ;;  %vm17753_vm9 = vmmov %vm17752_vm1  ;;  %vm17758_vm1 = vcmask 130048   ;;  %v14172_v17 = vld [vmem:[#allocation5 + $0x58] sm:$0xff]  }
 0x1f8   : > { %8860 = vmatmul.mubr.msk.bf16.vlgmr.msra.gmra.mrb[4].mxu1 %vm17751_vm12, %v10930_v37  ;;  %v3737_v33 = vsel %vm17753_vm9, %v16976_v56, %v10326_v15  ;;  %vm16973_vm12 = vmpackc.low %vm14135_vm13, %vm14135_vm13  ;;  %v10335_v15 = vpop.permute.xlu1 %10334 }
 0x1f9   : > { %8874 = vmatpush1.bf16.msk.msra.mxu1 %vm16970_vm11, %v8873_v14  ;;  %3901 = vmatprep.mubr.bf16.mxu1 %v17236_v11  ;;  %vm17754_vm11 = vmpackc.low %vm14111_vm6, %vm14111_vm6  ;;  %v8887_v30 = vpack.c.bf16 %v3738_v32, %v3737_v33  ;;  %v10337_v4 = vunpack.i.h.bf16 %v10335_v15  ;;  %v10336_v5 = vunpack.i.l.bf16 %v10335_v15  ;;  %v3777_v32 = vrot.slane %v14028_v18, %v17519_v19 }
 0x1fa   : > { %8885 = vmatprep.subr.msk.bf16.mxu1 %vm17754_vm11, %v8884_v16  ;;  %vm16977_vm9 = vmpackc.low %vm14167_vm0, %vm14167_vm0  ;;  %v3773_v33 = vrot.slane %v14028_v18, %v17539_v46 }
 0x1fb   : > { %vm17759_vm11 = vmmov %vm17758_vm1 }
 0x1fc   : > { %8853 = vmatmul.mubr.msk.bf16.vlgmr.msra.gmra.mrb[4].mxu0 %vm17758_vm1, %v10930_v37  ;;  %v14197_v37 = vpop.permute.xlu0 %10339  ;;  %v10345_v14 = vpop.permute.xlu1 %10344 }
 0x1fd   : > { %8867 = vmatpush1.bf16.msk.msra.mxu0 %vm16973_vm12, %v8866_v29  ;;  %3858 = vmatprep.mubr.bf16.mxu0 %v17236_v11  ;;  %vm17760_vm12 = vmmov %vm17758_vm1  ;;  %v16975_v63 = vunpack.i.h.bf16 %v14197_v37  ;;  %v16974_v54 = vunpack.i.l.bf16 %v14197_v37  ;;  %v10347_v61 = vunpack.i.h.bf16 %v10345_v14  ;;  %v10346_v16 = vunpack.i.l.bf16 %v10345_v14 }
 0x200   : > { %8875 = vmatmul.mubr.msk.bf16.vlgmr.msra.gmra.mrb[0].mxu1 %vm17759_vm11, %v14172_v17  ;;  %vm17761_vm11 = vcmp.lt.s32.totalorder %v11681_v35, 16  ;;  %v14209_v41 = vpop.permute.xlu0 %10349  ;;  %v10355_v14 = vpop.permute.xlu1 %10354 }
 0x201   : > { %8888 = vmatpush1.bf16.msk.msra.mxu1 %vm16977_vm9, %v8887_v30  ;;  %3987 = vmatprep.mubr.bf16.mxu1 %v17236_v11  ;;  %v686_v39 = vsel %vm17761_vm11, %v10337_v4, %v16975_v63  ;;  %v16984_v9 = vunpack.i.h.bf16 %v14209_v41  ;;  %v16978_v29 = vunpack.i.l.bf16 %v14209_v41  ;;  %v17765_v63 = vld [vmem:[#allocation35_spill] sm:$0xff]  ;;  %vm17767_vm9 = vnez %v17551_v59 }
 0x202   : > { %v10356_v49 = vunpack.i.l.bf16 %v10355_v14 }
 0x204   : > { %8868 = vmatmul.mubr.msk.bf16.vlgmr.msra.gmra.mrb[0].mxu0 %vm17758_vm1, %v14172_v17  ;;  %vm17763_vm1 = vcmp.lt.s32.totalorder %v11681_v35, 112 }
 0x205   : > { %3944 = vmatprep.mubr.bf16.mxu0 %v17236_v11  ;;  %v789_v30 = vsel %vm17763_vm1, %v10346_v16, %v16978_v29  ;;  %v10357_v29 = vunpack.i.h.bf16 %v10355_v14 }
 0x206   : > { %v843_v46 = vsel %vm17767_vm9, %v789_v30, -inf }
 0x208   : > { %8889 = vmatmul.mubr.msk.bf16.vlgmr.msra.gmra.mrb[4].mxu1 %vm17760_vm12, %v14172_v17  ;;  %vm17762_vm12 = vmmov %vm17761_vm11 }
 0x209   : > { %4108 = vmatprep.mubr.bf16.mxu1 %v17236_v11  ;;  %v685_v13 = vsel %vm17762_vm12, %v10336_v5, %v16974_v54  ;;  %vm17764_vm11 = vmmov %vm17763_vm1  ;;  %v10360_v54 = vpop.permute.xlu0 %10359  ;;  %vm17766_vm12 = vnez %v17765_v63  ;;  %vm14233_vm1 = vcmp.eq.s32.totalorder %v3777_v32, 1  ;;  %v17778_v32 = vld [vmem:[#allocation37_spill] sm:$0xff] }
 0x20a   : > { %v790_v15 = vsel %vm17764_vm11, %v10347_v61, %v16984_v9  ;;  %v737_v56 = vsel %vm17766_vm12, %v685_v13, -inf  ;;  %v745_v19 = vsel %vm17766_vm12, %v686_v39, -inf  ;;  %v10362_v53 = vunpack.i.h.bf16 %v10360_v54 }
 0x20b   : > { %v851_v18 = vsel %vm17767_vm9, %v790_v15, -inf  ;;  %v10361_v6 = vunpack.i.l.bf16 %v10360_v54  ;;  %v17768_v9 = vmov 0  ;;  %vm14237_vm11 = vcmp.eq.s32.totalorder %v3773_v33, 1 }
 0x20c   : > { %v17769_v9 = vsel %vm14233_vm1, 4294967295, %v17768_v9  ;;  %v17772_v43 = vsel %vm14237_vm11, 4294967295, %v17771_v43  ;;  %v859_v13 = vmax.f32 %v737_v56, %v843_v46  ;;  %v867_v39 = vmax.f32 %v745_v19, %v851_v18  ;;  %v10365_v19 = vpop.permute.xlu1 %10364 }
 0x20d   : > { %17770 = vst [vmem:[#allocation60_spill] sm:$0xff] %v17769_v9  ;;  %17773 = vst [vmem:[#allocation65_spill] sm:$0xff] %v17772_v43  ;;  %vm17774_vm12 = vcmp.lt.s32.totalorder %v11681_v35, 16  ;;  %vm17776_vm9 = vcmp.lt.s32.totalorder %v11681_v35, 112  ;;  %vm17779_vm6 = vnez %v17778_v32  ;;  %v10366_v63 = vunpack.i.l.bf16 %v10365_v19  ;;  %v17862_v43 = vld [vmem:[#allocation24_spill] sm:$0xff] }
 0x20e   : > { %v688_v30 = vsel %vm17774_vm12, %v10357_v29, %v10337_v4  ;;  %vm17775_vm0 = vmmov %vm17774_vm12  ;;  %v791_v14 = vsel %vm17776_vm9, %v10361_v6, %v10346_v16  ;;  %v10367_v16 = vunpack.i.h.bf16 %v10365_v19  ;;  %v875_v22 = vmax.f32 %v12921_v62, %v859_v13 }
 0x20f   : > { %v687_v15 = vsel %vm17775_vm0, %v10356_v49, %v10336_v5  ;;  %vm17777_vm13 = vmmov %vm17776_vm9  ;;  %v744_v59 = vsel %vm17779_vm6, %v688_v30, -inf  ;;  %v842_v56 = vsel %vm17780_vm2, %v791_v14, -inf  ;;  %v10370_v5 = vpop.permute.xlu0 %10369  ;;  %v17782_v30 = vunpack.i.h.bf16 %v14120_v3 }
 0x210   : > { %v792_v54 = vsel %vm17777_vm13, %v10362_v53, %v10347_v61  ;;  %v736_v33 = vsel %vm17779_vm6, %v687_v15, -inf  ;;  %v10372_v40 = vunpack.i.h.bf16 %v10370_v5  ;;  %v10371_v61 = vunpack.i.l.bf16 %v10370_v5  ;;  %v17781_v15 = vld [vmem:[#allocation85_spill] sm:$0xff] }
 0x211   : > { %v850_v4 = vsel %vm17780_vm2, %v792_v54, -inf  ;;  %v858_v46 = vmax.f32 %v736_v33, %v842_v56  ;;  %v883_v25 = vmax.f32 %v17781_v15, %v867_v39  ;;  %vm17783_vm13 = vcmp.lt.s32.totalorder %v11681_v35, 96  ;;  %vm17010_vm2 = vmpackc.low %vm14233_vm1, %vm14233_vm1  ;;  %v10375_v39 = vpop.permute.xlu1 %10374 }
 0x212   : > { %v866_v18 = vmax.f32 %v744_v59, %v850_v4  ;;  %v3740_v14 = vsel %vm17783_vm13, %v10367_v16, %v17782_v30  ;;  %vm17785_vm0 = vmmov %vm17783_vm13  ;;  %v17786_v59 = vunpack.i.l.bf16 %v14120_v3  ;;  %v17788_v56 = vunpack.i.l.bf16 %v14010_v8 }
 0x213   : > { %v3742_v54 = vsel %vm17785_vm0, %v17784_v2, %v10367_v16  ;;  %vm17787_vm9 = vmmov %vm17785_vm0  ;;  %vm17790_vm13 = vcmp.lt.s32.totalorder %v11681_v35, 16  ;;  %v14285_v8 = vpop.permute.xlu0 %10379  ;;  %v10376_v19 = vunpack.i.l.bf16 %v10375_v39  ;;  %v4020_v5 = vpack.c.bf16 %v883_v25, %v875_v22  ;;  %v17794_v22 = vld [vmem:[#allocation36_spill] sm:$0xff] }
 0x214   : > { %v3739_v33 = vsel %vm17787_vm9, %v10366_v63, %v17786_v59  ;;  %vm17789_vm12 = vmmov %vm17785_vm0  ;;  %v690_v4 = vsel %vm17790_vm13, %v10372_v40, %v10357_v29  ;;  %v10382_v29 = vunpack.i.h.bf16 %v14285_v8  ;;  %v874_v16 = vmax.f32 %v13002_v42, %v858_v46 }
 0x215   : > { %v3741_v62 = vsel %vm17789_vm12, %v17788_v56, %v10366_v63  ;;  %vm17791_vm0 = vmmov %vm17790_vm13  ;;  %v8877_v3 = vpack.c.bf16 %v3740_v14, %v3739_v33  ;;  %v10377_v63 = vunpack.i.h.bf16 %v10375_v39  ;;  %v882_v15 = vmax.f32 %v13005_v20, %v866_v18  ;;  %4076 = vmatprep.subr.bf16.mxu1 %v4020_v5  ;;  %v10385_v20 = vpop.permute.xlu1 %10384  ;;  %v17802_v5 = vld [vmem:[#allocation39_spill] sm:$0xff] }
 0x216   : > { %v8880_v13 = vpack.c.bf16 %v3742_v54, %v3741_v62  ;;  %v689_v2 = vsel %vm17791_vm0, %v10371_v61, %v10356_v49  ;;  %vm17009_vm9 = vmpackc.low %vm14237_vm11, %vm14237_vm11  ;;  %v10381_v49 = vunpack.i.l.bf16 %v14285_v8  ;;  %vm17792_vm12 = vcmp.lt.s32.totalorder %v11681_v35, 112  ;;  %v14313_v62 = vld [vmem:[#allocation5 + $0x60] sm:$0xff]  }
 0x217   : > { %8878 = vmatprep.subr.msk.bf16.mxu0 %vm17010_vm2, %v8877_v3  ;;  %v794_v30 = vsel %vm17792_vm12, %v10377_v63, %v10362_v53  ;;  %vm17793_vm13 = vmmov %vm17792_vm12  ;;  %vm17795_vm0 = vnez %v17794_v22  ;;  %v4019_v46 = vpack.c.bf16 %v882_v15, %v874_v16  ;;  %v10390_v18 = vpop.permute.xlu0 %10389  ;;  %vm17796_vm12 = vnez %v17557_v47 }
 0x218   : > { %v793_v25 = vsel %vm17793_vm13, %v10376_v19, %v10361_v6  ;;  %8881 = vmatpush1.bf16.msk.msra.mxu0 %vm17009_vm9, %v8880_v13  ;;  %v735_v14 = vsel %vm17795_vm0, %v689_v2, -inf  ;;  %v743_v42 = vsel %vm17795_vm0, %v690_v4, -inf  ;;  %v849_v6 = vsel %vm17796_vm12, %v794_v30, -inf }
 0x219   : > { %v841_v53 = vsel %vm17796_vm12, %v793_v25, -inf  ;;  %v10387_v54 = vunpack.i.h.bf16 %v10385_v20  ;;  %v10386_v59 = vunpack.i.l.bf16 %v10385_v20  ;;  %v10392_v33 = vunpack.i.h.bf16 %v10390_v18  ;;  %4077 = vmatpush1.bf16.msra.mxu1 %v4019_v46 }
 0x21a   : > { %v10391_v56 = vunpack.i.l.bf16 %v10390_v18  ;;  %v857_v13 = vmax.f32 %v735_v14, %v841_v53  ;;  %v865_v39 = vmax.f32 %v743_v42, %v849_v6  ;;  %vm17797_vm13 = vcmask 130048  }
 0x21b   : > { %8882 = vmatmul.mubr.msk.bf16.vlgmr.msra.gmra.mrb[4].mxu0 %vm17797_vm13, %v14172_v17  ;;  %vm17798_vm9 = vcmp.lt.s32.totalorder %v11681_v35, 16  ;;  %vm17803_vm6 = vnez %v17802_v5  ;;  %v10400_v30 = vpop.permute.xlu0 %10399 }
 0x21c   : > { %v691_v4 = vsel %vm17798_vm9, %v10386_v59, %v10371_v61  ;;  %vm17799_vm2 = vmmov %vm17798_vm9  ;;  %4065 = vmatprep.mubr.bf16.mxu0 %v17236_v11  ;;  %v10395_v61 = vpop.permute.xlu1 %10394  ;;  %vm17804_vm9 = vcmp.lt.s32.totalorder %v11681_v35, 112  ;;  %v873_v53 = vmax.f32 %v13185_v50, %v857_v13  ;;  %v17811_v50 = vld [vmem:[#allocation38_spill] sm:$0xff] }
 0x21d   : > { %v692_v2 = vsel %vm17799_vm2, %v10387_v54, %v10372_v40  ;;  %vm17800_vm0 = vmmov %vm17799_vm2  ;;  %v734_v16 = vsel %vm17803_vm6, %v691_v4, -inf  ;;  %v796_v40 = vsel %vm17804_vm9, %v10392_v33, %v10377_v63  ;;  %v10397_v25 = vunpack.i.h.bf16 %v10395_v61 }
 0x21e   : > { %v14323_v3 = vsel %vm17800_vm0, %v10382_v29, %v10387_v54  ;;  %vm17801_vm12 = vmmov %vm17800_vm0  ;;  %v742_v17 = vsel %vm17803_vm6, %v692_v2, -inf  ;;  %v10396_v14 = vunpack.i.l.bf16 %v10395_v61  ;;  %vm17806_vm0 = vnez %v17609_v10 }
 0x21f   : > { %v14327_v8 = vsel %vm17801_vm12, %v10381_v49, %v10386_v59  ;;  %vm17805_vm2 = vmmov %vm17804_vm9  ;;  %v848_v20 = vsel %vm17806_vm0, %v796_v40, -inf  ;;  %v881_v63 = vmax.f32 %v13189_v36, %v865_v39  ;;  %v10402_v54 = vunpack.i.h.bf16 %v10400_v30  ;;  %v10410_v61 = vpop.permute.xlu0 %10409 }
 0x220   : > { %v795_v15 = vsel %vm17805_vm2, %v10391_v56, %v10376_v19  ;;  %vm17807_vm12 = vmmov %vm17797_vm13  ;;  %v864_v18 = vmax.f32 %v742_v17, %v848_v20  ;;  %v10401_v59 = vunpack.i.l.bf16 %v10400_v30  ;;  %v10405_v2 = vpop.permute.xlu1 %10404  ;;  %v17810_v17 = vld [vmem:[#allocation92_spill] sm:$0xff]  ;;  %v10411_v20 = vunpack.i.l.bf16 %v10410_v61 }
 0x221   : > { %v840_v42 = vsel %vm17806_vm0, %v795_v15, -inf  ;;  %8892 = vmatmul.mubr.msk.bf16.vlgmr.msra.gmra.mrb[0].mxu1 %vm17807_vm12, %v14313_v62  ;;  %vm17808_vm13 = vmmov %vm17805_vm2  ;;  %v4018_v4 = vpack.c.bf16 %v881_v63, %v873_v53  ;;  %v10407_v13 = vunpack.i.h.bf16 %v10405_v2  ;;  %v10406_v39 = vunpack.i.l.bf16 %v10405_v2  ;;  %v17815_v15 = vld [vmem:[#allocation44_spill] sm:$0xff] }
 0x222   : > { %v856_v46 = vmax.f32 %v734_v16, %v840_v42  ;;  %4194 = vmatprep.mubr.bf16.mxu1 %v17236_v11  ;;  %v798_v19 = vsel %vm17808_vm13, %v10397_v25, %v10392_v33  ;;  %vm17809_vm9 = vmmov %vm17805_vm2  ;;  %v880_v40 = vmax.f32 %v17810_v17, %v864_v18  ;;  %vm17812_vm2 = vnez %v17811_v50 }
 0x223   : > { %v797_v6 = vsel %vm17809_vm9, %v10396_v14, %v10391_v56  ;;  %v741_v36 = vsel %vm17812_vm2, %v14327_v8, -inf  ;;  %vm17813_vm12 = vcmp.lt.s32.totalorder %v11681_v35, 16  ;;  %4033 = vmatprep.subr.bf16.mxu0 %v4018_v4  ;;  %vm17816_vm9 = vnez %v17815_v15 }
 0x224   : > { %v872_v16 = vmax.f32 %v13244_v44, %v856_v46  ;;  %v679_v33 = vsel %vm17813_vm12, %v10401_v59, %v10381_v49  ;;  %vm17814_vm13 = vmmov %vm17813_vm12  ;;  %v10412_v42 = vunpack.i.h.bf16 %v10410_v61  ;;  %vm17817_vm6 = vcmp.lt.s32.totalorder %v11681_v35, 112  ;;  %v17819_v49 = vld [vmem:[#allocation104_spill] sm:$0xff]  ;;  %v10415_v4 = vpop.permute.xlu1 %10414 }
 0x225   : > { %v680_v56 = vsel %vm17814_vm13, %v10402_v54, %v10382_v29  ;;  %v740_v30 = vsel %vm17816_vm9, %v679_v33, -inf  ;;  %v783_v8 = vsel %vm17817_vm6, %v10406_v39, %v10396_v14  ;;  %vm17818_vm0 = vmmov %vm17817_vm6  ;;  %v749_v29 = vsel %vm17812_vm2, %v14323_v3, -inf }
 0x226   : > { %v748_v44 = vsel %vm17816_vm9, %v680_v56, -inf  ;;  %v784_v46 = vsel %vm17818_vm0, %v10407_v13, %v10397_v25  ;;  %v4017_v18 = vpack.c.bf16 %v880_v40, %v872_v16  ;;  %vm17820_vm12 = vnez %v17819_v49  ;;  %vm17822_vm6 = vmmov %vm17814_vm13 }
 0x227   : > { %v846_v53 = vsel %vm17820_vm12, %v783_v8, -inf  ;;  %v854_v63 = vsel %vm17820_vm12, %v784_v46, -inf  ;;  %v17821_v2 = vunpack.i.h.bf16 %v14197_v37  ;;  %v681_v25 = vsel %vm17822_vm6, %v10411_v20, %v10401_v59  ;;  %vm17823_vm0 = vmmov %vm17822_vm6  ;;  %v17826_v8 = vld [vmem:[#allocation51_spill] sm:$0xff] }
 0x228   : > { %v862_v61 = vmax.f32 %v740_v30, %v846_v53  ;;  %v870_v16 = vmax.f32 %v748_v44, %v854_v63  ;;  %v10417_v17 = vunpack.i.h.bf16 %v10415_v4  ;;  %v10416_v40 = vunpack.i.l.bf16 %v10415_v4  ;;  %4034 = vmatpush1.bf16.msra.mxu0 %v4017_v18  ;;  %vm17825_vm12 = vmmov %vm17823_vm0 }
 0x229   : > { %v684_v14 = vsel %vm17814_vm13, %v17821_v2, %v10412_v42  ;;  %v682_v3 = vsel %vm17823_vm0, %v10412_v42, %v10402_v54  ;;  %v17824_v33 = vunpack.i.l.bf16 %v14197_v37  ;;  %vm17827_vm2 = vnez %v17826_v8  ;;  %v17828_v2 = vld [vmem:[#allocation98_spill] sm:$0xff] }
 0x22a   : > { %v746_v46 = vsel %vm17827_vm2, %v684_v14, -inf  ;;  %vm17829_vm13 = vnez %v17828_v2  ;;  %v17830_v59 = vunpack.i.h.bf16 %v14209_v41  ;;  %vm17831_vm6 = vcmp.lt.s32.totalorder %v11681_v35, 112  ;;  %v17839_v14 = vld [vmem:[#allocation94_spill] sm:$0xff] }
 0x22b   : > { %v683_v56 = vsel %vm17825_vm12, %v17824_v33, %v10411_v20  ;;  %v847_v49 = vsel %vm17829_vm13, %v797_v6, -inf  ;;  %vm17832_vm9 = vmmov %vm17831_vm6  ;;  %v17834_v54 = vunpack.i.l.bf16 %v14209_v41  ;;  %v17836_v20 = vld [vmem:[#allocation107_spill] sm:$0xff] }
 0x22c   : > { %v788_v30 = vsel %vm17831_vm6, %v17830_v59, %v10417_v17  ;;  %v785_v44 = vsel %vm17832_vm9, %v10416_v40, %v10406_v39  ;;  %vm17833_vm0 = vmmov %vm17831_vm6  ;;  %vm17837_vm11 = vnez %v17836_v20  ;;  %v738_v53 = vsel %vm17827_vm2, %v683_v56, -inf  ;;  %v17841_v59 = vld [vmem:[#allocation42_spill] sm:$0xff] }
 0x22d   : > { %v786_v37 = vsel %vm17833_vm0, %v10417_v17, %v10407_v13  ;;  %vm17835_vm12 = vmmov %vm17833_vm0  ;;  %v852_v6 = vsel %vm17837_vm11, %v788_v30, -inf  ;;  %v855_v39 = vsel %vm17829_vm13, %v798_v19, -inf  ;;  %vm17838_vm9 = vcmask 130048   ;;  %v17843_v19 = vld [vmem:[#allocation25_spill] sm:$0xff] }
 0x22e   : > { %v787_v42 = vsel %vm17835_vm12, %v17834_v54, %v10416_v40  ;;  %8891 = vmatmul.mubr.msk.bf16.vlgmr.msra.gmra.mrb[0].mxu0 %vm17838_vm9, %v14313_v62  ;;  %v868_v41 = vmax.f32 %v746_v46, %v852_v6  ;;  %v863_v63 = vmax.f32 %v741_v36, %v847_v49  ;;  %v871_v4 = vmax.f32 %v749_v29, %v855_v39  ;;  %v17840_v40 = vld [vmem:[#allocation95_spill] sm:$0xff]  ;;  %vm17851_vm12 = vmmov %vm17838_vm9 }
 0x22f   : > { %v844_v18 = vsel %vm17837_vm11, %v787_v42, -inf  ;;  %4151 = vmatprep.mubr.bf16.mxu0 %v17236_v11  ;;  %v878_v17 = vmax.f32 %v17839_v14, %v862_v61  ;;  %v886_v33 = vmax.f32 %v17840_v40, %v870_v16  ;;  %vm17842_vm6 = vnez %v17841_v59  ;;  %v17844_v42 = vld [vmem:[#allocation93_spill] sm:$0xff]  ;;  %v17847_v16 = vld [vmem:[#allocation87_spill] sm:$0xff]  ;;  %v17849_v14 = vld [vmem:[#allocation64_spill] sm:$0xff] }
 0x230   : > { %v860_v13 = vmax.f32 %v738_v53, %v844_v18  ;;  %v739_v30 = vsel %vm17842_vm6, %v681_v25, -inf  ;;  %v747_v56 = vsel %vm17842_vm6, %v682_v3, -inf  ;;  %v879_v54 = vmax.f32 %v17843_v19, %v863_v63  ;;  %v17845_v18 = vld [vmem:[#allocation102_spill] sm:$0xff]  ;;  %v17848_v25 = vld [vmem:[#allocation88_spill] sm:$0xff]  ;;  %v17850_v40 = vld [vmem:[#allocation97_spill] sm:$0xff] }
 0x231   : > { %v887_v2 = vmax.f32 %v17844_v42, %v871_v4  ;;  %vm17846_vm0 = vnez %v17845_v18  ;;  %v4023_v49 = vpack.c.bf16 %v886_v33, %v878_v17  ;;  %v884_v39 = vmax.f32 %v17848_v25, %v868_v41 }
 0x232   : > { %v845_v36 = vsel %vm17846_vm0, %v785_v44, -inf  ;;  %v853_v29 = vsel %vm17846_vm0, %v786_v37, -inf  ;;  %v876_v6 = vmax.f32 %v17847_v16, %v860_v13 }
 0x233   : > { %v861_v61 = vmax.f32 %v739_v30, %v845_v36  ;;  %v869_v46 = vmax.f32 %v747_v56, %v853_v29  ;;  %v4024_v53 = vpack.c.bf16 %v887_v2, %v879_v54 }
 0x234   : > { %v4021_v4 = vpack.c.bf16 %v884_v39, %v876_v6 }
 0x235   : > { %v877_v3 = vmax.f32 %v17849_v14, %v861_v61  ;;  %v885_v63 = vmax.f32 %v17850_v40, %v869_v46  ;;  %4162 = vmatprep.subr.bf16.mxu1 %v4024_v53 }
 0x236   : > { %4163 = vmatpush1.bf16.msra.mxu1 %v4023_v49 }
 0x237   : > { %v4022_v19 = vpack.c.bf16 %v885_v63, %v877_v3 }
 0x239   : > { %4119 = vmatprep.subr.bf16.mxu0 %v4022_v19  ;;  %8894 = vmatmul.mubr.msk.bf16.vlgmr.msra.gmra.mrb[4].mxu1 %vm17851_vm12, %v14313_v62  ;;  %vm17858_vm12 = vcmp.lt.s32.totalorder %v11681_v35, 17 }
 0x23a   : > { %4120 = vmatpush1.bf16.msra.mxu0 %v4021_v4  ;;  %4737 = vmatprep.mubr.bf16.mxu1 %v17236_v11 }
 0x23c   : > { %v4226_v17 = vpop.permute.xlu0 %4225  ;;  %v4231_v30 = vpop.permute.xlu1 %4230 }
 0x23d   : > { %8893 = vmatmul.mubr.msk.bf16.vlgmr.msra.gmra.mrb[4].mxu0 %vm17838_vm9, %v14313_v62  ;;  %vm17859_vm9 = vmmov %vm17858_vm12 }
 0x23e   : > { %4694 = vmatprep.mubr.bf16.mxu0 %v17236_v11  ;;  %vm17860_vm13 = vmmov %vm17859_vm9 }
 0x23f   : > { %vm17861_vm0 = vmmov %vm17859_vm9 }
 0x240   : > { %vm17865_vm11 = vmmov %vm17861_vm0 }
 0x241   : > { %vm17866_vm6 = vmmov %vm17861_vm0 }
 0x2f4   : > { %v4110_v2 = vpop.f32.mrb[0].mxu1 }
 0x2f5   : > { %v4112_v44 = vpop.f32.mrb[1].mxu1  ;;  %v14456_v6 = vadd.f32 %v4226_v17, %v4110_v2 }
 0x2f6   : > { %v4114_v37 = vpop.f32.mrb[2].mxu1  ;;  %v14460_v53 = vadd.f32 %v4226_v17, %v4112_v44 }
 0x2f7   : > { %v4116_v13 = vpop.f32.mrb[3].mxu1  ;;  %v14444_v62 = vadd.f32 %v4231_v30, %v4114_v37 }
 0x2f8   : > { %v14450_v46 = vadd.f32 %v4231_v30, %v4116_v13 }
 0x2f9   : > { %v14466_v25 = vpack.i.bf16 %v14444_v62, %v14456_v6 }
 0x2fa   : > { %v14470_v39 = vpack.i.bf16 %v14450_v46, %v14460_v53 }
 0x301   : > { %v4067_v41 = vpop.f32.mrb[0].mxu0 }
 0x302   : > { %v4069_v33 = vpop.f32.mrb[1].mxu0  ;;  %v14436_v54 = vadd.f32 %v4226_v17, %v4067_v41 }
 0x303   : > { %v4071_v56 = vpop.f32.mrb[2].mxu0  ;;  %v14440_v29 = vadd.f32 %v4226_v17, %v4069_v33 }
 0x304   : > { %v14438_v42 = vadd.f32 %v4231_v30, %v4071_v56  ;;  %v4073_v36 = vpop.f32.mrb[3].mxu0 }
 0x305   : > { %v14442_v49 = vadd.f32 %v4231_v30, %v4073_v36 }
 0x306   : > { %v14448_v61 = vpack.i.bf16 %v14438_v42, %v14436_v54 }
 0x307   : > { %v14454_v16 = vpack.i.bf16 %v14442_v49, %v14440_v29 }
 0x308   : > { %10421 = vrot.lane.b32.xlu1 %v14448_v61, %s11196_s16 }
 0x309   : > { %10431 = vrot.lane.b32.xlu0 %v14454_v16, %s11196_s16 }
 0x30c   : > { %v4196_v14 = vpop.f32.mrb[4].mxu1  ;;  %10426 = vrot.lane.b32.xlu1 %v14466_v25, %s11196_s16 }
 0x30d   : > { %v4198_v3 = vpop.f32.mrb[5].mxu1  ;;  %10436 = vrot.lane.b32.xlu0 %v14470_v39, %s11196_s16 }
 0x30e   : > { %v4200_v40 = vpop.f32.mrb[6].mxu1  ;;  %v14476_v19 = vadd.f32 %v4226_v17, %v4198_v3 }
 0x30f   : > { %v4202_v63 = vpop.f32.mrb[7].mxu1  ;;  %v14490_v50 = vadd.f32 %v4231_v30, %v4200_v40 }
 0x310   : > { %v4153_v4 = vpop.f32.mrb[4].mxu0  ;;  %17852 = vst [vmem:[#allocation85_spill] sm:$0xff] %v14476_v19  ;;  %v14478_v2 = vadd.f32 %v4231_v30, %v4202_v63  ;;  %v14500_v63 = vadd.f32 %v4226_v17, %v4196_v14 }
 0x311   : > { %v4155_v44 = vpop.f32.mrb[5].mxu0  ;;  %v14480_v13 = vadd.f32 %v4226_v17, %v4153_v4  ;;  %17855 = vst [vmem:[#allocation95_spill] sm:$0xff] %v14490_v50 }
 0x312   : > { %17853 = vst [vmem:[#allocation92_spill] sm:$0xff] %v14478_v2  ;;  %v4157_v37 = vpop.f32.mrb[6].mxu0  ;;  %v14486_v56 = vpack.i.bf16 %v14478_v2, %v14476_v19  ;;  %v14492_v15 = vadd.f32 %v4226_v17, %v4155_v44  ;;  %17857 = vst [vmem:[#allocation93_spill] sm:$0xff] %v14500_v63 }
 0x313   : > { %v14482_v41 = vadd.f32 %v4231_v30, %v4157_v37  ;;  %v4159_v33 = vpop.f32.mrb[7].mxu0 }
 0x314   : > { %v14488_v36 = vadd.f32 %v4231_v30, %v4159_v33  ;;  %17856 = vst [vmem:[#allocation25_spill] sm:$0xff] %v14492_v15  ;;  %10441 = vrot.lane.b32.xlu1 %v14486_v56, %s11196_s16  ;;  %v14512_v30 = vpack.i.bf16 %v14490_v50, %v14500_v63 }
 0x315   : > { %v14498_v3 = vpack.i.bf16 %v14482_v41, %v14480_v13 }
 0x316   : > { %17854 = vst [vmem:[#allocation94_spill] sm:$0xff] %v14488_v36  ;;  %v14506_v4 = vpack.i.bf16 %v14488_v36, %v14492_v15 }
 0x317   : > { %10446 = vrot.lane.b32.xlu0 %v14498_v3, %s11196_s16 }
 0x318   : > { %10451 = vrot.lane.b32.xlu1 %v14506_v4, %s11196_s16 }
 0x31b   : > { %10456 = vrot.lane.b32.xlu0 %v14512_v30, %s11196_s16 }
 0x31c   : > { %10461 = vrot.lane.b32.xlu1 %v14448_v61, %s11197_s19 }
 0x31f   : > { %10466 = vrot.lane.b32.xlu0 %v14454_v16, %s11197_s19 }
 0x320   : > { %10471 = vrot.lane.b32.xlu1 %v14466_v25, %s11197_s19 }
 0x323   : > { %10476 = vrot.lane.b32.xlu0 %v14470_v39, %s11197_s19 }
 0x324   : > { %10491 = vrot.lane.b32.xlu1 %v14486_v56, %s11197_s19 }
 0x327   : > { %10481 = vrot.lane.b32.xlu0 %v14498_v3, %s11197_s19 }
 0x328   : > { %10496 = vrot.lane.b32.xlu1 %v14506_v4, %s11197_s19 }
 0x32b   : > { %10486 = vrot.lane.b32.xlu0 %v14512_v30, %s11197_s19 }
 0x32c   : > { %10501 = vrot.lane.b32.xlu1 %v14448_v61, %s11198_s25 }
 0x32f   : > { %10506 = vrot.lane.b32.xlu0 %v14454_v16, %s11198_s25 }
 0x330   : > { %10511 = vrot.lane.b32.xlu1 %v14466_v25, %s11198_s25 }
 0x333   : > { %10516 = vrot.lane.b32.xlu0 %v14470_v39, %s11198_s25 }
 0x334   : > { %10531 = vrot.lane.b32.xlu1 %v14486_v56, %s11198_s25 }
 0x337   : > { %10521 = vrot.lane.b32.xlu0 %v14498_v3, %s11198_s25 }
 0x338   : > { %10536 = vrot.lane.b32.xlu1 %v14506_v4, %s11198_s25 }
 0x33b   : > { %10526 = vrot.lane.b32.xlu0 %v14512_v30, %s11198_s25 }
 0x33c   : > { %10541 = vrot.lane.b32.xlu1 %v14448_v61, %s11199_s10 }
 0x33f   : > { %10546 = vrot.lane.b32.xlu0 %v14454_v16, %s11199_s10 }
 0x340   : > { %10551 = vrot.lane.b32.xlu1 %v14466_v25, %s11199_s10 }
 0x343   : > { %10556 = vrot.lane.b32.xlu0 %v14470_v39, %s11199_s10 }
 0x344   : > { %10571 = vrot.lane.b32.xlu1 %v14486_v56, %s11199_s10 }
 0x347   : > { %10561 = vrot.lane.b32.xlu0 %v14498_v3, %s11199_s10 }
 0x348   : > { %10576 = vrot.lane.b32.xlu1 %v14506_v4, %s11199_s10 }
 0x34b   : > { %10566 = vrot.lane.b32.xlu0 %v14512_v30, %s11199_s10 }
 0x34c   : > { %10581 = vrot.lane.b32.xlu1 %v14454_v16, %s11200_s14 }
 0x34f   : > { %10586 = vrot.lane.b32.xlu0 %v14466_v25, %s11200_s14 }
 0x350   : > { %10591 = vrot.lane.b32.xlu1 %v14448_v61, %s11200_s14 }
 0x353   : > { %10596 = vrot.lane.b32.xlu0 %v14470_v39, %s11200_s14 }
 0x354   : > { %10601 = vrot.lane.b32.xlu1 %v14498_v3, %s11200_s14 }
 0x357   : > { %10616 = vrot.lane.b32.xlu0 %v14506_v4, %s11200_s14 }
 0x358   : > { %10606 = vrot.lane.b32.xlu1 %v14512_v30, %s11200_s14 }
 0x35b   : > { %10621 = vrot.lane.b32.xlu0 %v14486_v56, %s11200_s14 }
 0x35c   : > { %10611 = vrot.lane.b32.xlu1 %v14454_v16, %s11201_s15 }
 0x35f   : > { %10626 = vrot.lane.b32.xlu0 %v14466_v25, %s11201_s15 }
 0x360   : > { %10631 = vrot.lane.b32.xlu1 %v14448_v61, %s11201_s15 }
 0x363   : > { %10636 = vrot.lane.b32.xlu0 %v14470_v39, %s11201_s15 }
 0x364   : > { %10641 = vrot.lane.b32.xlu1 %v14498_v3, %s11201_s15 }
 0x367   : > { %10656 = vrot.lane.b32.xlu0 %v14506_v4, %s11201_s15 }
 0x368   : > { %10646 = vrot.lane.b32.xlu1 %v14512_v30, %s11201_s15 }
 0x36b   : > { %10661 = vrot.lane.b32.xlu0 %v14486_v56, %s11201_s15  ;;  %s9238_s15 = sshll.u32 %s11272_s9, 8  ;;  %s8438_s9 = scalar_lea.sflag [#allocation4], %s11438_s24 }
 0x36c   : > { %10651 = vrot.lane.b32.xlu1 %v14454_v16, %s11202_s22 }
 0x36f   : > { %10666 = vrot.lane.b32.xlu0 %v14466_v25, %s11202_s22 }
 0x370   : > { %10671 = vrot.lane.b32.xlu1 %v14448_v61, %s11202_s22 }
 0x373   : > { %10676 = vrot.lane.b32.xlu0 %v14470_v39, %s11202_s22 }
 0x374   : > { %10681 = vrot.lane.b32.xlu1 %v14498_v3, %s11202_s22 }
 0x377   : > { %10696 = vrot.lane.b32.xlu0 %v14506_v4, %s11202_s22 }
 0x378   : > { %10686 = vrot.lane.b32.xlu1 %v14512_v30, %s11202_s22 }
 0x37a   : > { %v10422_v17 = vpop.permute.xlu1 %10421 }
 0x37b   : > { %10701 = vrot.lane.b32.xlu0 %v14486_v56, %s11202_s22  ;;  %v10424_v14 = vunpack.i.h.bf16 %v10422_v17  ;;  %v10423_v40 = vunpack.i.l.bf16 %v10422_v17  ;;  %v10432_v44 = vpop.permute.xlu0 %10431 }
 0x37c   : > { %10691 = vrot.lane.b32.xlu1 %v14454_v16, %s11203_s26  ;;  %v10434_v37 = vunpack.i.h.bf16 %v10432_v44  ;;  %v10433_v33 = vunpack.i.l.bf16 %v10432_v44 }
 0x37e   : > { %v4627_v18 = vsel %vm17858_vm12, %v10424_v14, %v10434_v37  ;;  %v4626_v20 = vsel %vm17859_vm9, %v10423_v40, %v10433_v33  ;;  %v10427_v59 = vpop.permute.xlu1 %10426  ;;  %vm17863_vm12 = vnez %v17862_v43  ;;  %v14644_v43 = vld [vmem:[#allocation7 + $0x8] sm:$0xff]  }
 0x37f   : > { %10706 = vrot.lane.b32.xlu0 %v14466_v25, %s11203_s26  ;;  %v10429_v8 = vunpack.i.h.bf16 %v10427_v59  ;;  %v10428_v5 = vunpack.i.l.bf16 %v10427_v59  ;;  %v10437_v10 = vpop.permute.xlu0 %10436  ;;  %v8897_v17 = vpack.c.bf16 %v4627_v18, %v4626_v20  ;;  %vm17864_vm9 = vmpackc.low %vm17863_vm12, %vm17863_vm12  ;;  %vm17873_vm12 = vcmp.lt.s32.totalorder %v11681_v35, 17 }
 0x380   : > { %10711 = vrot.lane.b32.xlu1 %v14448_v61, %s11203_s26  ;;  %v10439_v22 = vunpack.i.h.bf16 %v10437_v10  ;;  %v10438_v47 = vunpack.i.l.bf16 %v10437_v10 }
 0x381   : > { %v4624_v44 = vsel %vm17860_vm13, %v10433_v33, %v10428_v5  ;;  %v4625_v32 = vsel %vm17861_vm0, %v10434_v37, %v10429_v8  ;;  %8898 = vmatprep.subr.msk.bf16.mxu0 %vm17864_vm9, %v8897_v17  ;;  %v17867_v37 = vld [vmem:[#allocation27_spill] sm:$0xff]  ;;  %v17870_v33 = vld [vmem:[#allocation28_spill] sm:$0xff]  ;;  %vm17874_vm9 = vmmov %vm17873_vm12 }
 0x382   : > { %v4623_v20 = vsel %vm17865_vm11, %v10429_v8, %v10439_v22  ;;  %v4622_v10 = vsel %vm17866_vm6, %v10428_v5, %v10438_v47  ;;  %v8907_v18 = vpack.c.bf16 %v4625_v32, %v4624_v44  ;;  %vm17868_vm13 = vnez %v17867_v37 }
 0x383   : > { %10716 = vrot.lane.b32.xlu0 %v14470_v39, %s11203_s26  ;;  %v8904_v59 = vpack.c.bf16 %v4623_v20, %v4622_v10  ;;  %vm17869_vm0 = vmpackc.low %vm17868_vm13, %vm17868_vm13  ;;  %vm17871_vm11 = vnez %v17870_v33  ;;  %vm17875_vm13 = vcmask 130048  }
 0x384   : > { %10721 = vrot.lane.b32.xlu1 %v14498_v3, %s11203_s26  ;;  %vm17872_vm6 = vmpackc.low %vm17871_vm11, %vm17871_vm11 }
 0x385   : > { %8905 = vmatprep.subr.msk.bf16.mxu1 %vm17869_vm0, %v8904_v59  ;;  %vm17876_vm0 = vmmov %vm17874_vm9 }
 0x386   : > { %v10442_v8 = vpop.permute.xlu1 %10441  ;;  %8908 = vmatpush1.bf16.msk.msra.mxu1 %vm17872_vm6, %v8907_v18  ;;  %vm17877_vm11 = vmmov %vm17876_vm0 }
 0x387   : > { %10731 = vrot.lane.b32.xlu0 %v14506_v4, %s11203_s26  ;;  %v10444_v32 = vunpack.i.h.bf16 %v10442_v8  ;;  %v10443_v5 = vunpack.i.l.bf16 %v10442_v8 }
 0x388   : > { %10726 = vrot.lane.b32.xlu1 %v14512_v30, %s11203_s26 }
 0x389   : > { %v10447_v17 = vpop.permute.xlu0 %10446  ;;  %v4628_v44 = vsel %vm17873_vm12, %v10443_v5, %v10423_v40  ;;  %v4629_v20 = vsel %vm17874_vm9, %v10444_v32, %v10424_v14  ;;  %8909 = vmatmul.mubr.msk.bf16.vlgmr.msra.gmra.mrb[8].mxu1 %vm17875_vm13, %v14644_v43  ;;  %vm17881_vm9 = vmmov %vm17876_vm0 }
 0x38a   : > { %v10449_v10 = vunpack.i.h.bf16 %v10447_v17  ;;  %v10448_v59 = vunpack.i.l.bf16 %v10447_v17  ;;  %v8900_v37 = vpack.c.bf16 %v4629_v20, %v4628_v44  ;;  %v10452_v18 = vpop.permute.xlu1 %10451  ;;  %4823 = vmatprep.mubr.bf16.mxu1 %v17236_v11  ;;  %v17878_v17 = vld [vmem:[#allocation29_spill] sm:$0xff]  ;;  %vm17882_vm13 = vmmov %vm17876_vm0 }
 0x38b   : > { %10736 = vrot.lane.b32.xlu0 %v14486_v56, %s11203_s26  ;;  %v10454_v33 = vunpack.i.h.bf16 %v10452_v18  ;;  %v10453_v14 = vunpack.i.l.bf16 %v10452_v18  ;;  %vm17879_vm6 = vnez %v17878_v17  ;;  %v17896_v17 = vld [vmem:[#allocation33_spill] sm:$0xff] }
 0x38c   : > { %v4621_v8 = vsel %vm17876_vm0, %v10439_v22, %v10449_v10  ;;  %v4620_v40 = vsel %vm17877_vm11, %v10438_v47, %v10448_v59  ;;  %vm17880_vm12 = vmpackc.low %vm17879_vm6, %vm17879_vm6  ;;  %10741 = vrot.lane.b32.xlu1 %v14454_v16, %s11204_s13 }
 0x38d   : > { %v10457_v9 = vpop.permute.xlu0 %10456  ;;  %8901 = vmatpush1.bf16.msk.msra.mxu0 %vm17880_vm12, %v8900_v37  ;;  %v4619_v44 = vsel %vm17881_vm9, %v10449_v10, %v10454_v33  ;;  %v4618_v22 = vsel %vm17882_vm13, %v10448_v59, %v10453_v14  ;;  %v8914_v60 = vpack.c.bf16 %v4621_v8, %v4620_v40  ;;  %vm17883_vm11 = vmmov %vm17876_vm0  ;;  %vm17886_vm9 = vcmask 130048  }
 0x38e   : > { %v10459_v20 = vunpack.i.h.bf16 %v10457_v9  ;;  %v10458_v47 = vunpack.i.l.bf16 %v10457_v9  ;;  %v8911_v18 = vpack.c.bf16 %v4619_v44, %v4618_v22  ;;  %v14681_v1 = vpop.permute.xlu1 %10461  ;;  %vm17884_vm6 = vmmov %vm17876_vm0  ;;  %v4572_v40 = vpack.c.bf16 %v14442_v49, %v14440_v29 }
 0x38f   : > { %10746 = vrot.lane.b32.xlu0 %v14466_v25, %s11204_s13  ;;  %vm17885_vm12 = vmmov %vm17876_vm0  ;;  %v4571_v44 = vpack.c.bf16 %v14438_v42, %v14436_v54 }
 0x390   : > { %v4615_v37 = vsel %vm17876_vm0, %v10459_v20, %v10444_v32  ;;  %v4614_v16 = vsel %vm17883_vm11, %v10458_v47, %v10443_v5  ;;  %v4616_v10 = vsel %vm17884_vm6, %v10453_v14, %v10458_v47  ;;  %v4617_v59 = vsel %vm17885_vm12, %v10454_v33, %v10459_v20  ;;  %8902 = vmatmul.mubr.msk.bf16.vlgmr.msra.gmra.mrb[8].mxu0 %vm17886_vm9, %v14644_v43  ;;  %v17887_v32 = vld [vmem:[#allocation32_spill] sm:$0xff]  ;;  %v17890_v5 = vld [vmem:[#allocation34_spill] sm:$0xff] }
 0x391   : > { %v8918_v9 = vpack.c.bf16 %v4615_v37, %v4614_v16  ;;  %v8921_v8 = vpack.c.bf16 %v4617_v59, %v4616_v10  ;;  %v14693_v25 = vpop.permute.xlu0 %10466  ;;  %10751 = vrot.lane.b32.xlu1 %v14448_v61, %s11204_s13  ;;  %vm17888_vm13 = vnez %v17887_v32  ;;  %vm17891_vm11 = vnez %v17890_v5  ;;  %4780 = vmatprep.mubr.bf16.mxu0 %v17236_v11  ;;  %v17893_v33 = vld [vmem:[#allocation30_spill] sm:$0xff] }
 0x392   : > { %vm17889_vm0 = vmpackc.low %vm17888_vm13, %vm17888_vm13  ;;  %vm17894_vm12 = vnez %v17893_v33  ;;  %v10472_v61 = vpop.permute.xlu1 %10471  ;;  %v4574_v14 = vpack.c.bf16 %v14450_v46, %v14460_v53  ;;  %vm17897_vm13 = vnez %v17896_v17  ;;  %v4578_v20 = vpack.c.bf16 %v14478_v2, %v14476_v19  ;;  %v10934_v32 = vld [vmem:[#allocation7] sm:$0xff]  }
 0x393   : > { %8912 = vmatprep.subr.msk.bf16.mxu0 %vm17889_vm0, %v8911_v18  ;;  %vm17892_vm6 = vmpackc.low %vm17891_vm11, %vm17891_vm11  ;;  %10756 = vrot.lane.b32.xlu0 %v14470_v39, %s11204_s13  ;;  %v4573_v39 = vpack.c.bf16 %v14444_v62, %v14456_v6  ;;  %vm17899_vm11 = vcmask 130048   ;;  %v4576_v47 = vpack.c.bf16 %v14488_v36, %v14492_v15  ;;  %v10473_v18 = vunpack.i.l.bf16 %v10472_v61  ;;  %v18033_v15 = vld [vmem:[#allocation73_spill] sm:$0xff] }
 0x394   : > { %8915 = vmatpush1.bf16.msk.msra.mxu0 %vm17892_vm6, %v8914_v60  ;;  %vm17895_vm9 = vmpackc.low %vm17894_vm12, %vm17894_vm12  ;;  %v10464_v10 = vunpack.i.h.bf16 %v14681_v1  ;;  %v10463_v59 = vunpack.i.l.bf16 %v14681_v1  ;;  %vm17901_vm12 = vcmp.lt.s32.totalorder %v11681_v35, 16 }
 0x395   : > { %8919 = vmatprep.subr.msk.bf16.mxu1 %vm17895_vm9, %v8918_v9  ;;  %vm17898_vm0 = vmpackc.low %vm17897_vm13, %vm17897_vm13  ;;  %4842 = vmatprep.subr.bf16.mxu0 %v4572_v40  ;;  %v14724_v60 = vpop.permute.xlu0 %10476  ;;  %v10469_v9 = vunpack.i.h.bf16 %v14693_v25  ;;  %v4577_v40 = vpack.c.bf16 %v14490_v50, %v14500_v63 }
 0x396   : > { %8922 = vmatpush1.bf16.msk.msra.mxu1 %vm17898_vm0, %v8921_v8  ;;  %10761 = vrot.lane.b32.xlu1 %v14498_v3, %s11204_s13  ;;  %v10492_v22 = vpop.permute.xlu1 %10491  ;;  %v10474_v3 = vunpack.i.h.bf16 %v10472_v61  ;;  %v17048_v37 = vunpack.i.h.bf16 %v14724_v60  ;;  %v17049_v16 = vunpack.i.l.bf16 %v14724_v60  ;;  %vm17900_vm6 = vmmov %vm17899_vm11  ;;  %v10468_v8 = vunpack.i.l.bf16 %v14693_v25 }
 0x397   : > { %4885 = vmatprep.subr.bf16.mxu1 %v4574_v14  ;;  %10771 = vrot.lane.b32.xlu0 %v14506_v4, %s11204_s13  ;;  %vm17902_vm9 = vmmov %vm17901_vm12  ;;  %v10494_v61 = vunpack.i.h.bf16 %v10492_v22  ;;  %v10493_v14 = vunpack.i.l.bf16 %v10492_v22 }
 0x398   : > { %8916 = vmatmul.mubr.msk.bf16.vlgmr.msra.gmra.mrb[12].mxu0 %vm17900_vm6, %v14644_v43  ;;  %v5057_v1 = vsel %vm17901_vm12, %v10473_v18, %v17049_v16  ;;  %v5058_v25 = vsel %vm17902_vm9, %v10474_v3, %v17048_v37  ;;  %vm17903_vm13 = vmmov %vm17902_vm9 }
 0x399   : > { %8923 = vmatmul.mubr.msk.bf16.vlgmr.msra.gmra.mrb[12].mxu1 %vm17899_vm11, %v14644_v43  ;;  %v14744_v4 = vpop.permute.xlu0 %10481  ;;  %4843 = vmatpush1.bf16.msra.mxu0 %v4571_v44  ;;  %vm17904_vm0 = vmmov %vm17902_vm9  ;;  %v14772_v33 = vpack.c.bf16 %v5058_v25, %v5057_v1 }
 0x39a   : > { %4886 = vmatpush1.bf16.msra.mxu1 %v4573_v39  ;;  %10766 = vrot.lane.b32.xlu1 %v14512_v30, %s11204_s13  ;;  %v14754_v43 = vpop.permute.xlu1 %10496  ;;  %v5062_v5 = vsel %vm17904_vm0, %v10464_v10, %v10469_v9  ;;  %vm17906_vm11 = vmmov %vm17900_vm6 }
 0x39b   : > { %4971 = vmatprep.subr.bf16.mxu1 %v4578_v20  ;;  %4928 = vmatprep.subr.bf16.mxu0 %v4576_v47  ;;  %17905 = vst [vmem:[#allocation87_spill] sm:$0xff] %v14772_v33  ;;  %v4575_v20 = vpack.c.bf16 %v14482_v41, %v14480_v13  ;;  %vm17908_vm12 = vmmov %vm17904_vm0  ;;  %v10499_v25 = vunpack.i.h.bf16 %v14754_v43 }
 0x39c   : > { %10776 = vrot.lane.b32.xlu0 %v14486_v56, %s11204_s13  ;;  %4917 = vmatprep.mubr.bf16.mxu1 %v17236_v11  ;;  %v5061_v56 = vsel %vm17903_vm13, %v10463_v59, %v10468_v8  ;;  %v5060_v22 = vsel %vm17908_vm12, %v10469_v9, %v10474_v3  ;;  %vm17909_vm9 = vmmov %vm17904_vm0  ;;  %v10484_v9 = vunpack.i.h.bf16 %v14744_v4 }
 0x39d   : > { %4874 = vmatprep.mubr.bf16.mxu0 %v17236_v11  ;;  %v10487_v30 = vpop.permute.xlu0 %10486  ;;  %v14779_v47 = vpack.c.bf16 %v5062_v5, %v5061_v56  ;;  %v5059_v56 = vsel %vm17909_vm9, %v10468_v8, %v10473_v18  ;;  %vm17910_vm13 = vmmov %vm17904_vm0 }
 0x39e   : > { %v14775_v17 = vpop.permute.xlu1 %10501  ;;  %v10489_v39 = vunpack.i.h.bf16 %v10487_v30  ;;  %v10488_v44 = vunpack.i.l.bf16 %v10487_v30  ;;  %v10498_v30 = vunpack.i.l.bf16 %v14754_v43  ;;  %v5063_v5 = vsel %vm17910_vm13, %v10493_v14, %v10463_v59  ;;  %vm17914_vm12 = vmmov %vm17904_vm0 }
 0x39f   : > { %17907 = vst [vmem:[#allocation88_spill] sm:$0xff] %v14779_v47  ;;  %v10483_v43 = vunpack.i.l.bf16 %v14744_v4  ;;  %vm17915_vm9 = vmmov %vm17904_vm0  ;;  %vm17918_vm13 = vcmask 130048  }
 0x3a0   : > { %8925 = vmatmul.mubr.msk.bf16.vlgmr.msra.gmra.mrb[8].mxu0 %vm17900_vm6, %v10934_v32  ;;  %vm17912_vm6 = vmmov %vm17904_vm0 }
 0x3a1   : > { %8926 = vmatmul.mubr.msk.bf16.vlgmr.msra.gmra.mrb[8].mxu1 %vm17906_vm11, %v10934_v32  ;;  %v14784_v1 = vpop.permute.xlu0 %10506  ;;  %4929 = vmatpush1.bf16.msra.mxu0 %v4575_v20  ;;  %vm17911_vm11 = vmmov %vm17904_vm0  ;;  %v5050_v59 = vsel %vm17912_vm6, %v10489_v39, %v10494_v61  ;;  %v5054_v20 = vsel %vm17914_vm12, %v10484_v9, %v10499_v25  ;;  %v5053_v37 = vsel %vm17915_vm9, %v10483_v43, %v10498_v30 }
 0x3a2   : > { %4972 = vmatpush1.bf16.msra.mxu1 %v4577_v40  ;;  %5003 = vmatprep.mubr.bf16.mxu1 %v17236_v11  ;;  %v5064_v40 = vsel %vm17904_vm0, %v10494_v61, %v10464_v10  ;;  %v10512_v3 = vpop.permute.xlu1 %10511  ;;  %v5049_v18 = vsel %vm17911_vm11, %v10488_v44, %v10493_v14  ;;  %v14810_v10 = vpack.c.bf16 %v5060_v22, %v5059_v56  ;;  %vm17920_vm0 = vmmov %vm17918_vm13  ;;  %v17925_v22 = vunpack.i.h.bf16 %v14724_v60 }
 0x3a3   : > { %8939 = vmatprep.subr.msk.bf16.mxu1 %vm17705_vm14, %v14772_v33  ;;  %8932 = vmatprep.subr.msk.bf16.mxu0 %vm17709_vm8, %v14779_v47  ;;  %v14816_v16 = vpack.c.bf16 %v5064_v40, %v5063_v5  ;;  %v14818_v0 = vpack.c.bf16 %v5050_v59, %v5049_v18  ;;  %v10514_v14 = vunpack.i.h.bf16 %v10512_v3  ;;  %v10513_v47 = vunpack.i.l.bf16 %v10512_v3  ;;  %vm17921_vm11 = vmmov %vm17912_vm6 }
 0x3a4   : > { %4960 = vmatprep.mubr.bf16.mxu0 %v17236_v11  ;;  %17913 = vst [vmem:[#allocation64_spill] sm:$0xff] %v14810_v10  ;;  %v14827_v56 = vpack.c.bf16 %v5054_v20, %v5053_v37  ;;  %v10504_v40 = vunpack.i.h.bf16 %v14775_v17  ;;  %v10503_v3 = vunpack.i.l.bf16 %v14775_v17  ;;  %v10509_v18 = vunpack.i.h.bf16 %v14784_v1  ;;  %v10935_v20 = vld [vmem:[#allocation7 + $0x10] sm:$0xff]   ;;  %vm17924_vm9 = vmmov %vm17912_vm6 }
 0x3a5   : > { %v14808_v8 = vpop.permute.xlu0 %10516  ;;  %17916 = vst [vmem:[#allocation97_spill] sm:$0xff] %v14816_v16  ;;  %17917 = vst [vmem:[#allocation24_spill] sm:$0xff] %v14818_v0  ;;  %v10508_v59 = vunpack.i.l.bf16 %v14784_v1  ;;  %v5051_v37 = vsel %vm17921_vm11, %v10498_v30, %v10488_v44  ;;  %vm17922_vm12 = vnez %v17722_v52  ;;  %v17923_v1 = vunpack.i.l.bf16 %v14724_v60 }
 0x3a6   : > { %v10532_v4 = vpop.permute.xlu1 %10531  ;;  %17919 = vst [vmem:[#allocation27_spill] sm:$0xff] %v14827_v56  ;;  %v17927_v30 = vunpack.i.l.bf16 %v14808_v8  ;;  %vm18037_vm8 = vcmask 130048  }
 0x3a7   : > { %v5055_v61 = vsel %vm17924_vm9, %v17923_v1, %v10483_v43 }
 0x3a8   : > { %8927 = vmatmul.mubr.msk.bf16.vlgmr.msra.gmra.mrb[12].mxu0 %vm17920_vm0, %v10934_v32  ;;  %vm17928_vm0 = vcmp.lt.s32.totalorder %v11681_v35, 15 }
 0x3a9   : > { %8928 = vmatmul.mubr.msk.bf16.vlgmr.msra.gmra.mrb[12].mxu1 %vm17918_vm13, %v10934_v32  ;;  %v14832_v5 = vpop.permute.xlu0 %10521  ;;  %8935 = vmatpush1.bf16.msk.msra.mxu0 %vm17720_vm7, %v14816_v16  ;;  %v5052_v32 = vsel %vm17912_vm6, %v10499_v25, %v10489_v39  ;;  %vm17926_vm13 = vmmov %vm17912_vm6  ;;  %v5328_v39 = vsel %vm17928_vm0, %v10513_v47, %v17927_v30  ;;  %v17929_v25 = vunpack.i.h.bf16 %v14808_v8  ;;  %v10534_v30 = vunpack.i.h.bf16 %v10532_v4 }
 0x3aa   : > { %8942 = vmatpush1.bf16.msk.msra.mxu1 %vm17713_vm15, %v14810_v10  ;;  %5172 = vmatprep.mubr.bf16.mxu1 %v17236_v11  ;;  %v14850_v17 = vpop.permute.xlu1 %10536  ;;  %v5056_v44 = vsel %vm17926_vm13, %v17925_v22, %v10484_v9  ;;  %vm17930_vm11 = vmmov %vm17928_vm0  ;;  %v14868_v7 = vpack.c.bf16 %v5052_v32, %v5051_v37  ;;  %vm17935_vm13 = vcmask 130048   ;;  %v10533_v16 = vunpack.i.l.bf16 %v10532_v4 }
 0x3ab   : > { %8953 = vmatprep.subr.msk.bf16.mxu1 %vm17716_vm5, %v14818_v0  ;;  %5129 = vmatprep.mubr.bf16.mxu0 %v17236_v11  ;;  %v5329_v52 = vsel %vm17930_vm11, %v10514_v14, %v17929_v25  ;;  %vm17932_vm6 = vmmov %vm17928_vm0  ;;  %v14874_v9 = vpack.c.bf16 %v5056_v44, %v5055_v61  ;;  %v10539_v32 = vunpack.i.h.bf16 %v14850_v17  ;;  %v10538_v0 = vunpack.i.l.bf16 %v14850_v17  ;;  %v17936_v61 = vld [vmem:[#allocation46_spill] sm:$0xff] }
 0x3ac   : > { %8946 = vmatprep.subr.msk.bf16.mxu0 %vm17922_vm12, %v14827_v56  ;;  %17931 = vst [vmem:[#allocation28_spill] sm:$0xff] %v14868_v7  ;;  %v5332_v43 = vsel %vm17932_vm6, %v10503_v3, %v10508_v59  ;;  %vm17933_vm9 = vmmov %vm17928_vm0  ;;  %v8967_v22 = vpack.c.bf16 %v5329_v52, %v5328_v39  ;;  %vm17937_vm0 = vnez %v17936_v61  ;;  %v10524_v17 = vunpack.i.h.bf16 %v14832_v5  ;;  %v17941_v39 = vld [vmem:[#allocation53_spill] sm:$0xff] }
 0x3ad   : > { %v10527_v56 = vpop.permute.xlu0 %10526  ;;  %v5333_v60 = vsel %vm17933_vm9, %v10504_v40, %v10509_v18  ;;  %17934 = vst [vmem:[#allocation29_spill] sm:$0xff] %v14874_v9  ;;  %vm17938_vm11 = vmpackc.low %vm17937_vm0, %vm17937_vm0  ;;  %v5331_v4 = vsel %vm17933_vm9, %v10509_v18, %v10514_v14  ;;  %v10523_v44 = vunpack.i.l.bf16 %v14832_v5  ;;  %vm17942_vm0 = vnez %v17941_v39 }
 0x3ae   : > { %v14877_v1 = vpop.permute.xlu1 %10541  ;;  %v10529_v23 = vunpack.i.h.bf16 %v10527_v56  ;;  %v10528_v25 = vunpack.i.l.bf16 %v10527_v56  ;;  %v8960_v37 = vpack.c.bf16 %v5333_v60, %v5332_v43  ;;  %vm17939_vm6 = vmmov %vm17935_vm13  ;;  %vm18003_vm12 = vcmp.lt.s32.totalorder %v11681_v35, 127 }
 0x3af   : > { %v10543_v61 = vunpack.i.l.bf16 %v14877_v1 }
 0x3b0   : > { %8936 = vmatmul.mubr.msk.bf16.vlgmr.msra.gmra.mrb[8].mxu0 %vm17939_vm6, %v10935_v20  ;;  %vm17944_vm6 = vmmov %vm17933_vm9 }
 0x3b1   : > { %8943 = vmatmul.mubr.msk.bf16.vlgmr.msra.gmra.mrb[8].mxu1 %vm17935_vm13, %v10935_v20  ;;  %v10547_v52 = vpop.permute.xlu0 %10546  ;;  %vm17940_vm13 = vmmov %vm17933_vm9  ;;  %8949 = vmatpush1.bf16.msk.msra.mxu0 %vm17731_vm10, %v14874_v9  ;;  %vm17993_vm10 = vnez %v17992_v21 }
 0x3b2   : > { %8956 = vmatpush1.bf16.msk.msra.mxu1 %vm17727_vm3, %v14868_v7  ;;  %v5330_v56 = vsel %vm17940_vm13, %v10508_v59, %v10513_v47  ;;  %5258 = vmatprep.mubr.bf16.mxu1 %v17236_v11  ;;  %v10552_v14 = vpop.permute.xlu1 %10551  ;;  %v5334_v47 = vsel %vm17944_vm6, %v10533_v16, %v10503_v3  ;;  %vm17945_vm9 = vmmov %vm17944_vm6  ;;  %v10544_v3 = vunpack.i.h.bf16 %v14877_v1  ;;  %v10548_v39 = vunpack.i.l.bf16 %v10547_v52  ;;  %v17953_v1 = vld [vmem:[#allocation56_spill] sm:$0xff] }
 0x3b3   : > { %8968 = vmatprep.subr.msk.bf16.mxu1 %vm17938_vm11, %v8967_v22  ;;  %vm17943_vm11 = vmpackc.low %vm17942_vm0, %vm17942_vm0  ;;  %5215 = vmatprep.mubr.bf16.mxu0 %v17236_v11  ;;  %v5335_v18 = vsel %vm17945_vm9, %v10534_v30, %v10504_v40  ;;  %v8970_v43 = vpack.c.bf16 %v5331_v4, %v5330_v56  ;;  %v10549_v40 = vunpack.i.h.bf16 %v10547_v52  ;;  %v10554_v9 = vunpack.i.h.bf16 %v10552_v14 }
 0x3b4   : > { %8961 = vmatprep.subr.msk.bf16.mxu0 %vm17943_vm11, %v8960_v37  ;;  %vm17946_vm13 = vmmov %vm17944_vm6  ;;  %v8963_v12 = vpack.c.bf16 %v5335_v18, %v5334_v47  ;;  %vm17950_vm11 = vcmask 130048   ;;  %v17951_v4 = vunpack.i.l.bf16 %v14808_v8  ;;  %v10553_v26 = vunpack.i.l.bf16 %v10552_v14  ;;  %v17959_v14 = vld [vmem:[#allocation58_spill] sm:$0xff] }
 0x3b5   : > { %v5320_v59 = vsel %vm17946_vm13, %v10528_v25, %v10533_v16  ;;  %vm17947_vm2 = vmmov %vm17944_vm6  ;;  %v14918_v37 = vpop.permute.xlu0 %10556  ;;  %v17956_v52 = vunpack.i.h.bf16 %v14808_v8 }
 0x3b6   : > { %v5321_v5 = vsel %vm17947_vm2, %v10529_v23, %v10534_v30  ;;  %vm17948_vm1 = vmmov %vm17947_vm2  ;;  %v14923_v30 = vpop.permute.xlu1 %10571  ;;  %v10559_v7 = vunpack.i.h.bf16 %v14918_v37  ;;  %v10558_v58 = vunpack.i.l.bf16 %v14918_v37  ;;  %vm17954_vm2 = vnez %v17953_v1 }
 0x3b7   : > { %v5325_v60 = vsel %vm17948_vm1, %v10524_v17, %v10539_v32  ;;  %vm17949_vm0 = vmmov %vm17948_vm1  ;;  %v8981_v16 = vpack.c.bf16 %v5321_v5, %v5320_v59 }
 0x3b8   : > { %v5324_v22 = vsel %vm17949_vm0, %v10523_v44, %v10538_v0  ;;  %vm17952_vm1 = vmmov %vm17949_vm0 }
 0x3b9   : > { %8957 = vmatmul.mubr.msk.bf16.vlgmr.msra.gmra.mrb[12].mxu1 %vm17950_vm11, %v10935_v20  ;;  %v5326_v56 = vsel %vm17952_vm1, %v17951_v4, %v10523_v44  ;;  %vm17955_vm6 = vmpackc.low %vm17954_vm2, %vm17954_vm2  ;;  %v8974_v18 = vpack.c.bf16 %v5325_v60, %v5324_v22  ;;  %v10562_v59 = vpop.permute.xlu0 %10561  ;;  %vm17962_vm1 = vcmask 130048   ;;  %v14978_v60 = vld [vmem:[#allocation7 + $0x18] sm:$0xff]   ;;  %v17982_v4 = vld [vmem:[#allocation66_spill] sm:$0xff] }
 0x3ba   : > { %8971 = vmatpush1.bf16.msk.msra.mxu1 %vm17955_vm6, %v8970_v43  ;;  %5443 = vmatprep.mubr.bf16.mxu1 %v17236_v11  ;;  %vm17957_vm9 = vmmov %vm17949_vm0  ;;  %vm17964_vm6 = vcmp.lt.s32.totalorder %v11681_v35, 1  ;;  %v14976_v43 = vpop.permute.xlu1 %10576 }
 0x3bb   : > { %v5327_v47 = vsel %vm17957_vm9, %v17956_v52, %v10524_v17  ;;  %vm17958_vm13 = vmmov %vm17949_vm0  ;;  %vm17960_vm0 = vnez %v17959_v14  ;;  %8950 = vmatmul.mubr.msk.bf16.vlgmr.msra.gmra.mrb[12].mxu0 %vm17962_vm1, %v10935_v20  ;;  %v14953_v8 = vsel %vm17964_vm6, %v10543_v61, %v10548_v39  ;;  %v10574_v20 = vunpack.i.h.bf16 %v14923_v30 }
 0x3bc   : > { %v5322_v44 = vsel %vm17958_vm13, %v10538_v0, %v10528_v25  ;;  %vm17961_vm11 = vmpackc.low %vm17960_vm0, %vm17960_vm0  ;;  %v10573_v0 = vunpack.i.l.bf16 %v14923_v30  ;;  %v17966_v25 = vld [vmem:[#allocation61_spill] sm:$0xff]  ;;  %5400 = vmatprep.mubr.bf16.mxu0 %v17236_v11  ;;  %v17975_v30 = vld [vmem:[#allocation70_spill] sm:$0xff] }
 0x3bd   : > { %8982 = vmatprep.subr.msk.bf16.mxu1 %vm17961_vm11, %v8981_v16  ;;  %vm17963_vm2 = vmmov %vm17957_vm9  ;;  %vm17967_vm13 = vnez %v17966_v25 }
 0x3be   : > { %v5323_v5 = vsel %vm17963_vm2, %v10539_v32, %v10529_v23  ;;  %vm17965_vm9 = vmmov %vm17964_vm6  ;;  %v17970_v32 = vld [vmem:[#allocation62_spill] sm:$0xff]  ;;  %v10582_v25 = vpop.permute.xlu1 %10581 }
 0x3bf   : > { %v14957_v17 = vsel %vm17965_vm9, %v10544_v3, %v10549_v40  ;;  %vm17968_vm0 = vmpackc.low %vm17967_vm13, %vm17967_vm13  ;;  %vm17971_vm1 = vnez %v17970_v32  ;;  %v8984_v16 = vpack.c.bf16 %v5323_v5, %v5322_v44  ;;  %v10564_v5 = vunpack.i.h.bf16 %v10562_v59 }
 0x3c0   : > { %8964 = vmatpush1.bf16.msk.msra.mxu0 %vm17968_vm0, %v8963_v12  ;;  %vm17969_vm11 = vmmov %vm17964_vm6  ;;  %v14982_v12 = vsel %vm17964_vm6, %v10548_v39, %v10553_v26  ;;  %vm17976_vm0 = vnez %v17975_v30  ;;  %v10567_v39 = vpop.permute.xlu0 %10566  ;;  %v8989_v52 = vpack.c.bf16 %v14957_v17, %v14953_v8  ;;  %v10578_v32 = vunpack.i.l.bf16 %v14976_v43 }
 0x3c1   : > { %v14968_v23 = vsel %vm17969_vm11, %v10549_v40, %v10554_v9  ;;  %vm17972_vm2 = vmpackc.low %vm17971_vm1, %vm17971_vm1  ;;  %v8977_v40 = vpack.c.bf16 %v5327_v47, %v5326_v56  ;;  %v10563_v56 = vunpack.i.l.bf16 %v10562_v59  ;;  %v10568_v1 = vunpack.i.l.bf16 %v10567_v39  ;;  %v17985_v59 = vld [vmem:[#allocation67_spill] sm:$0xff] }
 0x3c2   : > { %8975 = vmatprep.subr.msk.bf16.mxu0 %vm17972_vm2, %v8974_v18  ;;  %vm17973_vm9 = vmmov %vm17964_vm6  ;;  %v10569_v18 = vunpack.i.h.bf16 %v10567_v39  ;;  %v10584_v10 = vunpack.i.h.bf16 %v10582_v25  ;;  %v10583_v39 = vunpack.i.l.bf16 %v10582_v25  ;;  %v15067_v21 = vpop.permute.xlu1 %10591 }
 0x3c3   : > { %v14986_v22 = vsel %vm17973_vm9, %v10553_v26, %v10558_v58  ;;  %vm17974_vm13 = vmmov %vm17964_vm6  ;;  %v17977_v26 = vld [vmem:[#allocation68_spill] sm:$0xff]  ;;  %vm17983_vm9 = vnez %v17982_v4 }
 0x3c4   : > { %v14990_v37 = vsel %vm17974_vm13, %v10554_v9, %v10559_v7  ;;  %vm17978_vm11 = vnez %v17977_v26  ;;  %vm17979_vm1 = vmmov %vm17964_vm6  ;;  %vm17981_vm6 = vcmask 130048  }
 0x3c5   : > { %v15005_v9 = vsel %vm17979_vm1, %v10573_v0, %v10543_v61  ;;  %v8996_v44 = vpack.c.bf16 %v14990_v37, %v14986_v22  ;;  %vm17980_vm2 = vmmov %vm17979_vm1  ;;  %8972 = vmatmul.mubr.msk.bf16.vlgmr.msra.gmra.mrb[8].mxu1 %vm17981_vm6, %v14978_v60  ;;  %v10579_v61 = vunpack.i.h.bf16 %v14976_v43  ;;  %vm17986_vm1 = vnez %v17985_v59  ;;  %v17987_v43 = vld [vmem:[#allocation71_spill] sm:$0xff] }
 0x3c6   : > { %v15014_v14 = vsel %vm17980_vm2, %v10574_v20, %v10544_v3  ;;  %vm17984_vm13 = vmpackc.low %vm17983_vm9, %vm17983_vm9  ;;  %v8999_v3 = vpack.c.bf16 %v14968_v23, %v14982_v12  ;;  %vm17988_vm2 = vnez %v17987_v43  ;;  %vm17990_vm9 = vcmask 130048   ;;  %5529 = vmatprep.mubr.bf16.mxu1 %v17236_v11  ;;  %v10602_v51 = vpop.permute.xlu1 %10601 }
 0x3c7   : > { %8985 = vmatpush1.bf16.msk.msra.mxu1 %vm17984_vm13, %v8984_v16  ;;  %vm17989_vm6 = vmpackc.low %vm17986_vm1, %vm17986_vm1  ;;  %v10587_v16 = vpop.permute.xlu0 %10586  ;;  %8965 = vmatmul.mubr.msk.bf16.vlgmr.msra.gmra.mrb[8].mxu0 %vm17990_vm9, %v14978_v60  ;;  %vm17991_vm13 = vcmp.lt.s32.totalorder %v11681_v35, 1  ;;  %v10604_v30 = vunpack.i.h.bf16 %v10602_v51 }
 0x3c8   : > { %8997 = vmatprep.subr.msk.bf16.mxu1 %vm17989_vm6, %v8996_v44  ;;  %v15048_v47 = vsel %vm17991_vm13, %v10558_v58, %v10563_v56  ;;  %vm17994_vm3 = vmpackc.low %vm17993_vm10, %vm17993_vm10  ;;  %v8992_v44 = vpack.c.bf16 %v15014_v14, %v15005_v9  ;;  %v10589_v33 = vunpack.i.h.bf16 %v10587_v16  ;;  %v10588_v58 = vunpack.i.l.bf16 %v10587_v16  ;;  %5486 = vmatprep.mubr.bf16.mxu0 %v17236_v11 }
 0x3c9   : > { %8978 = vmatpush1.bf16.msk.msra.mxu0 %vm17994_vm3, %v8977_v40  ;;  %vm17995_vm6 = vmmov %vm17991_vm13 }
 0x3ca   : > { %v15060_v4 = vsel %vm17995_vm6, %v10559_v7, %v10564_v5  ;;  %vm17996_vm9 = vmpackc.low %vm17976_vm0, %vm17976_vm0 }
 0x3cb   : > { %8990 = vmatprep.subr.msk.bf16.mxu0 %vm17996_vm9, %v8989_v52  ;;  %vm17997_vm3 = vmmov %vm17995_vm6  ;;  %v18001_v52 = vld [vmem:[#allocation77_spill] sm:$0xff] }
 0x3cc   : > { %v15072_v40 = vsel %vm17997_vm3, %v10564_v5, %v10579_v61  ;;  %vm17998_vm10 = vmmov %vm17997_vm3  ;;  %vm18002_vm9 = vnez %v18001_v52  ;;  %v15091_v5 = vsel %vm18003_vm12, %v10583_v39, %v10588_v58 }
 0x3cd   : > { %v15076_v7 = vsel %vm17998_vm10, %v10563_v56, %v10578_v32  ;;  %vm17999_vm13 = vmmov %vm17997_vm3  ;;  %vm18006_vm10 = vnez %v18005_v55  ;;  %v18052_v59 = vsel %vm18002_vm9, %v15060_v4, -inf }
 0x3ce   : > { %v15080_v25 = vsel %vm17999_vm13, %v10568_v1, %v10573_v0  ;;  %vm18000_vm6 = vmmov %vm17997_vm3  ;;  %v10597_v0 = vpop.permute.xlu0 %10596  ;;  %v4362_v57 = vsel %vm18006_vm10, %v15091_v5, -inf  ;;  %vm18009_vm13 = vcmask 130048   ;;  %v9003_v31 = vpack.c.bf16 %v15072_v40, %v15076_v7 }
 0x3cf   : > { %v15084_v16 = vsel %vm18000_vm6, %v10569_v18, %v10574_v20  ;;  %vm18004_vm3 = vmmov %vm18003_vm12  ;;  %vm18008_vm12 = vnez %v18007_v38  ;;  %8986 = vmatmul.mubr.msk.bf16.vlgmr.msra.gmra.mrb[12].mxu1 %vm18009_vm13, %v14978_v60  ;;  %v15124_v34 = vsel %vm18000_vm6, %v10578_v32, %v10568_v1  ;;  %v10599_v48 = vunpack.i.h.bf16 %v10597_v0 }
 0x3d0   : > { %v15095_v56 = vsel %vm18004_vm3, %v10584_v10, %v10589_v33  ;;  %v9010_v28 = vpack.c.bf16 %v15084_v16, %v15080_v25  ;;  %18010 = vst [vmem:[#allocation32_spill] sm:$0xff] %v15124_v34  ;;  %vm18011_vm3 = vmmov %vm18000_vm6  ;;  %5666 = vmatprep.mubr.bf16.mxu1 %v17236_v11  ;;  %v18013_v20 = vsel %vm17976_vm0, %v14953_v8, -inf  ;;  %v18014_v1 = vsel %vm17976_vm0, %v14957_v17, -inf }
 0x3d1   : > { %v4370_v24 = vsel %vm18006_vm10, %v15095_v56, -inf  ;;  %v15128_v27 = vsel %vm18011_vm3, %v10579_v61, %v10569_v18  ;;  %vm18012_vm7 = vmpackc.low %vm17978_vm11, %vm17978_vm11  ;;  %v4378_v45 = vmax.f32 %v18013_v20, %v4362_v57  ;;  %v18015_v61 = vunpack.i.l.bf16 %v15067_v21 }
 0x3d2   : > { %9000 = vmatpush1.bf16.msk.msra.mxu1 %vm18012_vm7, %v8999_v3  ;;  %v4386_v18 = vmax.f32 %v18014_v1, %v4370_v24  ;;  %vm18016_vm13 = vcmp.lt.s32.totalorder %v11681_v35, 127  ;;  %v10598_v50 = vunpack.i.l.bf16 %v10597_v0  ;;  %v18017_v3 = vld [vmem:[#allocation72_spill] sm:$0xff]  ;;  %v15155_v8 = vpop.permute.xlu0 %10616  ;;  %vm18020_vm3 = vcmask 130048   ;;  %v15193_v0 = vld [vmem:[#allocation7 + $0x20] sm:$0xff]  }
 0x3d3   : > { %v15148_v32 = vsel %vm18016_vm13, %v18015_v61, %v10583_v39  ;;  %vm18018_vm7 = vnez %v18017_v3  ;;  %8979 = vmatmul.mubr.msk.bf16.vlgmr.msra.gmra.mrb[12].mxu0 %vm18020_vm3, %v14978_v60  ;;  %v18021_v57 = vunpack.i.h.bf16 %v15067_v21  ;;  %vm18022_vm0 = vmmov %vm18016_vm13  ;;  %v10603_v39 = vunpack.i.l.bf16 %v10602_v51  ;;  %v18030_v60 = vld [vmem:[#allocation75_spill] sm:$0xff] }
 0x3d4   : > { %vm18019_vm6 = vmpackc.low %vm18018_vm7, %vm18018_vm7  ;;  %5623 = vmatprep.mubr.bf16.mxu0 %v17236_v11  ;;  %v10619_v51 = vunpack.i.h.bf16 %v15155_v8  ;;  %v9013_v20 = vpack.c.bf16 %v15128_v27, %v15124_v34  ;;  %v9018_v1 = vpack.c.bf16 %v15095_v56, %v15091_v5  ;;  %v10618_v5 = vunpack.i.l.bf16 %v15155_v8 }
 0x3d5   : > { %9011 = vmatprep.subr.msk.bf16.mxu1 %vm18019_vm6, %v9010_v28  ;;  %v15163_v24 = vsel %vm18022_vm0, %v18021_v57, %v10584_v10  ;;  %vm18023_vm13 = vmmov %vm18022_vm0  ;;  %v18025_v28 = vld [vmem:[#allocation74_spill] sm:$0xff]  ;;  %v4352_v57 = vsel %vm18022_vm0, %v10599_v48, %v10604_v30  ;;  %v15216_v2 = vmax.f32 %v14440_v29, %v4378_v45 }
 0x3d6   : > { %v15167_v17 = vsel %vm18023_vm13, %v10589_v33, %v10599_v48  ;;  %vm18024_vm6 = vmpackc.low %vm17988_vm2, %vm17988_vm2  ;;  %vm18026_vm3 = vnez %v18025_v28  ;;  %v15183_v33 = vsel %vm18022_vm0, %v10588_v58, %v10598_v50  ;;  %v18028_v58 = vld [vmem:[#allocation81_spill] sm:$0xff]  ;;  %v15213_v56 = vpop.permute.xlu0 %10621  ;;  %v15219_v48 = vmax.f32 %v14442_v49, %v4386_v18 }
 0x3d7   : > { %8993 = vmatpush1.bf16.msk.msra.mxu0 %vm18024_vm6, %v8992_v44  ;;  %vm18027_vm13 = vmpackc.low %vm18008_vm12, %vm18008_vm12  ;;  %v15191_v44 = vpop.permute.xlu1 %10606  ;;  %vm18029_vm6 = vnez %v18028_v58  ;;  %9001 = vmatmul.mubr.msk.bf16.vlgmr.msra.gmra.mrb[8].mxu1 %vm18037_vm8, %v15193_v0  ;;  %v18038_v18 = vsel %vm17988_vm2, %v15014_v14, -inf }
 0x3d8   : > { %9004 = vmatprep.subr.msk.bf16.mxu0 %vm18027_vm13, %v9003_v31  ;;  %v4361_v61 = vsel %vm18029_vm6, %v15148_v32, -inf  ;;  %v4369_v31 = vsel %vm18029_vm6, %v15163_v24, -inf  ;;  %vm18031_vm13 = vnez %v18030_v60  ;;  %vm18032_vm5 = vmmov %vm18022_vm0  ;;  %vm18034_vm0 = vnez %v18033_v15  ;;  %5752 = vmatprep.mubr.bf16.mxu1 %v17236_v11 }
 0x3d9   : > { %v4371_v10 = vsel %vm18031_vm13, %v15167_v17, -inf  ;;  %v4351_v63 = vsel %vm18032_vm5, %v10598_v50, %v10603_v39  ;;  %v4363_v19 = vsel %vm18031_vm13, %v15183_v33, -inf  ;;  %v4372_v34 = vsel %vm18034_vm0, %v4352_v57, -inf  ;;  %vm18036_vm15 = vmmov %vm18032_vm5 }
 0x3da   : > { %v18035_v50 = vsel %vm17988_vm2, %v15005_v9, -inf  ;;  %v9025_v36 = vpack.c.bf16 %v4352_v57, %v4351_v63  ;;  %v15232_v45 = vsel %vm18032_vm5, %v10603_v39, %v10618_v5  ;;  %v15236_v29 = vsel %vm18036_vm15, %v10604_v30, %v10619_v51  ;;  %v18040_v30 = vld [vmem:[#allocation82_spill] sm:$0xff]  ;;  %vm18042_vm8 = vmpackc.low %vm18026_vm3, %vm18026_vm3  ;;  %v15278_v26 = vpop.permute.xlu0 %10626 }
 0x3db   : > { %v4377_v8 = vmax.f32 %v18035_v50, %v4361_v61  ;;  %v15240_v49 = vpop.permute.xlu1 %10611  ;;  %v4385_v9 = vmax.f32 %v18038_v18, %v4369_v31  ;;  %v18039_v61 = vsel %vm17978_vm11, %v14968_v23, -inf  ;;  %v4364_v57 = vsel %vm18034_vm0, %v4351_v63, -inf  ;;  %9014 = vmatpush1.bf16.msk.msra.mxu1 %vm18042_vm8, %v9013_v20  ;;  %vm18045_vm2 = vmpackc.low %vm18034_vm0, %vm18034_vm0 }
 0x3dc   : > { %v4387_v39 = vmax.f32 %v18039_v61, %v4371_v10  ;;  %vm18041_vm15 = vnez %v18040_v30  ;;  %v18043_v23 = vsel %vm17978_vm11, %v14982_v12, -inf  ;;  %v18044_v63 = vsel %vm17986_vm1, %v14990_v37, -inf  ;;  %9026 = vmatprep.subr.msk.bf16.mxu1 %vm18045_vm2, %v9025_v36  ;;  %vm18048_vm5 = vmpackc.low %vm18002_vm9, %vm18002_vm9 }
 0x3dd   : > { %v4365_v50 = vsel %vm18041_vm15, %v15232_v45, -inf  ;;  %v4379_v14 = vmax.f32 %v18043_v23, %v4363_v19  ;;  %v4388_v43 = vmax.f32 %v18044_v63, %v4372_v34  ;;  %v4373_v10 = vsel %vm18041_vm15, %v15236_v29, -inf  ;;  %vm18051_vm8 = vmpackc.low %vm18006_vm10, %vm18006_vm10 }
 0x3de   : > { %v10609_v31 = vunpack.i.h.bf16 %v15191_v44  ;;  %vm18046_vm11 = vcmask 130048   ;;  %v10608_v19 = vunpack.i.l.bf16 %v15191_v44  ;;  %v10785_v34 = vpack.i.bf16 %v15219_v48, %v15216_v2 }
 0x3df   : > { %8994 = vmatmul.mubr.msk.bf16.vlgmr.msra.gmra.mrb[8].mxu0 %vm18046_vm11, %v15193_v0  ;;  %v10624_v12 = vunpack.i.h.bf16 %v15213_v56  ;;  %v18047_v37 = vpack.c.bf16 %v15060_v4, %v15048_v47  ;;  %v9021_v36 = vpack.c.bf16 %v15163_v24, %v15148_v32  ;;  %v18049_v44 = vsel %vm17986_vm1, %v14986_v22, -inf  ;;  %v15311_v63 = vpop.permute.xlu1 %10631 }
 0x3e0   : > { %5709 = vmatprep.mubr.bf16.mxu0 %v17236_v11  ;;  %v4380_v20 = vmax.f32 %v18049_v44, %v4364_v57  ;;  %v18050_v18 = vsel %vm18002_vm9, %v15048_v47, -inf  ;;  %v10623_v23 = vunpack.i.l.bf16 %v15213_v56  ;;  %v4312_v22 = vsel %vm18018_vm7, %v15084_v16, -inf  ;;  %10786 = vrot.lane.b32.xlu1 %v10785_v34, %s11202_s22 }
 0x3e1   : > { %9007 = vmatpush1.bf16.msk.msra.mxu0 %vm18048_vm5, %v18047_v37  ;;  %v4381_v61 = vmax.f32 %v18050_v18, %v4365_v50  ;;  %v4389_v47 = vmax.f32 %v18052_v59, %v4373_v10  ;;  %vm18053_vm1 = vcmp.lt.s32.totalorder %v11681_v35, 127  ;;  %10781 = vrot.lane.b32.xlu0 %v10785_v34, %s11197_s19  ;;  %v15330_v16 = vmax.f32 %v14438_v42, %v4385_v9  ;;  %v18071_v18 = vld [vmem:[#allocation84_spill] sm:$0xff] }
 0x3e2   : > { %9019 = vmatprep.subr.msk.bf16.mxu0 %vm18051_vm8, %v9018_v1  ;;  %v4348_v32 = vsel %vm18053_vm1, %v10619_v51, %v10609_v31  ;;  %vm18054_vm2 = vmmov %vm18053_vm1  ;;  %v15327_v1 = vmax.f32 %v14436_v54, %v4377_v8  ;;  %v15333_v52 = vmax.f32 %v14444_v62, %v4387_v39  ;;  %v9028_v4 = vpack.c.bf16 %v15167_v17, %v15183_v33  ;;  %v15337_v51 = vpop.permute.xlu0 %10636  ;;  %v18059_v33 = vld [vmem:[#allocation86_spill] sm:$0xff] }
 0x3e3   : > { %v4347_v24 = vsel %vm18054_vm2, %v10618_v5, %v10608_v19  ;;  %v15340_v5 = vmax.f32 %v14456_v6, %v4379_v14  ;;  %v15343_v56 = vmax.f32 %v14450_v46, %v4388_v43  ;;  %v18055_v54 = vunpack.i.l.bf16 %v15067_v21  ;;  %vm18056_vm9 = vmmov %vm18053_vm1  ;;  %v15364_v39 = vpop.permute.xlu1 %10641  ;;  %v18064_v43 = vld [vmem:[#allocation83_spill] sm:$0xff] }
 0x3e4   : > { %v18057_v8 = vunpack.i.h.bf16 %v15067_v21  ;;  %vm18058_vm11 = vmmov %vm18053_vm1  ;;  %v15354_v17 = vmax.f32 %v14460_v53, %v4380_v20  ;;  %v9035_v6 = vpack.c.bf16 %v15236_v29, %v15232_v45  ;;  %vm18060_vm5 = vnez %v18059_v33  ;;  %v18093_v45 = vld [vmem:[#allocation91_spill] sm:$0xff] }
 0x3e5   : > { %v4359_v42 = vsel %vm18056_vm9, %v10623_v23, %v18055_v54  ;;  %v4374_v46 = vsel %vm18060_vm5, %v4348_v32, -inf  ;;  %v4366_v9 = vsel %vm18060_vm5, %v4347_v24, -inf  ;;  %vm18061_vm8 = vcmask 130048   ;;  %vm18062_vm2 = vmpackc.low %vm18031_vm13, %vm18031_vm13 }
 0x3e6   : > { %v4360_v62 = vsel %vm18058_vm11, %v10624_v12, %v18057_v8  ;;  %9015 = vmatmul.mubr.msk.bf16.vlgmr.msra.gmra.mrb[12].mxu1 %vm18061_vm8, %v15193_v0  ;;  %v15367_v21 = vmax.f32 %v14480_v13, %v4381_v61  ;;  %v15370_v53 = vmax.f32 %v14482_v41, %v4389_v47  ;;  %v9032_v57 = vpack.c.bf16 %v4348_v32, %v4347_v24  ;;  %vm18063_vm9 = vmmov %vm18053_vm1  ;;  %v15387_v34 = vpop.permute.xlu0 %10656 }
 0x3e7   : > { %v15374_v50 = vsel %vm18053_vm1, %v10609_v31, %v10624_v12  ;;  %9029 = vmatpush1.bf16.msk.msra.mxu1 %vm18062_vm2, %v9028_v4  ;;  %v4345_v14 = vsel %vm18063_vm9, %v10608_v19, %v10623_v23  ;;  %vm18065_vm11 = vnez %v18064_v43  ;;  %v9039_v10 = vpack.c.bf16 %v4360_v62, %v4359_v42  ;;  %9008 = vmatmul.mubr.msk.bf16.vlgmr.msra.gmra.mrb[12].mxu0 %vm18061_vm8, %v15193_v0  ;;  %vm18068_vm1 = vmpackc.low %vm18029_vm6, %vm18029_vm6  ;;  %v15422_v0 = vpop.permute.xlu1 %10646 }
 0x3e8   : > { %v4368_v13 = vsel %vm18065_vm11, %v4359_v42, -inf  ;;  %v4376_v41 = vsel %vm18065_vm11, %v4360_v62, -inf  ;;  %5889 = vmatprep.mubr.bf16.mxu1 %v17236_v11  ;;  %v18066_v31 = vsel %vm18008_vm12, %v15076_v7, -inf  ;;  %v18067_v19 = vsel %vm18008_vm12, %v15072_v40, -inf  ;;  %9022 = vmatpush1.bf16.msk.msra.mxu0 %vm18068_vm1, %v9021_v36  ;;  %vm18069_vm12 = vmpackc.low %vm18065_vm11, %vm18065_vm11  ;;  %v15424_v36 = vld [vmem:[#allocation7 + $0x28] sm:$0xff]   ;;  %v18076_v42 = vld [vmem:[#allocation94_spill] sm:$0xff] }
 0x3e9   : > { %v4382_v12 = vmax.f32 %v18066_v31, %v4366_v9  ;;  %v4390_v37 = vmax.f32 %v18067_v19, %v4374_v46  ;;  %v10614_v44 = vunpack.i.h.bf16 %v15240_v49  ;;  %v10613_v20 = vunpack.i.l.bf16 %v15240_v49  ;;  %5846 = vmatprep.mubr.bf16.mxu0 %v17236_v11  ;;  %9040 = vmatprep.subr.msk.bf16.mxu1 %vm18069_vm12, %v9039_v10  ;;  %vm18070_vm2 = vmpackc.low %vm18060_vm5, %vm18060_vm5  ;;  %v18077_v46 = vld [vmem:[#allocation32_spill] sm:$0xff]  ;;  %v18081_v10 = vld [vmem:[#allocation85_spill] sm:$0xff] }
 0x3ea   : > { %v10795_v7 = vpack.i.bf16 %v15333_v52, %v15340_v5  ;;  %v10629_v38 = vunpack.i.h.bf16 %v15278_v26  ;;  %v10628_v40 = vunpack.i.l.bf16 %v15278_v26  ;;  %9033 = vmatprep.subr.msk.bf16.mxu0 %vm18070_vm2, %v9032_v57  ;;  %vm18072_vm9 = vnez %v18071_v18  ;;  %v15442_v4 = vpop.permute.xlu0 %10661  ;;  %v18082_v19 = vld [vmem:[#allocation92_spill] sm:$0xff] }
 0x3eb   : > { %v4367_v61 = vsel %vm18072_vm9, %v4345_v14, -inf  ;;  %v18073_v26 = vsel %vm18018_vm7, %v15080_v25, -inf  ;;  %v4392_v59 = vmax.f32 %v4312_v22, %v4376_v41  ;;  %v9042_v47 = vpack.c.bf16 %v15374_v50, %v4345_v14  ;;  %vm18084_vm12 = vmpackc.low %vm18072_vm9, %vm18072_vm9 }
 0x3ec   : > { %v4384_v23 = vmax.f32 %v18073_v26, %v4368_v13  ;;  %v4311_v32 = vsel %vm18026_vm3, %v15128_v27, -inf  ;;  %10796 = vrot.lane.b32.xlu1 %v10795_v7, %s11197_s19  ;;  %10791 = vrot.lane.b32.xlu0 %v10795_v7, %s11202_s22  ;;  %vm18074_vm8 = vcmp.lt.s32.totalorder %v11681_v35, 113  ;;  %v10805_v3 = vpack.i.bf16 %v15343_v56, %v15354_v17  ;;  %v18080_v13 = vld [vmem:[#allocation25_spill] sm:$0xff] }
 0x3ed   : > { %v6047_v24 = vsel %vm18074_vm8, %v10613_v20, %v10628_v40  ;;  %vm18075_vm7 = vmmov %vm18074_vm8  ;;  %v10639_v22 = vunpack.i.h.bf16 %v15337_v51  ;;  %v10638_v27 = vunpack.i.l.bf16 %v15337_v51  ;;  %v10644_v54 = vunpack.i.h.bf16 %v15364_v39  ;;  %v15464_v51 = vpop.permute.xlu1 %10651 }
 0x3ee   : > { %v6048_v25 = vsel %vm18075_vm7, %v10614_v44, %v10629_v38  ;;  %v15452_v8 = vmax.f32 %v18076_v42, %v4390_v37  ;;  %v4375_v62 = vsel %vm18072_vm9, %v15374_v50, -inf  ;;  %v18078_v9 = vsel %vm18026_vm3, %v18077_v46, -inf  ;;  %vm18083_vm3 = vmmov %vm18075_vm7  ;;  %v15492_v26 = vpop.permute.xlu0 %10666  ;;  %v18090_v42 = vld [vmem:[#allocation89_spill] sm:$0xff] }
 0x3ef   : > { %v4383_v57 = vmax.f32 %v18078_v9, %v4367_v61  ;;  %v10643_v14 = vunpack.i.l.bf16 %v15364_v39  ;;  %vm18079_vm1 = vcmask 130048   ;;  %v15467_v41 = vmax.f32 %v18080_v13, %v4382_v12  ;;  %vm18085_vm2 = vmmov %vm18083_vm3 }
 0x3f0   : > { %9030 = vmatmul.mubr.msk.bf16.vlgmr.msra.gmra.mrb[8].mxu1 %vm18079_vm1, %v15424_v36  ;;  %v15470_v31 = vmax.f32 %v18081_v10, %v4384_v23  ;;  %v15473_v50 = vmax.f32 %v18082_v19, %v4392_v59  ;;  %v6044_v28 = vsel %vm18083_vm3, %v10639_v22, %v10644_v54  ;;  %v9047_v37 = vpack.c.bf16 %v6048_v25, %v6047_v24  ;;  %vm18086_vm8 = vmmov %vm18085_vm2  ;;  %v18103_v19 = vld [vmem:[#allocation95_spill] sm:$0xff] }
 0x3f1   : > { %9043 = vmatpush1.bf16.msk.msra.mxu1 %vm18084_vm12, %v9042_v47  ;;  %v10634_v12 = vunpack.i.h.bf16 %v15311_v63  ;;  %v10633_v7 = vunpack.i.l.bf16 %v15311_v63  ;;  %10806 = vrot.lane.b32.xlu1 %v10805_v3, %s11202_s22  ;;  %v6043_v61 = vsel %vm18085_vm2, %v10638_v27, %v10643_v14  ;;  %v6045_v23 = vsel %vm18086_vm8, %v10628_v40, %v10638_v27  ;;  %vm18087_vm7 = vmmov %vm18079_vm1  ;;  %v15514_v40 = vpop.permute.xlu1 %10671 }
 0x3f2   : > { %10801 = vrot.lane.b32.xlu0 %v10805_v3, %s11197_s19  ;;  %v9054_v59 = vpack.c.bf16 %v6044_v28, %v6043_v61  ;;  %v10649_v47 = vunpack.i.h.bf16 %v15422_v0  ;;  %v10648_v24 = vunpack.i.l.bf16 %v15422_v0  ;;  %9023 = vmatmul.mubr.msk.bf16.vlgmr.msra.gmra.mrb[8].mxu0 %vm18087_vm7, %v15424_v36  ;;  %vm18088_vm1 = vmmov %vm18085_vm2  ;;  %v10810_v3 = vpack.i.bf16 %v15330_v16, %v15327_v1 }
 0x3f3   : > { %5975 = vmatprep.mubr.bf16.mxu1 %v17236_v11  ;;  %v6046_v63 = vsel %vm18088_vm1, %v10629_v38, %v10639_v22  ;;  %v10664_v25 = vunpack.i.h.bf16 %v15442_v4  ;;  %vm18089_vm3 = vmpackc.low %vm18041_vm15, %vm18041_vm15  ;;  %5932 = vmatprep.mubr.bf16.mxu0 %v17236_v11  ;;  %v4391_v0 = vmax.f32 %v4311_v32, %v4375_v62  ;;  %v10659_v38 = vunpack.i.h.bf16 %v15387_v34  ;;  %v15540_v32 = vpop.permute.xlu0 %10676 }
 0x3f4   : > { %9036 = vmatpush1.bf16.msk.msra.mxu0 %vm18089_vm3, %v9035_v6  ;;  %v10658_v22 = vunpack.i.l.bf16 %v15387_v34  ;;  %v10663_v27 = vunpack.i.l.bf16 %v15442_v4  ;;  %vm18091_vm12 = vnez %v18090_v42  ;;  %vm18094_vm8 = vnez %v18093_v45  ;;  %vm18096_vm3 = vmmov %vm18088_vm1 }
 0x3f5   : > { %vm18092_vm2 = vmpackc.low %vm18091_vm12, %vm18091_vm12  ;;  %v6049_v29 = vsel %vm18088_vm1, %v10633_v7, %v10613_v20  ;;  %v6050_v6 = vsel %vm18096_vm3, %v10634_v12, %v10614_v44  ;;  %10811 = vrot.lane.b32.xlu1 %v10810_v3, %s11197_s19  ;;  %v9057_v4 = vpack.c.bf16 %v6046_v63, %v6045_v23  ;;  %v18101_v44 = vld [vmem:[#allocation93_spill] sm:$0xff]  ;;  %v15553_v9 = vpack.i.bf16 %v15473_v50, %v15470_v31  ;;  %v15559_v10 = vpop.permute.xlu1 %10681 }
 0x3f6   : > { %9055 = vmatprep.subr.msk.bf16.mxu1 %vm18092_vm2, %v9054_v59  ;;  %vm18095_vm7 = vmpackc.low %vm18094_vm8, %vm18094_vm8  ;;  %10821 = vrot.lane.b32.xlu0 %v10810_v3, %s11202_s22  ;;  %v15549_v46 = vmax.f32 %v18101_v44, %v4383_v57  ;;  %v10825_v13 = vpack.i.bf16 %v15370_v53, %v15367_v21  ;;  %v15562_v28 = vmax.f32 %v18103_v19, %v4391_v0  ;;  %v10654_v57 = vunpack.i.h.bf16 %v15464_v51 }
 0x3f7   : > { %9048 = vmatprep.subr.msk.bf16.mxu0 %vm18095_vm7, %v9047_v37  ;;  %vm18097_vm12 = vmmov %vm18088_vm1  ;;  %v9050_v37 = vpack.c.bf16 %v6050_v6, %v6049_v29  ;;  %v10653_v63 = vunpack.i.l.bf16 %v15464_v51  ;;  %v15579_v3 = vpop.permute.xlu0 %10696  ;;  %v10835_v0 = vpack.i.bf16 %v15452_v8, %v15467_v41  ;;  %v10669_v42 = vunpack.i.h.bf16 %v15492_v26  ;;  %v18108_v29 = vld [vmem:[#allocation80_spill] sm:$0xff]  ;;  %v18112_v6 = vld [vmem:[#allocation22_spill] sm:$0xff] }
 0x3f8   : > { %v6052_v34 = vsel %vm18097_vm12, %v10664_v25, %v10634_v12  ;;  %vm18098_vm2 = vmmov %vm18088_vm1  ;;  %v10684_v45 = vunpack.i.h.bf16 %v15559_v10  ;;  %vm18154_vm0 = vcmp.lt.s32.totalorder %v11681_v35, 112  ;;  %vm18157_vm13 = vcmask 130048  }
 0x3f9   : > { %v6040_v62 = vsel %vm18098_vm2, %v10659_v38, %v10649_v47  ;;  %vm18099_vm8 = vmmov %vm18088_vm1  ;;  %10816 = vrot.lane.b32.xlu1 %v15553_v9, %s11197_s19  ;;  %v6037_v23 = vsel %vm18098_vm2, %v10648_v24, %v10663_v27 }
 0x3fa   : > { %v6039_v20 = vsel %vm18099_vm8, %v10658_v22, %v10648_v24  ;;  %vm18100_vm7 = vmmov %vm18088_vm1  ;;  %vm18102_vm1 = vcmask 130048   ;;  %10826 = vrot.lane.b32.xlu0 %v10825_v13, %s11202_s22  ;;  %v10679_v24 = vunpack.i.h.bf16 %v15540_v32 }
 0x3fb   : > { %v6051_v49 = vsel %vm18100_vm7, %v10663_v27, %v10633_v7  ;;  %9044 = vmatmul.mubr.msk.bf16.vlgmr.msra.gmra.mrb[12].mxu1 %vm18102_vm1, %v15424_v36  ;;  %v18104_v7 = vld [vmem:[#allocation90_spill] sm:$0xff]  ;;  %v9061_v61 = vpack.c.bf16 %v6040_v62, %v6039_v20  ;;  %vm18107_vm8 = vmmov %vm18098_vm2  ;;  %vm18109_vm7 = vnez %v18108_v29  ;;  %v10683_v27 = vunpack.i.l.bf16 %v15559_v10  ;;  %v10702_v62 = vpop.permute.xlu0 %10701 }
 0x3fc   : > { %v9068_v12 = vpack.c.bf16 %v6052_v34, %v6051_v49  ;;  %vm18105_vm3 = vnez %v18104_v7  ;;  %6160 = vmatprep.mubr.bf16.mxu1 %v17236_v11  ;;  %v6038_v59 = vsel %vm18107_vm8, %v10649_v47, %v10664_v25  ;;  %vm18110_vm1 = vmpackc.low %vm18109_vm7, %vm18109_vm7  ;;  %v10668_v47 = vunpack.i.l.bf16 %v15492_v26  ;;  %v15601_v34 = vpop.permute.xlu1 %10686 }
 0x3fd   : > { %vm18106_vm12 = vmpackc.low %vm18105_vm3, %vm18105_vm3  ;;  %vm18111_vm3 = vcmask 130048   ;;  %v10678_v25 = vunpack.i.l.bf16 %v15540_v32  ;;  %10831 = vrot.lane.b32.xlu1 %v10825_v13, %s11197_s19  ;;  %v9071_v44 = vpack.c.bf16 %v6038_v59, %v6037_v23  ;;  %v10703_v7 = vunpack.i.l.bf16 %v10702_v62 }
 0x3fe   : > { %9058 = vmatpush1.bf16.msk.msra.mxu1 %vm18106_vm12, %v9057_v4  ;;  %9037 = vmatmul.mubr.msk.bf16.vlgmr.msra.gmra.mrb[12].mxu0 %vm18111_vm3, %v15424_v36  ;;  %vm18113_vm12 = vnez %v18112_v6  ;;  %v15603_v4 = vld [vmem:[#allocation7 + $0x30] sm:$0xff]   ;;  %v18115_v36 = vld [vmem:[#allocation23_spill] sm:$0xff]  ;;  %v10673_v59 = vunpack.i.l.bf16 %v15514_v40  ;;  %vm18155_vm9 = vmmov %vm18154_vm0 }
 0x3ff   : > { %9069 = vmatprep.subr.msk.bf16.mxu1 %vm18110_vm1, %v9068_v12  ;;  %vm18114_vm2 = vmpackc.low %vm18113_vm12, %vm18113_vm12  ;;  %6117 = vmatprep.mubr.bf16.mxu0 %v17236_v11  ;;  %vm18116_vm8 = vnez %v18115_v36  ;;  %vm18118_vm1 = vcmp.lt.s32.totalorder %v11681_v35, 112  ;;  %vm18120_vm12 = vcmp.lt.s32.totalorder %v11681_v35, 113  ;;  %v10704_v12 = vunpack.i.h.bf16 %v10702_v62  ;;  %v18130_v36 = vld [vmem:[#allocation21_spill] sm:$0xff] }
 0x400   : > { %9051 = vmatpush1.bf16.msk.msra.mxu0 %vm18114_vm2, %v9050_v37  ;;  %vm18117_vm7 = vmpackc.low %vm18116_vm8, %vm18116_vm8  ;;  %10836 = vrot.lane.b32.xlu0 %v10835_v0, %s11197_s19  ;;  %v6315_v26 = vsel %vm18118_vm1, %v10679_v24, %v10684_v45  ;;  %v6041_v20 = vsel %vm18120_vm12, %v10643_v14, %v10658_v22  ;;  %v10845_v37 = vpack.i.bf16 %v15562_v28, %v15549_v46  ;;  %v15639_v14 = vpop.permute.xlu1 %10691  ;;  %v10674_v22 = vunpack.i.h.bf16 %v15514_v40 }
 0x401   : > { %9062 = vmatprep.subr.msk.bf16.mxu0 %vm18117_vm7, %v9061_v61  ;;  %vm18119_vm3 = vmmov %vm18118_vm1  ;;  %10841 = vrot.lane.b32.xlu1 %v10835_v0, %s11202_s22  ;;  %v15651_v61 = vpop.permute.xlu0 %10706  ;;  %v10689_v0 = vunpack.i.h.bf16 %v15601_v34 }
 0x402   : > { %v6314_v32 = vsel %vm18119_vm3, %v10678_v25, %v10683_v27  ;;  %vm18121_vm2 = vmmov %vm18120_vm12 }
 0x403   : > { %v6042_v49 = vsel %vm18121_vm2, %v10644_v54, %v10659_v38  ;;  %vm18122_vm8 = vmmov %vm18118_vm1  ;;  %v15641_v39 = vpack.c.bf16 %v6315_v26, %v6314_v32  ;;  %v18125_v54 = vld [vmem:[#allocation26_spill] sm:$0xff]  ;;  %v10688_v26 = vunpack.i.l.bf16 %v15601_v34  ;;  %v18132_v32 = vld [vmem:[#allocation19_spill] sm:$0xff] }
 0x404   : > { %v6318_v13 = vsel %vm18122_vm8, %v10653_v63, %v10668_v47  ;;  %vm18123_vm7 = vmmov %vm18118_vm1  ;;  %vm18124_vm1 = vcmask 130048   ;;  %vm18126_vm3 = vnez %v18125_v54  ;;  %v9064_v38 = vpack.c.bf16 %v6042_v49, %v6041_v20  ;;  %10846 = vrot.lane.b32.xlu0 %v10845_v37, %s11202_s22  ;;  %v15672_v40 = vpop.permute.xlu1 %10711 }
 0x405   : > { %v6319_v19 = vsel %vm18123_vm7, %v10654_v57, %v10669_v42  ;;  %9059 = vmatmul.mubr.msk.bf16.vlgmr.msra.gmra.mrb[8].mxu1 %vm18124_vm1, %v15603_v4  ;;  %vm18127_vm12 = vmpackc.low %vm18126_vm3, %vm18126_vm3  ;;  %vm18133_vm3 = vnez %v18132_v32  ;;  %10851 = vrot.lane.b32.xlu1 %v10845_v37, %s11197_s19  ;;  %v10717_v62 = vpop.permute.xlu0 %10716 }
 0x406   : > { %9072 = vmatpush1.bf16.msk.msra.mxu1 %vm18127_vm12, %v9071_v44  ;;  %v15653_v23 = vpack.c.bf16 %v6319_v19, %v6318_v13  ;;  %vm18128_vm2 = vmmov %vm18123_vm7  ;;  %vm18131_vm7 = vnez %v18130_v36  ;;  %9052 = vmatmul.mubr.msk.bf16.vlgmr.msra.gmra.mrb[8].mxu0 %vm18124_vm1, %v15603_v4  ;;  %v7691_v44 = vld [vmem:[%s16592_s6] sm:$0xff]  ;;  %v18142_v19 = vld [vmem:[#allocation99_spill] sm:$0xff]  ;;  %v10719_v32 = vunpack.i.h.bf16 %v10717_v62 }
 0x407   : > { %v6316_v29 = vsel %vm18128_vm2, %v10668_v47, %v10678_v25  ;;  %vm18129_vm8 = vmmov %vm18128_vm2  ;;  %9084 = vmatprep.subr.msk.bf16.mxu1 %vm18131_vm7, %v15641_v39  ;;  %6246 = vmatprep.mubr.bf16.mxu1 %v17236_v11  ;;  %v10699_v47 = vunpack.i.h.bf16 %v15579_v3  ;;  %v6322_v25 = vsel %vm18128_vm2, %v10703_v7, %v10673_v59 }
 0x408   : > { %v6317_v6 = vsel %vm18129_vm8, %v10669_v42, %v10679_v24  ;;  %vm18134_vm12 = vmpackc.low %vm18133_vm3, %vm18133_vm3  ;;  %6203 = vmatprep.mubr.bf16.mxu0 %v17236_v11  ;;  %10856 = vrot.lane.b32.xlu0 %v15553_v9, %s11202_s22  ;;  %v10698_v24 = vunpack.i.l.bf16 %v15579_v3  ;;  %v7692_v3 = vld [vmem:[%s16592_s6 + $0x8] sm:$0xff]  ;;  %v15708_v51 = vpop.permute.xlu1 %10721 }
 0x409   : > { %9065 = vmatpush1.bf16.msk.msra.mxu0 %vm18134_vm12, %v9064_v38  ;;  %vm18136_vm8 = vmmov %vm18128_vm2  ;;  %v15694_v9 = vpack.c.bf16 %v6317_v6, %v6316_v29  ;;  %v17107_v37 = vunpack.i.h.bf16 %v15708_v51  ;;  %v17108_v54 = vunpack.i.l.bf16 %v15708_v51  ;;  %7700 = vperm.xlu1 %10419, %v7692_v3   ;;  %v18148_v3 = vld [vmem:[#allocation103_spill] sm:$0xff] }
 0x40a   : > { %9077 = vmatprep.subr.msk.bf16.mxu0 %vm13618_vm4, %v15653_v23  ;;  %v6323_v34 = vsel %vm18136_vm8, %v10704_v12, %v10674_v22  ;;  %vm18137_vm1 = vmmov %vm18128_vm2  ;;  %vm18141_vm8 = vcmask 130048  }
 0x40b   : > { %v6320_v20 = vsel %vm18137_vm1, %v10673_v59, %v10653_v63  ;;  %vm18138_vm3 = vmmov %vm18137_vm1  ;;  %v15722_v59 = vpop.permute.xlu0 %10731 }
 0x40c   : > { %v6321_v49 = vsel %vm18138_vm3, %v10674_v22, %v10654_v57  ;;  %vm18139_vm12 = vmmov %vm18137_vm1  ;;  %v15710_v57 = vpack.c.bf16 %v6323_v34, %v6322_v25  ;;  %7695 = vperm.xlu0 %10418, %v7691_v44   ;;  %v10718_v25 = vunpack.i.l.bf16 %v10717_v62  ;;  %v18146_v34 = vld [vmem:[#allocation101_spill] sm:$0xff]  ;;  %v6312_v62 = vsel %vm18154_vm0, %v10683_v27, %v10698_v24  ;;  %v10727_v43 = vpop.permute.xlu1 %10726  ;;  %v18158_v27 = vld [vmem:[#allocation108_spill] sm:$0xff] }
 0x40d   : > { %v6311_v13 = vsel %vm18139_vm12, %v10699_v47, %v10689_v0  ;;  %vm18140_vm2 = vmmov %vm18137_vm1  ;;  %9073 = vmatmul.mubr.msk.bf16.vlgmr.msra.gmra.mrb[12].mxu1 %vm18141_vm8, %v15603_v4  ;;  %vm18143_vm1 = vnez %v18142_v19  ;;  %v15718_v38 = vpack.c.bf16 %v6321_v49, %v6320_v20  ;;  %v10694_v20 = vunpack.i.h.bf16 %v15639_v14 }
 0x40e   : > { %v6310_v63 = vsel %vm18140_vm2, %v10698_v24, %v10688_v26  ;;  %9087 = vmatpush1.bf16.msk.msra.mxu1 %vm18143_vm1, %v15694_v9  ;;  %6431 = vmatprep.mubr.bf16.mxu1 %v17236_v11  ;;  %vm18144_vm3 = vmmov %vm18140_vm2  ;;  %v10708_v49 = vunpack.i.l.bf16 %v15651_v61  ;;  %v6313_v44 = vsel %vm18155_vm9, %v10684_v45, %v10699_v47  ;;  %vm18159_vm0 = vnez %v18158_v27  ;;  %v18160_v45 = vld [vmem:[#allocation106_spill] sm:$0xff] }
 0x40f   : > { %v6308_v22 = vsel %vm18144_vm3, %v10688_v26, %v10703_v7  ;;  %v15724_v29 = vpack.c.bf16 %v6311_v13, %v6310_v63  ;;  %vm18145_vm12 = vmmov %vm18140_vm2  ;;  %vm18147_vm2 = vnez %v18146_v34  ;;  %9066 = vmatmul.mubr.msk.bf16.vlgmr.msra.gmra.mrb[12].mxu0 %vm18141_vm8, %v15603_v4  ;;  %v10693_v7 = vunpack.i.l.bf16 %v15639_v14 }
 0x410   : > { %v6309_v6 = vsel %vm18145_vm12, %v10689_v0, %v10704_v12  ;;  %9098 = vmatprep.subr.msk.bf16.mxu1 %vm18147_vm2, %v15710_v57  ;;  %v10709_v26 = vunpack.i.h.bf16 %v15651_v61  ;;  %vm18149_vm3 = vnez %v18148_v3  ;;  %v10940_v12 = vld [vmem:[#allocation7 + $0x38] sm:$0xff]   ;;  %6388 = vmatprep.mubr.bf16.mxu0 %v17236_v11  ;;  %vm18150_vm12 = vcmp.lt.s32.totalorder %v11681_v35, 111  ;;  %v10737_v61 = vpop.permute.xlu0 %10736 }
 0x411   : > { %9080 = vmatpush1.bf16.msk.msra.mxu0 %vm18149_vm3, %v15718_v38  ;;  %v6586_v4 = vsel %vm18150_vm12, %v10719_v32, %v17107_v37  ;;  %vm18151_vm8 = vmmov %vm18150_vm12  ;;  %v18152_v0 = vld [vmem:[#allocation105_spill] sm:$0xff]  ;;  %v15760_v13 = vpack.c.bf16 %v6309_v6, %v6308_v22  ;;  %v10739_v15 = vunpack.i.h.bf16 %v10737_v61  ;;  %v10738_v18 = vunpack.i.l.bf16 %v10737_v61 }
 0x412   : > { %v6585_v14 = vsel %vm18151_vm8, %v10718_v25, %v17108_v54  ;;  %vm18153_vm11 = vnez %v18152_v0  ;;  %vm18156_vm12 = vmmov %vm18151_vm8  ;;  %v6590_v37 = vsel %vm18151_vm8, %v10694_v20, %v10709_v26  ;;  %v15771_v10 = vpack.c.bf16 %v6313_v44, %v6312_v62  ;;  %v18164_v62 = vld [vmem:[#allocation111_spill] sm:$0xff] }
 0x413   : > { %9091 = vmatprep.subr.msk.bf16.mxu0 %vm18153_vm11, %v15724_v29  ;;  %v6589_v63 = vsel %vm18156_vm12, %v10693_v7, %v10708_v49  ;;  %v9112_v54 = vpack.c.bf16 %v6586_v4, %v6585_v14  ;;  %vm18161_vm9 = vnez %v18160_v45  ;;  %v10714_v24 = vunpack.i.h.bf16 %v15672_v40  ;;  %vm18163_vm15 = vmmov %vm18151_vm8 }
 0x414   : > { %vm18162_vm12 = vmpackc.low %vm18161_vm9, %vm18161_vm9  ;;  %v9105_v47 = vpack.c.bf16 %v6590_v37, %v6589_v63  ;;  %v10713_v22 = vunpack.i.l.bf16 %v15672_v40  ;;  %v6587_v6 = vsel %vm18151_vm8, %v10708_v49, %v10718_v25  ;;  %v6588_v4 = vsel %vm18163_vm15, %v10709_v26, %v10719_v32 }
 0x415   : > { %9088 = vmatmul.mubr.msk.bf16.vlgmr.msra.gmra.mrb[8].mxu1 %vm18157_vm13, %v10940_v12  ;;  %v10729_v14 = vunpack.i.h.bf16 %v10727_v43  ;;  %v10728_v61 = vunpack.i.l.bf16 %v10727_v43  ;;  %vm18165_vm6 = vnez %v18164_v62  ;;  %vm18167_vm9 = vmmov %vm18151_vm8  ;;  %v10734_v43 = vunpack.i.h.bf16 %v15722_v59 }
 0x416   : > { %9101 = vmatpush1.bf16.msk.msra.mxu1 %vm18159_vm0, %v15760_v13  ;;  %6517 = vmatprep.mubr.bf16.mxu1 %v17236_v11  ;;  %v6594_v40 = vsel %vm18167_vm9, %v10739_v15, %v10714_v24  ;;  %v10733_v32 = vunpack.i.l.bf16 %v15722_v59  ;;  %vm18171_vm15 = vmmov %vm18167_vm9  ;;  %v9115_v49 = vpack.c.bf16 %v6588_v4, %v6587_v6  ;;  %v18184_v6 = vld [vmem:[#allocation113_spill] sm:$0xff]  ;;  %v10941_v4 = vld [vmem:[#allocation7 + $0x40] sm:$0xff]  }
 0x417   : > { %9113 = vmatprep.subr.msk.bf16.mxu1 %vm18162_vm12, %v9112_v54  ;;  %9081 = vmatmul.mubr.msk.bf16.vlgmr.msra.gmra.mrb[8].mxu0 %vm18157_vm13, %v10940_v12  ;;  %vm18166_vm12 = vmmov %vm18151_vm8  ;;  %v18168_v54 = vld [vmem:[#allocation109_spill] sm:$0xff]  ;;  %v6591_v25 = vsel %vm18171_vm15, %v10713_v22, %v10693_v7 }
 0x418   : > { %9094 = vmatpush1.bf16.msk.msra.mxu0 %vm18165_vm6, %v15771_v10  ;;  %6474 = vmatprep.mubr.bf16.mxu0 %v17236_v11  ;;  %v6593_v37 = vsel %vm18166_vm12, %v10738_v18, %v10713_v22  ;;  %vm18169_vm13 = vnez %v18168_v54  ;;  %vm18172_vm5 = vmmov %vm18167_vm9 }
 0x419   : > { %vm18170_vm8 = vmpackc.low %vm18169_vm13, %vm18169_vm13  ;;  %v6592_v26 = vsel %vm18172_vm5, %v10714_v24, %v10694_v20  ;;  %v9126_v45 = vpack.c.bf16 %v6594_v40, %v6593_v37  ;;  %vm18175_vm13 = vcmask 130048   ;;  %v18179_v20 = vld [vmem:[#allocation112_spill] sm:$0xff]  ;;  %v18187_v37 = vld [vmem:[#allocation114_spill] sm:$0xff] }
 0x41a   : > { %9106 = vmatprep.subr.msk.bf16.mxu0 %vm18170_vm8, %v9105_v47  ;;  %vm18173_vm12 = vmmov %vm18172_vm5  ;;  %v18176_v47 = vld [vmem:[#allocation110_spill] sm:$0xff]  ;;  %v9108_v59 = vpack.c.bf16 %v6592_v26, %v6591_v25  ;;  %v18197_v25 = vld [vmem:[#allocation87_spill] sm:$0xff] }
 0x41b   : > { %v6582_v44 = vsel %vm18173_vm12, %v10734_v43, %v10729_v14  ;;  %vm18174_vm9 = vmmov %vm18172_vm5  ;;  %vm18177_vm8 = vnez %v18176_v47  ;;  %vm18180_vm5 = vnez %v18179_v20  ;;  %v18223_v26 = vld [vmem:[#allocation29_spill] sm:$0xff] }
 0x41c   : > { %v6581_v63 = vsel %vm18174_vm9, %v10733_v32, %v10728_v61  ;;  %vm18178_vm10 = vmpackc.low %vm18177_vm8, %vm18177_vm8  ;;  %v6580_v22 = vsel %vm18174_vm9, %v10729_v14, %v10739_v15 }
 0x41d   : > { %9102 = vmatmul.mubr.msk.bf16.vlgmr.msra.gmra.mrb[12].mxu1 %vm18175_vm13, %v10940_v12  ;;  %vm18181_vm15 = vmpackc.low %vm18180_vm5, %vm18180_vm5  ;;  %v9119_v7 = vpack.c.bf16 %v6582_v44, %v6581_v63  ;;  %v18207_v44 = vld [vmem:[#allocation47_spill] sm:$0xff]  ;;  %v15869_v63 = vpop.permute.xlu1 %10741 }
 0x41e   : > { %9116 = vmatpush1.bf16.msk.msra.mxu1 %vm18178_vm10, %v9115_v49  ;;  %6702 = vmatprep.mubr.bf16.mxu1 %v17236_v11  ;;  %vm18182_vm12 = vmmov %vm18175_vm13  ;;  %vm18185_vm10 = vnez %v18184_v6  ;;  %v18206_v49 = vld [vmem:[#allocation64_spill] sm:$0xff] }
 0x41f   : > { %9127 = vmatprep.subr.msk.bf16.mxu1 %vm18181_vm15, %v9126_v45  ;;  %9095 = vmatmul.mubr.msk.bf16.vlgmr.msra.gmra.mrb[12].mxu0 %vm18182_vm12, %v10940_v12  ;;  %vm18183_vm13 = vmmov %vm18174_vm9  ;;  %vm18188_vm15 = vnez %v18187_v37  ;;  %v18192_v12 = vunpack.i.h.bf16 %v15708_v51 }
 0x420   : > { %v6579_v24 = vsel %vm18183_vm13, %v10728_v61, %v10738_v18  ;;  %vm18186_vm8 = vmpackc.low %vm18185_vm10, %vm18185_vm10  ;;  %6659 = vmatprep.mubr.bf16.mxu0 %v17236_v11  ;;  %v18190_v18 = vunpack.i.l.bf16 %v15708_v51  ;;  %v18194_v61 = vld [vmem:[#allocation115_spill] sm:$0xff]  ;;  %v18200_v51 = vld [vmem:[#allocation116_spill] sm:$0xff] }
 0x421   : > { %9109 = vmatpush1.bf16.msk.msra.mxu0 %vm18186_vm8, %v9108_v59  ;;  %vm18189_vm12 = vmpackc.low %vm18188_vm15, %vm18188_vm15  ;;  %v6584_v45 = vsel %vm18174_vm9, %v18192_v12, %v10734_v43  ;;  %v9129_v14 = vpack.c.bf16 %v6580_v22, %v6579_v24  ;;  %vm18193_vm8 = vcmask 130048   ;;  %vm18195_vm5 = vnez %v18194_v61  ;;  %v18203_v43 = vld [vmem:[#allocation88_spill] sm:$0xff]  ;;  %v10747_v24 = vpop.permute.xlu0 %10746  ;;  %v18213_v22 = vld [vmem:[#allocation97_spill] sm:$0xff] }
 0x422   : > { %9120 = vmatprep.subr.msk.bf16.mxu0 %vm18189_vm12, %v9119_v7  ;;  %vm18191_vm13 = vmmov %vm18174_vm9  ;;  %v18209_v59 = vld [vmem:[#allocation24_spill] sm:$0xff]  ;;  %v18210_v7 = vld [vmem:[#allocation49_spill] sm:$0xff] }
 0x423   : > { %v6583_v15 = vsel %vm18191_vm13, %v18190_v18, %v10733_v32  ;;  %vm18196_vm10 = vmpackc.low %vm18195_vm5, %vm18195_vm5  ;;  %vm18201_vm13 = vnez %v18200_v51  ;;  %v18204_v32 = vld [vmem:[#allocation43_spill] sm:$0xff]  ;;  %v18214_v18 = vld [vmem:[#allocation52_spill] sm:$0xff] }
 0x424   : > { %v9122_v40 = vpack.c.bf16 %v6584_v45, %v6583_v15  ;;  %vm18199_vm12 = vmmov %vm18193_vm8  ;;  %v10942_v15 = vld [vmem:[#allocation7 + $0x48] sm:$0xff]   ;;  %v18217_v45 = vld [vmem:[#allocation54_spill] sm:$0xff] }
 0x425   : > { %9117 = vmatmul.mubr.msk.bf16.vlgmr.msra.gmra.mrb[8].mxu1 %vm18193_vm8, %v10941_v4  ;;  %vm18202_vm9 = vmpackc.low %vm18201_vm13, %vm18201_vm13  ;;  %v18216_v12 = vld [vmem:[#allocation27_spill] sm:$0xff] }
 0x426   : > { %9130 = vmatpush1.bf16.msk.msra.mxu1 %vm18196_vm10, %v9129_v14  ;;  %6788 = vmatprep.mubr.bf16.mxu1 %v17236_v11  ;;  %vm18205_vm10 = vnez %v18204_v32  ;;  %v10752_v14 = vpop.permute.xlu1 %10751  ;;  %v18305_v61 = vld [vmem:[#allocation31_spill] sm:$0xff] }
 0x427   : > { %9142 = vmatprep.subr.msk.bf16.mxu1 %vm17705_vm14, %v18197_v25  ;;  %9110 = vmatmul.mubr.msk.bf16.vlgmr.msra.gmra.mrb[8].mxu0 %vm18199_vm12, %v10941_v4  ;;  %vm18208_vm14 = vnez %v18207_v44  ;;  %vm18211_vm12 = vnez %v18210_v7  ;;  %v18221_v25 = vld [vmem:[#allocation59_spill] sm:$0xff]  ;;  %v10744_v44 = vunpack.i.h.bf16 %v15869_v63  ;;  %v10749_v7 = vunpack.i.h.bf16 %v10747_v24 }
 0x428   : > { %9123 = vmatpush1.bf16.msk.msra.mxu0 %vm18202_vm9, %v9122_v40  ;;  %6745 = vmatprep.mubr.bf16.mxu0 %v17236_v11  ;;  %vm18212_vm9 = vmmov %vm18193_vm8  ;;  %v18220_v40 = vld [vmem:[#allocation28_spill] sm:$0xff] }
 0x429   : > { %9135 = vmatprep.subr.msk.bf16.mxu0 %vm18205_vm10, %v18203_v43  ;;  %vm18215_vm10 = vnez %v18214_v18  ;;  %v18224_v43 = vld [vmem:[#allocation63_spill] sm:$0xff] }
 0x42a   : > { %v15898_v32 = vpop.permute.xlu1 %10761 }
 0x42b   : > { %v10763_v36 = vunpack.i.l.bf16 %v15898_v32 }
 0x42d   : > { %9131 = vmatmul.mubr.msk.bf16.vlgmr.msra.gmra.mrb[12].mxu1 %vm18193_vm8, %v10941_v4  ;;  %vm18218_vm8 = vnez %v18217_v45  ;;  %v10753_v45 = vunpack.i.l.bf16 %v10752_v14 }
 0x42e   : > { %9145 = vmatpush1.bf16.msk.msra.mxu1 %vm18208_vm14, %v18206_v49  ;;  %6901 = vmatprep.mubr.bf16.mxu1 %v17236_v11  ;;  %vm18219_vm14 = vmmov %vm18212_vm9 }
 0x42f   : > { %9156 = vmatprep.subr.msk.bf16.mxu1 %vm18211_vm12, %v18209_v59  ;;  %9124 = vmatmul.mubr.msk.bf16.vlgmr.msra.gmra.mrb[12].mxu0 %vm18212_vm9, %v10941_v4  ;;  %vm18222_vm12 = vnez %v18221_v25  ;;  %v10757_v4 = vpop.permute.xlu0 %10756  ;;  %v10743_v59 = vunpack.i.l.bf16 %v15869_v63 }
 0x430   : > { %9138 = vmatpush1.bf16.msk.msra.mxu0 %vm18215_vm10, %v18213_v22  ;;  %6858 = vmatprep.mubr.bf16.mxu0 %v17236_v11  ;;  %vm18225_vm10 = vnez %v18224_v43  ;;  %v10758_v42 = vunpack.i.l.bf16 %v10757_v4  ;;  %v10748_v22 = vunpack.i.l.bf16 %v10747_v24  ;;  %v10767_v24 = vpop.permute.xlu1 %10766 }
 0x431   : > { %9149 = vmatprep.subr.msk.bf16.mxu0 %vm18218_vm8, %v18216_v12  ;;  %vm18226_vm8 = vmmov %vm18212_vm9  ;;  %v10754_v12 = vunpack.i.h.bf16 %v10752_v14  ;;  %v10768_v25 = vunpack.i.l.bf16 %v10767_v24 }
 0x433   : > { %v15900_v49 = vpop.permute.xlu0 %10771 }
 0x434   : > { %v10774_v43 = vunpack.i.h.bf16 %v15900_v49 }
 0x435   : > { %9146 = vmatmul.mubr.msk.bf16.vlgmr.msra.gmra.mrb[8].mxu1 %vm18219_vm14, %v10942_v15 }
 0x436   : > { %9159 = vmatpush1.bf16.msk.msra.mxu1 %vm18222_vm12, %v18220_v40  ;;  %6987 = vmatprep.mubr.bf16.mxu1 %v17236_v11 }
 0x437   : > { %9171 = vmatprep.subr.msk.bf16.mxu1 %vm18131_vm7, %v15641_v39  ;;  %9139 = vmatmul.mubr.msk.bf16.vlgmr.msra.gmra.mrb[8].mxu0 %vm18212_vm9, %v10942_v15  ;;  %v10764_v39 = vunpack.i.h.bf16 %v15898_v32  ;;  %vm18228_vm7 = vcmp.lt.s32.totalorder %v11681_v35, 96  ;;  %v10777_v34 = vpop.permute.xlu0 %10776 }
 0x438   : > { %9152 = vmatpush1.bf16.msk.msra.mxu0 %vm18225_vm10, %v18223_v26  ;;  %6944 = vmatprep.mubr.bf16.mxu0 %v17236_v11  ;;  %v10779_v18 = vunpack.i.h.bf16 %v10777_v34  ;;  %v18241_v26 = vld [vmem:[#allocation45_spill] sm:$0xff] }
 0x439   : > { %9164 = vmatprep.subr.msk.bf16.mxu0 %vm13618_vm4, %v15653_v23  ;;  %v10759_v23 = vunpack.i.h.bf16 %v10757_v4  ;;  %vm18227_vm4 = vmmov %vm18226_vm8 }
 0x43a   : > { %vm18232_vm14 = vmmov %vm18227_vm4 }
 0x43b   : > { %vm18236_vm9 = vmmov %vm18227_vm4 }
 0x43d   : > { %9160 = vmatmul.mubr.msk.bf16.vlgmr.msra.gmra.mrb[12].mxu1 %vm18226_vm8, %v10942_v15 }
 0x43e   : > { %9174 = vmatpush1.bf16.msk.msra.mxu1 %vm18143_vm1, %v15694_v9  ;;  %7100 = vmatprep.mubr.bf16.mxu1 %v17236_v11  ;;  %v10943_v9 = vld [vmem:[#allocation7 + $0x50] sm:$0xff]   ;;  %vm18229_vm1 = vmmov %vm18228_vm7 }
 0x43f   : > { %9185 = vmatprep.subr.msk.bf16.mxu1 %vm18147_vm2, %v15710_v57  ;;  %9153 = vmatmul.mubr.msk.bf16.vlgmr.msra.gmra.mrb[12].mxu0 %vm18227_vm4, %v10942_v15  ;;  %v7255_v57 = vsel %vm18228_vm7, %v10759_v23, %v10764_v39  ;;  %v7254_v19 = vsel %vm18229_vm1, %v10758_v42, %v10763_v36  ;;  %vm18230_vm2 = vmmov %vm18229_vm1  ;;  %v10778_v15 = vunpack.i.l.bf16 %v10777_v34  ;;  %vm18242_vm7 = vnez %v18241_v26 }
 0x440   : > { %9167 = vmatpush1.bf16.msk.msra.mxu0 %vm18149_vm3, %v15718_v38  ;;  %7057 = vmatprep.mubr.bf16.mxu0 %v17236_v11  ;;  %v7258_v38 = vsel %vm18230_vm2, %v10743_v59, %v10748_v22  ;;  %vm18231_vm3 = vmmov %vm18229_vm1  ;;  %v9199_v63 = vpack.c.bf16 %v7255_v57, %v7254_v19  ;;  %v18249_v19 = vld [vmem:[#allocation48_spill] sm:$0xff] }
 0x441   : > { %9178 = vmatprep.subr.msk.bf16.mxu0 %vm18153_vm11, %v15724_v29  ;;  %v7259_v3 = vsel %vm18231_vm3, %v10744_v44, %v10749_v7  ;;  %v18233_v29 = vld [vmem:[#allocation41_spill] sm:$0xff]  ;;  %vm18237_vm10 = vmmov %vm18229_vm1 }
 0x442   : > { %vm18234_vm11 = vnez %v18233_v29  ;;  %v9192_v0 = vpack.c.bf16 %v7259_v3, %v7258_v38  ;;  %v7256_v40 = vsel %vm18237_vm10, %v10748_v22, %v10758_v42  ;;  %vm18238_vm8 = vmmov %vm18229_vm1  ;;  %v18258_v3 = vld [vmem:[#allocation55_spill] sm:$0xff]  ;;  %v18267_v29 = vld [vmem:[#allocation57_spill] sm:$0xff] }
 0x443   : > { %vm18235_vm12 = vmpackc.low %vm18234_vm11, %vm18234_vm11  ;;  %v7257_v27 = vsel %vm18238_vm8, %v10749_v7, %v10759_v23  ;;  %v10773_v23 = vunpack.i.l.bf16 %v15900_v49 }
 0x444   : > { %v9202_v42 = vpack.c.bf16 %v7257_v27, %v7256_v40  ;;  %vm18248_vm11 = vmmov %vm18236_vm9 }
 0x445   : > { %9175 = vmatmul.mubr.msk.bf16.vlgmr.msra.gmra.mrb[8].mxu1 %vm18232_vm14, %v10943_v9 }
 0x446   : > { %9188 = vmatpush1.bf16.msk.msra.mxu1 %vm18159_vm0, %v15760_v13  ;;  %7186 = vmatprep.mubr.bf16.mxu1 %v17236_v11  ;;  %v10769_v13 = vunpack.i.h.bf16 %v10767_v24  ;;  %vm18239_vm0 = vmmov %vm18229_vm1  ;;  %v18261_v24 = vld [vmem:[#allocation60_spill] sm:$0xff] }
 0x447   : > { %9200 = vmatprep.subr.msk.bf16.mxu1 %vm18235_vm12, %v9199_v63  ;;  %9168 = vmatmul.mubr.msk.bf16.vlgmr.msra.gmra.mrb[8].mxu0 %vm18236_vm9, %v10943_v9  ;;  %v7262_v4 = vsel %vm18239_vm0, %v10778_v15, %v10753_v45  ;;  %vm18240_vm4 = vmmov %vm18239_vm0  ;;  %vm18250_vm12 = vnez %v18249_v19  ;;  %v10944_v63 = vld [vmem:[#allocation7 + $0x58] sm:$0xff]  }
 0x448   : > { %9181 = vmatpush1.bf16.msk.msra.mxu0 %vm18165_vm6, %v15771_v10  ;;  %7143 = vmatprep.mubr.bf16.mxu0 %v17236_v11  ;;  %v7263_v14 = vsel %vm18240_vm4, %v10779_v18, %v10754_v12  ;;  %vm18243_vm1 = vmpackc.low %vm18242_vm7, %vm18242_vm7 }
 0x449   : > { %9193 = vmatprep.subr.msk.bf16.mxu0 %vm18243_vm1, %v9192_v0  ;;  %vm18244_vm6 = vmmov %vm18239_vm0  ;;  %v9213_v57 = vpack.c.bf16 %v7263_v14, %v7262_v4  ;;  %vm18259_vm1 = vnez %v18258_v3 }
 0x44a   : > { %v7260_v10 = vsel %vm18244_vm6, %v10753_v45, %v10743_v59  ;;  %vm18245_vm2 = vmmov %vm18239_vm0 }
 0x44b   : > { %v7261_v62 = vsel %vm18245_vm2, %v10754_v12, %v10744_v44  ;;  %vm18246_vm3 = vmmov %vm18239_vm0  ;;  %v18252_v44 = vld [vmem:[#allocation50_spill] sm:$0xff] }
 0x44c   : > { %v7251_v7 = vsel %vm18246_vm3, %v10774_v43, %v10769_v13  ;;  %vm18247_vm14 = vmmov %vm18239_vm0  ;;  %v9195_v49 = vpack.c.bf16 %v7261_v62, %v7260_v10  ;;  %vm18253_vm10 = vnez %v18252_v44 }
 0x44d   : > { %v7250_v22 = vsel %vm18247_vm14, %v10773_v23, %v10768_v25  ;;  %9189 = vmatmul.mubr.msk.bf16.vlgmr.msra.gmra.mrb[12].mxu1 %vm18248_vm11, %v10943_v9  ;;  %vm18251_vm9 = vmpackc.low %vm18250_vm12, %vm18250_vm12 }
 0x44e   : > { %9203 = vmatpush1.bf16.msk.msra.mxu1 %vm18251_vm9, %v9202_v42  ;;  %7371 = vmatprep.mubr.bf16.mxu1 %v17236_v11  ;;  %vm18254_vm8 = vmpackc.low %vm18253_vm10, %vm18253_vm10  ;;  %v9206_v59 = vpack.c.bf16 %v7251_v7, %v7250_v22  ;;  %vm18268_vm9 = vnez %v18267_v29 }
 0x44f   : > { %9214 = vmatprep.subr.msk.bf16.mxu1 %vm18254_vm8, %v9213_v57  ;;  %vm18255_vm0 = vmmov %vm18248_vm11 }
 0x450   : > { %9182 = vmatmul.mubr.msk.bf16.vlgmr.msra.gmra.mrb[12].mxu0 %vm18255_vm0, %v10943_v9  ;;  %vm18256_vm4 = vmmov %vm18245_vm2 }
 0x451   : > { %v7248_v34 = vsel %vm18256_vm4, %v10768_v25, %v10778_v15  ;;  %vm18257_vm7 = vmmov %vm18245_vm2  ;;  %7328 = vmatprep.mubr.bf16.mxu0 %v17236_v11  ;;  %vm18262_vm2 = vnez %v18261_v24  ;;  %v18284_v24 = vld [vmem:[#allocation79_spill] sm:$0xff] }
 0x452   : > { %v7249_v38 = vsel %vm18257_vm7, %v10769_v13, %v10779_v18  ;;  %vm18260_vm6 = vmpackc.low %vm18259_vm1, %vm18259_vm1  ;;  %v10787_v32 = vpop.permute.xlu1 %10786 }
 0x453   : > { %9196 = vmatpush1.bf16.msk.msra.mxu0 %vm18260_vm6, %v9195_v49  ;;  %vm18263_vm3 = vmpackc.low %vm18262_vm2, %vm18262_vm2  ;;  %v9216_v15 = vpack.c.bf16 %v7249_v38, %v7248_v34  ;;  %v10789_v26 = vunpack.i.h.bf16 %v10787_v32  ;;  %vm18276_vm6 = vcmp.lt.s32.totalorder %v11681_v35, 16 }
 0x454   : > { %9207 = vmatprep.subr.msk.bf16.mxu0 %vm18263_vm3, %v9206_v59  ;;  %vm18264_vm14 = vmmov %vm18256_vm4  ;;  %vm18278_vm3 = vcmp.lt.s32.totalorder %v11681_v35, 112  ;;  %v18280_v59 = vld [vmem:[#allocation37_spill] sm:$0xff] }
 0x455   : > { %v7252_v9 = vsel %vm18264_vm14, %v10763_v36, %v10773_v23  ;;  %vm18265_vm11 = vmmov %vm18256_vm4  ;;  %v18271_v36 = vld [vmem:[#allocation65_spill] sm:$0xff] }
 0x456   : > { %v7253_v18 = vsel %vm18265_vm11, %v10764_v39, %v10774_v43  ;;  %vm18266_vm12 = vmmov %vm18255_vm0  ;;  %v10782_v39 = vpop.permute.xlu0 %10781  ;;  %v10788_v43 = vunpack.i.l.bf16 %v10787_v32  ;;  %vm18281_vm11 = vnez %v18280_v59 }
 0x457   : > { %9204 = vmatmul.mubr.msk.bf16.vlgmr.msra.gmra.mrb[8].mxu1 %vm18266_vm12, %v10944_v63  ;;  %vm18269_vm10 = vmpackc.low %vm18268_vm9, %vm18268_vm9  ;;  %v9209_v0 = vpack.c.bf16 %v7253_v18, %v7252_v9  ;;  %v10784_v4 = vunpack.i.h.bf16 %v10782_v39  ;;  %v10783_v14 = vunpack.i.l.bf16 %v10782_v39 }
 0x458   : > { %9217 = vmatpush1.bf16.msk.msra.mxu1 %vm18269_vm10, %v9216_v15  ;;  %7457 = vmatprep.mubr.bf16.mxu1 %v17236_v11  ;;  %vm18270_vm8 = vmmov %vm18255_vm0  ;;  %vm18272_vm0 = vnez %v18271_v36  ;;  %vm18285_vm10 = vnez %v18284_v24  ;;  %v18286_v15 = vld [vmem:[#allocation96_spill] sm:$0xff] }
 0x459   : > { %9197 = vmatmul.mubr.msk.bf16.vlgmr.msra.gmra.mrb[8].mxu0 %vm18270_vm8, %v10944_v63  ;;  %vm18273_vm4 = vmpackc.low %vm18272_vm0, %vm18272_vm0 }
 0x45a   : > { %9210 = vmatpush1.bf16.msk.msra.mxu0 %vm18273_vm4, %v9209_v0  ;;  %7414 = vmatprep.mubr.bf16.mxu0 %v17236_v11  ;;  %vm18274_vm7 = vmmov %vm18270_vm8  ;;  %vm18287_vm8 = vnez %v18286_v15 }
 0x45b   : > { %vm18275_vm1 = vmmov %vm18274_vm7 }
 0x45c   : > { %vm18277_vm2 = vmmov %vm18276_vm6 }
 0x45d   : > { %vm18279_vm14 = vmmov %vm18278_vm3 }
 0x45e   : > { %v10797_v12 = vpop.permute.xlu1 %10796  ;;  %v10792_v45 = vpop.permute.xlu0 %10791  ;;  %vm18282_vm12 = vmmov %vm18278_vm3 }
 0x45f   : > { %9218 = vmatmul.mubr.msk.bf16.vlgmr.msra.gmra.mrb[12].mxu1 %vm18274_vm7, %v10944_v63  ;;  %v10799_v40 = vunpack.i.h.bf16 %v10797_v12  ;;  %v10798_v27 = vunpack.i.l.bf16 %v10797_v12  ;;  %v10794_v13 = vunpack.i.h.bf16 %v10792_v45  ;;  %v10793_v25 = vunpack.i.l.bf16 %v10792_v45  ;;  %vm18283_vm9 = vmmov %vm18278_vm3 }
 0x460   : > { %7578 = vmatprep.mubr.bf16.mxu1 %v17236_v11  ;;  %vm18288_vm0 = vmmov %vm18277_vm2 }
 0x461   : > { %9211 = vmatmul.mubr.msk.bf16.vlgmr.msra.gmra.mrb[12].mxu0 %vm18275_vm1, %v10944_v63  ;;  %v4451_v23 = vsel %vm18276_vm6, %v10783_v14, %v10798_v27  ;;  %v4452_v10 = vsel %vm18277_vm2, %v10784_v4, %v10799_v40  ;;  %v4516_v7 = vsel %vm18278_vm3, %v10789_v26, %v10794_v13  ;;  %v4515_v22 = vsel %vm18279_vm14, %v10788_v43, %v10793_v25  ;;  %vm18289_vm4 = vmmov %vm18288_vm0 }
 0x462   : > { %7535 = vmatprep.mubr.bf16.mxu0 %v17236_v11  ;;  %v4459_v34 = vsel %vm18281_vm11, %v4451_v23, -inf  ;;  %v4467_v38 = vsel %vm18281_vm11, %v4452_v10, -inf  ;;  %v4530_v9 = vsel %vm18285_vm10, %v4516_v7, -inf  ;;  %v4522_v18 = vsel %vm18285_vm10, %v4515_v22, -inf  ;;  %vm18290_vm7 = vmmov %vm18288_vm0 }
 0x463   : > { %v10807_v62 = vpop.permute.xlu1 %10806  ;;  %vm18291_vm1 = vmmov %vm18288_vm0 }
 0x464   : > { %v16030_v42 = vpop.permute.xlu0 %10801  ;;  %v10809_v57 = vunpack.i.h.bf16 %v10807_v62  ;;  %v10808_v19 = vunpack.i.l.bf16 %v10807_v62  ;;  %vm18294_vm2 = vmmov %vm18278_vm3 }
 0x465   : > { %v17126_v49 = vunpack.i.h.bf16 %v16030_v42  ;;  %v10803_v44 = vunpack.i.l.bf16 %v16030_v42  ;;  %vm18295_vm3 = vmmov %vm18294_vm2 }
 0x466   : > { %v4513_v3 = vsel %vm18282_vm12, %v10793_v25, %v10808_v19  ;;  %v4514_v63 = vsel %vm18283_vm9, %v10794_v13, %v10809_v57  ;;  %vm18300_vm12 = vmmov %vm18288_vm0 }
 0x467   : > { %v4523_v29 = vsel %vm18287_vm8, %v4513_v3, -inf  ;;  %v4531_v0 = vsel %vm18287_vm8, %v4514_v63, -inf  ;;  %v10812_v36 = vpop.permute.xlu1 %10811  ;;  %v4450_v13 = vsel %vm18288_vm0, %v10799_v40, %v17126_v49  ;;  %v4449_v23 = vsel %vm18289_vm4, %v10798_v27, %v10803_v44  ;;  %vm18301_vm9 = vmmov %vm18288_vm0 }
 0x468   : > { %v16054_v32 = vpop.permute.xlu0 %10821  ;;  %v4539_v39 = vmax.f32 %v4459_v34, %v4523_v29  ;;  %v4547_v12 = vmax.f32 %v4467_v38, %v4531_v0  ;;  %v10814_v45 = vunpack.i.h.bf16 %v10812_v36  ;;  %v10813_v25 = vunpack.i.l.bf16 %v10812_v36  ;;  %v18292_v38 = vld [vmem:[#allocation36_spill] sm:$0xff]  ;;  %vm18304_vm4 = vmmov %vm18294_vm2 }
 0x469   : > { %v17123_v10 = vunpack.i.h.bf16 %v16054_v32  ;;  %v17124_v62 = vunpack.i.l.bf16 %v16054_v32  ;;  %vm18293_vm6 = vnez %v18292_v38 }
 0x46a   : > { %v4453_v7 = vsel %vm18290_vm7, %v10813_v25, %v10783_v14  ;;  %v4454_v22 = vsel %vm18291_vm1, %v10814_v45, %v10784_v4  ;;  %v4555_v59 = vmax.f32 %v15340_v5, %v4539_v39  ;;  %v4563_v34 = vmax.f32 %v15333_v52, %v4547_v12  ;;  %v18296_v52 = vld [vmem:[#allocation35_spill] sm:$0xff]  ;;  %v18298_v39 = vld [vmem:[#allocation100_spill] sm:$0xff]  ;;  %vm18307_vm1 = vmmov %vm18294_vm2 }
 0x46b   : > { %v4458_v40 = vsel %vm18293_vm6, %v4453_v7, -inf  ;;  %v4466_v27 = vsel %vm18293_vm6, %v4454_v22, -inf  ;;  %v4518_v3 = vsel %vm18294_vm2, %v17123_v10, %v10789_v26  ;;  %v4517_v4 = vsel %vm18295_vm3, %v17124_v62, %v10788_v43  ;;  %v16082_v14 = vpop.permute.xlu1 %10816  ;;  %vm18308_vm6 = vmmov %vm18301_vm9 }
 0x46c   : > { %v10827_v5 = vpop.permute.xlu0 %10826  ;;  %vm18297_vm14 = vnez %v18296_v52  ;;  %v10819_v0 = vunpack.i.h.bf16 %v16082_v14  ;;  %v17125_v36 = vunpack.i.l.bf16 %v16082_v14  ;;  %vm18299_vm11 = vnez %v18298_v39  ;;  %v18302_v52 = vld [vmem:[#allocation39_spill] sm:$0xff]  ;;  %vm18310_vm2 = vmmov %vm18308_vm6 }
 0x46d   : > { %v4468_v63 = vsel %vm18297_vm14, %v4450_v13, -inf  ;;  %v4460_v29 = vsel %vm18297_vm14, %v4449_v23, -inf  ;;  %v4529_v26 = vsel %vm18299_vm11, %v4518_v3, -inf  ;;  %v4521_v12 = vsel %vm18299_vm11, %v4517_v4, -inf  ;;  %vm18311_vm3 = vmmov %vm18310_vm2 }
 0x46e   : > { %v10829_v43 = vunpack.i.h.bf16 %v10827_v5  ;;  %v10828_v7 = vunpack.i.l.bf16 %v10827_v5  ;;  %v4455_v13 = vsel %vm18300_vm12, %v17125_v36, %v10813_v25  ;;  %v4456_v23 = vsel %vm18301_vm9, %v10819_v0, %v10814_v45  ;;  %vm18316_vm9 = vmmov %vm18310_vm2 }
 0x46f   : > { %v4538_v22 = vmax.f32 %v4458_v40, %v4522_v18  ;;  %v4546_v38 = vmax.f32 %v4466_v27, %v4530_v9  ;;  %vm18303_vm0 = vnez %v18302_v52  ;;  %v10832_v10 = vpop.permute.xlu1 %10831  ;;  %v16110_v25 = vpack.c.bf16 %v4563_v34, %v4555_v59 }
 0x470   : > { %v4457_v3 = vsel %vm18303_vm0, %v4455_v13, -inf  ;;  %v4465_v4 = vsel %vm18303_vm0, %v4456_v23, -inf  ;;  %v4512_v5 = vsel %vm18304_vm4, %v10809_v57, %v10829_v43  ;;  %vm18306_vm7 = vnez %v18305_v61  ;;  %vm18317_vm0 = vmmov %vm18307_vm1 }
 0x471   : > { %v4537_v36 = vmax.f32 %v4457_v3, %v4521_v12  ;;  %v4545_v49 = vmax.f32 %v4465_v4, %v4529_v26  ;;  %v4532_v18 = vsel %vm18306_vm7, %v4512_v5, -inf  ;;  %v4511_v9 = vsel %vm18307_vm1, %v10808_v19, %v10828_v7  ;;  %vm18318_vm4 = vmmov %vm18317_vm0 }
 0x472   : > { %v16108_v62 = vpop.permute.xlu0 %10836  ;;  %v10834_v45 = vunpack.i.h.bf16 %v10832_v10  ;;  %v10833_v40 = vunpack.i.l.bf16 %v10832_v10  ;;  %v4554_v57 = vmax.f32 %v15216_v2, %v4538_v22  ;;  %v4562_v23 = vmax.f32 %v15219_v48, %v4546_v38  ;;  %v18312_v22 = vld [vmem:[#allocation51_spill] sm:$0xff]  ;;  %vm18319_vm1 = vmmov %vm18317_vm0 }
 0x473   : > { %v10839_v27 = vunpack.i.h.bf16 %v16108_v62  ;;  %v10838_v13 = vunpack.i.l.bf16 %v16108_v62  ;;  %v4553_v59 = vmax.f32 %v15327_v1, %v4537_v36  ;;  %v4561_v34 = vmax.f32 %v15330_v16, %v4545_v49  ;;  %v10842_v62 = vpop.permute.xlu1 %10841  ;;  %v18314_v49 = vld [vmem:[#allocation42_spill] sm:$0xff] }
 0x474   : > { %v4524_v26 = vsel %vm18306_vm7, %v4511_v9, -inf  ;;  %v4447_v19 = vsel %vm18308_vm6, %v10803_v44, %v10833_v40  ;;  %v18309_v10 = vunpack.i.h.bf16 %v16030_v42  ;;  %vm18313_vm14 = vnez %v18312_v22 }
 0x475   : > { %v4446_v2 = vsel %vm18311_vm3, %v10834_v45, %v10839_v27  ;;  %v4461_v1 = vsel %vm18313_vm14, %v4447_v19, -inf  ;;  %vm18315_vm12 = vnez %v18314_v49  ;;  %v4445_v42 = vsel %vm18316_vm9, %v10833_v40, %v10838_v13  ;;  %vm18324_vm3 = vmmov %vm18317_vm0 }
 0x476   : > { %v4448_v12 = vsel %vm18310_vm2, %v18309_v10, %v10834_v45  ;;  %v10847_v48 = vpop.permute.xlu0 %10846  ;;  %v4470_v36 = vsel %vm18315_vm12, %v4446_v2, -inf  ;;  %v7488_v44 = vpack.c.bf16 %v4562_v23, %v4554_v57  ;;  %v10844_v38 = vunpack.i.h.bf16 %v10842_v62  ;;  %v10945_v2 = vld [vmem:[#allocation7 + $0x60] sm:$0xff]  }
 0x477   : > { %v4469_v16 = vsel %vm18313_vm14, %v4448_v12, -inf  ;;  %v10843_v52 = vunpack.i.l.bf16 %v10842_v62  ;;  %v10849_v3 = vunpack.i.h.bf16 %v10847_v48  ;;  %v10848_v4 = vunpack.i.l.bf16 %v10847_v48  ;;  %v10852_v57 = vpop.permute.xlu1 %10851  ;;  %v18320_v62 = vld [vmem:[#allocation107_spill] sm:$0xff] }
 0x478   : > { %v7487_v5 = vpack.c.bf16 %v4561_v34, %v4553_v59  ;;  %v4540_v9 = vmax.f32 %v4460_v29, %v4524_v26  ;;  %v4548_v45 = vmax.f32 %v4468_v63, %v4532_v18  ;;  %v4462_v19 = vsel %vm18315_vm12, %v4445_v42, -inf  ;;  %7503 = vmatprep.subr.bf16.mxu0 %v7488_v44  ;;  %v18322_v18 = vld [vmem:[#allocation102_spill] sm:$0xff]  ;;  %vm18327_vm12 = vmmov %vm18316_vm9 }
 0x479   : > { %v4509_v10 = vsel %vm18317_vm0, %v10828_v7, %v10843_v52  ;;  %v4510_v12 = vsel %vm18318_vm4, %v10829_v43, %v10844_v38  ;;  %v4508_v40 = vsel %vm18319_vm1, %v10844_v38, %v10849_v3  ;;  %vm18321_vm6 = vnez %v18320_v62  ;;  %vm18328_vm0 = vmmov %vm18316_vm9 }
 0x47a   : > { %v10857_v23 = vpop.permute.xlu0 %10856  ;;  %v4525_v29 = vsel %vm18321_vm6, %v4509_v10, -inf  ;;  %v4533_v63 = vsel %vm18321_vm6, %v4510_v12, -inf  ;;  %vm18323_vm2 = vnez %v18322_v18  ;;  %v4507_v7 = vsel %vm18324_vm3, %v10843_v52, %v10848_v4  ;;  %7504 = vmatpush1.bf16.msra.mxu0 %v7487_v5  ;;  %vm18329_vm4 = vmmov %vm18328_vm0 }
 0x47b   : > { %v4534_v59 = vsel %vm18323_vm2, %v4508_v40, -inf  ;;  %v4541_v43 = vmax.f32 %v4461_v1, %v4525_v29  ;;  %v4549_v34 = vmax.f32 %v4469_v16, %v4533_v63  ;;  %v4526_v26 = vsel %vm18323_vm2, %v4507_v7, -inf  ;;  %v18340_v63 = vld [vmem:[#allocation104_spill] sm:$0xff]  ;;  %v18342_v7 = vld [vmem:[#allocation98_spill] sm:$0xff] }
 0x47c   : > { %v4556_v48 = vmax.f32 %v15354_v17, %v4540_v9  ;;  %v4564_v22 = vmax.f32 %v15343_v56, %v4548_v45  ;;  %v10854_v49 = vunpack.i.h.bf16 %v10852_v57  ;;  %v10853_v42 = vunpack.i.l.bf16 %v10852_v57  ;;  %v18332_v45 = vld [vmem:[#allocation38_spill] sm:$0xff] }
 0x47d   : > { %v10859_v44 = vunpack.i.h.bf16 %v10857_v23  ;;  %v10858_v38 = vunpack.i.l.bf16 %v10857_v23  ;;  %vm18325_vm14 = vcmask 130048   ;;  %v4542_v10 = vmax.f32 %v4462_v19, %v4526_v26 }
 0x47e   : > { %9220 = vmatmul.mubr.msk.bf16.vlgmr.msra.gmra.mrb[8].mxu0 %vm18325_vm14, %v10945_v2  ;;  %v4550_v12 = vmax.f32 %v4470_v36, %v4534_v59  ;;  %v4557_v52 = vmax.f32 %v15367_v21, %v4541_v43  ;;  %v7490_v5 = vpack.c.bf16 %v4564_v22, %v4556_v48  ;;  %v18326_v1 = vunpack.i.l.bf16 %v16082_v14  ;;  %v18330_v21 = vld [vmem:[#allocation44_spill] sm:$0xff] }
 0x47f   : > { %v4442_v56 = vsel %vm18316_vm9, %v10854_v49, %v10819_v0  ;;  %v4443_v17 = vsel %vm18328_vm0, %v10838_v13, %v10853_v42  ;;  %7621 = vmatprep.mubr.bf16.mxu0 %v17236_v11  ;;  %v4444_v36 = vsel %vm18329_vm4, %v10839_v27, %v10854_v49  ;;  %vm18331_vm1 = vnez %v18330_v21 }
 0x480   : > { %v4441_v16 = vsel %vm18327_vm12, %v10853_v42, %v18326_v1  ;;  %v4463_v9 = vsel %vm18331_vm1, %v4443_v17, -inf  ;;  %vm18333_vm3 = vnez %v18332_v45  ;;  %7546 = vmatprep.subr.bf16.mxu1 %v7490_v5  ;;  %v4471_v0 = vsel %vm18331_vm1, %v4444_v36, -inf  ;;  %v8025_v17 = vld [vmem:[#allocation8 + $0x410] sm:$0xff]  ;;  %v7900_v36 = vld [vmem:[#allocation8 + $0x28] sm:$0xff] }
 0x481   : > { %v4464_v19 = vsel %vm18333_vm3, %v4441_v16, -inf  ;;  %v4472_v14 = vsel %vm18333_vm3, %v4442_v56, -inf  ;;  %vm18334_vm14 = vcmp.lt.s32.totalorder %v11681_v35, 112  ;;  %v18336_v27 = vunpack.i.l.bf16 %v16054_v32  ;;  %7547 = vmatpush1.bf16.msra.mxu1 %v16110_v25  ;;  %v8028_v45 = vld [vmem:[#allocation8 + $0x428] sm:$0xff] }
 0x482   : > { %v4505_v13 = vsel %vm18334_vm14, %v10848_v4, %v10858_v38  ;;  %vm18335_vm12 = vmmov %vm18334_vm14  ;;  %v18338_v23 = vunpack.i.h.bf16 %v16054_v32  ;;  %vm18341_vm4 = vnez %v18340_v63  ;;  %vm18343_vm1 = vnez %v18342_v7 }
 0x483   : > { %v4506_v40 = vsel %vm18335_vm12, %v10849_v3, %v10859_v44  ;;  %vm18337_vm9 = vmmov %vm18335_vm12  ;;  %v4527_v59 = vsel %vm18341_vm4, %v4505_v13, -inf  ;;  %v4558_v32 = vmax.f32 %v15467_v41, %v4542_v10  ;;  %v4566_v22 = vmax.f32 %v15452_v8, %v4550_v12  ;;  %v8026_v10 = vld [vmem:[#allocation8 + $0x418] sm:$0xff]  ;;  %v7897_v12 = vld [vmem:[#allocation8 + $0x10] sm:$0xff] }
 0x484   : > { %v4519_v57 = vsel %vm18337_vm9, %v10858_v38, %v18336_v27  ;;  %vm18339_vm0 = vmmov %vm18337_vm9  ;;  %v4535_v4 = vsel %vm18341_vm4, %v4506_v40, -inf  ;;  %v4543_v26 = vmax.f32 %v4463_v9, %v4527_v59  ;;  %v4565_v49 = vmax.f32 %v15370_v53, %v4549_v34  ;;  %v7896_v53 = vld [vmem:[#allocation8 + $0x8] sm:$0xff]  ;;  %v7902_v9 = vld [vmem:[#allocation8 + $0x38] sm:$0xff] }
 0x485   : > { %v4520_v29 = vsel %vm18339_vm0, %v10859_v44, %v18338_v23  ;;  %v4528_v43 = vsel %vm18343_vm1, %v4519_v57, -inf  ;;  %v4551_v48 = vmax.f32 %v4471_v0, %v4535_v4  ;;  %vm18344_vm3 = vcmask 130048   ;;  %v7899_v0 = vld [vmem:[#allocation8 + $0x20] sm:$0xff]  ;;  %v7901_v13 = vld [vmem:[#allocation8 + $0x30] sm:$0xff]  ;;  %v7904_v23 = vld [vmem:[#allocation8 + $0x48] sm:$0xff] }
 0x486   : > { %v4536_v3 = vsel %vm18343_vm1, %v4520_v29, -inf  ;;  %v4544_v42 = vmax.f32 %v4464_v19, %v4528_v43  ;;  %9221 = vmatmul.mubr.msk.bf16.vlgmr.msra.gmra.mrb[8].mxu1 %vm18344_vm3, %v10945_v2  ;;  %v4559_v38 = vmax.f32 %v15549_v46, %v4543_v26  ;;  %v7492_v25 = vpack.c.bf16 %v4566_v22, %v4558_v32  ;;  %vm18345_vm14 = vmmov %vm18344_vm3  ;;  %v7898_v46 = vld [vmem:[#allocation8 + $0x18] sm:$0xff]  ;;  %v8027_v40 = vld [vmem:[#allocation8 + $0x420] sm:$0xff] }
 0x487   : > { %v4552_v44 = vmax.f32 %v4472_v14, %v4536_v3  ;;  %v4567_v5 = vmax.f32 %v15562_v28, %v4551_v48  ;;  %v7491_v1 = vpack.c.bf16 %v4565_v49, %v4557_v52  ;;  %7664 = vmatprep.mubr.bf16.mxu1 %v17236_v11  ;;  %vm18346_vm12 = vmmov %vm18344_vm3  ;;  %v8024_v28 = vld [vmem:[#allocation8 + $0x408] sm:$0xff]  ;;  %v9239_v34 = vpack.c.bf16 %v7898_v46, %v7896_v53  ;;  %v8023_v11 = vld [vmem:[#allocation8 + $0x400] sm:$0xff] }
 0x488   : > { %v4560_v16 = vmax.f32 %v15470_v31, %v4544_v42  ;;  %7589 = vmatprep.subr.bf16.mxu0 %v7492_v25  ;;  %v7895_v31 = vld [vmem:[#allocation8] sm:$0xff]  ;;  %v9369_v21 = vpack.c.bf16 %v8025_v17, %v8023_v11  ;;  %v8030_v19 = vld [vmem:[#allocation8 + $0x438] sm:$0xff]  ;;  %v9245_v27 = vpack.c.bf16 %v7901_v13, %v7899_v0  ;;  %v8029_v57 = vld [vmem:[#allocation8 + $0x430] sm:$0xff]  ;;  %vm18347_vm9 = vcmp.lt.s32.totalorder %v11681_v35, 127 }
 0x489   : > { %v4568_v56 = vmax.f32 %v15473_v50, %v4552_v44  ;;  %v7493_v41 = vpack.c.bf16 %v4567_v5, %v4559_v38  ;;  %7590 = vmatpush1.bf16.msra.mxu0 %v7491_v1  ;;  %v9367_v50 = vpack.c.bf16 %v8026_v10, %v8024_v28  ;;  %v9241_v52 = vpack.c.bf16 %v7897_v12, %v7895_v31  ;;  %v7906_v29 = vld [vmem:[#allocation8 + $0x58] sm:$0xff]  ;;  %v8032_v4 = vld [vmem:[#allocation8 + $0x448] sm:$0xff]  ;;  %v7903_v26 = vld [vmem:[#allocation8 + $0x40] sm:$0xff] }
 0x48a   : > { %v9371_v14 = vpack.c.bf16 %v8030_v19, %v8028_v45  ;;  %v9373_v59 = vpack.c.bf16 %v8029_v57, %v8027_v40  ;;  %v9247_v43 = vpack.c.bf16 %v7906_v29, %v7904_v23  ;;  %v8034_v3 = vld [vmem:[#allocation8 + $0x458] sm:$0xff]  ;;  %v7905_v32 = vld [vmem:[#allocation8 + $0x50] sm:$0xff]  ;;  %v8031_v22 = vld [vmem:[#allocation8 + $0x440] sm:$0xff]  ;;  %vm18348_vm3 = vcmp.lt.s32.totalorder %v11681_v35, 111 }
 0x48b   : > { %v7494_v8 = vpack.c.bf16 %v4568_v56, %v4560_v16  ;;  %9368 = vmatprep.subr.bf16.mxu0 %v9367_v50  ;;  %v9375_v48 = vpack.c.bf16 %v8034_v3, %v8032_v4  ;;  %v8033_v49 = vld [vmem:[#allocation8 + $0x450] sm:$0xff]  ;;  %v9249_v42 = vpack.c.bf16 %v7905_v32, %v7903_v26  ;;  %v7908_v44 = vld [vmem:[#allocation8 + $0x68] sm:$0xff]  ;;  %v7910_v38 = vld [vmem:[#allocation8 + $0x78] sm:$0xff] }
 0x48c   : > { %9222 = vmatmul.mubr.msk.bf16.vlgmr.msra.gmra.mrb[12].mxu0 %vm18345_vm14, %v10945_v2  ;;  %v8036_v5 = vld [vmem:[#allocation8 + $0x468] sm:$0xff]  ;;  %v9377_v25 = vpack.c.bf16 %v8033_v49, %v8031_v22  ;;  %v9251_v1 = vpack.c.bf16 %v7910_v38, %v7908_v44  ;;  %v8038_v16 = vld [vmem:[#allocation8 + $0x478] sm:$0xff]  ;;  %v7907_v56 = vld [vmem:[#allocation8 + $0x60] sm:$0xff]  ;;  %vm18349_vm14 = vnez %v18005_v55 }
 0x48d   : > { %7632 = vmatprep.subr.bf16.mxu1 %v7494_v8  ;;  %9370 = vmatpush1.bf16.msra.mxu0 %v9369_v21  ;;  %v9379_v8 = vpack.c.bf16 %v8038_v16, %v8036_v5  ;;  %v8035_v53 = vld [vmem:[#allocation8 + $0x460] sm:$0xff]  ;;  %v8037_v46 = vld [vmem:[#allocation8 + $0x470] sm:$0xff]  ;;  %v7912_v28 = vld [vmem:[#allocation8 + $0x88] sm:$0xff] }
 0x48e   : > { %7633 = vmatpush1.bf16.msra.mxu1 %v7493_v41  ;;  %9372 = vmatprep.subr.bf16.mxu0 %v9371_v14  ;;  %v7909_v41 = vld [vmem:[#allocation8 + $0x70] sm:$0xff]  ;;  %v8040_v10 = vld [vmem:[#allocation8 + $0x488] sm:$0xff]  ;;  %v8042_v31 = vld [vmem:[#allocation8 + $0x498] sm:$0xff]  ;;  %v9381_v50 = vpack.c.bf16 %v8037_v46, %v8035_v53 }
 0x48f   : > { %9240 = vmatprep.subr.bf16.mxu1 %v9239_v34  ;;  %v7914_v34 = vld [vmem:[#allocation8 + $0x98] sm:$0xff]  ;;  %v9253_v12 = vpack.c.bf16 %v7909_v41, %v7907_v56  ;;  %v7911_v11 = vld [vmem:[#allocation8 + $0x80] sm:$0xff]  ;;  %v7913_v17 = vld [vmem:[#allocation8 + $0x90] sm:$0xff]  ;;  %v9383_v21 = vpack.c.bf16 %v8042_v31, %v8040_v10 }
 0x490   : > { %v7916_v45 = vld [vmem:[#allocation8 + $0xa8] sm:$0xff]  ;;  %v7918_v19 = vld [vmem:[#allocation8 + $0xb8] sm:$0xff]  ;;  %v9257_v0 = vpack.c.bf16 %v7913_v17, %v7911_v11  ;;  %v7917_v57 = vld [vmem:[#allocation8 + $0xb0] sm:$0xff] }
 0x491   : > { %9223 = vmatmul.mubr.msk.bf16.vlgmr.msra.gmra.mrb[12].mxu1 %vm18346_vm12, %v10945_v2  ;;  %v9243_v2 = vpack.c.bf16 %v7902_v9, %v7900_v36  ;;  %9374 = vmatpush1.bf16.msra.mxu0 %v9373_v59  ;;  %v8039_v36 = vld [vmem:[#allocation8 + $0x480] sm:$0xff]  ;;  %v8041_v9 = vld [vmem:[#allocation8 + $0x490] sm:$0xff]  ;;  %v8046_v14 = vld [vmem:[#allocation8 + $0x4b8] sm:$0xff]  ;;  %v9259_v40 = vpack.c.bf16 %v7918_v19, %v7916_v45  ;;  %vm18350_vm12 = vnez %v18168_v54 }
 0x492   : > { %9242 = vmatpush1.bf16.msra.mxu1 %v9241_v52  ;;  %9376 = vmatprep.subr.bf16.mxu0 %v9375_v48  ;;  %v9255_v52 = vpack.c.bf16 %v7914_v34, %v7912_v28  ;;  %v9385_v13 = vpack.c.bf16 %v8041_v9, %v8039_v36  ;;  %v8043_v23 = vld [vmem:[#allocation8 + $0x4a0] sm:$0xff]  ;;  %v8045_v59 = vld [vmem:[#allocation8 + $0x4b0] sm:$0xff]  ;;  %v7922_v4 = vld [vmem:[#allocation8 + $0xd8] sm:$0xff] }
 0x493   : > { %9244 = vmatprep.subr.bf16.mxu1 %v9243_v2  ;;  %v8044_v2 = vld [vmem:[#allocation8 + $0x4a8] sm:$0xff]  ;;  %v8050_v26 = vld [vmem:[#allocation8 + $0x4d8] sm:$0xff]  ;;  %v9389_v32 = vpack.c.bf16 %v8045_v59, %v8043_v23  ;;  %v7919_v49 = vld [vmem:[#allocation8 + $0xc0] sm:$0xff] }
 0x494   : > { %v9387_v29 = vpack.c.bf16 %v8046_v14, %v8044_v2  ;;  %v8048_v3 = vld [vmem:[#allocation8 + $0x4c8] sm:$0xff]  ;;  %v8047_v44 = vld [vmem:[#allocation8 + $0x4c0] sm:$0xff]  ;;  %v8049_v5 = vld [vmem:[#allocation8 + $0x4d0] sm:$0xff]  ;;  %v7701_v2 = vpop.permute.xlu1 %7700 }
 0x495   : > { %9378 = vmatpush1.bf16.msra.mxu0 %v9377_v25  ;;  %v9391_v38 = vpack.c.bf16 %v8050_v26, %v8048_v3  ;;  %v7924_v25 = vld [vmem:[#allocation8 + $0xe8] sm:$0xff]  ;;  %v8054_v56 = vld [vmem:[#allocation8 + $0x4f8] sm:$0xff]  ;;  %v7923_v46 = vld [vmem:[#allocation8 + $0xe0] sm:$0xff] }
 0x496   : > { %9246 = vmatpush1.bf16.msra.mxu1 %v9245_v27  ;;  %9380 = vmatprep.subr.bf16.mxu0 %v9379_v8  ;;  %v7915_v27 = vld [vmem:[#allocation8 + $0xa0] sm:$0xff]  ;;  %v8052_v16 = vld [vmem:[#allocation8 + $0x4e8] sm:$0xff]  ;;  %v9393_v8 = vpack.c.bf16 %v8049_v5, %v8047_v44  ;;  %v7925_v28 = vld [vmem:[#allocation8 + $0xf0] sm:$0xff] }
 0x497   : > { %9248 = vmatprep.subr.bf16.mxu1 %v9247_v43  ;;  %v7920_v43 = vld [vmem:[#allocation8 + $0xc8] sm:$0xff]  ;;  %v9261_v48 = vpack.c.bf16 %v7917_v57, %v7915_v27  ;;  %v8051_v34 = vld [vmem:[#allocation8 + $0x4e0] sm:$0xff]  ;;  %v9395_v10 = vpack.c.bf16 %v8054_v56, %v8052_v16  ;;  %v8053_v31 = vld [vmem:[#allocation8 + $0x4f0] sm:$0xff]  ;;  %v9269_v17 = vpack.c.bf16 %v7925_v28, %v7923_v46 }
 0x498   : > { %v9263_v22 = vpack.c.bf16 %v7922_v4, %v7920_v43  ;;  %v8058_v11 = vld [vmem:[#allocation8 + $0x518] sm:$0xff]  ;;  %v9397_v36 = vpack.c.bf16 %v8053_v31, %v8051_v34 }
 0x499   : > { %9382 = vmatpush1.bf16.msra.mxu0 %v9381_v50  ;;  %v7930_v50 = vld [vmem:[#allocation8 + $0x118] sm:$0xff] }
 0x49a   : > { %9250 = vmatpush1.bf16.msra.mxu1 %v9249_v42  ;;  %9384 = vmatprep.subr.bf16.mxu0 %v9383_v21  ;;  %v7921_v42 = vld [vmem:[#allocation8 + $0xd0] sm:$0xff]  ;;  %v16330_v54 = vld [vmem:[#allocation8 + $0x238] sm:$0xff] }
 0x49b   : > { %9252 = vmatprep.subr.bf16.mxu1 %v9251_v1  ;;  %v7926_v1 = vld [vmem:[#allocation8 + $0xf8] sm:$0xff]  ;;  %v9265_v41 = vpack.c.bf16 %v7921_v42, %v7919_v49 }
 0x49c   : > { %v9267_v53 = vpack.c.bf16 %v7926_v1, %v7924_v25 }
 0x49d   : > { %9386 = vmatpush1.bf16.msra.mxu0 %v9385_v13 }
 0x49e   : > { %9254 = vmatpush1.bf16.msra.mxu1 %v9253_v12  ;;  %9388 = vmatprep.subr.bf16.mxu0 %v9387_v29  ;;  %v7928_v12 = vld [vmem:[#allocation8 + $0x108] sm:$0xff] }
 0x49f   : > { %9256 = vmatprep.subr.bf16.mxu1 %v9255_v52  ;;  %v8056_v52 = vld [vmem:[#allocation8 + $0x508] sm:$0xff]  ;;  %v9271_v21 = vpack.c.bf16 %v7930_v50, %v7928_v12 }
 0x4a0   : > { %v9399_v9 = vpack.c.bf16 %v8058_v11, %v8056_v52 }
 0x4a1   : > { %9390 = vmatpush1.bf16.msra.mxu0 %v9389_v32 }
 0x4a2   : > { %9258 = vmatpush1.bf16.msra.mxu1 %v9257_v0  ;;  %9392 = vmatprep.subr.bf16.mxu0 %v9391_v38 }
 0x4a3   : > { %9260 = vmatprep.subr.bf16.mxu1 %v9259_v40 }
 0x4a5   : > { %9394 = vmatpush1.bf16.msra.mxu0 %v9393_v8 }
 0x4a6   : > { %9262 = vmatpush1.bf16.msra.mxu1 %v9261_v48  ;;  %9396 = vmatprep.subr.bf16.mxu0 %v9395_v10 }
 0x4a7   : > { %9264 = vmatprep.subr.bf16.mxu1 %v9263_v22 }
 0x4a9   : > { %9398 = vmatpush1.bf16.msra.mxu0 %v9397_v36  ;;  %v7927_v36 = vld [vmem:[#allocation8 + $0x100] sm:$0xff] }
 0x4aa   : > { %9266 = vmatpush1.bf16.msra.mxu1 %v9265_v41  ;;  %9400 = vmatprep.subr.bf16.mxu0 %v9399_v9  ;;  %v8055_v9 = vld [vmem:[#allocation8 + $0x500] sm:$0xff] }
 0x4ab   : > { %9268 = vmatprep.subr.bf16.mxu1 %v9267_v53 }
 0x4ae   : > { %9270 = vmatpush1.bf16.msra.mxu1 %v9269_v17 }
 0x4af   : > { %9272 = vmatprep.subr.bf16.mxu1 %v9271_v21  ;;  %v7929_v21 = vld [vmem:[#allocation8 + $0x110] sm:$0xff] }
 0x551   : > { %v7537_v45 = vpop.f32.mrb[8].mxu0 }
 0x552   : > { %v7539_v19 = vpop.f32.mrb[9].mxu0 }
 0x553   : > { %v7541_v14 = vpop.f32.mrb[10].mxu0 }
 0x554   : > { %v7711_v0 = vadd.f32 %v7701_v2, %v7541_v14  ;;  %v7543_v13 = vpop.f32.mrb[11].mxu0  ;;  %v16227_v14 = vpop.permute.xlu0 %7695 }
 0x555   : > { %v7712_v40 = vadd.f32 %v7701_v2, %v7543_v13  ;;  %v7703_v13 = vadd.f32 %v16227_v14, %v7537_v45 }
 0x556   : > { %v9224_v27 = vmul.f32 -1.442695, %v7711_v0  ;;  %v9273_v0 = vpack.c.bf16 %v7929_v21, %v7927_v36  ;;  %v7935_v36 = vld [vmem:[#allocation8 + $0x140] sm:$0xff]  ;;  %v7937_v21 = vld [vmem:[#allocation8 + $0x150] sm:$0xff] }
 0x557   : > { %v9225_v57 = vmul.f32 -1.442695, %v7712_v40 }
 0x558   : > { %10946 = vpow2.f32 %v9224_v27  ;;  %9274 = vmatpush1.bf16.msra.mxu1 %v9273_v0 }
 0x559   : > { %v16215_v23 = vpop.f32.mrb[8].mxu1  ;;  %10948 = vpow2.f32 %v9225_v57  ;;  %v7704_v57 = vadd.f32 %v16227_v14, %v7539_v19 }
 0x55a   : > { %v16217_v29 = vpop.f32.mrb[9].mxu1 }
 0x55b   : > { %v7584_v59 = vpop.f32.mrb[10].mxu1 }
 0x55c   : > { %v7713_v43 = vadd.f32 %v7701_v2, %v7584_v59  ;;  %v7586_v4 = vpop.f32.mrb[11].mxu1  ;;  %v7932_v59 = vld [vmem:[#allocation8 + $0x128] sm:$0xff] }
 0x55d   : > { %v7714_v3 = vadd.f32 %v7701_v2, %v7586_v4  ;;  %v8060_v4 = vld [vmem:[#allocation8 + $0x528] sm:$0xff] }
 0x55e   : > { %v9226_v26 = vmul.f32 -1.442695, %v7713_v43  ;;  %v7934_v43 = vld [vmem:[#allocation8 + $0x138] sm:$0xff] }
 0x55f   : > { %v9227_v48 = vmul.f32 -1.442695, %v7714_v3  ;;  %v16219_v32 = vpop.f32.mrb[12].mxu0 }
 0x560   : > { %10950 = vpow2.f32 %v9226_v26  ;;  %v16221_v22 = vpop.f32.mrb[13].mxu0 }
 0x561   : > { %10952 = vpow2.f32 %v9227_v48  ;;  %v7627_v49 = vpop.f32.mrb[14].mxu0  ;;  %v9275_v48 = vpack.c.bf16 %v7934_v43, %v7932_v59 }
 0x562   : > { %v10947_v44 = vpop.eup %10946  ;;  %v7715_v38 = vadd.f32 %v7701_v2, %v7627_v49  ;;  %v7629_v5 = vpop.f32.mrb[15].mxu0  ;;  %v8062_v49 = vld [vmem:[#allocation8 + $0x538] sm:$0xff] }
 0x563   : > { %v10949_v1 = vpop.eup %10948  ;;  %v7743_v16 = vadd.f32 1.0, %v10947_v44  ;;  %v7716_v56 = vadd.f32 %v7701_v2, %v7629_v5  ;;  %v7931_v44 = vld [vmem:[#allocation8 + $0x120] sm:$0xff]  ;;  %v9403_v45 = vpack.c.bf16 %v8062_v49, %v8060_v4  ;;  %9276 = vmatprep.subr.bf16.mxu1 %v9275_v48  ;;  %v7940_v4 = vld [vmem:[#allocation8 + $0x168] sm:$0xff] }
 0x564   : > { %v16223_v42 = vpop.f32.mrb[12].mxu1  ;;  %v7744_v8 = vadd.f32 1.0, %v10949_v1  ;;  %v9228_v53 = vmul.f32 -1.442695, %v7715_v38  ;;  %v7933_v38 = vld [vmem:[#allocation8 + $0x130] sm:$0xff]  ;;  %v8068_v48 = vld [vmem:[#allocation8 + $0x568] sm:$0xff] }
 0x565   : > { %v16225_v25 = vpop.f32.mrb[13].mxu1  ;;  %10954 = vrcp.f32 %v7743_v16  ;;  %v9229_v34 = vmul.f32 -1.442695, %v7716_v56  ;;  %v9277_v16 = vpack.c.bf16 %v7933_v38, %v7931_v44  ;;  %v8059_v56 = vld [vmem:[#allocation8 + $0x520] sm:$0xff]  ;;  %v8070_v38 = vld [vmem:[#allocation8 + $0x578] sm:$0xff] }
 0x566   : > { %v7670_v41 = vpop.f32.mrb[14].mxu1  ;;  %10956 = vrcp.f32 %v7744_v8 }
 0x567   : > { %v7717_v46 = vadd.f32 %v7701_v2, %v7670_v41  ;;  %v7672_v28 = vpop.f32.mrb[15].mxu1  ;;  %10958 = vpow2.f32 %v9228_v53  ;;  %v8061_v41 = vld [vmem:[#allocation8 + $0x530] sm:$0xff]  ;;  %9278 = vmatpush1.bf16.msra.mxu1 %v9277_v16  ;;  %v9411_v16 = vpack.c.bf16 %v8070_v38, %v8068_v48  ;;  %v7947_v48 = vld [vmem:[#allocation8 + $0x1a0] sm:$0xff] }
 0x568   : > { %v7718_v10 = vadd.f32 %v7701_v2, %v7672_v28  ;;  %10960 = vpow2.f32 %v9229_v34  ;;  %v8057_v2 = vld [vmem:[#allocation8 + $0x510] sm:$0xff]  ;;  %v9405_v53 = vpack.c.bf16 %v8061_v41, %v8059_v56  ;;  %v7936_v34 = vld [vmem:[#allocation8 + $0x148] sm:$0xff]  ;;  %v8067_v56 = vld [vmem:[#allocation8 + $0x560] sm:$0xff] }
 0x569   : > { %v9230_v31 = vmul.f32 -1.442695, %v7717_v46  ;;  %v9401_v40 = vpack.c.bf16 %v8057_v2, %v8055_v9  ;;  %v9281_v2 = vpack.c.bf16 %v7937_v21, %v7935_v36  ;;  %v8069_v41 = vld [vmem:[#allocation8 + $0x570] sm:$0xff] }
 0x56a   : > { %v9231_v12 = vmul.f32 -1.442695, %v7718_v10  ;;  %v10951_v50 = vpop.eup %10950  ;;  %v7938_v10 = vld [vmem:[#allocation8 + $0x158] sm:$0xff]  ;;  %v8073_v36 = vld [vmem:[#allocation8 + $0x590] sm:$0xff] }
 0x56b   : > { %10962 = vpow2.f32 %v9230_v31  ;;  %v10953_v52 = vpop.eup %10952  ;;  %v7745_v11 = vadd.f32 1.0, %v10951_v50  ;;  %9402 = vmatpush1.bf16.msra.mxu0 %v9401_v40  ;;  %v8064_v31 = vld [vmem:[#allocation8 + $0x548] sm:$0xff]  ;;  %v7705_v50 = vadd.f32 %v16227_v14, %v16215_v23  ;;  %v8065_v40 = vld [vmem:[#allocation8 + $0x550] sm:$0xff] }
 0x56c   : > { %10964 = vpow2.f32 %v9231_v12  ;;  %v7746_v17 = vadd.f32 1.0, %v10953_v52  ;;  %9404 = vmatprep.subr.bf16.mxu0 %v9403_v45  ;;  %v7941_v45 = vld [vmem:[#allocation8 + $0x170] sm:$0xff] }
 0x56d   : > { %10966 = vrcp.f32 %v7745_v11  ;;  %v9279_v11 = vpack.c.bf16 %v7938_v10, %v7936_v34  ;;  %v8074_v10 = vld [vmem:[#allocation8 + $0x598] sm:$0xff] }
 0x56e   : > { %10968 = vrcp.f32 %v7746_v17  ;;  %v8066_v17 = vld [vmem:[#allocation8 + $0x558] sm:$0xff] }
 0x56f   : > { %v10955_v27 = vpop.eup %10954  ;;  %9406 = vmatpush1.bf16.msra.mxu0 %v9405_v53  ;;  %v9407_v0 = vpack.c.bf16 %v8066_v17, %v8064_v31  ;;  %9280 = vmatprep.subr.bf16.mxu1 %v9279_v11  ;;  %v7944_v53 = vld [vmem:[#allocation8 + $0x188] sm:$0xff]  ;;  %v7943_v31 = vld [vmem:[#allocation8 + $0x180] sm:$0xff] }
 0x570   : > { %v10957_v3 = vpop.eup %10956  ;;  %v16231_v26 = vmul.f32 %v10955_v27, %v7703_v13  ;;  %v8063_v13 = vld [vmem:[#allocation8 + $0x540] sm:$0xff]  ;;  %9282 = vmatpush1.bf16.msra.mxu1 %v9281_v2 }
 0x571   : > { %v10959_v5 = vpop.eup %10958  ;;  %v16233_v1 = vmul.f32 %v10957_v3, %v7704_v57  ;;  %v7706_v57 = vadd.f32 %v16227_v14, %v16217_v29  ;;  %v9409_v23 = vpack.c.bf16 %v8065_v40, %v8063_v13  ;;  %9408 = vmatprep.subr.bf16.mxu0 %v9407_v0  ;;  %v7942_v3 = vld [vmem:[#allocation8 + $0x178] sm:$0xff]  ;;  %v8071_v17 = vld [vmem:[#allocation8 + $0x580] sm:$0xff]  ;;  %v7709_v13 = vadd.f32 %v16227_v14, %v16223_v42  ;;  %v7949_v42 = vld [vmem:[#allocation8 + $0x1b0] sm:$0xff] }
 0x572   : > { %v10961_v19 = vpop.eup %10960  ;;  %v7747_v8 = vadd.f32 1.0, %v10959_v5  ;;  %v9283_v44 = vpack.c.bf16 %v7942_v3, %v7940_v4  ;;  %v7939_v5 = vld [vmem:[#allocation8 + $0x160] sm:$0xff]  ;;  %v9417_v0 = vpack.c.bf16 %v8073_v36, %v8071_v17  ;;  %v8078_v3 = vld [vmem:[#allocation8 + $0x5b8] sm:$0xff]  ;;  %v7956_v17 = vld [vmem:[#allocation8 + $0x1e8] sm:$0xff] }
 0x573   : > { %v7748_v28 = vadd.f32 1.0, %v10961_v19  ;;  %9410 = vmatpush1.bf16.msra.mxu0 %v9409_v23  ;;  %v9285_v19 = vpack.c.bf16 %v7941_v45, %v7939_v5  ;;  %v8075_v5 = vld [vmem:[#allocation8 + $0x5a0] sm:$0xff]  ;;  %v8077_v45 = vld [vmem:[#allocation8 + $0x5b0] sm:$0xff]  ;;  %v7958_v36 = vld [vmem:[#allocation8 + $0x1f8] sm:$0xff] }
 0x574   : > { %10970 = vrcp.f32 %v7747_v8  ;;  %9284 = vmatprep.subr.bf16.mxu1 %v9283_v44  ;;  %v9413_v8 = vpack.c.bf16 %v8069_v41, %v8067_v56  ;;  %9412 = vmatprep.subr.bf16.mxu0 %v9411_v16  ;;  %v9293_v41 = vpack.c.bf16 %v7949_v42, %v7947_v48  ;;  %v8088_v48 = vld [vmem:[#allocation8 + $0x608] sm:$0xff] }
 0x575   : > { %v10963_v46 = vpop.eup %10962  ;;  %10972 = vrcp.f32 %v7748_v28  ;;  %v8072_v28 = vld [vmem:[#allocation8 + $0x588] sm:$0xff]  ;;  %9286 = vmatpush1.bf16.msra.mxu1 %v9285_v19  ;;  %v9421_v19 = vpack.c.bf16 %v8077_v45, %v8075_v5 }
 0x576   : > { %v10965_v12 = vpop.eup %10964  ;;  %v7749_v52 = vadd.f32 1.0, %v10963_v46  ;;  %v7946_v46 = vld [vmem:[#allocation8 + $0x198] sm:$0xff] }
 0x577   : > { %v7750_v9 = vadd.f32 1.0, %v10965_v12  ;;  %v10967_v27 = vpop.eup %10966  ;;  %9414 = vmatpush1.bf16.msra.mxu0 %v9413_v8  ;;  %v9287_v34 = vpack.c.bf16 %v7946_v46, %v7944_v53  ;;  %v7945_v12 = vld [vmem:[#allocation8 + $0x190] sm:$0xff]  ;;  %v7954_v8 = vld [vmem:[#allocation8 + $0x1d8] sm:$0xff]  ;;  %v8080_v53 = vld [vmem:[#allocation8 + $0x5c8] sm:$0xff] }
 0x578   : > { %10974 = vrcp.f32 %v7749_v52  ;;  %v10969_v59 = vpop.eup %10968  ;;  %v16239_v43 = vmul.f32 %v10967_v27, %v7705_v50  ;;  %v7707_v50 = vadd.f32 %v16227_v14, %v16219_v32  ;;  %v9415_v52 = vpack.c.bf16 %v8074_v10, %v8072_v28  ;;  %v7948_v32 = vld [vmem:[#allocation8 + $0x1a8] sm:$0xff]  ;;  %v7950_v27 = vld [vmem:[#allocation8 + $0x1b8] sm:$0xff]  ;;  %v7953_v10 = vld [vmem:[#allocation8 + $0x1d0] sm:$0xff] }
 0x579   : > { %10976 = vrcp.f32 %v7750_v9  ;;  %v16241_v49 = vmul.f32 %v10969_v59, %v7706_v57  ;;  %v9289_v11 = vpack.c.bf16 %v7945_v12, %v7943_v31  ;;  %v7708_v9 = vadd.f32 %v16227_v14, %v16221_v22  ;;  %9288 = vmatprep.subr.bf16.mxu1 %v9287_v34  ;;  %v8076_v57 = vld [vmem:[#allocation8 + $0x5a8] sm:$0xff]  ;;  %v8082_v28 = vld [vmem:[#allocation8 + $0x5d8] sm:$0xff]  ;;  %v7951_v34 = vld [vmem:[#allocation8 + $0x1c0] sm:$0xff] }
 0x57a   : > { %v10860_v29 = vpack.i.bf16 %v16239_v43, %v16233_v1  ;;  %9416 = vmatprep.subr.bf16.mxu0 %v9415_v52  ;;  %v7710_v59 = vadd.f32 %v16227_v14, %v16225_v25  ;;  %v9291_v22 = vpack.c.bf16 %v7950_v27, %v7948_v32  ;;  %v9419_v56 = vpack.c.bf16 %v8078_v3, %v8076_v57  ;;  %v7952_v14 = vld [vmem:[#allocation8 + $0x1c8] sm:$0xff]  ;;  %v8081_v52 = vld [vmem:[#allocation8 + $0x5d0] sm:$0xff]  ;;  %v8083_v57 = vld [vmem:[#allocation8 + $0x5e0] sm:$0xff] }
 0x57b   : > { %9290 = vmatpush1.bf16.msra.mxu1 %v9289_v11  ;;  %9418 = vmatpush1.bf16.msra.mxu0 %v9417_v0  ;;  %v9295_v31 = vpack.c.bf16 %v7954_v8, %v7952_v14  ;;  %v9423_v12 = vpack.c.bf16 %v8082_v28, %v8080_v53  ;;  %v8086_v0 = vld [vmem:[#allocation8 + $0x5f8] sm:$0xff] }
 0x57c   : > { %10861 = vrot.lane.b32.xlu1 %v10860_v29, %s11200_s14  ;;  %9292 = vmatprep.subr.bf16.mxu1 %v9291_v22  ;;  %v7960_v22 = vld [vmem:[#allocation8 + $0x208] sm:$0xff]  ;;  %v7962_v3 = vld [vmem:[#allocation8 + $0x218] sm:$0xff] }
 0x57d   : > { %9420 = vmatprep.subr.bf16.mxu0 %v9419_v56  ;;  %v9303_v42 = vpack.c.bf16 %v7962_v3, %v7960_v22  ;;  %v16336_v22 = vld [vmem:[#allocation8 + $0x220] sm:$0xff]  ;;  %v16338_v3 = vld [vmem:[#allocation8 + $0x230] sm:$0xff] }
 0x57e   : > { %v10971_v21 = vpop.eup %10970 }
 0x57f   : > { %v10973_v2 = vpop.eup %10972  ;;  %v16253_v40 = vmul.f32 %v10971_v21, %v7707_v50  ;;  %9294 = vmatpush1.bf16.msra.mxu1 %v9293_v41  ;;  %9422 = vmatpush1.bf16.msra.mxu0 %v9421_v19  ;;  %v8079_v50 = vld [vmem:[#allocation8 + $0x5c0] sm:$0xff]  ;;  %v8084_v21 = vld [vmem:[#allocation8 + $0x5e8] sm:$0xff] }
 0x580   : > { %10866 = vrot.lane.b32.xlu1 %v10860_v29, %s11202_s22  ;;  %v16257_v4 = vmul.f32 %v10973_v2, %v7708_v9  ;;  %v9425_v11 = vpack.c.bf16 %v8081_v52, %v8079_v50  ;;  %9296 = vmatprep.subr.bf16.mxu1 %v9295_v31  ;;  %v9299_v9 = vpack.c.bf16 %v7958_v36, %v7956_v17  ;;  %v7955_v2 = vld [vmem:[#allocation8 + $0x1e0] sm:$0xff] }
 0x581   : > { %v10875_v46 = vpack.i.bf16 %v16253_v40, %v16231_v26  ;;  %9424 = vmatprep.subr.bf16.mxu0 %v9423_v12  ;;  %v9427_v32 = vpack.c.bf16 %v8086_v0, %v8084_v21  ;;  %v16317_v21 = vld [vmem:[#allocation8 + $0x200] sm:$0xff] }
 0x582   : > { %v10975_v23 = vpop.eup %10974 }
 0x583   : > { %v10977_v44 = vpop.eup %10976  ;;  %v16259_v38 = vmul.f32 %v10975_v23, %v7709_v13  ;;  %v7957_v13 = vld [vmem:[#allocation8 + $0x1f0] sm:$0xff]  ;;  %9426 = vmatpush1.bf16.msra.mxu0 %v9425_v11 }
 0x584   : > { %v16261_v16 = vmul.f32 %v10977_v44, %v7710_v59  ;;  %10871 = vrot.lane.b32.xlu1 %v10860_v29, %s11203_s26  ;;  %v9297_v29 = vpack.c.bf16 %v7953_v10, %v7951_v34  ;;  %v9301_v27 = vpack.c.bf16 %v7957_v13, %v7955_v2  ;;  %v8085_v23 = vld [vmem:[#allocation8 + $0x5f0] sm:$0xff]  ;;  %9428 = vmatprep.subr.bf16.mxu0 %v9427_v32  ;;  %v8090_v44 = vld [vmem:[#allocation8 + $0x618] sm:$0xff]  ;;  %v16323_v13 = vld [vmem:[#allocation8 + $0x600] sm:$0xff] }
 0x585   : > { %v10880_v25 = vpack.i.bf16 %v16259_v38, %v16257_v4  ;;  %v9429_v59 = vpack.c.bf16 %v8085_v23, %v8083_v57  ;;  %v9431_v45 = vpack.c.bf16 %v8090_v44, %v8088_v48  ;;  %v16321_v2 = vld [vmem:[#allocation8 + $0x210] sm:$0xff]  ;;  %v16328_v57 = vld [vmem:[#allocation8 + $0x228] sm:$0xff] }
 0x586   : > { %9298 = vmatpush1.bf16.msra.mxu1 %v9297_v29  ;;  %v10910_v5 = vpack.i.bf16 %v16261_v16, %v16241_v49  ;;  %v16325_v32 = vld [vmem:[#allocation8 + $0x610] sm:$0xff]  ;;  %v16332_v23 = vld [vmem:[#allocation8 + $0x628] sm:$0xff] }
 0x587   : > { %10881 = vrot.lane.b32.xlu0 %v10880_v25, %s11200_s14  ;;  %9300 = vmatprep.subr.bf16.mxu1 %v9299_v9 }
 0x588   : > { %10876 = vrot.lane.b32.xlu1 %v10875_v46, %s11200_s14  ;;  %9430 = vmatpush1.bf16.msra.mxu0 %v9429_v59  ;;  %v16334_v59 = vld [vmem:[#allocation8 + $0x638] sm:$0xff] }
 0x589   : > { %9432 = vmatprep.subr.bf16.mxu0 %v9431_v45  ;;  %v16346_v45 = vld [vmem:[#allocation8 + $0x620] sm:$0xff] }
 0x58a   : > { %9302 = vmatpush1.bf16.msra.mxu1 %v9301_v27  ;;  %18352 = vst [vmem:[#allocation34_spill] sm:$0xff] %v16346_v45 }
 0x58b   : > { %10886 = vrot.lane.b32.xlu0 %v10880_v25, %s11202_s22  ;;  %9304 = vmatprep.subr.bf16.mxu1 %v9303_v42 }
 0x58c   : > { %10901 = vrot.lane.b32.xlu1 %v10875_v46, %s11203_s26 }
 0x58f   : > { %10891 = vrot.lane.b32.xlu0 %v10880_v25, %s11203_s26 }
 0x590   : > { %10911 = vrot.lane.b32.xlu1 %v10910_v5, %s11202_s22 }
 0x593   : > { %10896 = vrot.lane.b32.xlu0 %v10875_v46, %s11202_s22 }
 0x597   : > { %10906 = vrot.lane.b32.xlu0 %v10910_v5, %s11200_s14  ;;  %s8565_s14 = sshll.u32 %s11438_s24, 4 }
 0x598   : > { %s367_s22 = scalar_lea.vmem [#allocation10], %s8565_s14 }
 0x599   : > { %s8452_s27 = sshll.u32 %s367_s22, 4  ;;  %s16544_s27 = int_to_ptr.vmem [resolvable:$true] %s8452_s27 }
 0x59a   : > { %s11109_s23 = scalar_lea.vmem %s16544_s27, 256  ;;  %p11116_p2 = scmp.lt.s32.totalorder %s16544_s27, %s11114_s12 }
 0x59b   : > { %10916 = vrot.lane.b32.xlu0 %v10910_v5, %s11203_s26  ;;  %s18406_s26 = sld [smem:[#allocation118_spill]]  ;;  %p11110_p10 = scmp.ne.s32.totalorder %s16544_s27, %s11109_s23 }
 0x59c   : > { %p11117_p5 = scmp.lt.s32.totalorder %s11115_s11, %s11109_s23 }
 0x59d   : > { %p11111_p4 = pnand %p11110_p10, %p18407_p1 }
 0x59e   : > { %p11118_p11 = por %p11117_p5, %p11116_p2 }
 0x59f   : > { %p11112_p0 = pneg %p11111_p4 }
 0x5a1   : > { %s16542_s13 = scalar_lea.hbm %s18406_s26, %s9238_s15  ;;  %p11119_p12 = pnand %p11118_p11, %p11112_p0 }
 0x5ee   : > { %v16279_v56 = vpop.permute.xlu1 %10861 }
 0x5ef   : > { %v17129_v41 = vunpack.i.h.bf16 %v16279_v56  ;;  %v10863_v19 = vunpack.i.l.bf16 %v16279_v56 }
 0x5f1   : > { %v7796_v53 = vsel %vm18347_vm9, %v10863_v19, %v17129_v41  ;;  %v16379_v41 = vld [vmem:[#allocation8 + $0x258] sm:$0xff] }
 0x5f2   : > { %v16283_v14 = vpop.permute.xlu1 %10866  ;;  %v7800_v29 = vsel %vm18349_vm14, %v7796_v53, -inf  ;;  %v16348_v53 = vld [vmem:[#allocation8 + $0x630] sm:$0xff]  ;;  %vm18356_vm14 = vnez %v18028_v58 }
 0x5f3   : > { %v17134_v25 = vunpack.i.h.bf16 %v16283_v14  ;;  %v17133_v8 = vunpack.i.l.bf16 %v16283_v14  ;;  %v7808_v24 = vmax.f32 %v16233_v1, %v7800_v29  ;;  %18353 = vst [vmem:[#allocation30_spill] sm:$0xff] %v16348_v53  ;;  %v18364_v45 = vunpack.i.h.bf16 %v16283_v14 }
 0x5f5   : > { %v7836_v28 = vsel %vm18339_vm0, %v17133_v8, %v17134_v25  ;;  %vm18354_vm0 = vmmov %vm18347_vm9 }
 0x5f6   : > { %v16291_v46 = vpop.permute.xlu1 %10871  ;;  %v7840_v17 = vsel %vm18285_vm10, %v7836_v28, -inf  ;;  %vm18351_vm10 = vmmov %vm18347_vm9 }
 0x5f7   : > { %v17128_v34 = vunpack.i.h.bf16 %v16291_v46  ;;  %v10873_v10 = vunpack.i.l.bf16 %v16291_v46 }
 0x5f9   : > { %v16301_v31 = vpop.permute.xlu0 %10881  ;;  %v7868_v12 = vsel %vm18348_vm3, %v10873_v10, %v17128_v34  ;;  %vm18355_vm3 = vnez %v18059_v33 }
 0x5fa   : > { %v16309_v50 = vpop.permute.xlu1 %10876  ;;  %v17131_v52 = vunpack.i.h.bf16 %v16301_v31  ;;  %v10883_v11 = vunpack.i.l.bf16 %v16301_v31  ;;  %v7872_v36 = vsel %vm18350_vm12, %v7868_v12, -inf  ;;  %vm18357_vm12 = vnez %v18040_v30 }
 0x5fb   : > { %v17130_v9 = vunpack.i.h.bf16 %v16309_v50  ;;  %v17132_v0 = vunpack.i.l.bf16 %v16309_v50  ;;  %v7880_v55 = vmax.f32 %v7840_v17, %v7872_v36  ;;  %v18370_v62 = vunpack.i.l.bf16 %v16309_v50 }
 0x5fc   : > { %v7792_v48 = vsel %vm18351_vm10, %v10883_v11, %v17131_v52  ;;  %vm18358_vm10 = vcmp.lt.s32.totalorder %v11681_v35, 112  ;;  %v18374_v63 = vunpack.i.h.bf16 %v16309_v50 }
 0x5fd   : > { %v10887_v27 = vpop.permute.xlu0 %10886  ;;  %v7888_v5 = vmax.f32 %v7808_v24, %v7880_v55  ;;  %v7797_v28 = vsel %vm18347_vm9, %v17132_v0, %v10863_v19  ;;  %v7793_v12 = vsel %vm18354_vm0, %v17130_v9, %v10883_v11  ;;  %v16371_v24 = vld [vmem:[#allocation8 + $0x248] sm:$0xff]  ;;  %v7804_v17 = vsel %vm18355_vm3, %v7792_v48, -inf  ;;  %v16383_v19 = vld [vmem:[#allocation8 + $0x658] sm:$0xff] }
 0x5fe   : > { %v16344_v42 = vpop.permute.xlu1 %10901  ;;  %v10889_v1 = vunpack.i.h.bf16 %v10887_v27  ;;  %v10888_v44 = vunpack.i.l.bf16 %v10887_v27  ;;  %v16381_v27 = vld [vmem:[#allocation8 + $0x648] sm:$0xff]  ;;  %v7799_v11 = vsel %vm18356_vm14, %v7797_v28, -inf  ;;  %v7803_v9 = vsel %vm18357_vm12, %v7793_v12, -inf  ;;  %vm18363_vm14 = vmmov %vm18358_vm10 }
 0x5ff   : > { %v17136_v29 = vunpack.i.l.bf16 %v16344_v42  ;;  %8215 = vmatprep.mubr.f32.mxu1 %v7888_v5  ;;  %v10904_v52 = vunpack.i.h.bf16 %v16344_v42  ;;  %vm18359_vm9 = vcmp.lt.s32.totalorder %v11681_v35, 111  ;;  %v7812_v28 = vmax.f32 %v16257_v4, %v7804_v17  ;;  %vm18365_vm12 = vmmov %vm18358_vm10 }
 0x600   : > { %v7832_v33 = vsel %vm18358_vm10, %v10888_v44, %v10889_v1  ;;  %vm18360_vm0 = vmmov %vm18359_vm9  ;;  %v9311_v25 = vpack.c.bf16 %v16379_v41, %v16371_v24  ;;  %v7807_v53 = vmax.f32 %v16231_v26, %v7799_v11  ;;  %v7811_v4 = vmax.f32 %v16253_v40, %v7803_v9 }
 0x601   : > { %v16361_v36 = vpop.permute.xlu0 %10891  ;;  %v7869_v55 = vsel %vm18359_vm9, %v17136_v29, %v10873_v10  ;;  %vm18361_vm3 = vmmov %vm18360_vm0  ;;  %v18385_v61 = vunpack.i.l.bf16 %v16344_v42  ;;  %v7967_v42 = vld [vmem:[#allocation8 + $0x240] sm:$0xff] }
 0x602   : > { %v17137_v34 = vunpack.i.h.bf16 %v16361_v36  ;;  %v10893_v5 = vunpack.i.l.bf16 %v16361_v36  ;;  %v10912_v48 = vpop.permute.xlu1 %10911 }
 0x603   : > { %v10914_v0 = vunpack.i.h.bf16 %v10912_v48  ;;  %v10913_v8 = vunpack.i.l.bf16 %v10912_v48 }
 0x604   : > { %v7864_v58 = vsel %vm18360_vm0, %v10893_v5, %v17137_v34  ;;  %v7865_v10 = vsel %vm18361_vm3, %v10904_v52, %v10893_v5  ;;  %v7844_v34 = vsel %vm18323_vm2, %v7832_v33, -inf  ;;  %v18366_v33 = vunpack.i.l.bf16 %v16283_v14  ;;  %vm18367_vm2 = vmmov %vm18358_vm10 }
 0x605   : > { %v10897_v30 = vpop.permute.xlu0 %10896  ;;  %v7876_v12 = vsel %vm18188_vm15, %v7864_v58, -inf  ;;  %vm18362_vm15 = vnez %v18184_v6  ;;  %v7831_v58 = vsel %vm18363_vm14, %v10889_v1, %v10914_v0  ;;  %v7835_v5 = vsel %vm18365_vm12, %v18364_v45, %v10913_v8 }
 0x606   : > { %v10899_v48 = vunpack.i.h.bf16 %v10897_v30  ;;  %v10898_v29 = vunpack.i.l.bf16 %v10897_v30  ;;  %v7871_v37 = vsel %vm18362_vm15, %v7869_v55, -inf  ;;  %v7884_v17 = vmax.f32 %v7844_v34, %v7876_v12 }
 0x607   : > { %v7875_v6 = vsel %vm18201_vm13, %v7865_v10, -inf  ;;  %v7841_v14 = vsel %vm18287_vm8, %v7835_v5, -inf  ;;  %v7845_v30 = vsel %vm18341_vm4, %v7831_v58, -inf  ;;  %vm18368_vm13 = vmmov %vm18367_vm2  ;;  %v18372_v12 = vunpack.i.h.bf16 %v16301_v31 }
 0x608   : > { %v7833_v18 = vsel %vm18358_vm10, %v10899_v48, %v10888_v44  ;;  %v7837_v26 = vsel %vm18367_vm2, %v10898_v29, %v18366_v33  ;;  %v7892_v1 = vmax.f32 %v7812_v28, %v7884_v17  ;;  %v7834_v51 = vsel %vm18368_vm13, %v10913_v8, %v10899_v48  ;;  %v18379_v48 = vld [vmem:[#allocation84_spill] sm:$0xff] }
 0x609   : > { %v7839_v40 = vsel %vm18299_vm11, %v7837_v26, -inf  ;;  %v7843_v34 = vsel %vm18321_vm6, %v7833_v18, -inf  ;;  %v10907_v9 = vpop.permute.xlu0 %10906  ;;  %vm18369_vm11 = vmmov %vm18367_vm2  ;;  %vm18371_vm6 = vcmp.lt.s32.totalorder %v11681_v35, 127  ;;  %v18376_v8 = vunpack.i.h.bf16 %v16279_v56  ;;  %v18381_v26 = vld [vmem:[#allocation73_spill] sm:$0xff] }
 0x60a   : > { %v7879_v45 = vmax.f32 %v7839_v40, %v7871_v37  ;;  %v7883_v55 = vmax.f32 %v7843_v34, %v7875_v6  ;;  %v10909_v11 = vunpack.i.h.bf16 %v10907_v9  ;;  %v10908_v44 = vunpack.i.l.bf16 %v10907_v9  ;;  %8357 = vmatprep.mubr.f32.mxu0 %v7892_v1  ;;  %vm18373_vm9 = vmmov %vm18371_vm6 }
 0x60b   : > { %v7838_v39 = vsel %vm18369_vm11, %v10914_v0, %v10898_v29  ;;  %vm18375_vm8 = vmmov %vm18371_vm6  ;;  %vm18378_vm0 = vnez %v18030_v60  ;;  %vm18380_vm3 = vnez %v18379_v48  ;;  %v7842_v50 = vsel %vm18306_vm7, %v7834_v51, -inf  ;;  %v8099_v48 = vld [vmem:[#allocation8 + $0x660] sm:$0xff] }
 0x60c   : > { %v7798_v28 = vsel %vm18371_vm6, %v10909_v11, %v18370_v62  ;;  %v7791_v15 = vsel %vm18373_vm9, %v18372_v12, %v10909_v11  ;;  %v7794_v10 = vsel %vm18375_vm8, %v10908_v44, %v18374_v63  ;;  %vm18377_vm4 = vmmov %vm18371_vm6  ;;  %v7887_v17 = vmax.f32 %v7807_v53, %v7879_v45 }
 0x60d   : > { %v7795_v0 = vsel %vm18377_vm4, %v18376_v8, %v10908_v44  ;;  %v7805_v37 = vsel %vm18380_vm3, %v7791_v15, -inf  ;;  %v10917_v31 = vpop.permute.xlu0 %10916  ;;  %v7891_v58 = vmax.f32 %v7811_v4, %v7883_v55  ;;  %v7846_v56 = vsel %vm18343_vm1, %v7838_v39, -inf  ;;  %v18383_v4 = vld [vmem:[#allocation83_spill] sm:$0xff]  ;;  %v18395_v55 = vld [vmem:[#allocation106_spill] sm:$0xff] }
 0x60e   : > { %v7801_v29 = vsel %vm18378_vm0, %v7795_v0, -inf  ;;  %v10919_v5 = vunpack.i.h.bf16 %v10917_v31  ;;  %v10918_v18 = vunpack.i.l.bf16 %v10917_v31  ;;  %v16469_v60 = vmax.f32 %v16259_v38, %v7805_v37  ;;  %8216 = vmatmul.mubr.f32.vlgmr.msra.gmra.mrb[16].mxu1 %v7887_v17  ;;  %v8102_v15 = vld [vmem:[#allocation8 + $0x678] sm:$0xff]  ;;  %v8101_v17 = vld [vmem:[#allocation8 + $0x670] sm:$0xff] }
 0x60f   : > { %v16466_v33 = vmax.f32 %v16239_v43, %v7801_v29  ;;  %8358 = vmatmul.mubr.f32.vlgmr.msra.gmra.mrb[16].mxu0 %v7891_v58  ;;  %vm18382_vm15 = vnez %v18381_v26  ;;  %vm18384_vm14 = vnez %v18383_v4  ;;  %vm18386_vm7 = vcmp.lt.s32.totalorder %v11681_v35, 111  ;;  %v7973_v29 = vld [vmem:[#allocation8 + $0x270] sm:$0xff]  ;;  %v7976_v58 = vld [vmem:[#allocation8 + $0x288] sm:$0xff] }
 0x610   : > { %v7802_v53 = vsel %vm18382_vm15, %v7794_v10, -inf  ;;  %v7806_v6 = vsel %vm18384_vm14, %v7798_v28, -inf  ;;  %v7870_v7 = vsel %vm18386_vm7, %v10919_v5, %v18385_v61  ;;  %v18387_v40 = vunpack.i.h.bf16 %v16361_v36  ;;  %vm18388_vm1 = vmmov %vm18386_vm7  ;;  %v8097_v28 = vld [vmem:[#allocation8 + $0x650] sm:$0xff]  ;;  %v18403_v10 = vld [vmem:[#allocation34_spill] sm:$0xff] }
 0x611   : > { %vm18389_vm12 = vmmov %vm18388_vm1  ;;  %v18390_v34 = vunpack.i.h.bf16 %v16291_v46  ;;  %v18392_v1 = vpack.c.bf16 %v16321_v2, %v16317_v21  ;;  %vm18393_vm2 = vnez %v18179_v20  ;;  %vm18394_vm13 = vnez %v18176_v47  ;;  %v7969_v2 = vld [vmem:[#allocation8 + $0x250] sm:$0xff]  ;;  %v8095_v20 = vld [vmem:[#allocation8 + $0x640] sm:$0xff] }
 0x612   : > { %v7863_v43 = vsel %vm18388_vm1, %v18387_v40, %v10919_v5  ;;  %v7866_v38 = vsel %vm18389_vm12, %v10918_v18, %v10904_v52  ;;  %vm18391_vm10 = vmmov %vm18388_vm1  ;;  %v7878_v45 = vsel %vm18393_vm2, %v7870_v7, -inf  ;;  %vm18396_vm11 = vnez %v18395_v55  ;;  %v7978_v5 = vld [vmem:[#allocation8 + $0x298] sm:$0xff]  ;;  %v7977_v26 = vld [vmem:[#allocation8 + $0x290] sm:$0xff] }
 0x613   : > { %v7867_v9 = vsel %vm18391_vm10, %v18390_v34, %v10918_v18  ;;  %9306 = vmatpush1.bf16.msra.mxu1 %v18392_v1  ;;  %v7874_v11 = vsel %vm18396_vm11, %v7866_v38, -inf  ;;  %v7877_v46 = vsel %vm18195_vm5, %v7863_v43, -inf  ;;  %v18398_v35 = vpack.c.bf16 %v16325_v32, %v16323_v13  ;;  %v7972_v13 = vld [vmem:[#allocation8 + $0x268] sm:$0xff]  ;;  %v7974_v32 = vld [vmem:[#allocation8 + $0x278] sm:$0xff]  ;;  %v7979_v34 = vld [vmem:[#allocation8 + $0x2a0] sm:$0xff] }
 0x614   : > { %v7873_v36 = vsel %vm18394_vm13, %v7867_v9, -inf  ;;  %v18399_v21 = vpack.c.bf16 %v16330_v54, %v16328_v57  ;;  %v16508_v47 = vmax.f32 %v7845_v30, %v7877_v46  ;;  %v18400_v51 = vpack.c.bf16 %v16334_v59, %v16332_v23  ;;  %v8100_v54 = vld [vmem:[#allocation8 + $0x668] sm:$0xff]  ;;  %v18402_v59 = vld [vmem:[#allocation30_spill] sm:$0xff]  ;;  %v7981_v9 = vld [vmem:[#allocation8 + $0x2b0] sm:$0xff] }
 0x615   : > { %9434 = vmatpush1.bf16.msra.mxu0 %v18398_v35  ;;  %v16506_v44 = vmax.f32 %v7841_v14, %v7873_v36  ;;  %v7810_v39 = vmax.f32 %v16241_v49, %v7802_v53  ;;  %v7882_v62 = vmax.f32 %v7842_v50, %v7874_v11  ;;  %v7814_v12 = vmax.f32 %v16261_v16, %v7806_v6  ;;  %v8104_v18 = vld [vmem:[#allocation8 + $0x688] sm:$0xff]  ;;  %v8106_v50 = vld [vmem:[#allocation8 + $0x698] sm:$0xff]  ;;  %v8103_v53 = vld [vmem:[#allocation8 + $0x680] sm:$0xff] }
 0x616   : > { %9308 = vmatprep.subr.bf16.mxu1 %v18399_v21  ;;  %9436 = vmatprep.subr.bf16.mxu0 %v18400_v51  ;;  %v7886_v57 = vmax.f32 %v7846_v56, %v7878_v45  ;;  %v18401_v14 = vpack.c.bf16 %v16338_v3, %v16336_v22  ;;  %v9313_v30 = vpack.c.bf16 %v7969_v2, %v7967_v42  ;;  %v7971_v3 = vld [vmem:[#allocation8 + $0x260] sm:$0xff]  ;;  %v7980_v4 = vld [vmem:[#allocation8 + $0x2a8] sm:$0xff]  ;;  %v7982_v6 = vld [vmem:[#allocation8 + $0x2b8] sm:$0xff] }
 0x617   : > { %v7890_v63 = vmax.f32 %v7810_v39, %v7882_v62  ;;  %v7889_v23 = vmax.f32 %v16466_v33, %v16506_v44  ;;  %v7893_v49 = vmax.f32 %v16469_v60, %v16508_v47  ;;  %v18404_v8 = vpack.c.bf16 %v18402_v59, %v18403_v10  ;;  %v7975_v56 = vld [vmem:[#allocation8 + $0x280] sm:$0xff]  ;;  %v8108_v61 = vld [vmem:[#allocation8 + $0x6a8] sm:$0xff]  ;;  %v8110_v7 = vld [vmem:[#allocation8 + $0x6b8] sm:$0xff] }
 0x618   : > { %9310 = vmatpush1.bf16.msra.mxu1 %v18401_v14  ;;  %v9441_v16 = vpack.c.bf16 %v8097_v28, %v8095_v20  ;;  %v7894_v0 = vmax.f32 %v7814_v12, %v7886_v57  ;;  %v9315_v22 = vpack.c.bf16 %v7974_v32, %v7972_v13  ;;  %v18405_v37 = vpack.c.bf16 %v16383_v19, %v16381_v27  ;;  %v8105_v19 = vld [vmem:[#allocation8 + $0x690] sm:$0xff]  ;;  %v8107_v1 = vld [vmem:[#allocation8 + $0x6a0] sm:$0xff]  ;;  %v7984_v36 = vld [vmem:[#allocation8 + $0x2c8] sm:$0xff] }
 0x619   : > { %9438 = vmatpush1.bf16.msra.mxu0 %v18404_v8  ;;  %9312 = vmatprep.subr.bf16.mxu1 %v9311_v25  ;;  %v9443_v31 = vpack.c.bf16 %v8102_v15, %v8100_v54  ;;  %v9317_v41 = vpack.c.bf16 %v7973_v29, %v7971_v3  ;;  %v9445_v25 = vpack.c.bf16 %v8101_v17, %v8099_v48  ;;  %v8109_v45 = vld [vmem:[#allocation8 + $0x6b0] sm:$0xff]  ;;  %v7986_v55 = vld [vmem:[#allocation8 + $0x2d8] sm:$0xff]  ;;  %v8112_v11 = vld [vmem:[#allocation8 + $0x6c8] sm:$0xff] }
 0x61a   : > { %9440 = vmatprep.subr.bf16.mxu0 %v18405_v37  ;;  %8286 = vmatprep.mubr.f32.mxu1 %v7890_v63  ;;  %v9319_v24 = vpack.c.bf16 %v7978_v5, %v7976_v58  ;;  %v9447_v27 = vpack.c.bf16 %v8106_v50, %v8104_v18  ;;  %v9321_v40 = vpack.c.bf16 %v7977_v26, %v7975_v56  ;;  %v8114_v52 = vld [vmem:[#allocation8 + $0x6d8] sm:$0xff]  ;;  %v7983_v2 = vld [vmem:[#allocation8 + $0x2c0] sm:$0xff]  ;;  %v7985_v20 = vld [vmem:[#allocation8 + $0x2d0] sm:$0xff] }
 0x61b   : > { %8428 = vmatprep.mubr.f32.mxu0 %v7894_v0  ;;  %v9449_v43 = vpack.c.bf16 %v8105_v19, %v8103_v53  ;;  %v9323_v38 = vpack.c.bf16 %v7982_v6, %v7980_v4  ;;  %v9451_v42 = vpack.c.bf16 %v8110_v7, %v8108_v61  ;;  %v9325_v46 = vpack.c.bf16 %v7981_v9, %v7979_v34  ;;  %v8111_v51 = vld [vmem:[#allocation8 + $0x6c0] sm:$0xff]  ;;  %v8113_v62 = vld [vmem:[#allocation8 + $0x6d0] sm:$0xff]  ;;  %v7988_v28 = vld [vmem:[#allocation8 + $0x2e8] sm:$0xff] }
 0x61c   : > { %9314 = vmatpush1.bf16.msra.mxu1 %v9313_v30  ;;  %v9453_v35 = vpack.c.bf16 %v8109_v45, %v8107_v1  ;;  %v9327_v21 = vpack.c.bf16 %v7986_v55, %v7984_v36  ;;  %v9455_v39 = vpack.c.bf16 %v8114_v52, %v8112_v11  ;;  %v7990_v13 = vld [vmem:[#allocation8 + $0x2f8] sm:$0xff]  ;;  %v8116_v32 = vld [vmem:[#allocation8 + $0x6e8] sm:$0xff]  ;;  %v9329_v57 = vpack.c.bf16 %v7985_v20, %v7983_v2  ;;  %v7987_v14 = vld [vmem:[#allocation8 + $0x2e0] sm:$0xff] }
 0x61d   : > { %9442 = vmatpush1.bf16.msra.mxu0 %v9441_v16  ;;  %9316 = vmatprep.subr.bf16.mxu1 %v9315_v22  ;;  %v8118_v12 = vld [vmem:[#allocation8 + $0x6f8] sm:$0xff]  ;;  %v9457_v54 = vpack.c.bf16 %v8113_v62, %v8111_v51  ;;  %v9331_v15 = vpack.c.bf16 %v7990_v13, %v7988_v28  ;;  %v7989_v30 = vld [vmem:[#allocation8 + $0x2f0] sm:$0xff]  ;;  %v8115_v63 = vld [vmem:[#allocation8 + $0x6e0] sm:$0xff] }
 0x61e   : > { %9444 = vmatprep.subr.bf16.mxu0 %v9443_v31  ;;  %v9459_v59 = vpack.c.bf16 %v8118_v12, %v8116_v32  ;;  %v8117_v10 = vld [vmem:[#allocation8 + $0x6f0] sm:$0xff]  ;;  %v7992_v8 = vld [vmem:[#allocation8 + $0x308] sm:$0xff]  ;;  %v7994_v16 = vld [vmem:[#allocation8 + $0x318] sm:$0xff]  ;;  %v9333_v3 = vpack.c.bf16 %v7989_v30, %v7987_v14 }
 0x61f   : > { %v8120_v0 = vld [vmem:[#allocation8 + $0x708] sm:$0xff]  ;;  %v8122_v22 = vld [vmem:[#allocation8 + $0x718] sm:$0xff]  ;;  %v9461_v29 = vpack.c.bf16 %v8117_v10, %v8115_v63  ;;  %v9335_v48 = vpack.c.bf16 %v7994_v16, %v7992_v8  ;;  %v7991_v37 = vld [vmem:[#allocation8 + $0x300] sm:$0xff] }
 0x620   : > { %9318 = vmatpush1.bf16.msra.mxu1 %v9317_v41  ;;  %v7993_v31 = vld [vmem:[#allocation8 + $0x310] sm:$0xff]  ;;  %v8119_v17 = vld [vmem:[#allocation8 + $0x700] sm:$0xff]  ;;  %v9463_v58 = vpack.c.bf16 %v8122_v22, %v8120_v0  ;;  %v7996_v18 = vld [vmem:[#allocation8 + $0x328] sm:$0xff] }
 0x621   : > { %9446 = vmatpush1.bf16.msra.mxu0 %v9445_v25  ;;  %9320 = vmatprep.subr.bf16.mxu1 %v9319_v24  ;;  %v8121_v5 = vld [vmem:[#allocation8 + $0x710] sm:$0xff]  ;;  %v7998_v50 = vld [vmem:[#allocation8 + $0x338] sm:$0xff]  ;;  %v8124_v41 = vld [vmem:[#allocation8 + $0x728] sm:$0xff]  ;;  %v9337_v24 = vpack.c.bf16 %v7993_v31, %v7991_v37 }
 0x622   : > { %9448 = vmatprep.subr.bf16.mxu0 %v9447_v27  ;;  %v8126_v25 = vld [vmem:[#allocation8 + $0x738] sm:$0xff]  ;;  %v9465_v56 = vpack.c.bf16 %v8121_v5, %v8119_v17  ;;  %v9339_v26 = vpack.c.bf16 %v7998_v50, %v7996_v18  ;;  %v7995_v53 = vld [vmem:[#allocation8 + $0x320] sm:$0xff]  ;;  %v7997_v27 = vld [vmem:[#allocation8 + $0x330] sm:$0xff] }
 0x623   : > { %v8123_v19 = vld [vmem:[#allocation8 + $0x720] sm:$0xff]  ;;  %v9467_v4 = vpack.c.bf16 %v8126_v25, %v8124_v41  ;;  %v8125_v6 = vld [vmem:[#allocation8 + $0x730] sm:$0xff]  ;;  %v8000_v61 = vld [vmem:[#allocation8 + $0x348] sm:$0xff] }
 0x624   : > { %9322 = vmatpush1.bf16.msra.mxu1 %v9321_v40  ;;  %v8002_v7 = vld [vmem:[#allocation8 + $0x358] sm:$0xff]  ;;  %v8128_v40 = vld [vmem:[#allocation8 + $0x748] sm:$0xff]  ;;  %v9469_v34 = vpack.c.bf16 %v8125_v6, %v8123_v19  ;;  %v7999_v1 = vld [vmem:[#allocation8 + $0x340] sm:$0xff] }
 0x625   : > { %9450 = vmatpush1.bf16.msra.mxu0 %v9449_v43  ;;  %9324 = vmatprep.subr.bf16.mxu1 %v9323_v38  ;;  %v8130_v43 = vld [vmem:[#allocation8 + $0x758] sm:$0xff]  ;;  %v9341_v38 = vpack.c.bf16 %v7997_v27, %v7995_v53  ;;  %v9343_v9 = vpack.c.bf16 %v8002_v7, %v8000_v61  ;;  %v8127_v45 = vld [vmem:[#allocation8 + $0x740] sm:$0xff]  ;;  %v8129_v55 = vld [vmem:[#allocation8 + $0x750] sm:$0xff] }
 0x626   : > { %9452 = vmatprep.subr.bf16.mxu0 %v9451_v42  ;;  %v8001_v42 = vld [vmem:[#allocation8 + $0x350] sm:$0xff]  ;;  %v9471_v36 = vpack.c.bf16 %v8130_v43, %v8128_v40  ;;  %v8004_v11 = vld [vmem:[#allocation8 + $0x368] sm:$0xff]  ;;  %v8006_v52 = vld [vmem:[#allocation8 + $0x378] sm:$0xff]  ;;  %v9473_v2 = vpack.c.bf16 %v8129_v55, %v8127_v45 }
 0x627   : > { %v9347_v20 = vpack.c.bf16 %v8006_v52, %v8004_v11  ;;  %v8003_v51 = vld [vmem:[#allocation8 + $0x360] sm:$0xff]  ;;  %v8133_v13 = vld [vmem:[#allocation8 + $0x770] sm:$0xff]  ;;  %v8008_v32 = vld [vmem:[#allocation8 + $0x388] sm:$0xff] }
 0x628   : > { %9326 = vmatpush1.bf16.msra.mxu1 %v9325_v46  ;;  %v8132_v46 = vld [vmem:[#allocation8 + $0x768] sm:$0xff]  ;;  %v8131_v62 = vld [vmem:[#allocation8 + $0x760] sm:$0xff]  ;;  %v8010_v12 = vld [vmem:[#allocation8 + $0x398] sm:$0xff] }
 0x629   : > { %9454 = vmatpush1.bf16.msra.mxu0 %v9453_v35  ;;  %9328 = vmatprep.subr.bf16.mxu1 %v9327_v21  ;;  %v8134_v35 = vld [vmem:[#allocation8 + $0x778] sm:$0xff]  ;;  %v9345_v21 = vpack.c.bf16 %v8001_v42, %v7999_v1  ;;  %v9477_v14 = vpack.c.bf16 %v8133_v13, %v8131_v62  ;;  %v9351_v30 = vpack.c.bf16 %v8010_v12, %v8008_v32  ;;  %v8007_v63 = vld [vmem:[#allocation8 + $0x380] sm:$0xff]  ;;  %v8137_v16 = vld [vmem:[#allocation8 + $0x790] sm:$0xff] }
 0x62a   : > { %9456 = vmatprep.subr.bf16.mxu0 %v9455_v39  ;;  %v8005_v39 = vld [vmem:[#allocation8 + $0x370] sm:$0xff]  ;;  %v9475_v28 = vpack.c.bf16 %v8134_v35, %v8132_v46  ;;  %v8135_v10 = vld [vmem:[#allocation8 + $0x780] sm:$0xff]  ;;  %v8012_v0 = vld [vmem:[#allocation8 + $0x3a8] sm:$0xff] }
 0x62b   : > { %v8014_v22 = vld [vmem:[#allocation8 + $0x3b8] sm:$0xff]  ;;  %v9481_v37 = vpack.c.bf16 %v8137_v16, %v8135_v10  ;;  %v8011_v17 = vld [vmem:[#allocation8 + $0x3a0] sm:$0xff]  ;;  %v8141_v50 = vld [vmem:[#allocation8 + $0x7b0] sm:$0xff] }
 0x62c   : > { %9330 = vmatpush1.bf16.msra.mxu1 %v9329_v57  ;;  %v8136_v57 = vld [vmem:[#allocation8 + $0x788] sm:$0xff]  ;;  %v9355_v31 = vpack.c.bf16 %v8014_v22, %v8012_v0  ;;  %v8139_v5 = vld [vmem:[#allocation8 + $0x7a0] sm:$0xff]  ;;  %v8018_v25 = vld [vmem:[#allocation8 + $0x3d8] sm:$0xff] }
 0x62d   : > { %9458 = vmatpush1.bf16.msra.mxu0 %v9457_v54  ;;  %9332 = vmatprep.subr.bf16.mxu1 %v9331_v15  ;;  %v8138_v54 = vld [vmem:[#allocation8 + $0x798] sm:$0xff]  ;;  %v9349_v15 = vpack.c.bf16 %v8005_v39, %v8003_v51  ;;  %v8016_v41 = vld [vmem:[#allocation8 + $0x3c8] sm:$0xff]  ;;  %v9485_v53 = vpack.c.bf16 %v8141_v50, %v8139_v5  ;;  %v8015_v19 = vld [vmem:[#allocation8 + $0x3c0] sm:$0xff] }
 0x62e   : > { %9460 = vmatprep.subr.bf16.mxu0 %v9459_v59  ;;  %v8009_v59 = vld [vmem:[#allocation8 + $0x390] sm:$0xff]  ;;  %v9479_v8 = vpack.c.bf16 %v8138_v54, %v8136_v57  ;;  %v9359_v27 = vpack.c.bf16 %v8018_v25, %v8016_v41  ;;  %v8143_v6 = vld [vmem:[#allocation8 + $0x7c0] sm:$0xff]  ;;  %v8020_v40 = vld [vmem:[#allocation8 + $0x3e8] sm:$0xff] }
 0x62f   : > { %v8145_v7 = vld [vmem:[#allocation8 + $0x7d0] sm:$0xff]  ;;  %v8022_v43 = vld [vmem:[#allocation8 + $0x3f8] sm:$0xff]  ;;  %v8019_v45 = vld [vmem:[#allocation8 + $0x3e0] sm:$0xff] }
 0x630   : > { %9334 = vmatpush1.bf16.msra.mxu1 %v9333_v3  ;;  %v8140_v3 = vld [vmem:[#allocation8 + $0x7a8] sm:$0xff]  ;;  %v9489_v1 = vpack.c.bf16 %v8145_v7, %v8143_v6  ;;  %v9363_v42 = vpack.c.bf16 %v8022_v43, %v8020_v40  ;;  %v8147_v11 = vld [vmem:[#allocation8 + $0x7e0] sm:$0xff]  ;;  %v8149_v52 = vld [vmem:[#allocation8 + $0x7f0] sm:$0xff] }
 0x631   : > { %9462 = vmatpush1.bf16.msra.mxu0 %v9461_v29  ;;  %9336 = vmatprep.subr.bf16.mxu1 %v9335_v48  ;;  %v8142_v29 = vld [vmem:[#allocation8 + $0x7b8] sm:$0xff]  ;;  %v9353_v48 = vpack.c.bf16 %v8009_v59, %v8007_v63  ;;  %v9493_v35 = vpack.c.bf16 %v8149_v52, %v8147_v11 }
 0x632   : > { %9464 = vmatprep.subr.bf16.mxu0 %v9463_v58  ;;  %v8013_v58 = vld [vmem:[#allocation8 + $0x3b0] sm:$0xff]  ;;  %v9483_v18 = vpack.c.bf16 %v8142_v29, %v8140_v3 }
 0x634   : > { %9338 = vmatpush1.bf16.msra.mxu1 %v9337_v24  ;;  %v8144_v24 = vld [vmem:[#allocation8 + $0x7c8] sm:$0xff] }
 0x635   : > { %9466 = vmatpush1.bf16.msra.mxu0 %v9465_v56  ;;  %9340 = vmatprep.subr.bf16.mxu1 %v9339_v26  ;;  %v8146_v56 = vld [vmem:[#allocation8 + $0x7d8] sm:$0xff]  ;;  %v9357_v26 = vpack.c.bf16 %v8013_v58, %v8011_v17 }
 0x636   : > { %9468 = vmatprep.subr.bf16.mxu0 %v9467_v4  ;;  %v8017_v4 = vld [vmem:[#allocation8 + $0x3d0] sm:$0xff]  ;;  %v9487_v61 = vpack.c.bf16 %v8146_v56, %v8144_v24 }
 0x638   : > { %9342 = vmatpush1.bf16.msra.mxu1 %v9341_v38  ;;  %v8148_v38 = vld [vmem:[#allocation8 + $0x7e8] sm:$0xff] }
 0x639   : > { %9470 = vmatpush1.bf16.msra.mxu0 %v9469_v34  ;;  %9344 = vmatprep.subr.bf16.mxu1 %v9343_v9  ;;  %v8150_v34 = vld [vmem:[#allocation8 + $0x7f8] sm:$0xff]  ;;  %v9361_v9 = vpack.c.bf16 %v8017_v4, %v8015_v19 }
 0x63a   : > { %9472 = vmatprep.subr.bf16.mxu0 %v9471_v36  ;;  %v8021_v36 = vld [vmem:[#allocation8 + $0x3f0] sm:$0xff]  ;;  %v9491_v55 = vpack.c.bf16 %v8150_v34, %v8148_v38 }
 0x63b   : > { %v9365_v46 = vpack.c.bf16 %v8021_v36, %v8019_v45 }
 0x63c   : > { %9346 = vmatpush1.bf16.msra.mxu1 %v9345_v21 }
 0x63d   : > { %9474 = vmatpush1.bf16.msra.mxu0 %v9473_v2  ;;  %9348 = vmatprep.subr.bf16.mxu1 %v9347_v20 }
 0x63e   : > { %9476 = vmatprep.subr.bf16.mxu0 %v9475_v28 }
 0x640   : > { %9350 = vmatpush1.bf16.msra.mxu1 %v9349_v15 }
 0x641   : > { %9478 = vmatpush1.bf16.msra.mxu0 %v9477_v14  ;;  %9352 = vmatprep.subr.bf16.mxu1 %v9351_v30 }
 0x642   : > { %9480 = vmatprep.subr.bf16.mxu0 %v9479_v8 }
 0x644   : > { %9354 = vmatpush1.bf16.msra.mxu1 %v9353_v48 }
 0x645   : > { %9482 = vmatpush1.bf16.msra.mxu0 %v9481_v37  ;;  %9356 = vmatprep.subr.bf16.mxu1 %v9355_v31 }
 0x646   : > { %9484 = vmatprep.subr.bf16.mxu0 %v9483_v18 }
 0x648   : > { %9358 = vmatpush1.bf16.msra.mxu1 %v9357_v26 }
 0x649   : > { %9486 = vmatpush1.bf16.msra.mxu0 %v9485_v53  ;;  %9360 = vmatprep.subr.bf16.mxu1 %v9359_v27 }
 0x64a   : > { %9488 = vmatprep.subr.bf16.mxu0 %v9487_v61 }
 0x64c   : > { %9362 = vmatpush1.bf16.msra.mxu1 %v9361_v9 }
 0x64d   : > { %9490 = vmatpush1.bf16.msra.mxu0 %v9489_v1  ;;  %9364 = vmatprep.subr.bf16.mxu1 %v9363_v42 }
 0x64e   : > { %9492 = vmatprep.subr.bf16.mxu0 %v9491_v55 }
 0x650   : > { %9366 = vmatpush1.bf16.msra.mxu1 %v9365_v46 }
 0x651   : > { %9494 = vmatpush1.bf16.msra.mxu0 %v9493_v35 }
 0x653   : > { %8287 = vmatmul.mubr.f32.vlgmr.msra.gmra.mrb[16].mxu1 %v7889_v23 }
 0x654   : > { %8429 = vmatmul.mubr.f32.vlgmr.msra.gmra.mrb[16].mxu0 %v7893_v49 }
 0x726   : > { %v8288_v21 = vpop.f32.mrb[16].mxu1 }
 0x727   : > { %v8430_v2 = vpop.f32.mrb[16].mxu0  ;;  %v8290_v20 = vpop.f32.mrb[17].mxu1 }
 0x728   : > { %v9495_v51 = vadd.f32 %v8430_v2, %v8288_v21  ;;  %v8432_v39 = vpop.f32.mrb[17].mxu0 }
 0x729   : > { %v9496_v62 = vadd.f32 %v8432_v39, %v8290_v20 }
 0x72a   : > { %8435 = vst [vmem:[%s367_s22] sm:$0xff] %v9495_v51 }
 0x72b   : > { %8436 = vst [vmem:[%s367_s22 + $0x8] sm:$0xff] %v9496_v62 }
 0x72c   : > { %11122 = shalt.err (!%p11119_p12)
}
 0x72d   : > { %s11123_s24 = scalar_lea.hbm %s16542_s13, 256  ;;  %s11127_s16 = scalar_lea.hbm %s18406_s26, 512 }
 0x72e   : > { %p11124_p3 = scmp.ne.s32.totalorder %s16542_s13, %s11123_s24  ;;  %p11128_p13 = scmp.lt.u32.totalorder %s16542_s13, %s18406_s26 }
 0x72f   : > { %p11129_p7 = scmp.lt.u32.totalorder %s11127_s16, %s11123_s24  ;;  %p11131_p10 = scmp.lt.u32.totalorder %s11123_s24, %s16542_s13 }
 0x730   : > { %p11125_p6 = pnand %p11124_p3, %p18407_p1 }
 0x731   : > { %p11130_p9 = por %p11129_p7, %p11128_p13 }
 0x732   : > { %p11126_p8 = pneg %p11125_p6 }
 0x733   : > { %p11132_p4 = por %p11131_p10, %p11130_p9 }
 0x735   : > { %p11133_p0 = pnand %p11132_p4, %p11126_p8 }
 0x737   : > { %11136 = shalt.err (!%p11133_p0)
}
 0x738   : > { %9899 = dma.vmem_to_hbm [thread:$0]  (%p18407_p1), %s16544_s27, 256, %s16542_s13, %s8438_s9  }
 0x739 PF: > { %s18408_s10 = sld [smem:[#allocation15_spill]]  ;;  %s18409_s14 = sld [smem:[#allocation18_spill]] }
 0x73a   : > { %p18411_p5 = scmp.ge.s32.totalorder %s11183_s30, 2 }
 0x73f   : > { %s8464_s15 = sand.u32 1, %s18408_s10   ;;  %p18410_p2 = scmp.ne.s32.totalorder %s18409_s14, 0 }
 0x740   : > { %s8465_s22 = scalar_lea.sflag [#allocation4], %s8464_s15 }
 0x741   : > { %p9916_p11 = pnand %p18411_p5, %p18410_p2 }
 0x743   : > { %11166 = dma.done.wait (!%p9916_p11), %s8465_s22, 256  }
 0x744   : > { %11168 = vsyncadd (!%p9916_p11), %s8465_s22, 4294967040  ;;  %s18412_s30 = sld [smem:[#allocation16_spill]]  ;;  %s18413_s20 = sld [smem:[#allocation17_spill]] }
 0x745   : > { %s18414_s27 = smov %s11175_s28  ;;  %s18415_s28 = smov %s11179_s29 }
 0x74a   : > { %p23_p12 = scmp.ge.s32.totalorder %s18412_s30, 4   ;;  %s18416_s29 = smov %s18413_s20 }
 0x74c   :  { %25 = sbr.rel (!%p23_p12) target bundleno = 10 (0xa), region = 133 }
 0x753   :  { %8470 = vsyncpa [#allocation3], 1 }
 0x754   :  { %8472 = vsyncpa [#allocation3 + $0x1], 1 }
 0x755   :  { %8473 = vsyncpa [#allocation6], 1 }
 0x756   :  { %8474 = vsyncpa [#allocation9], 1 }
 0x757   :  { %8475 = vsyncpa [#allocation4], 1 }
 0x758   :  { %8477 = vsyncpa [#allocation4 + $0x1], 1 }

</bundles_post_ra>
